<compile_context>
chip_gen: v5e
topology: v5e:2x2
jax: 0.10.0
libtpu: 0.0.40
codegen_flags: <defaults>
</compile_context>

<pallas_src>
import functools

import jax
import jax.numpy as jnp
from jax import lax
from jax.experimental import pallas as pl
from jax.experimental.pallas import tpu as pltpu

LANE = 128


def _round_up(v, m):
    return (v + m - 1) // m * m


# ---------------------------------------------------------------------------
# Fused ResBlock kernel: one grid step == one image.
# ---------------------------------------------------------------------------
def _resblock_kernel(*refs, hd, wp, w_sp, k, ks, base1, base2, base_s, off,
                     halo_hi, has_proj):
    if has_proj:
        x_ref, w1_ref, w2_ref, ws_ref, b1_ref, b2_ref, o_ref, y1_ref = refs
    else:
        x_ref, w1_ref, w2_ref, b1_ref, b2_ref, o_ref, y1_ref = refs
        ws_ref = None
    cp = o_ref.shape[-1]

    def conv_acc(src_ref, w_ref, kc, base, acc=None):
        # stride-1 "same" conv as implicit GEMM: each tap is a contiguous
        # row-window of the flat padded activation feeding one MXU matmul.
        for ki in range(kc):
            for kj in range(kc):
                d = base + ki * wp + kj            # static offset
                t = jnp.dot(src_ref[pl.ds(d, hd), :], w_ref[ki * kc + kj],
                            preferred_element_type=jnp.float32)
                acc = t if acc is None else acc + t
        return acc

    # Zero only the scratch halo rows (O(pad*wp) rows, not the whole scratch).
    if off > 0:
        y1_ref[pl.ds(0, off), :] = jnp.zeros((off, cp), y1_ref.dtype)
    if halo_hi > 0:
        y1_ref[pl.ds(off + hd, halo_hi), :] = jnp.zeros((halo_hi, cp),
                                                        y1_ref.dtype)

    # conv1 -> BN1 (scale folded into w1) -> ReLU.  Wrap-around padding
    # columns are zeroed via an in-kernel iota mask fused into the bf16 store.
    keep = lax.broadcasted_iota(jnp.int32, (hd, cp), 0) % wp < w_sp
    y1 = jnp.maximum(conv_acc(x_ref, w1_ref, k, base1) + b1_ref[...], 0.0)
    y1_ref[pl.ds(off, hd), :] = jnp.where(keep, y1, 0.0).astype(y1_ref.dtype)

    # Shortcut initialises the single f32 accumulator; conv2 chains onto it.
    if has_proj:
        acc = conv_acc(x_ref, ws_ref, ks, base_s)                # 1x1 proj+BN
    else:
        acc = x_ref[pl.ds(base_s, hd), :].astype(jnp.float32)    # identity
    acc = conv_acc(y1_ref, w2_ref, k, base2, acc)

    # BN biases pre-summed, residual-fused ReLU, single lane-dense bf16 store.
    o_ref[...] = jnp.maximum(acc + b2_ref[...], 0.0).astype(o_ref.dtype)


# ---------------------------------------------------------------------------
# Wrapper: BN folding, channel/spatial padding, pallas_call plumbing.
# ---------------------------------------------------------------------------
def _bn_fold(gamma, beta, mean, var, eps=1e-5):
    scale = gamma / jnp.sqrt(var + eps)
    return scale, beta - mean * scale


def _taps_bf16(w_oihw, scale, cin_p, cout_p):
    # (Cout, Cin, kh, kw) * scale[Cout] -> (kh*kw, Cin_p, Cout_p) bf16,
    # channel-padded so every per-tap matmul is lane/sublane aligned.
    cout, cin, kh, kw = w_oihw.shape
    w = w_oihw * scale[:, None, None, None]
    w = jnp.transpose(w, (2, 3, 1, 0)).reshape(kh * kw, cin, cout)
    w = jnp.pad(w, ((0, 0), (0, cin_p - cin), (0, cout_p - cout)))
    return w.astype(jnp.bfloat16)


def resblock_forward(x_nchw, params, stride=1):
    if stride != 1:
        # TODO(synk): strided conv needs a strided-window implicit GEMM.
        raise NotImplementedError("fused ResBlock kernel supports stride=1")

    w1, w2 = params["w1"], params["w2"]
    cout, cin, k, _ = w1.shape
    n, _, h, w_sp = x_nchw.shape
    has_proj = (stride != 1) or (cin != cout)
    ks = int(params["ws"].shape[2]) if has_proj else 1

    p1, ps = k // 2, (ks - 1) // 2
    pmax = max(p1, ps)
    wp = w_sp + 2 * pmax                       # padded row width
    hd = h * wp                                # dense output rows per image
    rx = (h + 2 * pmax + 1) * wp               # flat padded-input rows
    cin_p = _round_up(cin, LANE)
    cp = _round_up(cout, LANE)

    off = _round_up(pmax * (wp + 1), 16)       # sublane-aligned y1 placement
    r_scr = _round_up(off + p1 * (wp + 1) + hd, 8)
    halo_hi = r_scr - off - hd
    base1 = (pmax - p1) * (wp + 1)             # conv1 tap base on x
    base_s = (pmax - ps) * (wp + 1)            # shortcut base on x
    base2 = off - p1 * (wp + 1)                # conv2 tap base on y1 scratch

    # activations: NCHW -> NHWC, bf16 BEFORE padding, channel pad to 128,
    # spatial zero pad, flatten to (pixels, channels).
    x = jnp.transpose(x_nchw, (0, 2, 3, 1)).astype(jnp.bfloat16)
    x = jnp.pad(x, ((0, 0), (pmax, pmax + 1), (pmax, pmax),
                    (0, cin_p - cin)))
    x_flat = x.reshape(n, rx, cin_p)

    # fold BN scales into the weights; biases stay as epilogue adds.
    s1, b1 = _bn_fold(params["bn1_gamma"], params["bn1_beta"],
                      params["bn1_mean"], params["bn1_var"])
    s2, b2 = _bn_fold(params["bn2_gamma"], params["bn2_beta"],
                      params["bn2_mean"], params["bn2_var"])
    w1t = _taps_bf16(w1, s1, cin_p, cp)
    w2t = _taps_bf16(w2, s2, cp, cp)

    inputs = [x_flat, w1t, w2t]
    in_specs = [
        pl.BlockSpec((None, rx, cin_p), lambda i: (i, 0, 0)),
        pl.BlockSpec((k * k, cin_p, cp), lambda i: (0, 0, 0)),
        pl.BlockSpec((k * k, cp, cp), lambda i: (0, 0, 0)),
    ]
    if has_proj:
        ss, bs = _bn_fold(params["bns_gamma"], params["bns_beta"],
                          params["bns_mean"], params["bns_var"])
        wst = _taps_bf16(params["ws"], ss, cin_p, cp)
        inputs.append(wst)
        in_specs.append(pl.BlockSpec((ks * ks, cin_p, cp),
                                     lambda i: (0, 0, 0)))
        b_last = b2 + bs
        ws_bytes = ks * ks * cin_p * cp * 2
    else:
        b_last = b2                            # identity shortcut: direct add
        ws_bytes = 0
    b1v = jnp.pad(b1, (0, cp - cout)).reshape(1, cp).astype(jnp.float32)
    b2v = jnp.pad(b_last, (0, cp - cout)).reshape(1, cp).astype(jnp.float32)
    inputs += [b1v, b2v]
    in_specs += [pl.BlockSpec((1, cp), lambda i: (0, 0)),
                 pl.BlockSpec((1, cp), lambda i: (0, 0))]

    # Explicit VMEM budget: 2x x / 2x bf16 out double buffers, y1 scratch,
    # 2x weights (constants still double-buffered), biases; + headroom.
    w_bytes = (k * k * cin_p * cp + k * k * cp * cp) * 2 + ws_bytes
    est = (2 * rx * cin_p * 2 + 2 * hd * cp * 2 + r_scr * cp * 2
           + 2 * w_bytes + 2 * 2 * cp * 4)
    vmem_limit = int(min(64 * 2 ** 20, 2 * est + 16 * 2 ** 20))

    kernel = functools.partial(
        _resblock_kernel, hd=hd, wp=wp, w_sp=w_sp, k=k, ks=ks, base1=base1,
        base2=base2, base_s=base_s, off=off, halo_hi=halo_hi,
        has_proj=has_proj)

    out_flat = pl.pallas_call(
        kernel,
        out_shape=jax.ShapeDtypeStruct((n, hd, cp), jnp.bfloat16),
        grid_spec=pltpu.PrefetchScalarGridSpec(
            num_scalar_prefetch=0,
            grid=(n,),
            in_specs=in_specs,
            out_specs=pl.BlockSpec((None, hd, cp), lambda i: (i, 0, 0)),
            scratch_shapes=[pltpu.VMEM((r_scr, cp), jnp.bfloat16)],
        ),
        compiler_params=pltpu.CompilerParams(
            dimension_semantics=("parallel",),
            vmem_limit_bytes=vmem_limit),
    )(*inputs)

    # TODO(synk): downstream consumers could keep the NHWC bf16 result; we
    # restore f32 NCHW here for parity with the PyTorch module interface.
    out = out_flat.reshape(n, h, wp, cp)[:, :, :w_sp, :cout]
    return jnp.transpose(out, (0, 3, 1, 2)).astype(jnp.float32)


# ---------------------------------------------------------------------------
# Pure-JAX reference (eval-mode BN) for correctness checking.
# ---------------------------------------------------------------------------
def resblock_reference(x, params, stride, eps=1e-5):
    def conv(x, w, s, pad):
        return lax.conv_general_dilated(
            x, w, (s, s), ((pad, pad), (pad, pad)),
            dimension_numbers=("NCHW", "OIHW", "NCHW"))

    def bn(x, g, b, m, v):
        g, b, m, v = (a[None, :, None, None] for a in (g, b, m, v))
        return (x - m) / jnp.sqrt(v + eps) * g + b

    k = params["w1"].shape[2]
    cin, cout = x.shape[1], params["w1"].shape[0]
    y = jax.nn.relu(bn(conv(x, params["w1"], stride, k // 2),
                       params["bn1_gamma"], params["bn1_beta"],
                       params["bn1_mean"], params["bn1_var"]))
    y = bn(conv(y, params["w2"], 1, k // 2),
           params["bn2_gamma"], params["bn2_beta"],
           params["bn2_mean"], params["bn2_var"])
    if stride != 1 or cin != cout:
        ks = params["ws"].shape[2]
        s = bn(conv(x, params["ws"], stride, (ks - 1) // 2),
               params["bns_gamma"], params["bns_beta"],
               params["bns_mean"], params["bns_var"])
    else:
        s = x
    return jax.nn.relu(y + s)


# ---------------------------------------------------------------------------
def make_params(key, cin, cout, k=3, ks=1):
    keys = jax.random.split(key, 12)
    p = {
        "w1": 0.1 * jax.random.normal(keys[0], (cout, cin, k, k), jnp.float32),
        "w2": 0.1 * jax.random.normal(keys[1], (cout, cout, k, k), jnp.float32),
        "ws": 0.1 * jax.random.normal(keys[2], (cout, cin, ks, ks), jnp.float32),
        "bn1_gamma": 1.0 + 0.1 * jax.random.normal(keys[3], (cout,), jnp.float32),
        "bn1_beta": 0.1 * jax.random.normal(keys[4], (cout,), jnp.float32),
        "bn1_mean": 0.1 * jax.random.normal(keys[5], (cout,), jnp.float32),
        "bn1_var": jax.random.uniform(keys[6], (cout,), jnp.float32, 0.5, 1.5),
        "bn2_gamma": 1.0 + 0.1 * jax.random.normal(keys[7], (cout,), jnp.float32),
        "bn2_beta": 0.1 * jax.random.normal(keys[8], (cout,), jnp.float32),
        "bn2_mean": 0.1 * jax.random.normal(keys[9], (cout,), jnp.float32),
        "bn2_var": jax.random.uniform(keys[10], (cout,), jnp.float32, 0.5, 1.5),
    }
    ksub = jax.random.split(keys[11], 4)
    p.update({
        "bns_gamma": 1.0 + 0.1 * jax.random.normal(ksub[0], (cout,), jnp.float32),
        "bns_beta": 0.1 * jax.random.normal(ksub[1], (cout,), jnp.float32),
        "bns_mean": 0.1 * jax.random.normal(ksub[2], (cout,), jnp.float32),
        "bns_var": jax.random.uniform(ksub[3], (cout,), jnp.float32, 0.5, 1.5),
    })
    return p


if __name__ == "__main__":
    key = jax.random.PRNGKey(0)
    k_x, k_p, k_x2, k_p2 = jax.random.split(key, 4)

    # Case 1: in != out -> 1x1 projection shortcut.
    in_channels, out_channels, stride = 4, 8, 1
    x = jax.random.normal(k_x, (2, in_channels, 16, 16), jnp.float32)
    params = make_params(k_p, in_channels, out_channels)
    out = jax.block_until_ready(resblock_forward(x, params, stride))
    ref = jax.block_until_ready(resblock_reference(x, params, stride))
    assert out.shape == ref.shape == (2, out_channels, 16, 16)
    # bf16 inputs / f32 accumulation / bf16 output -> loosened tolerance.
    assert jnp.allclose(out, ref, atol=3e-2, rtol=3e-2), \
        float(jnp.max(jnp.abs(out - ref)))

    # Case 2: in == out -> identity shortcut (direct f32 residual add path).
    x2 = jax.random.normal(k_x2, (2, 8, 16, 16), jnp.float32)
    params2 = make_params(k_p2, 8, 8)
    out2 = jax.block_until_ready(resblock_forward(x2, params2, 1))
    ref2 = jax.block_until_ready(resblock_reference(x2, params2, 1))
    assert out2.shape == ref2.shape == (2, 8, 16, 16)
    assert jnp.allclose(out2, ref2, atol=3e-2, rtol=3e-2), \
        float(jnp.max(jnp.abs(out2 - ref2)))

    print("KERNEL_OK")
</pallas_src>

<mosaic_0001>
module attributes {stable_mosaic.version = 11 : i64} {
  func.func @_resblock_kernel(%arg0: i32, %arg1: memref<1x342x128xbf16, #tpu.memory_space<vmem>>, %arg2: memref<9x128x128xbf16, #tpu.memory_space<vmem>>, %arg3: memref<9x128x128xbf16, #tpu.memory_space<vmem>>, %arg4: memref<1x128x128xbf16, #tpu.memory_space<vmem>>, %arg5: memref<1x128xf32, #tpu.memory_space<vmem>>, %arg6: memref<1x128xf32, #tpu.memory_space<vmem>>, %arg7: memref<1x288x128xbf16, #tpu.memory_space<vmem>>, %arg8: memref<344x128xbf16, #tpu.memory_space<vmem>>) attributes {dimension_semantics = [#tpu.dimension_semantics<parallel>], iteration_bounds = array<i64: 2>, scalar_prefetch = 0 : i64, scratch_operands = 1 : i64, tpu.core_type = #tpu.core_type<tc>, window_params = [{transform_indices = @transform_0, window_bounds = array<i64: 1, 342, 128>}, {pipeline_mode = #tpu.pipeline_mode<synchronous>, transform_indices = @transform_1, window_bounds = array<i64: 9, 128, 128>}, {pipeline_mode = #tpu.pipeline_mode<synchronous>, transform_indices = @transform_2, window_bounds = array<i64: 9, 128, 128>}, {pipeline_mode = #tpu.pipeline_mode<synchronous>, transform_indices = @transform_3, window_bounds = array<i64: 1, 128, 128>}, {pipeline_mode = #tpu.pipeline_mode<synchronous>, transform_indices = @transform_4, window_bounds = array<i64: 1, 128>}, {pipeline_mode = #tpu.pipeline_mode<synchronous>, transform_indices = @transform_5, window_bounds = array<i64: 1, 128>}, {transform_indices = @transform_6, window_bounds = array<i64: 1, 288, 128>}]} {
    %cst = arith.constant 0.000000e+00 : bf16
    %0 = vector.broadcast %cst : bf16 to vector<32x128xbf16>
    %c0 = arith.constant 0 : index
    %c0_0 = arith.constant 0 : index
    %1 = vector.load %arg8[%c0, %c0_0] : memref<344x128xbf16, #tpu.memory_space<vmem>>, vector<32x128xbf16>
    tpu.vector_store %arg8[%c0, %c0_0], %0 {strides = array<i32>} : memref<344x128xbf16, #tpu.memory_space<vmem>>, vector<32x128xbf16>,
    %cst_1 = arith.constant 0.000000e+00 : bf16
    %2 = vector.broadcast %cst_1 : bf16 to vector<24x128xbf16>
    %c320 = arith.constant 320 : index
    %c0_2 = arith.constant 0 : index
    %3 = vector.load %arg8[%c320, %c0_2] : memref<344x128xbf16, #tpu.memory_space<vmem>>, vector<24x128xbf16>
    tpu.vector_store %arg8[%c320, %c0_2], %2 {strides = array<i32>} : memref<344x128xbf16, #tpu.memory_space<vmem>>, vector<24x128xbf16>,
    %4 = tpu.iota {dimensions = array<i32: 0>} : vector<288x128xi32>
    %c18_i32 = arith.constant 18 : i32
    %c0_i32 = arith.constant 0 : i32
    %5 = arith.cmpi eq, %c18_i32, %c0_i32 : i32
    %c1_i32 = arith.constant 1 : i32
    %6 = arith.select %5, %c1_i32, %c18_i32 : i32
    %7 = vector.broadcast %6 : i32 to vector<288x128xi32>
    %8 = arith.remsi %4, %7 : vector<288x128xi32>
    %c0_i32_3 = arith.constant 0 : i32
    %9 = vector.broadcast %c0_i32_3 : i32 to vector<288x128xi32>
    %10 = arith.cmpi ne, %8, %9 : vector<288x128xi32>
    %c0_i32_4 = arith.constant 0 : i32
    %11 = vector.broadcast %c0_i32_4 : i32 to vector<288x128xi32>
    %12 = arith.cmpi slt, %8, %11 : vector<288x128xi32>
    %c0_i32_5 = arith.constant 0 : i32
    %13 = arith.cmpi slt, %6, %c0_i32_5 : i32
    %14 = vector.broadcast %13 : i1 to vector<288x128xi1>
    %15 = vector.broadcast %14 : vector<288x128xi1> to vector<288x128xi1>
    %16 = arith.xori %12, %15 : vector<288x128xi1>
    %17 = arith.andi %16, %10 : vector<288x128xi1>
    %18 = vector.broadcast %6 : i32 to vector<288x128xi32>
    %19 = arith.addi %8, %18 : vector<288x128xi32>
    %20 = arith.select %17, %19, %8 : vector<288x128xi1>, vector<288x128xi32>
    %c16_i32 = arith.constant 16 : i32
    %21 = vector.broadcast %c16_i32 : i32 to vector<288x128xi32>
    %22 = arith.cmpi slt, %20, %21 : vector<288x128xi32>
    %c0_6 = arith.constant 0 : index
    %c0_7 = arith.constant 0 : index
    %c0_8 = arith.constant 0 : index
    %23 = vector.load %arg1[%c0_6, %c0_7, %c0_8] : memref<1x342x128xbf16, #tpu.memory_space<vmem>>, vector<1x288x128xbf16>
    %24 = vector.shape_cast %23 : vector<1x288x128xbf16> to vector<288x128xbf16>
    %c0_9 = arith.constant 0 : index
    %c0_10 = arith.constant 0 : index
    %c0_11 = arith.constant 0 : index
    %25 = vector.load %arg2[%c0_9, %c0_10, %c0_11] : memref<9x128x128xbf16, #tpu.memory_space<vmem>>, vector<1x128x128xbf16>
    %26 = vector.shape_cast %25 : vector<1x128x128xbf16> to vector<128x128xbf16>
    %cst_12 = arith.constant dense<0.000000e+00> : vector<288x128xf32>
    %27 = tpu.matmul %24, %26, %cst_12 {dimension_numbers = #tpu.dot_dimension_numbers<[1], [0], [0], [1], [0, 0, 1, 1], [], []>} : vector<288x128xbf16>, vector<128x128xbf16>, vector<288x128xf32> -> vector<288x128xf32>
    %c0_13 = arith.constant 0 : index
    %c1 = arith.constant 1 : index
    %c0_14 = arith.constant 0 : index
    %28 = vector.load %arg1[%c0_13, %c1, %c0_14] : memref<1x342x128xbf16, #tpu.memory_space<vmem>>, vector<1x288x128xbf16>
    %29 = vector.shape_cast %28 : vector<1x288x128xbf16> to vector<288x128xbf16>
    %c1_15 = arith.constant 1 : index
    %c0_16 = arith.constant 0 : index
    %c0_17 = arith.constant 0 : index
    %30 = vector.load %arg2[%c1_15, %c0_16, %c0_17] : memref<9x128x128xbf16, #tpu.memory_space<vmem>>, vector<1x128x128xbf16>
    %31 = vector.shape_cast %30 : vector<1x128x128xbf16> to vector<128x128xbf16>
    %cst_18 = arith.constant dense<0.000000e+00> : vector<288x128xf32>
    %32 = tpu.matmul %29, %31, %cst_18 {dimension_numbers = #tpu.dot_dimension_numbers<[1], [0], [0], [1], [0, 0, 1, 1], [], []>} : vector<288x128xbf16>, vector<128x128xbf16>, vector<288x128xf32> -> vector<288x128xf32>
    %33 = arith.addf %27, %32 : vector<288x128xf32>
    %c0_19 = arith.constant 0 : index
    %c2 = arith.constant 2 : index
    %c0_20 = arith.constant 0 : index
    %34 = vector.load %arg1[%c0_19, %c2, %c0_20] : memref<1x342x128xbf16, #tpu.memory_space<vmem>>, vector<1x288x128xbf16>
    %35 = vector.shape_cast %34 : vector<1x288x128xbf16> to vector<288x128xbf16>
    %c2_21 = arith.constant 2 : index
    %c0_22 = arith.constant 0 : index
    %c0_23 = arith.constant 0 : index
    %36 = vector.load %arg2[%c2_21, %c0_22, %c0_23] : memref<9x128x128xbf16, #tpu.memory_space<vmem>>, vector<1x128x128xbf16>
    %37 = vector.shape_cast %36 : vector<1x128x128xbf16> to vector<128x128xbf16>
    %cst_24 = arith.constant dense<0.000000e+00> : vector<288x128xf32>
    %38 = tpu.matmul %35, %37, %cst_24 {dimension_numbers = #tpu.dot_dimension_numbers<[1], [0], [0], [1], [0, 0, 1, 1], [], []>} : vector<288x128xbf16>, vector<128x128xbf16>, vector<288x128xf32> -> vector<288x128xf32>
    %39 = arith.addf %33, %38 : vector<288x128xf32>
    %c0_25 = arith.constant 0 : index
    %c18 = arith.constant 18 : index
    %c0_26 = arith.constant 0 : index
    %40 = vector.load %arg1[%c0_25, %c18, %c0_26] : memref<1x342x128xbf16, #tpu.memory_space<vmem>>, vector<1x288x128xbf16>
    %41 = vector.shape_cast %40 : vector<1x288x128xbf16> to vector<288x128xbf16>
    %c3 = arith.constant 3 : index
    %c0_27 = arith.constant 0 : index
    %c0_28 = arith.constant 0 : index
    %42 = vector.load %arg2[%c3, %c0_27, %c0_28] : memref<9x128x128xbf16, #tpu.memory_space<vmem>>, vector<1x128x128xbf16>
    %43 = vector.shape_cast %42 : vector<1x128x128xbf16> to vector<128x128xbf16>
    %cst_29 = arith.constant dense<0.000000e+00> : vector<288x128xf32>
    %44 = tpu.matmul %41, %43, %cst_29 {dimension_numbers = #tpu.dot_dimension_numbers<[1], [0], [0], [1], [0, 0, 1, 1], [], []>} : vector<288x128xbf16>, vector<128x128xbf16>, vector<288x128xf32> -> vector<288x128xf32>
    %45 = arith.addf %39, %44 : vector<288x128xf32>
    %c0_30 = arith.constant 0 : index
    %c19 = arith.constant 19 : index
    %c0_31 = arith.constant 0 : index
    %46 = vector.load %arg1[%c0_30, %c19, %c0_31] : memref<1x342x128xbf16, #tpu.memory_space<vmem>>, vector<1x288x128xbf16>
    %47 = vector.shape_cast %46 : vector<1x288x128xbf16> to vector<288x128xbf16>
    %c4 = arith.constant 4 : index
    %c0_32 = arith.constant 0 : index
    %c0_33 = arith.constant 0 : index
    %48 = vector.load %arg2[%c4, %c0_32, %c0_33] : memref<9x128x128xbf16, #tpu.memory_space<vmem>>, vector<1x128x128xbf16>
    %49 = vector.shape_cast %48 : vector<1x128x128xbf16> to vector<128x128xbf16>
    %cst_34 = arith.constant dense<0.000000e+00> : vector<288x128xf32>
    %50 = tpu.matmul %47, %49, %cst_34 {dimension_numbers = #tpu.dot_dimension_numbers<[1], [0], [0], [1], [0, 0, 1, 1], [], []>} : vector<288x128xbf16>, vector<128x128xbf16>, vector<288x128xf32> -> vector<288x128xf32>
    %51 = arith.addf %45, %50 : vector<288x128xf32>
    %c0_35 = arith.constant 0 : index
    %c20 = arith.constant 20 : index
    %c0_36 = arith.constant 0 : index
    %52 = vector.load %arg1[%c0_35, %c20, %c0_36] : memref<1x342x128xbf16, #tpu.memory_space<vmem>>, vector<1x288x128xbf16>
    %53 = vector.shape_cast %52 : vector<1x288x128xbf16> to vector<288x128xbf16>
    %c5 = arith.constant 5 : index
    %c0_37 = arith.constant 0 : index
    %c0_38 = arith.constant 0 : index
    %54 = vector.load %arg2[%c5, %c0_37, %c0_38] : memref<9x128x128xbf16, #tpu.memory_space<vmem>>, vector<1x128x128xbf16>
    %55 = vector.shape_cast %54 : vector<1x128x128xbf16> to vector<128x128xbf16>
    %cst_39 = arith.constant dense<0.000000e+00> : vector<288x128xf32>
    %56 = tpu.matmul %53, %55, %cst_39 {dimension_numbers = #tpu.dot_dimension_numbers<[1], [0], [0], [1], [0, 0, 1, 1], [], []>} : vector<288x128xbf16>, vector<128x128xbf16>, vector<288x128xf32> -> vector<288x128xf32>
    %57 = arith.addf %51, %56 : vector<288x128xf32>
    %c0_40 = arith.constant 0 : index
    %c36 = arith.constant 36 : index
    %c0_41 = arith.constant 0 : index
    %58 = vector.load %arg1[%c0_40, %c36, %c0_41] : memref<1x342x128xbf16, #tpu.memory_space<vmem>>, vector<1x288x128xbf16>
    %59 = vector.shape_cast %58 : vector<1x288x128xbf16> to vector<288x128xbf16>
    %c6 = arith.constant 6 : index
    %c0_42 = arith.constant 0 : index
    %c0_43 = arith.constant 0 : index
    %60 = vector.load %arg2[%c6, %c0_42, %c0_43] : memref<9x128x128xbf16, #tpu.memory_space<vmem>>, vector<1x128x128xbf16>
    %61 = vector.shape_cast %60 : vector<1x128x128xbf16> to vector<128x128xbf16>
    %cst_44 = arith.constant dense<0.000000e+00> : vector<288x128xf32>
    %62 = tpu.matmul %59, %61, %cst_44 {dimension_numbers = #tpu.dot_dimension_numbers<[1], [0], [0], [1], [0, 0, 1, 1], [], []>} : vector<288x128xbf16>, vector<128x128xbf16>, vector<288x128xf32> -> vector<288x128xf32>
    %63 = arith.addf %57, %62 : vector<288x128xf32>
    %c0_45 = arith.constant 0 : index
    %c37 = arith.constant 37 : index
    %c0_46 = arith.constant 0 : index
    %64 = vector.load %arg1[%c0_45, %c37, %c0_46] : memref<1x342x128xbf16, #tpu.memory_space<vmem>>, vector<1x288x128xbf16>
    %65 = vector.shape_cast %64 : vector<1x288x128xbf16> to vector<288x128xbf16>
    %c7 = arith.constant 7 : index
    %c0_47 = arith.constant 0 : index
    %c0_48 = arith.constant 0 : index
    %66 = vector.load %arg2[%c7, %c0_47, %c0_48] : memref<9x128x128xbf16, #tpu.memory_space<vmem>>, vector<1x128x128xbf16>
    %67 = vector.shape_cast %66 : vector<1x128x128xbf16> to vector<128x128xbf16>
    %cst_49 = arith.constant dense<0.000000e+00> : vector<288x128xf32>
    %68 = tpu.matmul %65, %67, %cst_49 {dimension_numbers = #tpu.dot_dimension_numbers<[1], [0], [0], [1], [0, 0, 1, 1], [], []>} : vector<288x128xbf16>, vector<128x128xbf16>, vector<288x128xf32> -> vector<288x128xf32>
    %69 = arith.addf %63, %68 : vector<288x128xf32>
    %c0_50 = arith.constant 0 : index
    %c38 = arith.constant 38 : index
    %c0_51 = arith.constant 0 : index
    %70 = vector.load %arg1[%c0_50, %c38, %c0_51] : memref<1x342x128xbf16, #tpu.memory_space<vmem>>, vector<1x288x128xbf16>
    %71 = vector.shape_cast %70 : vector<1x288x128xbf16> to vector<288x128xbf16>
    %c8 = arith.constant 8 : index
    %c0_52 = arith.constant 0 : index
    %c0_53 = arith.constant 0 : index
    %72 = vector.load %arg2[%c8, %c0_52, %c0_53] : memref<9x128x128xbf16, #tpu.memory_space<vmem>>, vector<1x128x128xbf16>
    %73 = vector.shape_cast %72 : vector<1x128x128xbf16> to vector<128x128xbf16>
    %cst_54 = arith.constant dense<0.000000e+00> : vector<288x128xf32>
    %74 = tpu.matmul %71, %73, %cst_54 {dimension_numbers = #tpu.dot_dimension_numbers<[1], [0], [0], [1], [0, 0, 1, 1], [], []>} : vector<288x128xbf16>, vector<128x128xbf16>, vector<288x128xf32> -> vector<288x128xf32>
    %75 = arith.addf %69, %74 : vector<288x128xf32>
    %c0_55 = arith.constant 0 : index
    %c0_56 = arith.constant 0 : index
    %76 = vector.load %arg5[%c0_55, %c0_56] : memref<1x128xf32, #tpu.memory_space<vmem>>, vector<1x128xf32>
    %77 = vector.broadcast %76 : vector<1x128xf32> to vector<288x128xf32>
    %78 = arith.addf %75, %77 : vector<288x128xf32>
    %cst_57 = arith.constant 0.000000e+00 : f32
    %79 = vector.broadcast %cst_57 : f32 to vector<288x128xf32>
    %80 = arith.maximumf %78, %79 : vector<288x128xf32>
    %cst_58 = arith.constant 0.000000e+00 : f32
    %81 = vector.broadcast %cst_58 : f32 to vector<288x128xf32>
    %82 = arith.select %22, %80, %81 : vector<288x128xi1>, vector<288x128xf32>
    %83 = arith.truncf %82 : vector<288x128xf32> to vector<288x128xbf16>
    %c32 = arith.constant 32 : index
    %c0_59 = arith.constant 0 : index
    %84 = vector.load %arg8[%c32, %c0_59] : memref<344x128xbf16, #tpu.memory_space<vmem>>, vector<288x128xbf16>
    tpu.vector_store %arg8[%c32, %c0_59], %83 {strides = array<i32>} : memref<344x128xbf16, #tpu.memory_space<vmem>>, vector<288x128xbf16>,
    %c0_60 = arith.constant 0 : index
    %c19_61 = arith.constant 19 : index
    %c0_62 = arith.constant 0 : index
    %85 = vector.load %arg1[%c0_60, %c19_61, %c0_62] : memref<1x342x128xbf16, #tpu.memory_space<vmem>>, vector<1x288x128xbf16>
    %86 = vector.shape_cast %85 : vector<1x288x128xbf16> to vector<288x128xbf16>
    %c0_63 = arith.constant 0 : index
    %c0_64 = arith.constant 0 : index
    %c0_65 = arith.constant 0 : index
    %87 = vector.load %arg4[%c0_63, %c0_64, %c0_65] : memref<1x128x128xbf16, #tpu.memory_space<vmem>>, vector<1x128x128xbf16>
    %88 = vector.shape_cast %87 : vector<1x128x128xbf16> to vector<128x128xbf16>
    %cst_66 = arith.constant dense<0.000000e+00> : vector<288x128xf32>
    %89 = tpu.matmul %86, %88, %cst_66 {dimension_numbers = #tpu.dot_dimension_numbers<[1], [0], [0], [1], [0, 0, 1, 1], [], []>} : vector<288x128xbf16>, vector<128x128xbf16>, vector<288x128xf32> -> vector<288x128xf32>
    %c13 = arith.constant 13 : index
    %c0_67 = arith.constant 0 : index
    %90 = vector.load %arg8[%c13, %c0_67] : memref<344x128xbf16, #tpu.memory_space<vmem>>, vector<288x128xbf16>
    %c0_68 = arith.constant 0 : index
    %c0_69 = arith.constant 0 : index
    %c0_70 = arith.constant 0 : index
    %91 = vector.load %arg3[%c0_68, %c0_69, %c0_70] : memref<9x128x128xbf16, #tpu.memory_space<vmem>>, vector<1x128x128xbf16>
    %92 = vector.shape_cast %91 : vector<1x128x128xbf16> to vector<128x128xbf16>
    %cst_71 = arith.constant dense<0.000000e+00> : vector<288x128xf32>
    %93 = tpu.matmul %90, %92, %cst_71 {dimension_numbers = #tpu.dot_dimension_numbers<[1], [0], [0], [1], [0, 0, 1, 1], [], []>} : vector<288x128xbf16>, vector<128x128xbf16>, vector<288x128xf32> -> vector<288x128xf32>
    %94 = arith.addf %89, %93 : vector<288x128xf32>
    %c14 = arith.constant 14 : index
    %c0_72 = arith.constant 0 : index
    %95 = vector.load %arg8[%c14, %c0_72] : memref<344x128xbf16, #tpu.memory_space<vmem>>, vector<288x128xbf16>
    %c1_73 = arith.constant 1 : index
    %c0_74 = arith.constant 0 : index
    %c0_75 = arith.constant 0 : index
    %96 = vector.load %arg3[%c1_73, %c0_74, %c0_75] : memref<9x128x128xbf16, #tpu.memory_space<vmem>>, vector<1x128x128xbf16>
    %97 = vector.shape_cast %96 : vector<1x128x128xbf16> to vector<128x128xbf16>
    %cst_76 = arith.constant dense<0.000000e+00> : vector<288x128xf32>
    %98 = tpu.matmul %95, %97, %cst_76 {dimension_numbers = #tpu.dot_dimension_numbers<[1], [0], [0], [1], [0, 0, 1, 1], [], []>} : vector<288x128xbf16>, vector<128x128xbf16>, vector<288x128xf32> -> vector<288x128xf32>
    %99 = arith.addf %94, %98 : vector<288x128xf32>
    %c15 = arith.constant 15 : index
    %c0_77 = arith.constant 0 : index
    %100 = vector.load %arg8[%c15, %c0_77] : memref<344x128xbf16, #tpu.memory_space<vmem>>, vector<288x128xbf16>
    %c2_78 = arith.constant 2 : index
    %c0_79 = arith.constant 0 : index
    %c0_80 = arith.constant 0 : index
    %101 = vector.load %arg3[%c2_78, %c0_79, %c0_80] : memref<9x128x128xbf16, #tpu.memory_space<vmem>>, vector<1x128x128xbf16>
    %102 = vector.shape_cast %101 : vector<1x128x128xbf16> to vector<128x128xbf16>
    %cst_81 = arith.constant dense<0.000000e+00> : vector<288x128xf32>
    %103 = tpu.matmul %100, %102, %cst_81 {dimension_numbers = #tpu.dot_dimension_numbers<[1], [0], [0], [1], [0, 0, 1, 1], [], []>} : vector<288x128xbf16>, vector<128x128xbf16>, vector<288x128xf32> -> vector<288x128xf32>
    %104 = arith.addf %99, %103 : vector<288x128xf32>
    %c31 = arith.constant 31 : index
    %c0_82 = arith.constant 0 : index
    %105 = vector.load %arg8[%c31, %c0_82] : memref<344x128xbf16, #tpu.memory_space<vmem>>, vector<288x128xbf16>
    %c3_83 = arith.constant 3 : index
    %c0_84 = arith.constant 0 : index
    %c0_85 = arith.constant 0 : index
    %106 = vector.load %arg3[%c3_83, %c0_84, %c0_85] : memref<9x128x128xbf16, #tpu.memory_space<vmem>>, vector<1x128x128xbf16>
    %107 = vector.shape_cast %106 : vector<1x128x128xbf16> to vector<128x128xbf16>
    %cst_86 = arith.constant dense<0.000000e+00> : vector<288x128xf32>
    %108 = tpu.matmul %105, %107, %cst_86 {dimension_numbers = #tpu.dot_dimension_numbers<[1], [0], [0], [1], [0, 0, 1, 1], [], []>} : vector<288x128xbf16>, vector<128x128xbf16>, vector<288x128xf32> -> vector<288x128xf32>
    %109 = arith.addf %104, %108 : vector<288x128xf32>
    %c32_87 = arith.constant 32 : index
    %c0_88 = arith.constant 0 : index
    %110 = vector.load %arg8[%c32_87, %c0_88] : memref<344x128xbf16, #tpu.memory_space<vmem>>, vector<288x128xbf16>
    %c4_89 = arith.constant 4 : index
    %c0_90 = arith.constant 0 : index
    %c0_91 = arith.constant 0 : index
    %111 = vector.load %arg3[%c4_89, %c0_90, %c0_91] : memref<9x128x128xbf16, #tpu.memory_space<vmem>>, vector<1x128x128xbf16>
    %112 = vector.shape_cast %111 : vector<1x128x128xbf16> to vector<128x128xbf16>
    %cst_92 = arith.constant dense<0.000000e+00> : vector<288x128xf32>
    %113 = tpu.matmul %110, %112, %cst_92 {dimension_numbers = #tpu.dot_dimension_numbers<[1], [0], [0], [1], [0, 0, 1, 1], [], []>} : vector<288x128xbf16>, vector<128x128xbf16>, vector<288x128xf32> -> vector<288x128xf32>
    %114 = arith.addf %109, %113 : vector<288x128xf32>
    %c33 = arith.constant 33 : index
    %c0_93 = arith.constant 0 : index
    %115 = vector.load %arg8[%c33, %c0_93] : memref<344x128xbf16, #tpu.memory_space<vmem>>, vector<288x128xbf16>
    %c5_94 = arith.constant 5 : index
    %c0_95 = arith.constant 0 : index
    %c0_96 = arith.constant 0 : index
    %116 = vector.load %arg3[%c5_94, %c0_95, %c0_96] : memref<9x128x128xbf16, #tpu.memory_space<vmem>>, vector<1x128x128xbf16>
    %117 = vector.shape_cast %116 : vector<1x128x128xbf16> to vector<128x128xbf16>
    %cst_97 = arith.constant dense<0.000000e+00> : vector<288x128xf32>
    %118 = tpu.matmul %115, %117, %cst_97 {dimension_numbers = #tpu.dot_dimension_numbers<[1], [0], [0], [1], [0, 0, 1, 1], [], []>} : vector<288x128xbf16>, vector<128x128xbf16>, vector<288x128xf32> -> vector<288x128xf32>
    %119 = arith.addf %114, %118 : vector<288x128xf32>
    %c49 = arith.constant 49 : index
    %c0_98 = arith.constant 0 : index
    %120 = vector.load %arg8[%c49, %c0_98] : memref<344x128xbf16, #tpu.memory_space<vmem>>, vector<288x128xbf16>
    %c6_99 = arith.constant 6 : index
    %c0_100 = arith.constant 0 : index
    %c0_101 = arith.constant 0 : index
    %121 = vector.load %arg3[%c6_99, %c0_100, %c0_101] : memref<9x128x128xbf16, #tpu.memory_space<vmem>>, vector<1x128x128xbf16>
    %122 = vector.shape_cast %121 : vector<1x128x128xbf16> to vector<128x128xbf16>
    %cst_102 = arith.constant dense<0.000000e+00> : vector<288x128xf32>
    %123 = tpu.matmul %120, %122, %cst_102 {dimension_numbers = #tpu.dot_dimension_numbers<[1], [0], [0], [1], [0, 0, 1, 1], [], []>} : vector<288x128xbf16>, vector<128x128xbf16>, vector<288x128xf32> -> vector<288x128xf32>
    %124 = arith.addf %119, %123 : vector<288x128xf32>
    %c50 = arith.constant 50 : index
    %c0_103 = arith.constant 0 : index
    %125 = vector.load %arg8[%c50, %c0_103] : memref<344x128xbf16, #tpu.memory_space<vmem>>, vector<288x128xbf16>
    %c7_104 = arith.constant 7 : index
    %c0_105 = arith.constant 0 : index
    %c0_106 = arith.constant 0 : index
    %126 = vector.load %arg3[%c7_104, %c0_105, %c0_106] : memref<9x128x128xbf16, #tpu.memory_space<vmem>>, vector<1x128x128xbf16>
    %127 = vector.shape_cast %126 : vector<1x128x128xbf16> to vector<128x128xbf16>
    %cst_107 = arith.constant dense<0.000000e+00> : vector<288x128xf32>
    %128 = tpu.matmul %125, %127, %cst_107 {dimension_numbers = #tpu.dot_dimension_numbers<[1], [0], [0], [1], [0, 0, 1, 1], [], []>} : vector<288x128xbf16>, vector<128x128xbf16>, vector<288x128xf32> -> vector<288x128xf32>
    %129 = arith.addf %124, %128 : vector<288x128xf32>
    %c51 = arith.constant 51 : index
    %c0_108 = arith.constant 0 : index
    %130 = vector.load %arg8[%c51, %c0_108] : memref<344x128xbf16, #tpu.memory_space<vmem>>, vector<288x128xbf16>
    %c8_109 = arith.constant 8 : index
    %c0_110 = arith.constant 0 : index
    %c0_111 = arith.constant 0 : index
    %131 = vector.load %arg3[%c8_109, %c0_110, %c0_111] : memref<9x128x128xbf16, #tpu.memory_space<vmem>>, vector<1x128x128xbf16>
    %132 = vector.shape_cast %131 : vector<1x128x128xbf16> to vector<128x128xbf16>
    %cst_112 = arith.constant dense<0.000000e+00> : vector<288x128xf32>
    %133 = tpu.matmul %130, %132, %cst_112 {dimension_numbers = #tpu.dot_dimension_numbers<[1], [0], [0], [1], [0, 0, 1, 1], [], []>} : vector<288x128xbf16>, vector<128x128xbf16>, vector<288x128xf32> -> vector<288x128xf32>
    %134 = arith.addf %129, %133 : vector<288x128xf32>
    %c0_113 = arith.constant 0 : index
    %c0_114 = arith.constant 0 : index
    %135 = vector.load %arg6[%c0_113, %c0_114] : memref<1x128xf32, #tpu.memory_space<vmem>>, vector<1x128xf32>
    %136 = vector.broadcast %135 : vector<1x128xf32> to vector<288x128xf32>
    %137 = arith.addf %134, %136 : vector<288x128xf32>
    %cst_115 = arith.constant 0.000000e+00 : f32
    %138 = vector.broadcast %cst_115 : f32 to vector<288x128xf32>
    %139 = arith.maximumf %137, %138 : vector<288x128xf32>
    %140 = arith.truncf %139 : vector<288x128xf32> to vector<288x128xbf16>
    %c0_116 = arith.constant 0 : index
    %c0_117 = arith.constant 0 : index
    %c0_118 = arith.constant 0 : index
    %141 = vector.load %arg7[%c0_116, %c0_117, %c0_118] : memref<1x288x128xbf16, #tpu.memory_space<vmem>>, vector<1x288x128xbf16>
    %142 = vector.shape_cast %141 : vector<1x288x128xbf16> to vector<288x128xbf16>
    %143 = vector.shape_cast %140 : vector<288x128xbf16> to vector<1x288x128xbf16>
    tpu.vector_store %arg7[%c0_116, %c0_117, %c0_118], %143 {strides = array<i32>} : memref<1x288x128xbf16, #tpu.memory_space<vmem>>, vector<1x288x128xbf16>,
    return
  }
  func.func @transform_0(%arg0: i32) -> (i32, i32, i32) {
    %c0_i32 = arith.constant 0 : i32
    %c0_i32_0 = arith.constant 0 : i32
    %c0_i32_1 = arith.constant 0 : i32
    return %arg0, %c0_i32, %c0_i32_0 : i32, i32, i32
  }
  func.func @transform_1(%arg0: i32) -> (i32, i32, i32) {
    %c0_i32 = arith.constant 0 : i32
    %c0_i32_0 = arith.constant 0 : i32
    %c0_i32_1 = arith.constant 0 : i32
    %c0_i32_2 = arith.constant 0 : i32
    return %c0_i32, %c0_i32_0, %c0_i32_1 : i32, i32, i32
  }
  func.func @transform_2(%arg0: i32) -> (i32, i32, i32) {
    %c0_i32 = arith.constant 0 : i32
    %c0_i32_0 = arith.constant 0 : i32
    %c0_i32_1 = arith.constant 0 : i32
    %c0_i32_2 = arith.constant 0 : i32
    return %c0_i32, %c0_i32_0, %c0_i32_1 : i32, i32, i32
  }
  func.func @transform_3(%arg0: i32) -> (i32, i32, i32) {
    %c0_i32 = arith.constant 0 : i32
    %c0_i32_0 = arith.constant 0 : i32
    %c0_i32_1 = arith.constant 0 : i32
    %c0_i32_2 = arith.constant 0 : i32
    return %c0_i32, %c0_i32_0, %c0_i32_1 : i32, i32, i32
  }
  func.func @transform_4(%arg0: i32) -> (i32, i32) {
    %c0_i32 = arith.constant 0 : i32
    %c0_i32_0 = arith.constant 0 : i32
    %c0_i32_1 = arith.constant 0 : i32
    return %c0_i32, %c0_i32_0 : i32, i32
  }
  func.func @transform_5(%arg0: i32) -> (i32, i32) {
    %c0_i32 = arith.constant 0 : i32
    %c0_i32_0 = arith.constant 0 : i32
    %c0_i32_1 = arith.constant 0 : i32
    return %c0_i32, %c0_i32_0 : i32, i32
  }
  func.func @transform_6(%arg0: i32) -> (i32, i32, i32) {
    %c0_i32 = arith.constant 0 : i32
    %c0_i32_0 = arith.constant 0 : i32
    %c0_i32_1 = arith.constant 0 : i32
    return %arg0, %c0_i32, %c0_i32_0 : i32, i32, i32
  }
}

</mosaic_0001>

<bundles_post_ra>
// kernel: tpu_custom_call.1
= control target key start
LH: loop header
LB: loop body
LE: loop exit
PB: predicated region body
PF: predicated region fallthrough
CT: control target
= control target key end

     0   :  { %11 = vsyncpa [#allocation4], 0  ;;  %s15288_s0 = inlined_call_operand.vmem [shape: bf16[2,342,128], index: 0, kind: input, shape index: {}]   ;;  %s15289_s1 = inlined_call_operand.vmem [shape: bf16[9,128,128], index: 1, kind: input, shape index: {}]   ;;  %s15290_s2 = inlined_call_operand.hbm [shape: bf16[9,128,128], index: 2, kind: input, shape index: {}]   ;;  %s15291_s3 = inlined_call_operand.vmem [shape: bf16[1,128,128], index: 3, kind: input, shape index: {}]   ;;  %s15292_s4 = inlined_call_operand.vmem [shape: f32[1,128], index: 4, kind: input, shape index: {}]   ;;  %s15293_s5 = inlined_call_operand.vmem [shape: f32[1,128], index: 5, kind: input, shape index: {}]   ;;  %s15294_s6 = inlined_call_operand.hbm [shape: bf16[2,288,128], index: 6, kind: output, shape index: {}]  }
   0x1   :  { %12 = vsyncpa [#allocation5], 0 }
   0x2   :  { %14 = vsyncpa [#allocation5 + $0x1], 0  ;;  %s11021_s21 = smov 0   ;;  %s11023_s22 = smov 0  }
   0x3   :  { %s11025_s23 = smov 0   ;;  %s11027_s24 = smov 0  }
   0x4 LB: > { %s11042_s25 = sadd.s32 4294967295, %s10978_s24   ;;  %s8813_s26 = sadd.s32 4294967294, %s10978_s24   ;;  %s10978_s24 = sphi %s11027_s24, %s15828_s24   ;;  %s10974_s23 = sphi %s11025_s23, %s15827_s23   ;;  %s10970_s22 = sphi %s11023_s22, %s15826_s22   ;;  %s10966_s21 = sphi %s11021_s21, %s15825_s21  }
   0x5   : > { %s11046_s27 = sadd.s32 1, %s10978_s24   ;;  %s158_s28 = sadd.s32 1, %s10974_s23 }
   0x6   : > { %s155_s29 = ssub.s32 %s10978_s24, %s11046_s27  ;;  %p168_p0 = scmp.ne.s32.totalorder %s10974_s23, %s10970_s22 }
   0x7   : > { %p156_p1 = scmp.eq.s32.totalorder %s155_s29, 0  ;;  %p169_p2 = scmp.eq.s32.totalorder %s11042_s25, 1 }
   0x8   : > { %p174_p3 = scmp.ne.s32.totalorder %s10970_s22, %s10966_s21  ;;  %p175_p4 = scmp.eq.s32.totalorder %s8813_s26, 1 }
   0x9   : > { %s11057_s30 = scalar_select %p156_p1, %s10974_s23, %s158_s28  }
   0xa   : > { %p11059_p5 = por %p169_p2, %p168_p0  ;;  %p11063_p6 = por %p175_p4, %p174_p3 }
   0xb   : > { %p8814_p7 = scmp.ge.s32.totalorder %s10978_s24, 1  ;;  %p182_p8 = scmp.lt.s32.totalorder %s10978_s24, 3 }
   0xc   : > { %p10801_p9 = scmp.eq.s32.totalorder %s11042_s25, 0  ;;  %s196_s11 = sshll.u32 %s15290_s2, 4  ;;  %s197_s11 = int_to_ptr.hbm [resolvable:$true] %s196_s11 }
   0xd   : > { %p183_p10 = pnand %p8814_p7, %p182_p8  ;;  %s10980_s12 = smov [#allocation3]  }
   0xe   : > { %s198_s13 = sshll.u32 %s10980_s12, 4  ;;  %s10981_s14 = smov 64   ;;  %s199_s13 = int_to_ptr.vmem [resolvable:$true] %s198_s13 }
   0xf   : > { %p10793_p11 = pneg %p183_p10  ;;  %s10982_s15 = smov 4  }
  0x10   : > { %231 = sbr.rel (%p183_p10) target bundleno = 1790 (0x6fe), region = 44 }
  0x11   : > { %p10794_p12 = pnand %p10801_p9, %p10793_p11 }
  0x13   : > { %10796 = dma.hbm_to_vmem [thread:$0]  (!%p10794_p12), %s197_s11, 9216, %s199_s13, [#allocation4], %s10981_s14, %s10981_s14, %s10982_s15  }
  0x15   : > { %10957 = dma.done.wait (%p10801_p9), [#allocation4], 9216  }
  0x16   : > { %10959 = vsyncadd (%p10801_p9), [#allocation4], 4294958080  ;;  %v15295_v0 = vmov 0   ;;  %p262_p13 = scmp.lt.s32.totalorder %s11042_s25, 1  ;;  %v10075_v1 = vld [vmem:[%s15289_s1 + $0x78] sm:$0xff]  ;;  %v10074_v4 = vld [vmem:[%s15289_s1 + $0x70] sm:$0xff] }
  0x17   : > { %269 = vst [vmem:[#allocation2 + $0x4] sm:$0xf] %v15295_v0  ;;  %v11092_v2 = vld [vmem:[%s15289_s1 + $0x38] sm:$0xff]  ;;  %1950 = vmatpush.bf16.msra.mxu0 %v10075_v1  ;;  %10725 = vmatpush.bf16.msra.mxu3 %v10075_v1  ;;  %v11107_v5 = vld [vmem:[%s15289_s1 + $0x30] sm:$0xff]  ;;  %v10073_v7 = vld [vmem:[%s15289_s1 + $0x68] sm:$0xff]  ;;  %vm2235_vm1 = vcmask 1046528  }
  0x18   : > { %270 = vst [vmem:[#allocation2 + $0x8] sm:$0xf] %v15295_v0  ;;  %v11097_v3 = vld [vmem:[%s15289_s1 + $0xb8] sm:$0xff]  ;;  %2115 = vmatpush.bf16.msra.mxu1 %v11092_v2  ;;  %v11112_v6 = vld [vmem:[%s15289_s1 + $0xb0] sm:$0xff]  ;;  %s263_s13 = scalar_select %p262_p13, %s11042_s25, 1  ;;  %v11123_v8 = vld [vmem:[%s15289_s1 + $0x28] sm:$0xff] }
  0x19   : > { %271 = vst [vmem:[#allocation2 + $0xc] sm:$0xf] %v15295_v0  ;;  %2339 = vmatpush.bf16.msra.mxu2 %v11097_v3  ;;  %v11128_v9 = vld [vmem:[%s15289_s1 + $0xa8] sm:$0xff]  ;;  %v10072_v10 = vld [vmem:[%s15289_s1 + $0x60] sm:$0xff]  ;;  %v10071_v13 = vld [vmem:[%s15289_s1 + $0x58] sm:$0xff]  ;;  %vm3273_vm3 = vcmask 1045504  }
  0x1a   : > { %272 = vst [vmem:[#allocation2 + $0xa0] sm:$0xf] %v15295_v0  ;;  %s10785_s20 = smul.u32 172, %s263_s13  ;;  %v11138_v11 = vld [vmem:[%s15289_s1 + $0x20] sm:$0xff]  ;;  %v11161_v15 = vld [vmem:[%s15289_s1 + $0x18] sm:$0xff]  ;;  %v10070_v19 = vld [vmem:[%s15289_s1 + $0x50] sm:$0xff] }
  0x1b   : > { %273 = vst [vmem:[#allocation2 + $0xa4] sm:$0xf] %v15295_v0  ;;  %1951 = vmatpush.bf16.msra.mxu0 %v10074_v4  ;;  %10726 = vmatpush.bf16.msra.mxu3 %v10074_v4  ;;  %v11143_v12 = vld [vmem:[%s15289_s1 + $0xa0] sm:$0xff]  ;;  %v11166_v16 = vld [vmem:[%s15289_s1 + $0x98] sm:$0xff]  ;;  %v11184_v23 = vld [vmem:[%s15289_s1 + $0x10] sm:$0xff]  ;;  %vm4311_vm5 = vcmask 1044480  }
  0x1c   : > { %274 = vst [vmem:[#allocation2 + $0xa8] sm:$0xf] %v15295_v0  ;;  %2116 = vmatpush.bf16.msra.mxu1 %v11107_v5  ;;  %s11148_s14 = scalar_lea.vmem %s15288_s0, %s10785_s20  ;;  %v11189_v24 = vld [vmem:[%s15289_s1 + $0x90] sm:$0xff]  ;;  %v10069_v29 = vld [vmem:[%s15289_s1 + $0x48] sm:$0xff]  ;;  %v10068_v37 = vld [vmem:[%s15289_s1 + $0x40] sm:$0xff]  ;;  %s259_s20 = sand.u32 1, %s10970_s22  }
  0x1d   : > { %2340 = vmatpush.bf16.msra.mxu2 %v11112_v6  ;;  %v11154_v14 = vld [vmem:[%s11148_s14 + $0x70] sm:$0xff]  ;;  %v10317_v17 = vld [vmem:[%s11148_s14] sm:$0xff]   ;;  %v11170_v18 = vld [vmem:[%s11148_s14 + $0x8] sm:$0xff]  ;;  %vm1735_vm0 = vsmask.f32 7424  ;;  %s10784_s26 = smul.u32 144, %s259_s20 }
  0x1e   : > { %v1739_v20 = vshll.u32 %v10317_v17, 16  ;;  %v11176_v21 = vld [vmem:[%s11148_s14 + $0x78] sm:$0xff]  ;;  %v1848_v22 = vshll.u32 %v11154_v14, 16  ;;  %v10576_v25 = vld [vmem:[%s11148_s14] sm:$0xf0]  ;;  %v1737_v27 = vshrl.u32 %v10317_v17, 16 }
  0x1f   : > { %1952 = vmatpush.bf16.msra.mxu0 %v10073_v7  ;;  %10727 = vmatpush.bf16.msra.mxu3 %v10073_v7  ;;  %v10577_v26 = vld [vmem:[%s11148_s14] sm:$0xe]  ;;  %v1744_v28 = vshll.u32 %v11170_v18, 16  ;;  %v1852_v32 = vshrl.u32 %v11154_v14, 16  ;;  %v1856_v33 = vshll.u32 %v11176_v21, 16  ;;  %v11206_v34 = vld [vmem:[%s15289_s1 + $0x8] sm:$0xff] }
  0x20   : > { %2117 = vmatpush.bf16.msra.mxu1 %v11123_v8  ;;  %v1741_v30 = vrot.slane %v1739_v20, 1  ;;  %v11197_v31 = vrot.slane %v1848_v22, 1  ;;  %v11211_v35 = vld [vmem:[%s15289_s1 + $0x88] sm:$0xff]  ;;  %v10578_v36 = vor.u32 %v10577_v26, %v10576_v25  ;;  %v10060_v42 = vld [vmem:[%s15289_s1] sm:$0xff]  ;;  %v2237_v45 = vrot.slane %v11170_v18, 1  ;;  %v10116_v46 = vld [vmem:[%s15289_s1 + $0x138] sm:$0xff] }
  0x21   : > { %2341 = vmatpush.bf16.msra.mxu2 %v11128_v9  ;;  %v1746_v39 = vrot.slane %v1744_v28, 1  ;;  %v1858_v41 = vrot.slane %v1856_v33, 1  ;;  %v11225_v43 = vld [vmem:[%s15289_s1 + $0x80] sm:$0xff]  ;;  %v10115_v50 = vld [vmem:[%s15289_s1 + $0x130] sm:$0xff]  ;;  %v1748_v53 = vshrl.u32 %v11170_v18, 16  ;;  %v1860_v55 = vshrl.u32 %v11176_v21, 16 }
  0x22   : > { %v1742_v38 = vor.u32 %v1741_v30, %v1737_v27  ;;  %v1854_v40 = vor.u32 %v1852_v32, %v11197_v31  ;;  %v2236_v44 = vrot.slane %v10578_v36, 1  ;;  %v10044_v51 = vld [vmem:[%s11148_s14 + $0x10] sm:$0xff]  ;;  %v11241_v52 = vld [vmem:[%s11148_s14 + $0x80] sm:$0xff]  ;;  %v11256_v4 = vld [vmem:[%s11148_s14 + $0x88] sm:$0xff]  ;;  %vm2880_vm2 = vsmask.f32 6400 }
  0x23   : > { %1953 = vmatpush.bf16.msra.mxu0 %v10072_v10  ;;  %10728 = vmatpush.bf16.msra.mxu3 %v10072_v10  ;;  %v1752_v54 = vshll.u32 %v10044_v51, 16  ;;  %v1864_v56 = vshll.u32 %v11241_v52, 16  ;;  %v1750_v57 = vor.u32 %v1748_v53, %v1746_v39  ;;  %v1862_v59 = vor.u32 %v1860_v55, %v1858_v41  ;;  %v1624_v20 = vld [vmem:[%s11148_s14 + $0x90] sm:$0x1]  ;;  %v10046_v27 = vld [vmem:[%s11148_s14 + $0x20] sm:$0xff]  ;;  %v10112_v55 = vld [vmem:[%s15289_s1 + $0x118] sm:$0xff] }
  0x24   : > { %2118 = vmatpush.bf16.msra.mxu1 %v11138_v11  ;;  %v1747_v47 = vsel %vm1735_vm0, %v1742_v38, %v1746_v39  ;;  %v1859_v48 = vsel %vm1735_vm0, %v1854_v40, %v1858_v41  ;;  %v2238_v49 = vsel %vm2235_vm1, %v2236_v44, %v2237_v45  ;;  %v2239_v61 = vrot.slane %v10044_v51, 1  ;;  %v10113_v41 = vld [vmem:[%s15289_s1 + $0x120] sm:$0xff]  ;;  %s15081_s28 = scalar_lea.vmem [#allocation6], %s10784_s26  ;;  %s10786_s29 = smul.u32 144, %s11042_s25 }
  0x25   : > { %2342 = vmatpush.bf16.msra.mxu2 %v11143_v12  ;;  %v1754_v58 = vrot.slane %v1752_v54, 1  ;;  %v1866_v60 = vrot.slane %v1864_v56, 1  ;;  %v1756_v7 = vshrl.u32 %v10044_v51, 16  ;;  %v1868_v10 = vshrl.u32 %v11241_v52, 16  ;;  %v10049_v54 = vld [vmem:[%s11148_s14 + $0x38] sm:$0xff]  ;;  %s8736_s12 = sshll.u32 %s15081_s28, 4  ;;  %s8737_s12 = int_to_ptr.vmem [resolvable:$true] %s8736_s12 }
  0x26   : > { %v2240_v1 = vsel %vm2235_vm1, %v2237_v45, %v2239_v61  ;;  %v1715_v25 = vunpack.c.l.b16 %v1624_v20  ;;  %v1768_v30 = vshll.u32 %v10046_v27, 16  ;;  %v2243_v38 = vrot.slane %v10046_v27, 1  ;;  %s8735_s11 = scalar_lea.hbm %s15294_s6, %s10786_s29  ;;  %s8724_s25 = scalar_lea.sflag [#allocation5], %s259_s20 }
  0x27   : > { %1954 = vmatpush.bf16.msra.mxu0 %v10071_v13  ;;  %10729 = vmatpush.bf16.msra.mxu3 %v10071_v13  ;;  %v1755_v62 = vsel %vm1735_vm0, %v1750_v57, %v1754_v58  ;;  %v1867_v63 = vsel %vm1735_vm0, %v1862_v59, %v1866_v60  ;;  %v1758_v13 = vor.u32 %v1756_v7, %v1754_v58  ;;  %v1792_v57 = vshll.u32 %v10049_v54, 16  ;;  %s8738_s13 = sshll.u32 %s8735_s11, 4  ;;  %s10932_s18 = scalar_lea.hbm %s15294_s6, 288  ;;  %s8739_s13 = int_to_ptr.hbm [resolvable:$true] %s8738_s13 }
  0x28   : > { %2119 = vmatpush.bf16.msra.mxu1 %v11161_v15  ;;  %v11271_v28 = vpack.c.b16 %v1715_v25, %v1715_v25  ;;  %v2265_v25 = vrot.slane %v11176_v21, 1  ;;  %vm3918_vm4 = vsmask.f32 5376 }
  0x29   : > { %2343 = vmatpush.bf16.msra.mxu2 %v11166_v16  ;;  %v1794_v59 = vrot.slane %v1792_v57, 1  ;;  %v11360_v57 = vld [vmem:[%s11148_s14 + $0x58] sm:$0xff] }
  0x2a   : > { %v1880_v32 = vshll.u32 %v11271_v28, 16 }
  0x2b   : > { %1955 = vmatpush.bf16.msra.mxu0 %v10070_v19  ;;  %10730 = vmatpush.bf16.msra.mxu3 %v10070_v19 }
  0x2c   : > { %2120 = vmatpush.bf16.msra.mxu1 %v11184_v23 }
  0x2d   : > { %2344 = vmatpush.bf16.msra.mxu2 %v11189_v24 }
  0x2f   : > { %1956 = vmatpush.bf16.msra.mxu0 %v10069_v29  ;;  %10731 = vmatpush.bf16.msra.mxu3 %v10069_v29 }
  0x30   : > { %2121 = vmatpush.bf16.msra.mxu1 %v11206_v34 }
  0x31   : > { %2345 = vmatpush.bf16.msra.mxu2 %v11211_v35 }
  0x33   : > { %1957 = vmatpush.bf16.msra.mxu0 %v10068_v37  ;;  %10732 = vmatpush.bf16.msra.mxu3 %v10068_v37  ;;  %v1882_v37 = vrot.slane %v1880_v32, 1 }
  0x34   : > { %2122 = vmatpush.bf16.msra.mxu1 %v10060_v42 }
  0x35   : > { %2346 = vmatpush.bf16.msra.mxu2 %v11225_v43 }
  0x36   : > { %1958 = vmatmul.bf16.vlgmr.msra.gmra.mxu0 %v1747_v47  ;;  %2028 = vmatmul.bf16.vlgmr.msra.gmra.mxu3 %v1859_v48 }
  0x37   : > { %3117 = vmatpush.bf16.msrb.mxu0 %v10116_v46  ;;  %10733 = vmatpush.bf16.msrb.mxu3 %v11092_v2  ;;  %v10045_v2 = vld [vmem:[%s11148_s14 + $0x18] sm:$0xff] }
  0x38   : > { %2123 = vmatmul.bf16.vlgmr.msra.gmra.mxu1 %v10317_v17  ;;  %2347 = vmatmul.bf16.vlgmr.msra.gmra.mxu2 %v2238_v49  ;;  %v1870_v17 = vor.u32 %v1868_v10, %v1866_v60  ;;  %v2241_v19 = vrot.slane %v10045_v2, 1  ;;  %v1764_v29 = vshrl.u32 %v10045_v2, 16  ;;  %v2249_v60 = vrot.slane %v10049_v54, 1 }
  0x3a   : > { %v2242_v26 = vsel %vm2235_vm1, %v2239_v61, %v2241_v19  ;;  %v2244_v40 = vsel %vm2235_vm1, %v2241_v19, %v2243_v38  ;;  %v10108_v19 = vld [vmem:[%s15289_s1 + $0xf8] sm:$0xff] }
  0x3b   : > { %3118 = vmatpush.bf16.msrb.mxu0 %v10115_v50  ;;  %10734 = vmatpush.bf16.msrb.mxu3 %v11107_v5  ;;  %v10114_v5 = vld [vmem:[%s15289_s1 + $0x128] sm:$0xff] }
  0x3f   : > { %10735 = vmatpush.bf16.msrb.mxu3 %v11123_v8  ;;  %3119 = vmatpush.bf16.msrb.mxu0 %v10114_v5  ;;  %v1760_v8 = vshll.u32 %v10045_v2, 16 }
  0x43   : > { %10736 = vmatpush.bf16.msrb.mxu3 %v11138_v11  ;;  %v1872_v11 = vshll.u32 %v11256_v4, 16  ;;  %3120 = vmatpush.bf16.msrb.mxu0 %v10113_v41 }
  0x46   : > { %1963 = vmatmul.bf16.gmra.mxu0 %v1755_v62  ;;  %2033 = vmatmul.bf16.gmra.mxu3 %v1867_v63  ;;  %v10050_v63 = vld [vmem:[%s11148_s14 + $0x40] sm:$0xff] }
  0x47   : > { %10737 = vmatpush.bf16.msrb.mxu3 %v11161_v15  ;;  %v1762_v15 = vrot.slane %v1760_v8, 1  ;;  %3121 = vmatpush.bf16.msrb.mxu0 %v10112_v55  ;;  %v2251_v8 = vrot.slane %v10050_v63, 1 }
  0x48   : > { %2128 = vmatmul.bf16.gmra.mxu1 %v11170_v18  ;;  %2352 = vmatmul.bf16.gmra.mxu2 %v2240_v1  ;;  %v1874_v18 = vrot.slane %v1872_v11, 1  ;;  %v1796_v1 = vshrl.u32 %v10049_v54, 16  ;;  %v10111_v11 = vld [vmem:[%s15289_s1 + $0x110] sm:$0xff] }
  0x49   : > { %v1763_v22 = vsel %vm1735_vm0, %v1758_v13, %v1762_v15  ;;  %v1766_v33 = vor.u32 %v1764_v29, %v1762_v15  ;;  %v2252_v13 = vsel %vm2235_vm1, %v2249_v60, %v2251_v8  ;;  %v10051_v15 = vld [vmem:[%s11148_s14 + $0x48] sm:$0xff] }
  0x4a   : > { %v1798_v5 = vor.u32 %v1796_v1, %v1794_v59  ;;  %v1824_v1 = vshll.u32 %v11360_v57, 16 }
  0x4b   : > { %10738 = vmatpush.bf16.msrb.mxu3 %v11184_v23  ;;  %v1875_v23 = vsel %vm1735_vm0, %v1870_v17, %v1874_v18  ;;  %3122 = vmatpush.bf16.msrb.mxu0 %v10111_v11  ;;  %v1804_v17 = vshrl.u32 %v10050_v63, 16 }
  0x4c   : > { %v1826_v11 = vrot.slane %v1824_v1, 1  ;;  %v10120_v1 = vld [vmem:[%s15289_s1 + $0x158] sm:$0xff] }
  0x4f   : > { %10739 = vmatpush.bf16.msrb.mxu3 %v11206_v34  ;;  %v1770_v34 = vrot.slane %v1768_v30, 1 }
  0x51   : > { %v1771_v39 = vsel %vm1735_vm0, %v1766_v33, %v1770_v34 }
  0x53   : > { %10740 = vmatpush.bf16.msrb.mxu3 %v10060_v42 }
  0x56   : > { %1968 = vmatmul.bf16.gmra.mxu0 %v1763_v22  ;;  %2038 = vmatmul.bf16.gmra.mxu3 %v1875_v23  ;;  %v2263_v23 = vrot.slane %v11154_v14, 1 }
  0x57   : > { %10741 = vmatpush.bf16.msra.mxu3 %v11097_v3  ;;  %v1876_v3 = vshrl.u32 %v11256_v4, 16 }
  0x58   : > { %2133 = vmatmul.bf16.gmra.mxu1 %v10044_v51  ;;  %2357 = vmatmul.bf16.gmra.mxu2 %v2242_v26  ;;  %v2253_v26 = vrot.slane %v10051_v15, 1  ;;  %v2266_v30 = vsel %vm2235_vm1, %v2263_v23, %v2265_v25 }
  0x59   : > { %v1878_v36 = vor.u32 %v1876_v3, %v1874_v18  ;;  %v1808_v18 = vshll.u32 %v10051_v15, 16  ;;  %v10149_v3 = vld [vmem:[%s15289_s1 + $0x1b8] sm:$0xff] }
  0x5a   : > { %v2254_v33 = vsel %vm2235_vm1, %v2251_v8, %v2253_v26  ;;  %3762 = vmatpush.bf16.msrb.mxu2 %v10149_v3  ;;  %v10102_v8 = vld [vmem:[%s15289_s1 + $0xc8] sm:$0xff]  ;;  %v11394_v3 = vld [vmem:[%s11148_s14 + $0x60] sm:$0xff] }
  0x5b   : > { %10742 = vmatpush.bf16.msra.mxu3 %v11112_v6  ;;  %v1883_v6 = vsel %vm1735_vm0, %v1878_v36, %v1882_v37  ;;  %v1810_v22 = vrot.slane %v1808_v18, 1  ;;  %v10107_v36 = vld [vmem:[%s15289_s1 + $0xf0] sm:$0xff]  ;;  %v10124_v37 = vld [vmem:[%s15289_s1 + $0x178] sm:$0xff] }
  0x5c   : > { %3377 = vmatpush.bf16.msrb.mxu1 %v10124_v37  ;;  %v1828_v37 = vshrl.u32 %v11360_v57, 16 }
  0x5f   : > { %10743 = vmatpush.bf16.msra.mxu3 %v11128_v9  ;;  %v10047_v9 = vld [vmem:[%s11148_s14 + $0x28] sm:$0xff] }
  0x60   : > { %v1776_v42 = vshll.u32 %v10047_v9, 16  ;;  %v1780_v48 = vshrl.u32 %v10047_v9, 16 }
  0x62   : > { %v1778_v45 = vrot.slane %v1776_v42, 1 }
  0x63   : > { %10744 = vmatpush.bf16.msra.mxu3 %v11143_v12  ;;  %v1772_v12 = vshrl.u32 %v10046_v27, 16 }
  0x64   : > { %v1782_v50 = vor.u32 %v1780_v48, %v1778_v45 }
  0x65   : > { %v1774_v44 = vor.u32 %v1772_v12, %v1770_v34 }
  0x66   : > { %1973 = vmatmul.bf16.gmra.mxu0 %v1771_v39  ;;  %2043 = vmatmul.bf16.gmra.mxu3 %v1883_v6 }
  0x67   : > { %10745 = vmatpush.bf16.msra.mxu3 %v11166_v16  ;;  %v2245_v16 = vrot.slane %v10047_v9, 1  ;;  %v1779_v46 = vsel %vm1735_vm0, %v1774_v44, %v1778_v45  ;;  %v10106_v44 = vld [vmem:[%s15289_s1 + $0xe8] sm:$0xff] }
  0x68   : > { %2138 = vmatmul.bf16.gmra.mxu1 %v10045_v2  ;;  %2362 = vmatmul.bf16.gmra.mxu2 %v2244_v40  ;;  %v1800_v2 = vshll.u32 %v10050_v63, 16  ;;  %v10110_v45 = vld [vmem:[%s15289_s1 + $0x108] sm:$0xff] }
  0x69   : > { %v2246_v47 = vsel %vm2235_vm1, %v2243_v38, %v2245_v16  ;;  %3123 = vmatpush.bf16.msrb.mxu0 %v10110_v45  ;;  %v2259_v45 = vrot.slane %v11394_v3, 1 }
  0x6a   : > { %v1802_v7 = vrot.slane %v1800_v2, 1 }
  0x6b   : > { %10746 = vmatpush.bf16.msra.mxu3 %v11189_v24  ;;  %v10048_v24 = vld [vmem:[%s11148_s14 + $0x30] sm:$0xff] }
  0x6c   : > { %v1784_v49 = vshll.u32 %v10048_v24, 16  ;;  %v2247_v51 = vrot.slane %v10048_v24, 1  ;;  %v1788_v56 = vshrl.u32 %v10048_v24, 16  ;;  %v1803_v10 = vsel %vm1735_vm0, %v1798_v5, %v1802_v7 }
  0x6d   : > { %v1806_v20 = vor.u32 %v1804_v17, %v1802_v7  ;;  %v10148_v7 = vld [vmem:[%s15289_s1 + $0x1b0] sm:$0xff] }
  0x6e   : > { %v2250_v62 = vsel %vm2235_vm1, %v2247_v51, %v2249_v60  ;;  %v10103_v60 = vld [vmem:[%s15289_s1 + $0xd0] sm:$0xff]  ;;  %3763 = vmatpush.bf16.msrb.mxu2 %v10148_v7 }
  0x6f   : > { %10747 = vmatpush.bf16.msra.mxu3 %v11211_v35  ;;  %v1786_v35 = vrot.slane %v1784_v49, 1  ;;  %v1811_v29 = vsel %vm1735_vm0, %v1806_v20, %v1810_v22  ;;  %v10144_v7 = vld [vmem:[%s15289_s1 + $0x190] sm:$0xff] }
  0x71   : > { %v1787_v53 = vsel %vm1735_vm0, %v1782_v50, %v1786_v35  ;;  %v1790_v58 = vor.u32 %v1788_v56, %v1786_v35  ;;  %v10105_v50 = vld [vmem:[%s15289_s1 + $0xe0] sm:$0xff]  ;;  %v10104_v56 = vld [vmem:[%s15289_s1 + $0xd8] sm:$0xff] }
  0x73   : > { %10748 = vmatpush.bf16.msra.mxu3 %v11225_v43  ;;  %v2248_v43 = vsel %vm2235_vm1, %v2245_v16, %v2247_v51  ;;  %v1795_v61 = vsel %vm1735_vm0, %v1790_v58, %v1794_v59 }
  0x76   : > { %1978 = vmatmul.bf16.gmra.mxu0 %v1779_v46  ;;  %2193 = vmatmul.bf16.vlgmr.msrb.gmra.mxu3 %v11154_v14 }
  0x77   : > { %2724 = vmatpush.bf16.msrb.mxu3 %v10108_v19  ;;  %v10101_v19 = vld [vmem:[%s15289_s1 + $0xc0] sm:$0xff] }
  0x78   : > { %2143 = vmatmul.bf16.gmra.mxu1 %v10046_v27  ;;  %2367 = vmatmul.bf16.gmra.mxu2 %v2246_v47  ;;  %v2267_v47 = vrot.slane %v11241_v52, 1 }
  0x7b   : > { %2725 = vmatpush.bf16.msrb.mxu3 %v10107_v36 }
  0x7f   : > { %2726 = vmatpush.bf16.msrb.mxu3 %v10106_v44  ;;  %v2271_v44 = vrot.slane %v11271_v28, 1 }
  0x83   : > { %2727 = vmatpush.bf16.msrb.mxu3 %v10105_v50 }
  0x86   : > { %1983 = vmatmul.bf16.gmra.mxu0 %v1787_v53  ;;  %2198 = vmatmul.bf16.gmra.mxu3 %v11176_v21  ;;  %v11325_v21 = vld [vmem:[%s11148_s14 + $0x50] sm:$0xff] }
  0x87   : > { %v1816_v41 = vshll.u32 %v11325_v21, 16  ;;  %2728 = vmatpush.bf16.msrb.mxu3 %v10104_v56 }
  0x88   : > { %2148 = vmatmul.bf16.gmra.mxu1 %v10047_v9  ;;  %2372 = vmatmul.bf16.gmra.mxu2 %v2248_v43  ;;  %v1812_v9 = vshrl.u32 %v10051_v15, 16  ;;  %v2268_v43 = vsel %vm2235_vm1, %v2265_v25, %v2267_v47 }
  0x89   : > { %v1818_v46 = vrot.slane %v1816_v41, 1 }
  0x8a   : > { %v1814_v16 = vor.u32 %v1812_v9, %v1810_v22 }
  0x8b   : > { %2729 = vmatpush.bf16.msrb.mxu3 %v10103_v60  ;;  %v11435_v60 = vld [vmem:[%s11148_s14 + $0x68] sm:$0xff] }
  0x8c   : > { %v1819_v53 = vsel %vm1735_vm0, %v1814_v16, %v1818_v46  ;;  %v10122_v16 = vld [vmem:[%s15289_s1 + $0x168] sm:$0xff] }
  0x8f   : > { %2730 = vmatpush.bf16.msrb.mxu3 %v10102_v8 }
  0x93   : > { %2731 = vmatpush.bf16.msrb.mxu3 %v10101_v19  ;;  %v10119_v19 = vld [vmem:[%s15289_s1 + $0x150] sm:$0xff] }
  0x96   : > { %1988 = vmatmul.bf16.gmra.mxu0 %v1795_v61  ;;  %2203 = vmatmul.bf16.gmra.mxu3 %v11241_v52 }
  0x98   : > { %2153 = vmatmul.bf16.gmra.mxu1 %v10048_v24  ;;  %2377 = vmatmul.bf16.gmra.mxu2 %v2250_v62  ;;  %v2255_v24 = vrot.slane %v11325_v21, 1 }
  0xa6   : > { %1993 = vmatmul.bf16.gmra.mxu0 %v1803_v10  ;;  %2208 = vmatmul.bf16.gmra.mxu3 %v11256_v4 }
  0xa8   : > { %2158 = vmatmul.bf16.gmra.mxu1 %v10049_v54  ;;  %2382 = vmatmul.bf16.gmra.mxu2 %v2252_v13  ;;  %v2256_v54 = vsel %vm2235_vm1, %v2253_v26, %v2255_v24  ;;  %v2269_v13 = vrot.slane %v11256_v4, 1  ;;  %v10123_v4 = vld [vmem:[%s15289_s1 + $0x170] sm:$0xff] }
  0xa9   : > { %3378 = vmatpush.bf16.msrb.mxu1 %v10123_v4 }
  0xaa   : > { %v2270_v26 = vsel %vm2235_vm1, %v2267_v47, %v2269_v13 }
  0xad   : > { %3379 = vmatpush.bf16.msrb.mxu1 %v10122_v16  ;;  %v10117_v16 = vld [vmem:[%s15289_s1 + $0x140] sm:$0xff] }
  0xb3   : > { %v1959_v27 = vpop.f32.mrf.mxu0 }
  0xb5   : > { %v2124_v32 = vpop.f32.mrf.mxu1 }
  0xb6   : > { %v2125_v34 = vadd.f32 %v2124_v32, %v1959_v27  ;;  %1998 = vmatmul.bf16.gmra.mxu0 %v1811_v29  ;;  %2417 = vmatmul.bf16.vlgmr.msra.gmra.mxu3 %v2266_v30 }
  0xb8   : > { %2163 = vmatmul.bf16.gmra.mxu1 %v10050_v63  ;;  %2387 = vmatmul.bf16.gmra.mxu2 %v2254_v33  ;;  %v1820_v63 = vshrl.u32 %v11325_v21, 16 }
  0xb9   : > { %v11333_v38 = vpop.f32.mrf.mxu3 }
  0xba   : > { %v1822_v10 = vor.u32 %v1820_v63, %v1818_v46 }
  0xbb   : > { %v2348_v39 = vpop.f32.mrf.mxu2  ;;  %v1961_v40 = vpop.f32.mrf.mxu0 }
  0xbc   : > { %v11335_v6 = vadd.f32 %v2348_v39, %v2125_v34  ;;  %v1827_v25 = vsel %vm1735_vm0, %v1822_v10, %v1826_v11  ;;  %v1832_v39 = vshll.u32 %v11394_v3, 16  ;;  %v1836_v10 = vshrl.u32 %v11394_v3, 16 }
  0xbd   : > { %v2126_v12 = vpop.f32.mrf.mxu1 }
  0xbe   : > { %v2127_v42 = vadd.f32 %v2126_v12, %v1961_v40  ;;  %v10109_v40 = vld [vmem:[%s15289_s1 + $0x100] sm:$0xff]  ;;  %v1830_v12 = vor.u32 %v1828_v37, %v1826_v11  ;;  %v1840_v11 = vshll.u32 %v11435_v60, 16 }
  0xbf   : > { %3124 = vmatpush.bf16.msrb.mxu0 %v10109_v40  ;;  %v10142_v40 = vld [vmem:[%s15289_s1 + $0x180] sm:$0xff] }
  0xc1   : > { %v11346_v48 = vpop.f32.mrf.mxu3 }
  0xc3   : > { %v2350_v49 = vpop.f32.mrf.mxu2  ;;  %v1964_v51 = vpop.f32.mrf.mxu0 }
  0xc4   : > { %v11351_v35 = vadd.f32 %v2350_v49, %v2127_v42  ;;  %v1834_v42 = vrot.slane %v1832_v39, 1 }
  0xc5   : > { %v2129_v52 = vpop.f32.mrf.mxu1 }
  0xc6   : > { %v2130_v55 = vadd.f32 %v2129_v52, %v1964_v51  ;;  %2003 = vmatmul.bf16.gmra.mxu0 %v1819_v53  ;;  %2422 = vmatmul.bf16.gmra.mxu3 %v2268_v43  ;;  %v1835_v28 = vsel %vm1735_vm0, %v1830_v12, %v1834_v42  ;;  %v2272_v51 = vsel %vm2235_vm1, %v2269_v13, %v2271_v44  ;;  %v2474_v52 = vld [vmem:[%s11148_s14 + $0x8] sm:$0xe]  ;;  %v11451_v13 = vld [vmem:[%s11148_s14 + $0x10] sm:$0xff] }
  0xc7   : > { %v1838_v4 = vor.u32 %v1836_v10, %v1834_v42  ;;  %v2893_v14 = vshll.u32 %v11451_v13, 16 }
  0xc8   : > { %2168 = vmatmul.bf16.gmra.mxu1 %v10051_v15  ;;  %2392 = vmatmul.bf16.gmra.mxu2 %v2256_v54  ;;  %v2257_v15 = vrot.slane %v11360_v57, 1  ;;  %v11425_v54 = vld [vmem:[%s11148_s14 + $0xc] sm:$0xf] }
  0xc9   : > { %v11362_v58 = vpop.f32.mrf.mxu3  ;;  %v2566_v63 = vunpack.c.l.b16 %v11425_v54 }
  0xca   : > { %v2258_v29 = vsel %vm2235_vm1, %v2255_v24, %v2257_v15  ;;  %v10146_v24 = vld [vmem:[%s15289_s1 + $0x1a0] sm:$0xff]  ;;  %v2260_v43 = vsel %vm2235_vm1, %v2257_v15, %v2259_v45 }
  0xcb   : > { %v2353_v59 = vpop.f32.mrf.mxu2  ;;  %v1966_v62 = vpop.f32.mrf.mxu0 }
  0xcc   : > { %v11367_v61 = vadd.f32 %v2353_v59, %v2130_v55  ;;  %v10121_v55 = vld [vmem:[%s15289_s1 + $0x160] sm:$0xff]  ;;  %v10145_v59 = vld [vmem:[%s15289_s1 + $0x198] sm:$0xff] }
  0xcd   : > { %v2131_v2 = vpop.f32.mrf.mxu1  ;;  %3380 = vmatpush.bf16.msrb.mxu1 %v10121_v55 }
  0xce   : > { %v2132_v5 = vadd.f32 %v2131_v2, %v1966_v62  ;;  %v2565_v62 = vunpack.c.l.b16 %v2474_v52  ;;  %v11496_v52 = vld [vmem:[%s11148_s14 + $0x18] sm:$0xff] }
  0xd0   : > { %v11455_v15 = vpack.c.b16 %v2566_v63, %v2565_v62 }
  0xd1   : > { %v11379_v17 = vpop.f32.mrf.mxu3  ;;  %3381 = vmatpush.bf16.msrb.mxu1 %v10120_v1 }
  0xd3   : > { %v2355_v18 = vpop.f32.mrf.mxu2  ;;  %v1969_v22 = vpop.f32.mrf.mxu0 }
  0xd4   : > { %v11384_v20 = vadd.f32 %v2355_v18, %v2132_v5 }
  0xd5   : > { %v2134_v27 = vpop.f32.mrf.mxu1  ;;  %3382 = vmatpush.bf16.msrb.mxu1 %v10119_v19 }
  0xd6   : > { %v2135_v30 = vadd.f32 %v2134_v27, %v1969_v22  ;;  %2008 = vmatmul.bf16.gmra.mxu0 %v1827_v25  ;;  %2427 = vmatmul.bf16.gmra.mxu3 %v2270_v26  ;;  %v10157_v25 = vld [vmem:[%s15289_s1 + $0x1f8] sm:$0xff]  ;;  %v10143_v26 = vld [vmem:[%s15289_s1 + $0x188] sm:$0xff]  ;;  %v1842_v27 = vrot.slane %v1840_v11, 1 }
  0xd7   : > { %4155 = vmatpush.bf16.msra.mxu3 %v10157_v25  ;;  %v11512_v25 = vld [vmem:[%s11148_s14 + $0x14] sm:$0xf] }
  0xd8   : > { %2173 = vmatmul.bf16.gmra.mxu1 %v11325_v21  ;;  %2397 = vmatmul.bf16.gmra.mxu2 %v2258_v29  ;;  %v10147_v21 = vld [vmem:[%s15289_s1 + $0x1a8] sm:$0xff]  ;;  %v2621_v29 = vrot.slane %v11455_v15, 1 }
  0xd9   : > { %v11396_v32 = vpop.f32.mrf.mxu3  ;;  %3764 = vmatpush.bf16.msrb.mxu2 %v10147_v21  ;;  %v1843_v21 = vsel %vm1735_vm0, %v1838_v4, %v1842_v27  ;;  %v2890_v4 = vshrl.u32 %v11451_v13, 16 }
  0xdb   : > { %v2358_v33 = vpop.f32.mrf.mxu2  ;;  %v1971_v36 = vpop.f32.mrf.mxu0 }
  0xdc   : > { %v11398_v34 = vadd.f32 %v2358_v33, %v2135_v30  ;;  %v2622_v30 = vrot.slane %v11451_v13, 1  ;;  %v2261_v33 = vrot.slane %v11435_v60, 1 }
  0xdd   : > { %v2136_v9 = vpop.f32.mrf.mxu1  ;;  %3765 = vmatpush.bf16.msrb.mxu2 %v10146_v24  ;;  %v10165_v24 = vld [vmem:[%s15289_s1 + $0x238] sm:$0xff] }
  0xde   : > { %v2137_v41 = vadd.f32 %v2136_v9, %v1971_v36  ;;  %v10118_v36 = vld [vmem:[%s15289_s1 + $0x148] sm:$0xff]  ;;  %v2623_v12 = vsel %vm2235_vm1, %v2621_v29, %v2622_v30  ;;  %v2262_v44 = vsel %vm2235_vm1, %v2259_v45, %v2261_v33  ;;  %4415 = vmatpush.bf16.msra.mxu0 %v10165_v24 }
  0xdf   : > { %3383 = vmatpush.bf16.msrb.mxu1 %v10118_v36 }
  0xe1   : > { %v11413_v46 = vpop.f32.mrf.mxu3  ;;  %3766 = vmatpush.bf16.msrb.mxu2 %v10145_v59  ;;  %v2624_v59 = vrot.slane %v11496_v52, 1 }
  0xe3   : > { %v2360_v47 = vpop.f32.mrf.mxu2  ;;  %v1974_v50 = vpop.f32.mrf.mxu0  ;;  %3384 = vmatpush.bf16.msrb.mxu1 %v10117_v16  ;;  %v2625_v10 = vsel %vm2235_vm1, %v2622_v30, %v2624_v59 }
  0xe4   : > { %v11418_v49 = vadd.f32 %v2360_v47, %v2137_v41 }
  0xe5   : > { %v2139_v53 = vpop.f32.mrf.mxu1  ;;  %3767 = vmatpush.bf16.msrb.mxu2 %v10144_v7 }
  0xe6   : > { %v2140_v56 = vadd.f32 %v2139_v53, %v1974_v50  ;;  %2013 = vmatmul.bf16.gmra.mxu0 %v1835_v28  ;;  %2432 = vmatmul.bf16.gmra.mxu3 %v2272_v51 }
  0xe8   : > { %2178 = vmatmul.bf16.gmra.mxu1 %v11360_v57  ;;  %2402 = vmatmul.bf16.gmra.mxu2 %v2260_v43  ;;  %v1844_v43 = vshrl.u32 %v11435_v60, 16 }
  0xe9   : > { %v11441_v2 = vpop.f32.mrf.mxu3  ;;  %3768 = vmatpush.bf16.msrb.mxu2 %v10143_v26  ;;  %v2882_v26 = vshrl.u32 %v11455_v15, 16 }
  0xeb   : > { %v2363_v5 = vpop.f32.mrf.mxu2  ;;  %v1976_v8 = vpop.f32.mrf.mxu0 }
  0xec   : > { %v11446_v57 = vadd.f32 %v2363_v5, %v2140_v56  ;;  %v1846_v56 = vor.u32 %v1844_v43, %v1842_v27  ;;  %v15297_v27 = vunpack.c.l.b16 %v11512_v25 }
  0xed   : > { %v2141_v18 = vpop.f32.mrf.mxu1  ;;  %3769 = vmatpush.bf16.msrb.mxu2 %v10142_v40 }
  0xee   : > { %v2142_v22 = vadd.f32 %v2141_v18, %v1976_v8  ;;  %v1851_v8 = vsel %vm1735_vm0, %v1846_v56, %v11197_v31  ;;  %v2264_v18 = vsel %vm2235_vm1, %v2261_v33, %v2263_v23  ;;  %v2885_v31 = vshll.u32 %v11455_v15, 16 }
  0xf0   : > { %v2887_v15 = vrot.slane %v2885_v31, 2 }
  0xf1   : > { %v11472_v37 = vpop.f32.mrf.mxu3 }
  0xf3   : > { %v2365_v39 = vpop.f32.mrf.mxu2  ;;  %v1979_v41 = vpop.f32.mrf.mxu0 }
  0xf4   : > { %v11477_v9 = vadd.f32 %v2365_v39, %v2142_v22  ;;  %v3512_v22 = vld [vmem:[%s11148_s14 + $0x10] sm:$0xc]  ;;  %v2884_v39 = vrot.slane %v2882_v26, 1 }
  0xf5   : > { %v2144_v42 = vpop.f32.mrf.mxu1  ;;  %v3603_v23 = vunpack.c.l.b16 %v3512_v22 }
  0xf6   : > { %v2145_v47 = vadd.f32 %v2144_v42, %v1979_v41  ;;  %2018 = vmatmul.bf16.gmra.mxu0 %v1843_v21  ;;  %2732 = vmatmul.bf16.vlgmr.msrb.gmra.mxu3 %v2623_v12  ;;  %v11527_v41 = vld [vmem:[%s11148_s14 + $0x20] sm:$0xff]  ;;  %v2892_v21 = vrot.slane %v2890_v4, 1  ;;  %v2895_v12 = vrot.slane %v2893_v14, 2  ;;  %v11559_v14 = vld [vmem:[%s11148_s14 + $0x28] sm:$0xff] }
  0xf7   : > { %v11532_v16 = vpack.c.b16 %v15297_v27, %v3603_v23  ;;  %v2626_v24 = vrot.slane %v11527_v41, 1 }
  0xf8   : > { %2183 = vmatmul.bf16.gmra.mxu1 %v11394_v3  ;;  %2407 = vmatmul.bf16.gmra.mxu2 %v2262_v44  ;;  %v10125_v44 = vld [vmem:[%s11148_s14 + $0x18] sm:$0xff] }
  0xf9   : > { %v2194_v50 = vpop.f32.mrf.mxu3  ;;  %v3660_v43 = vrot.slane %v10125_v44, 2 }
  0xfa   : > { %v11490_v45 = vadd.f32 %v2194_v50, %v11333_v38  ;;  %v2888_v50 = vor.u32 %v2887_v15, %v2884_v39  ;;  %v10126_v39 = vld [vmem:[%s11148_s14 + $0x20] sm:$0xff]  ;;  %v2628_v15 = vrot.slane %v11559_v14, 1 }
  0xfb   : > { %v2368_v28 = vpop.f32.mrf.mxu2  ;;  %v1981_v53 = vpop.f32.mrf.mxu0 }
  0xfc   : > { %v11492_v51 = vadd.f32 %v2368_v28, %v2145_v47  ;;  %v2896_v28 = vor.u32 %v2895_v12, %v2892_v21  ;;  %v3662_v21 = vrot.slane %v10126_v39, 2  ;;  %v3277_v12 = vrot.slane %v11496_v52, 2 }
  0xfd   : > { %v2146_v3 = vpop.f32.mrf.mxu1 }
  0xfe   : > { %v2147_v55 = vadd.f32 %v2146_v3, %v1981_v53  ;;  %v3659_v53 = vrot.slane %v11532_v16, 2 }
 0x101   : > { %v2196_v62 = vpop.f32.mrf.mxu3 }
 0x102   : > { %v11500_v38 = vadd.f32 %v2196_v62, %v11346_v48  ;;  %v3252_v48 = vld [vmem:[%s11148_s14 + $0x8] sm:$0xc] }
 0x103   : > { %v2370_v1 = vpop.f32.mrf.mxu2  ;;  %v1984_v7 = vpop.f32.mrf.mxu0  ;;  %v3271_v29 = vunpack.c.l.b16 %v3252_v48 }
 0x104   : > { %v11502_v5 = vadd.f32 %v2370_v1, %v2147_v55  ;;  %v3275_v55 = vrot.slane %v11451_v13, 2  ;;  %v3661_v13 = vsel %vm3273_vm3, %v3659_v53, %v3660_v43  ;;  %v2629_v53 = vsel %vm2235_vm1, %v2626_v24, %v2628_v15 }
 0x105   : > { %v2149_v11 = vpop.f32.mrf.mxu1 }
 0x106   : > { %v2150_v19 = vadd.f32 %v2149_v11, %v1984_v7  ;;  %2023 = vmatmul.bf16.gmra.mxu0 %v1851_v8  ;;  %2737 = vmatmul.bf16.gmra.mxu3 %v2625_v10  ;;  %v2627_v7 = vsel %vm2235_vm1, %v2624_v59, %v2626_v24  ;;  %v2897_v8 = vsel %vm2880_vm2, %v2888_v50, %v2896_v28  ;;  %v10156_v10 = vld [vmem:[%s15289_s1 + $0x1f0] sm:$0xff]  ;;  %v2899_v59 = vshrl.u32 %v11496_v52, 16 }
 0x107   : > { %4156 = vmatpush.bf16.msra.mxu3 %v10156_v10 }
 0x108   : > { %2188 = vmatmul.bf16.gmra.mxu1 %v11435_v60  ;;  %2412 = vmatmul.bf16.gmra.mxu2 %v2264_v18  ;;  %v2901_v23 = vrot.slane %v2899_v59, 1 }
 0x109   : > { %v2199_v30 = vpop.f32.mrf.mxu3 }
 0x10a   : > { %v11522_v33 = vadd.f32 %v2199_v30, %v11362_v58  ;;  %v3272_v58 = vpack.c.b16 %v2566_v63, %v3271_v29  ;;  %v10164_v30 = vld [vmem:[%s15289_s1 + $0x230] sm:$0xff] }
 0x10b   : > { %v2373_v36 = vpop.f32.mrf.mxu2  ;;  %v1986_v60 = vpop.f32.mrf.mxu0  ;;  %4416 = vmatpush.bf16.msra.mxu0 %v10164_v30 }
 0x10c   : > { %v11524_v40 = vadd.f32 %v2373_v36, %v2150_v19  ;;  %v3274_v3 = vrot.slane %v3272_v58, 2  ;;  %v2902_v19 = vshll.u32 %v11496_v52, 16  ;;  %v2911_v52 = vshll.u32 %v11527_v41, 16 }
 0x10d   : > { %v2151_v42 = vpop.f32.mrf.mxu1 }
 0x10e   : > { %v2152_v47 = vadd.f32 %v2151_v42, %v1986_v60  ;;  %v3276_v18 = vsel %vm3273_vm3, %v3274_v3, %v3275_v55  ;;  %v2904_v29 = vrot.slane %v2902_v19, 2 }
 0x111   : > { %v2201_v56 = vpop.f32.mrf.mxu3 }
 0x112   : > { %v11540_v62 = vadd.f32 %v2201_v56, %v11379_v17 }
 0x113   : > { %v2375_v1 = vpop.f32.mrf.mxu2  ;;  %v1989_v63 = vpop.f32.mrf.mxu0 }
 0x114   : > { %v11542_v54 = vadd.f32 %v2375_v1, %v2152_v47  ;;  %v3663_v1 = vsel %vm3273_vm3, %v3660_v43, %v3662_v21 }
 0x115   : > { %v2154_v11 = vpop.f32.mrf.mxu1 }
 0x116   : > { %v2155_v17 = vadd.f32 %v2154_v11, %v1989_v63  ;;  %2742 = vmatmul.bf16.gmra.mxu3 %v2627_v7  ;;  %3125 = vmatmul.bf16.vlgmr.msrb.gmra.mxu0 %v2897_v8  ;;  %v3278_v63 = vsel %vm3273_vm3, %v3275_v55, %v3277_v12  ;;  %v11584_v11 = vld [vmem:[%s11148_s14 + $0x30] sm:$0xff] }
 0x117   : > { %v2630_v19 = vrot.slane %v11584_v11, 1 }
 0x118   : > { %3770 = vmatmul.bf16.vlgmr.msrb.gmra.mxu2 %v3661_v13  ;;  %3385 = vmatmul.bf16.vlgmr.msrb.gmra.mxu1 %v3276_v18  ;;  %v2913_v13 = vrot.slane %v2911_v52, 2  ;;  %v10128_v52 = vld [vmem:[%s11148_s14 + $0x30] sm:$0xff] }
 0x119   : > { %v2204_v22 = vpop.f32.mrf.mxu3  ;;  %v2631_v39 = vsel %vm2235_vm1, %v2628_v15, %v2630_v19  ;;  %v10155_v15 = vld [vmem:[%s15289_s1 + $0x1e8] sm:$0xff] }
 0x11a   : > { %v11554_v48 = vadd.f32 %v2204_v22, %v11396_v32  ;;  %v2905_v32 = vor.u32 %v2904_v29, %v2901_v23  ;;  %4157 = vmatpush.bf16.msra.mxu3 %v10155_v15 }
 0x11b   : > { %v2378_v26 = vpop.f32.mrf.mxu2  ;;  %v1991_v4 = vpop.f32.mrf.mxu0 }
 0x11c   : > { %v11556_v31 = vadd.f32 %v2378_v26, %v2155_v17  ;;  %v2906_v3 = vsel %vm2880_vm2, %v2896_v28, %v2905_v32  ;;  %v10127_v17 = vld [vmem:[%s11148_s14 + $0x28] sm:$0xff] }
 0x11d   : > { %v2156_v36 = vpop.f32.mrf.mxu1  ;;  %v3664_v26 = vrot.slane %v10127_v17, 2 }
 0x11e   : > { %v2157_v60 = vadd.f32 %v2156_v36, %v1991_v4  ;;  %v3279_v4 = vrot.slane %v11527_v41, 2 }
 0x121   : > { %v2206_v42 = vpop.f32.mrf.mxu3 }
 0x122   : > { %v11568_v44 = vadd.f32 %v2206_v42, %v11413_v46  ;;  %v2908_v46 = vshrl.u32 %v11527_v41, 16  ;;  %v2920_v41 = vshll.u32 %v11559_v14, 16 }
 0x123   : > { %v2380_v58 = vpop.f32.mrf.mxu2  ;;  %v1994_v50 = vpop.f32.mrf.mxu0 }
 0x124   : > { %v11570_v47 = vadd.f32 %v2380_v58, %v2157_v60  ;;  %v2910_v55 = vrot.slane %v2908_v46, 1  ;;  %v3665_v58 = vsel %vm3273_vm3, %v3662_v21, %v3664_v26 }
 0x125   : > { %v2159_v56 = vpop.f32.mrf.mxu1 }
 0x126   : > { %v2160_v7 = vadd.f32 %v2159_v56, %v1994_v50  ;;  %2747 = vmatmul.bf16.gmra.mxu3 %v2629_v53  ;;  %3130 = vmatmul.bf16.gmra.mxu0 %v2906_v3  ;;  %v2914_v22 = vor.u32 %v2913_v13, %v2910_v55  ;;  %v3280_v50 = vsel %vm3273_vm3, %v3277_v12, %v3279_v4  ;;  %v3281_v13 = vrot.slane %v11559_v14, 2 }
 0x128   : > { %3775 = vmatmul.bf16.gmra.mxu2 %v3663_v1  ;;  %3390 = vmatmul.bf16.gmra.mxu1 %v3278_v63  ;;  %v2915_v60 = vsel %vm2880_vm2, %v2905_v32, %v2914_v22  ;;  %v11609_v1 = vld [vmem:[%s11148_s14 + $0x38] sm:$0xff] }
 0x129   : > { %v2209_v8 = vpop.f32.mrf.mxu3 }
 0x12a   : > { %v11579_v24 = vadd.f32 %v2209_v8, %v11441_v2 }
 0x12b   : > { %v2383_v28 = vpop.f32.mrf.mxu2  ;;  %v1996_v43 = vpop.f32.mrf.mxu0 }
 0x12c   : > { %v11581_v10 = vadd.f32 %v2383_v28, %v2160_v7  ;;  %v2922_v7 = vrot.slane %v2920_v41, 2  ;;  %v10163_v28 = vld [vmem:[%s15289_s1 + $0x228] sm:$0xff]  ;;  %v11634_v41 = vld [vmem:[%s11148_s14 + $0x40] sm:$0xff] }
 0x12d   : > { %v2161_v18 = vpop.f32.mrf.mxu1  ;;  %4417 = vmatpush.bf16.msra.mxu0 %v10163_v28 }
 0x12e   : > { %v2162_v59 = vadd.f32 %v2161_v18, %v1996_v43  ;;  %v2632_v43 = vrot.slane %v11609_v1, 1 }
 0x131   : > { %v2211_v23 = vpop.f32.mrf.mxu3 }
 0x132   : > { %v11590_v2 = vadd.f32 %v2211_v23, %v11472_v37  ;;  %v2917_v37 = vshrl.u32 %v11559_v14, 16  ;;  %v2929_v14 = vshll.u32 %v11584_v11, 16 }
 0x133   : > { %v2385_v29 = vpop.f32.mrf.mxu2  ;;  %v1999_v36 = vpop.f32.mrf.mxu0 }
 0x134   : > { %v11592_v30 = vadd.f32 %v2385_v29, %v2162_v59  ;;  %v2919_v63 = vrot.slane %v2917_v37, 1  ;;  %v2931_v15 = vrot.slane %v2929_v14, 2  ;;  %v11656_v14 = vld [vmem:[%s11148_s14 + $0x48] sm:$0xff] }
 0x135   : > { %v2164_v42 = vpop.f32.mrf.mxu1 }
 0x136   : > { %v2165_v53 = vadd.f32 %v2164_v42, %v1999_v36  ;;  %2752 = vmatmul.bf16.gmra.mxu3 %v2631_v39  ;;  %3135 = vmatmul.bf16.gmra.mxu0 %v2915_v60  ;;  %v2923_v55 = vor.u32 %v2922_v7, %v2919_v63  ;;  %v2633_v36 = vsel %vm2235_vm1, %v2630_v19, %v2632_v43  ;;  %v2634_v63 = vrot.slane %v11634_v41, 1 }
 0x138   : > { %3780 = vmatmul.bf16.gmra.mxu2 %v3665_v58  ;;  %3395 = vmatmul.bf16.gmra.mxu1 %v3280_v50  ;;  %v2924_v39 = vsel %vm2880_vm2, %v2914_v22, %v2923_v55  ;;  %v3282_v58 = vsel %vm3273_vm3, %v3279_v4, %v3281_v13 }
 0x139   : > { %v2418_v32 = vpop.f32.mrf.mxu3 }
 0x13a   : > { %v11604_v3 = vadd.f32 %v2418_v32, %v11490_v45  ;;  %v3666_v45 = vrot.slane %v10128_v52, 2  ;;  %v3283_v52 = vrot.slane %v11584_v11, 2 }
 0x13b   : > { %v2388_v21 = vpop.f32.mrf.mxu2  ;;  %v2001_v56 = vpop.f32.mrf.mxu0 }
 0x13c   : > { %v11606_v12 = vadd.f32 %v2388_v21, %v2165_v53  ;;  %v3667_v42 = vsel %vm3273_vm3, %v3664_v26, %v3666_v45  ;;  %v10129_v21 = vld [vmem:[%s11148_s14 + $0x38] sm:$0xff] }
 0x13d   : > { %v2166_v46 = vpop.f32.mrf.mxu1 }
 0x13e   : > { %v2167_v8 = vadd.f32 %v2166_v46, %v2001_v56  ;;  %v3668_v46 = vrot.slane %v10129_v21, 2 }
 0x141   : > { %v2420_v18 = vpop.f32.mrf.mxu3 }
 0x142   : > { %v11618_v59 = vadd.f32 %v2420_v18, %v11500_v38  ;;  %v2926_v38 = vshrl.u32 %v11584_v11, 16  ;;  %v2938_v11 = vshll.u32 %v11609_v1, 16 }
 0x143   : > { %v2390_v17 = vpop.f32.mrf.mxu2  ;;  %v2004_v29 = vpop.f32.mrf.mxu0 }
 0x144   : > { %v11620_v23 = vadd.f32 %v2390_v17, %v2167_v8  ;;  %v2928_v4 = vrot.slane %v2926_v38, 1 }
 0x145   : > { %v2169_v60 = vpop.f32.mrf.mxu1 }
 0x146   : > { %v2170_v50 = vadd.f32 %v2169_v60, %v2004_v29  ;;  %2757 = vmatmul.bf16.gmra.mxu3 %v2633_v36  ;;  %3140 = vmatmul.bf16.gmra.mxu0 %v2924_v39  ;;  %v2932_v7 = vor.u32 %v2931_v15, %v2928_v4  ;;  %v2635_v29 = vsel %vm2235_vm1, %v2632_v43, %v2634_v63  ;;  %v10130_v4 = vld [vmem:[%s11148_s14 + $0x40] sm:$0xff] }
 0x147   : > { %v3669_v60 = vsel %vm3273_vm3, %v3666_v45, %v3668_v46 }
 0x148   : > { %3785 = vmatmul.bf16.gmra.mxu2 %v3667_v42  ;;  %3400 = vmatmul.bf16.gmra.mxu1 %v3282_v58  ;;  %v2933_v36 = vsel %vm2880_vm2, %v2923_v55, %v2932_v7  ;;  %v3284_v42 = vsel %vm3273_vm3, %v3281_v13, %v3283_v52 }
 0x149   : > { %v2423_v53 = vpop.f32.mrf.mxu3 }
 0x14a   : > { %v11629_v22 = vadd.f32 %v2423_v53, %v11522_v33  ;;  %v2940_v53 = vrot.slane %v2938_v11, 2 }
 0x14b   : > { %v2393_v19 = vpop.f32.mrf.mxu2  ;;  %v2006_v26 = vpop.f32.mrf.mxu0 }
 0x14c   : > { %v11631_v37 = vadd.f32 %v2393_v19, %v2170_v50  ;;  %v10154_v19 = vld [vmem:[%s15289_s1 + $0x1e0] sm:$0xff] }
 0x14d   : > { %v2171_v32 = vpop.f32.mrf.mxu1  ;;  %4158 = vmatpush.bf16.msra.mxu3 %v10154_v19 }
 0x14e   : > { %v2172_v56 = vadd.f32 %v2171_v32, %v2006_v26  ;;  %v2636_v32 = vrot.slane %v11656_v14, 1 }
 0x151   : > { %v2425_v8 = vpop.f32.mrf.mxu3 }
 0x152   : > { %v11640_v33 = vadd.f32 %v2425_v8, %v11540_v62  ;;  %v2935_v62 = vshrl.u32 %v11609_v1, 16 }
 0x153   : > { %v2395_v28 = vpop.f32.mrf.mxu2  ;;  %v2009_v17 = vpop.f32.mrf.mxu0 }
 0x154   : > { %v11642_v18 = vadd.f32 %v2395_v28, %v2172_v56  ;;  %v2937_v13 = vrot.slane %v2935_v62, 1  ;;  %v3285_v56 = vrot.slane %v11609_v1, 2 }
 0x155   : > { %v2174_v39 = vpop.f32.mrf.mxu1 }
 0x156   : > { %v2175_v58 = vadd.f32 %v2174_v39, %v2009_v17  ;;  %2762 = vmatmul.bf16.gmra.mxu3 %v2635_v29  ;;  %3145 = vmatmul.bf16.gmra.mxu0 %v2933_v36  ;;  %v2941_v21 = vor.u32 %v2940_v53, %v2937_v13  ;;  %v2637_v39 = vsel %vm2235_vm1, %v2634_v63, %v2636_v32  ;;  %v2947_v63 = vshll.u32 %v11634_v41, 16 }
 0x157   : > { %v3286_v62 = vsel %vm3273_vm3, %v3283_v52, %v3285_v56  ;;  %v11684_v52 = vld [vmem:[%s11148_s14 + $0x50] sm:$0xff] }
 0x158   : > { %3790 = vmatmul.bf16.gmra.mxu2 %v3669_v60  ;;  %3405 = vmatmul.bf16.gmra.mxu1 %v3284_v42  ;;  %v2942_v60 = vsel %vm2880_vm2, %v2932_v7, %v2941_v21  ;;  %v10162_v42 = vld [vmem:[%s15289_s1 + $0x220] sm:$0xff]  ;;  %v2949_v53 = vrot.slane %v2947_v63, 2 }
 0x159   : > { %v2428_v50 = vpop.f32.mrf.mxu3  ;;  %4418 = vmatpush.bf16.msra.mxu0 %v10162_v42 }
 0x15a   : > { %v11651_v55 = vadd.f32 %v2428_v50, %v11554_v48  ;;  %v3670_v48 = vrot.slane %v10130_v4, 2 }
 0x15b   : > { %v2398_v43 = vpop.f32.mrf.mxu2  ;;  %v2011_v45 = vpop.f32.mrf.mxu0 }
 0x15c   : > { %v11653_v38 = vadd.f32 %v2398_v43, %v2175_v58  ;;  %v3671_v1 = vsel %vm3273_vm3, %v3668_v46, %v3670_v48 }
 0x15d   : > { %v2176_v26 = vpop.f32.mrf.mxu1 }
 0x15e   : > { %v2177_v15 = vadd.f32 %v2176_v26, %v2011_v45  ;;  %v10131_v26 = vld [vmem:[%s11148_s14 + $0x48] sm:$0xff] }
 0x161   : > { %v2430_v8 = vpop.f32.mrf.mxu3 }
 0x162   : > { %v11665_v17 = vadd.f32 %v2430_v8, %v11568_v44  ;;  %v2944_v44 = vshrl.u32 %v11634_v41, 16 }
 0x163   : > { %v2400_v28 = vpop.f32.mrf.mxu2  ;;  %v2014_v36 = vpop.f32.mrf.mxu0 }
 0x164   : > { %v11667_v29 = vadd.f32 %v2400_v28, %v2177_v15  ;;  %v2946_v13 = vrot.slane %v2944_v44, 1  ;;  %v2638_v15 = vrot.slane %v11684_v52, 1  ;;  %v3672_v28 = vrot.slane %v10131_v26, 2  ;;  %v10132_v26 = vld [vmem:[%s11148_s14 + $0x50] sm:$0xff] }
 0x165   : > { %v2179_v58 = vpop.f32.mrf.mxu1 }
 0x166   : > { %v2180_v11 = vadd.f32 %v2179_v58, %v2014_v36  ;;  %2767 = vmatmul.bf16.gmra.mxu3 %v2637_v39  ;;  %3150 = vmatmul.bf16.gmra.mxu0 %v2942_v60  ;;  %v2950_v8 = vor.u32 %v2949_v53, %v2946_v13  ;;  %v3287_v36 = vrot.slane %v11634_v41, 2  ;;  %v3673_v44 = vsel %vm3273_vm3, %v3670_v48, %v3672_v28  ;;  %v11704_v48 = vld [vmem:[%s11148_s14 + $0x58] sm:$0xff] }
 0x167   : > { %v2956_v41 = vshll.u32 %v11656_v14, 16 }
 0x168   : > { %3795 = vmatmul.bf16.gmra.mxu2 %v3671_v1  ;;  %3410 = vmatmul.bf16.gmra.mxu1 %v3286_v62  ;;  %v2639_v1 = vsel %vm2235_vm1, %v2636_v32, %v2638_v15  ;;  %v2951_v62 = vsel %vm2880_vm2, %v2941_v21, %v2950_v8  ;;  %v3288_v63 = vsel %vm3273_vm3, %v3285_v56, %v3287_v36 }
 0x169   : > { %v2433_v7 = vpop.f32.mrf.mxu3  ;;  %v2958_v53 = vrot.slane %v2956_v41, 2 }
 0x16a   : > { %v11679_v43 = vadd.f32 %v2433_v7, %v11579_v24 }
 0x16b   : > { %v2403_v50 = vpop.f32.mrf.mxu2  ;;  %v2016_v46 = vpop.f32.mrf.mxu0 }
 0x16c   : > { %v11681_v45 = vadd.f32 %v2403_v50, %v2180_v11 }
 0x16d   : > { %v2181_v19 = vpop.f32.mrf.mxu1 }
 0x16e   : > { %v2182_v4 = vadd.f32 %v2181_v19, %v2016_v46 }
 0x171   : > { %v2435_v39 = vpop.f32.mrf.mxu3 }
 0x172   : > { %v11690_v24 = vadd.f32 %v2435_v39, %v11590_v2  ;;  %v2953_v2 = vshrl.u32 %v11656_v14, 16  ;;  %v10153_v39 = vld [vmem:[%s15289_s1 + $0x1d8] sm:$0xff] }
 0x173   : > { %v2405_v60 = vpop.f32.mrf.mxu2  ;;  %v2019_v58 = vpop.f32.mrf.mxu0  ;;  %4159 = vmatpush.bf16.msra.mxu3 %v10153_v39 }
 0x174   : > { %v11692_v42 = vadd.f32 %v2405_v60, %v2182_v4  ;;  %v2955_v56 = vrot.slane %v2953_v2, 1  ;;  %v2640_v60 = vrot.slane %v11704_v48, 1 }
 0x175   : > { %v2184_v11 = vpop.f32.mrf.mxu1 }
 0x176   : > { %v2185_v7 = vadd.f32 %v2184_v11, %v2019_v58  ;;  %2772 = vmatmul.bf16.gmra.mxu3 %v2639_v1  ;;  %3155 = vmatmul.bf16.gmra.mxu0 %v2951_v62  ;;  %v2959_v58 = vor.u32 %v2958_v53, %v2955_v56  ;;  %v3674_v1 = vrot.slane %v10132_v26, 2  ;;  %v2641_v2 = vsel %vm2235_vm1, %v2638_v15, %v2640_v60  ;;  %v10161_v15 = vld [vmem:[%s15289_s1 + $0x218] sm:$0xff]  ;;  %v11728_v26 = vld [vmem:[%s11148_s14 + $0x60] sm:$0xff] }
 0x177   : > { %4419 = vmatpush.bf16.msra.mxu0 %v10161_v15 }
 0x178   : > { %3800 = vmatmul.bf16.gmra.mxu2 %v3673_v44  ;;  %3415 = vmatmul.bf16.gmra.mxu1 %v3288_v63  ;;  %v2960_v41 = vsel %vm2880_vm2, %v2950_v8, %v2959_v58 }
 0x179   : > { %v2733_v50 = vpop.f32.mrf.mxu3 }
 0x17a   : > { %v2823_v21 = vadd.f32 %v2733_v50, %v11335_v6  ;;  %v3289_v6 = vrot.slane %v11656_v14, 2  ;;  %v2965_v14 = vshll.u32 %v11684_v52, 16 }
 0x17b   : > { %v2408_v32 = vpop.f32.mrf.mxu2  ;;  %v2021_v13 = vpop.f32.mrf.mxu0 }
 0x17c   : > { %v11701_v46 = vadd.f32 %v2408_v32, %v2185_v7  ;;  %v3675_v32 = vsel %vm3273_vm3, %v3672_v28, %v3674_v1  ;;  %v2967_v39 = vrot.slane %v2965_v14, 2 }
 0x17d   : > { %v2186_v19 = vpop.f32.mrf.mxu1 }
 0x17e   : > { %v2187_v4 = vadd.f32 %v2186_v19, %v2021_v13  ;;  %v3290_v13 = vsel %vm3273_vm3, %v3287_v36, %v3289_v6 }
 0x181   : > { %v2735_v62 = vpop.f32.mrf.mxu3 }
 0x182   : > { %v2824_v44 = vadd.f32 %v2735_v62, %v11351_v35  ;;  %v2962_v35 = vshrl.u32 %v11684_v52, 16 }
 0x183   : > { %v2410_v11 = vpop.f32.mrf.mxu2  ;;  %v2024_v7 = vpop.f32.mrf.mxu0 }
 0x184   : > { %v11713_v63 = vadd.f32 %v2410_v11, %v2187_v4  ;;  %v2964_v4 = vrot.slane %v2962_v35, 1  ;;  %v10133_v11 = vld [vmem:[%s11148_s14 + $0x58] sm:$0xff] }
 0x185   : > { %v2189_v50 = vpop.f32.mrf.mxu1 }
 0x186   : > { %v2190_v56 = vadd.f32 %v2189_v50, %v2024_v7  ;;  %2777 = vmatmul.bf16.gmra.mxu3 %v2641_v2  ;;  %3160 = vmatmul.bf16.gmra.mxu0 %v2960_v41  ;;  %v2642_v2 = vrot.slane %v11728_v26, 1  ;;  %v2968_v41 = vor.u32 %v2967_v39, %v2964_v4  ;;  %v3676_v50 = vrot.slane %v10133_v11, 2 }
 0x188   : > { %3805 = vmatmul.bf16.gmra.mxu2 %v3675_v32  ;;  %3420 = vmatmul.bf16.gmra.mxu1 %v3290_v13  ;;  %v3291_v32 = vrot.slane %v11684_v52, 2  ;;  %v2643_v35 = vsel %vm2235_vm1, %v2640_v60, %v2642_v2  ;;  %v2969_v14 = vsel %vm2880_vm2, %v2959_v58, %v2968_v41  ;;  %v3677_v52 = vsel %vm3273_vm3, %v3674_v1, %v3676_v50 }
 0x189   : > { %v2738_v8 = vpop.f32.mrf.mxu3  ;;  %v2971_v60 = vshrl.u32 %v11704_v48, 16  ;;  %v2974_v58 = vshll.u32 %v11704_v48, 16 }
 0x18a   : > { %v2825_v53 = vadd.f32 %v2738_v8, %v11367_v61  ;;  %v3292_v39 = vsel %vm3273_vm3, %v3289_v6, %v3291_v32 }
 0x18b   : > { %v2413_v28 = vpop.f32.mrf.mxu2  ;;  %v2026_v19 = vpop.f32.mrf.mxu0 }
 0x18c   : > { %v11725_v36 = vadd.f32 %v2413_v28, %v2190_v56  ;;  %v10191_v28 = vld [vmem:[%s15291_s3 + $0x38] sm:$0xff] }
 0x18d   : > { %v2191_v62 = vpop.f32.mrf.mxu1  ;;  %5597 = vmatpush.bf16.msra.mxu2 %v10191_v28  ;;  %v10134_v28 = vld [vmem:[%s11148_s14 + $0x60] sm:$0xff] }
 0x18e   : > { %v2192_v7 = vadd.f32 %v2191_v62, %v2026_v19  ;;  %v10216_v62 = vld [vmem:[#allocation3 + $0x38] sm:$0xff] }
 0x18f   : > { %5169 = vmatpush.bf16.msra.mxu1 %v10216_v62  ;;  %v3293_v62 = vrot.slane %v11704_v48, 2 }
 0x191   : > { %v2740_v13 = vpop.f32.mrf.mxu3 }
 0x192   : > { %v11734_v61 = vadd.f32 %v2740_v13, %v11384_v20  ;;  %v11751_v13 = vld [vmem:[%s11148_s14 + $0x68] sm:$0xff] }
 0x193   : > { %v2415_v15 = vpop.f32.mrf.mxu2  ;;  %v3126_v8 = vpop.f32.mrf.mxu0 }
 0x194   : > { %v11736_v56 = vadd.f32 %v2415_v15, %v2192_v7  ;;  %v3216_v19 = vadd.f32 %v3126_v8, %v2823_v21  ;;  %v2973_v15 = vrot.slane %v2971_v60, 1  ;;  %v2976_v8 = vrot.slane %v2974_v58, 2  ;;  %v10152_v58 = vld [vmem:[%s15289_s1 + $0x1d0] sm:$0xff] }
 0x195   : > { %v3386_v4 = vpop.f32.mrf.mxu1  ;;  %4160 = vmatpush.bf16.msra.mxu3 %v10152_v58 }
 0x196   : > { %v3476_v20 = vadd.f32 %v3386_v4, %v3216_v19  ;;  %2782 = vmatmul.bf16.gmra.mxu3 %v2643_v35  ;;  %3165 = vmatmul.bf16.gmra.mxu0 %v2969_v14  ;;  %v2644_v4 = vrot.slane %v11751_v13, 1 }
 0x198   : > { %3810 = vmatmul.bf16.gmra.mxu2 %v3677_v52  ;;  %3425 = vmatmul.bf16.gmra.mxu1 %v3292_v39  ;;  %v2977_v52 = vor.u32 %v2976_v8, %v2973_v15  ;;  %v3678_v39 = vrot.slane %v10134_v28, 2  ;;  %v2645_v60 = vsel %vm2235_vm1, %v2642_v2, %v2644_v4  ;;  %v2980_v2 = vshrl.u32 %v11728_v26, 16 }
 0x199   : > { %v2743_v11 = vpop.f32.mrf.mxu3 }
 0x19a   : > { %v2827_v21 = vadd.f32 %v2743_v11, %v11398_v34  ;;  %v3679_v48 = vsel %vm3273_vm3, %v3676_v50, %v3678_v39  ;;  %v2982_v28 = vrot.slane %v2980_v2, 1 }
 0x19b   : > { %v3771_v1 = vpop.f32.mrf.mxu2  ;;  %v3128_v6 = vpop.f32.mrf.mxu0 }
 0x19c   : > { %v11748_v7 = vadd.f32 %v3771_v1, %v3476_v20  ;;  %v3217_v35 = vadd.f32 %v3128_v6, %v2824_v44  ;;  %v2978_v44 = vsel %vm2880_vm2, %v2968_v41, %v2977_v52  ;;  %v2983_v41 = vshll.u32 %v11728_v26, 16 }
 0x19d   : > { %v3388_v14 = vpop.f32.mrf.mxu1 }
 0x19e   : > { %v3477_v19 = vadd.f32 %v3388_v14, %v3217_v35 }
 0x1a1   : > { %v2745_v0 = vpop.f32.mrf.mxu3 }
 0x1a2   : > { %v11757_v34 = vadd.f32 %v2745_v0, %v11418_v49  ;;  %v3294_v0 = vsel %vm3273_vm3, %v3291_v32, %v3293_v62  ;;  %v11776_v32 = vld [vmem:[%s11148_s14 + $0x70] sm:$0xff] }
 0x1a3   : > { %v3773_v20 = vpop.f32.mrf.mxu2  ;;  %v3131_v1 = vpop.f32.mrf.mxu0 }
 0x1a4   : > { %v11759_v11 = vadd.f32 %v3773_v20, %v3477_v19  ;;  %v3218_v6 = vadd.f32 %v3131_v1, %v2825_v53  ;;  %v2985_v19 = vrot.slane %v2983_v41, 2  ;;  %v10160_v20 = vld [vmem:[%s15289_s1 + $0x210] sm:$0xff] }
 0x1a5   : > { %v3391_v15 = vpop.f32.mrf.mxu1  ;;  %4420 = vmatpush.bf16.msra.mxu0 %v10160_v20 }
 0x1a6   : > { %v3478_v49 = vadd.f32 %v3391_v15, %v3218_v6  ;;  %2787 = vmatmul.bf16.gmra.mxu3 %v2645_v60  ;;  %3170 = vmatmul.bf16.gmra.mxu0 %v2978_v44  ;;  %v10135_v44 = vld [vmem:[%s11148_s14 + $0x68] sm:$0xff]  ;;  %v2986_v6 = vor.u32 %v2985_v19, %v2982_v28  ;;  %v2992_v19 = vshll.u32 %v11751_v13, 16 }
 0x1a7   : > { %v3680_v15 = vrot.slane %v10135_v44, 2  ;;  %v11805_v44 = vld [vmem:[%s11148_s14 + $0x78] sm:$0xff] }
 0x1a8   : > { %3815 = vmatmul.bf16.gmra.mxu2 %v3679_v48  ;;  %3430 = vmatmul.bf16.gmra.mxu1 %v3294_v0  ;;  %v3295_v48 = vrot.slane %v11728_v26, 2 }
 0x1a9   : > { %v2748_v8 = vpop.f32.mrf.mxu3 }
 0x1aa   : > { %v11771_v53 = vadd.f32 %v2748_v8, %v11446_v57  ;;  %v2646_v57 = vrot.slane %v11776_v32, 1  ;;  %v3296_v28 = vsel %vm3273_vm3, %v3293_v62, %v3295_v48 }
 0x1ab   : > { %v3776_v35 = vpop.f32.mrf.mxu2  ;;  %v3133_v50 = vpop.f32.mrf.mxu0 }
 0x1ac   : > { %v11773_v14 = vadd.f32 %v3776_v35, %v3478_v49  ;;  %v3219_v1 = vadd.f32 %v3133_v50, %v11734_v61  ;;  %v2647_v61 = vsel %vm2235_vm1, %v2644_v4, %v2646_v57  ;;  %v2987_v35 = vsel %vm2880_vm2, %v2977_v52, %v2986_v6 }
 0x1ad   : > { %v3393_v60 = vpop.f32.mrf.mxu1 }
 0x1ae   : > { %v3479_v58 = vadd.f32 %v3393_v60, %v3219_v1  ;;  %v3681_v1 = vsel %vm3273_vm3, %v3678_v39, %v3680_v15 }
 0x1b1   : > { %v2750_v0 = vpop.f32.mrf.mxu3 }
 0x1b2   : > { %v11786_v49 = vadd.f32 %v2750_v0, %v11477_v9  ;;  %v2989_v9 = vshrl.u32 %v11751_v13, 16  ;;  %v2994_v0 = vrot.slane %v2992_v19, 2 }
 0x1b3   : > { %v3778_v2 = vpop.f32.mrf.mxu2  ;;  %v3136_v8 = vpop.f32.mrf.mxu0 }
 0x1b4   : > { %v11788_v41 = vadd.f32 %v3778_v2, %v3479_v58  ;;  %v3220_v50 = vadd.f32 %v3136_v8, %v2827_v21  ;;  %v10190_v21 = vld [vmem:[%s15291_s3 + $0x30] sm:$0xff]  ;;  %v2991_v58 = vrot.slane %v2989_v9, 1  ;;  %v10215_v2 = vld [vmem:[#allocation3 + $0x30] sm:$0xff] }
 0x1b5   : > { %v3396_v20 = vpop.f32.mrf.mxu1  ;;  %5598 = vmatpush.bf16.msra.mxu2 %v10190_v21  ;;  %5170 = vmatpush.bf16.msra.mxu1 %v10215_v2 }
 0x1b6   : > { %v3480_v26 = vadd.f32 %v3396_v20, %v3220_v50  ;;  %2792 = vmatmul.bf16.gmra.mxu3 %v2647_v61  ;;  %3175 = vmatmul.bf16.gmra.mxu0 %v2987_v35  ;;  %v10136_v35 = vld [vmem:[%s11148_s14 + $0x70] sm:$0xff]  ;;  %v2648_v20 = vrot.slane %v11805_v44, 1 }
 0x1b8   : > { %3820 = vmatmul.bf16.gmra.mxu2 %v3681_v1  ;;  %3435 = vmatmul.bf16.gmra.mxu1 %v3296_v28  ;;  %v2995_v1 = vor.u32 %v2994_v0, %v2991_v58  ;;  %v3297_v28 = vrot.slane %v11751_v13, 2 }
 0x1b9   : > { %v2753_v4 = vpop.f32.mrf.mxu3 }
 0x1ba   : > { %v11800_v52 = vadd.f32 %v2753_v4, %v11492_v51  ;;  %v3682_v51 = vrot.slane %v10136_v35, 2  ;;  %v3298_v13 = vsel %vm3273_vm3, %v3295_v48, %v3297_v28  ;;  %v11832_v35 = vld [vmem:[%s11148_s14 + $0x80] sm:$0xff] }
 0x1bb   : > { %v3781_v39 = vpop.f32.mrf.mxu2  ;;  %v3138_v60 = vpop.f32.mrf.mxu0 }
 0x1bc   : > { %v11802_v62 = vadd.f32 %v3781_v39, %v3480_v26  ;;  %v3221_v8 = vadd.f32 %v3138_v60, %v11757_v34  ;;  %v2649_v34 = vsel %vm2235_vm1, %v2646_v57, %v2648_v20  ;;  %v2996_v39 = vsel %vm2880_vm2, %v2986_v6, %v2995_v1 }
 0x1bd   : > { %v3398_v61 = vpop.f32.mrf.mxu1  ;;  %v3683_v58 = vsel %vm3273_vm3, %v3680_v15, %v3682_v51  ;;  %v3001_v57 = vshll.u32 %v11776_v32, 16 }
 0x1be   : > { %v3481_v50 = vadd.f32 %v3398_v61, %v3221_v8 }
 0x1c1   : > { %v2755_v26 = vpop.f32.mrf.mxu3 }
 0x1c2   : > { %v11812_v21 = vadd.f32 %v2755_v26, %v11502_v5  ;;  %v2998_v5 = vshrl.u32 %v11776_v32, 16  ;;  %v3003_v26 = vrot.slane %v3001_v57, 2 }
 0x1c3   : > { %v3783_v4 = vpop.f32.mrf.mxu2  ;;  %v3141_v19 = vpop.f32.mrf.mxu0 }
 0x1c4   : > { %v11814_v9 = vadd.f32 %v3783_v4, %v3481_v50  ;;  %v3222_v60 = vadd.f32 %v3141_v19, %v11771_v53  ;;  %v10151_v53 = vld [vmem:[%s15289_s1 + $0x1c8] sm:$0xff]  ;;  %v3000_v50 = vrot.slane %v2998_v5, 1 }
 0x1c5   : > { %v3401_v2 = vpop.f32.mrf.mxu1  ;;  %4161 = vmatpush.bf16.msra.mxu3 %v10151_v53 }
 0x1c6   : > { %v3482_v0 = vadd.f32 %v3401_v2, %v3222_v60  ;;  %2797 = vmatmul.bf16.gmra.mxu3 %v2649_v34  ;;  %3180 = vmatmul.bf16.gmra.mxu0 %v2996_v39  ;;  %v10137_v34 = vld [vmem:[%s11148_s14 + $0x78] sm:$0xff]  ;;  %v10159_v60 = vld [vmem:[%s15289_s1 + $0x208] sm:$0xff]  ;;  %v3004_v2 = vor.u32 %v3003_v26, %v3000_v50 }
 0x1c7   : > { %4421 = vmatpush.bf16.msra.mxu0 %v10159_v60 }
 0x1c8   : > { %3825 = vmatmul.bf16.gmra.mxu2 %v3683_v58  ;;  %3440 = vmatmul.bf16.gmra.mxu1 %v3298_v13  ;;  %v3684_v58 = vrot.slane %v10137_v34, 2  ;;  %v3299_v13 = vrot.slane %v11776_v32, 2 }
 0x1c9   : > { %v2758_v6 = vpop.f32.mrf.mxu3 }
 0x1ca   : > { %v11827_v15 = vadd.f32 %v2758_v6, %v11524_v40  ;;  %v2650_v40 = vrot.slane %v11832_v35, 1  ;;  %v3685_v26 = vsel %vm3273_vm3, %v3682_v51, %v3684_v58  ;;  %v3300_v32 = vsel %vm3273_vm3, %v3297_v28, %v3299_v13 }
 0x1cb   : > { %v3786_v48 = vpop.f32.mrf.mxu2  ;;  %v3143_v61 = vpop.f32.mrf.mxu0 }
 0x1cc   : > { %v11829_v8 = vadd.f32 %v3786_v48, %v3482_v0  ;;  %v3223_v4 = vadd.f32 %v3143_v61, %v11786_v49  ;;  %v2651_v6 = vsel %vm2235_vm1, %v2648_v20, %v2650_v40  ;;  %v3005_v48 = vsel %vm2880_vm2, %v2995_v1, %v3004_v2 }
 0x1cd   : > { %v3403_v19 = vpop.f32.mrf.mxu1  ;;  %v3010_v20 = vshll.u32 %v11805_v44, 16 }
 0x1ce   : > { %v3483_v39 = vadd.f32 %v3403_v19, %v3223_v4 }
 0x1cf   : > { %v3012_v60 = vrot.slane %v3010_v20, 2 }
 0x1d1   : > { %v2760_v0 = vpop.f32.mrf.mxu3 }
 0x1d2   : > { %v11842_v5 = vadd.f32 %v2760_v0, %v11542_v54  ;;  %v3007_v54 = vshrl.u32 %v11805_v44, 16  ;;  %v10189_v0 = vld [vmem:[%s15291_s3 + $0x28] sm:$0xff] }
 0x1d3   : > { %v3788_v57 = vpop.f32.mrf.mxu2  ;;  %v3146_v53 = vpop.f32.mrf.mxu0  ;;  %5599 = vmatpush.bf16.msra.mxu2 %v10189_v0 }
 0x1d4   : > { %v11844_v49 = vadd.f32 %v3788_v57, %v3483_v39  ;;  %v3224_v61 = vadd.f32 %v3146_v53, %v11800_v52  ;;  %v11859_v39 = vld [vmem:[%s11148_s14 + $0x88] sm:$0xff]  ;;  %v3009_v28 = vrot.slane %v3007_v54, 1 }
 0x1d5   : > { %v3406_v50 = vpop.f32.mrf.mxu1 }
 0x1d6   : > { %v3484_v4 = vadd.f32 %v3406_v50, %v3224_v61  ;;  %2802 = vmatmul.bf16.gmra.mxu3 %v2651_v6  ;;  %3185 = vmatmul.bf16.gmra.mxu0 %v3005_v48  ;;  %v10138_v6 = vld [vmem:[%s11148_s14 + $0x80] sm:$0xff]  ;;  %v2652_v61 = vrot.slane %v11859_v39, 1  ;;  %v3013_v50 = vor.u32 %v3012_v60, %v3009_v28 }
 0x1d8   : > { %3830 = vmatmul.bf16.gmra.mxu2 %v3685_v26  ;;  %3445 = vmatmul.bf16.gmra.mxu1 %v3300_v32  ;;  %v3686_v26 = vrot.slane %v10138_v6, 2  ;;  %v3301_v32 = vrot.slane %v11805_v44, 2 }
 0x1d9   : > { %v2763_v19 = vpop.f32.mrf.mxu3 }
 0x1da   : > { %v11854_v1 = vadd.f32 %v2763_v19, %v11556_v31  ;;  %v10214_v31 = vld [vmem:[#allocation3 + $0x28] sm:$0xff]  ;;  %v3687_v60 = vsel %vm3273_vm3, %v3684_v58, %v3686_v26  ;;  %v3302_v44 = vsel %vm3273_vm3, %v3299_v13, %v3301_v32 }
 0x1db   : > { %v3791_v52 = vpop.f32.mrf.mxu2  ;;  %v3148_v51 = vpop.f32.mrf.mxu0  ;;  %5171 = vmatpush.bf16.msra.mxu1 %v10214_v31 }
 0x1dc   : > { %v11856_v34 = vadd.f32 %v3791_v52, %v3484_v4  ;;  %v3225_v57 = vadd.f32 %v3148_v51, %v11812_v21  ;;  %v2653_v52 = vsel %vm2235_vm1, %v2650_v40, %v2652_v61  ;;  %v3014_v51 = vsel %vm2880_vm2, %v3004_v2, %v3013_v50 }
 0x1dd   : > { %v3408_v53 = vpop.f32.mrf.mxu1  ;;  %v3019_v40 = vshll.u32 %v11832_v35, 16 }
 0x1de   : > { %v3485_v48 = vadd.f32 %v3408_v53, %v3225_v57 }
 0x1df   : > { %v3021_v31 = vrot.slane %v3019_v40, 2 }
 0x1e1   : > { %v2765_v4 = vpop.f32.mrf.mxu3 }
 0x1e2   : > { %v11869_v54 = vadd.f32 %v2765_v4, %v11570_v47  ;;  %v3016_v47 = vshrl.u32 %v11832_v35, 16  ;;  %v10150_v4 = vld [vmem:[%s15289_s1 + $0x1c0] sm:$0xff] }
 0x1e3   : > { %v3793_v20 = vpop.f32.mrf.mxu2  ;;  %v3151_v21 = vpop.f32.mrf.mxu0  ;;  %4162 = vmatpush.bf16.msra.mxu3 %v10150_v4  ;;  %v2510_v4 = vld [vmem:[%s11148_s14 + $0x98] sm:$0x1] }
 0x1e4   : > { %v11871_v19 = vadd.f32 %v3793_v20, %v3485_v48  ;;  %v3226_v0 = vadd.f32 %v3151_v21, %v11827_v15  ;;  %v11886_v48 = vld [vmem:[%s11148_s14 + $0x90] sm:$0xff]  ;;  %v3018_v13 = vrot.slane %v3016_v47, 1 }
 0x1e5   : > { %v3411_v28 = vpop.f32.mrf.mxu1 }
 0x1e6   : > { %v3486_v57 = vadd.f32 %v3411_v28, %v3226_v0  ;;  %2807 = vmatmul.bf16.gmra.mxu3 %v2653_v52  ;;  %3190 = vmatmul.bf16.gmra.mxu0 %v3014_v51  ;;  %v10139_v52 = vld [vmem:[%s11148_s14 + $0x88] sm:$0xff]  ;;  %v3022_v0 = vor.u32 %v3021_v31, %v3018_v13 }
 0x1e7   : > { %v3688_v28 = vrot.slane %v10139_v52, 2 }
 0x1e8   : > { %3835 = vmatmul.bf16.gmra.mxu2 %v3687_v60  ;;  %3450 = vmatmul.bf16.gmra.mxu1 %v3302_v44  ;;  %v3303_v60 = vrot.slane %v11832_v35, 2 }
 0x1e9   : > { %v2768_v53 = vpop.f32.mrf.mxu3  ;;  %v3689_v35 = vsel %vm3273_vm3, %v3686_v26, %v3688_v28 }
 0x1ea   : > { %v11881_v2 = vadd.f32 %v2768_v53, %v11581_v10  ;;  %v2654_v10 = vrot.slane %v11886_v48, 1 }
 0x1eb   : > { %v3796_v15 = vpop.f32.mrf.mxu2  ;;  %v3153_v58 = vpop.f32.mrf.mxu0 }
 0x1ec   : > { %v11883_v6 = vadd.f32 %v3796_v15, %v3486_v57  ;;  %v3227_v20 = vadd.f32 %v3153_v58, %v11842_v5  ;;  %v2655_v5 = vsel %vm2235_vm1, %v2652_v61, %v2654_v10  ;;  %v3023_v15 = vsel %vm2880_vm2, %v3013_v50, %v3022_v0  ;;  %v10158_v58 = vld [vmem:[%s15289_s1 + $0x200] sm:$0xff] }
 0x1ed   : > { %v3413_v21 = vpop.f32.mrf.mxu1  ;;  %4422 = vmatpush.bf16.msra.mxu0 %v10158_v58  ;;  %v2601_v61 = vunpack.c.l.b16 %v2510_v4  ;;  %v3025_v50 = vshrl.u32 %v11859_v39, 16  ;;  %v11918_v58 = vld [vmem:[%s11148_s14 + $0x90] sm:$0xff] }
 0x1ee   : > { %v3487_v51 = vadd.f32 %v3413_v21, %v3227_v20  ;;  %v3028_v21 = vshll.u32 %v11859_v39, 16 }
 0x1f1   : > { %v2770_v44 = vpop.f32.mrf.mxu3 }
 0x1f2   : > { %v11896_v57 = vadd.f32 %v2770_v44, %v11592_v30  ;;  %v3304_v30 = vsel %vm3273_vm3, %v3301_v32, %v3303_v60  ;;  %v2620_v44 = vpack.c.b16 %v2601_v61, %v2601_v61 }
 0x1f3   : > { %v3798_v47 = vpop.f32.mrf.mxu2  ;;  %v3156_v53 = vpop.f32.mrf.mxu0 }
 0x1f4   : > { %v11898_v40 = vadd.f32 %v3798_v47, %v3487_v51  ;;  %v3228_v13 = vadd.f32 %v3156_v53, %v11854_v1  ;;  %v3027_v47 = vrot.slane %v3025_v50, 1  ;;  %v3030_v53 = vrot.slane %v3028_v21, 2 }
 0x1f5   : > { %v3416_v31 = vpop.f32.mrf.mxu1 }
 0x1f6   : > { %v3488_v20 = vadd.f32 %v3416_v31, %v3228_v13  ;;  %2812 = vmatmul.bf16.gmra.mxu3 %v2655_v5  ;;  %3195 = vmatmul.bf16.gmra.mxu0 %v3023_v15  ;;  %v10188_v13 = vld [vmem:[%s15291_s3 + $0x20] sm:$0xff]  ;;  %v2656_v31 = vrot.slane %v2620_v44, 1 }
 0x1f7   : > { %5600 = vmatpush.bf16.msra.mxu2 %v10188_v13  ;;  %v11950_v13 = vld [vmem:[%s11148_s14 + $0x18] sm:$0xff] }
 0x1f8   : > { %3840 = vmatmul.bf16.gmra.mxu2 %v3689_v35  ;;  %3455 = vmatmul.bf16.gmra.mxu1 %v3304_v30  ;;  %v11923_v35 = vor.u32 %v3030_v53, %v3027_v47  ;;  %v15298_v30 = vrot.slane %v11859_v39, 2 }
 0x1f9   : > { %v2773_v52 = vpop.f32.mrf.mxu3 }
 0x1fa   : > { %v11912_v1 = vadd.f32 %v2773_v52, %v11606_v12  ;;  %v3690_v12 = vrot.slane %v11918_v58, 2  ;;  %v2657_v52 = vsel %vm2235_vm1, %v2654_v10, %v2656_v31  ;;  %v3034_v10 = vshrl.u32 %v11886_v48, 16 }
 0x1fb   : > { %v3801_v26 = vpop.f32.mrf.mxu2  ;;  %v3158_v32 = vpop.f32.mrf.mxu0  ;;  %v3931_v31 = vshll.u32 %v11950_v13, 16 }
 0x1fc   : > { %v11914_v51 = vadd.f32 %v3801_v26, %v3488_v20  ;;  %v3229_v5 = vadd.f32 %v3158_v32, %v11869_v54  ;;  %v3032_v26 = vsel %vm2880_vm2, %v3022_v0, %v11923_v35  ;;  %v10213_v32 = vld [vmem:[#allocation3 + $0x20] sm:$0xff]  ;;  %v3691_v53 = vsel %vm3273_vm3, %v3688_v28, %v3690_v12 }
 0x1fd   : > { %v3418_v15 = vpop.f32.mrf.mxu1  ;;  %5172 = vmatpush.bf16.msra.mxu1 %v10213_v32  ;;  %v3037_v0 = vshll.u32 %v11886_v48, 16  ;;  %v3923_v28 = vshll.u32 %v11532_v16, 16 }
 0x1fe   : > { %v3489_v4 = vadd.f32 %v3418_v15, %v3229_v5  ;;  %v3920_v15 = vshrl.u32 %v11532_v16, 16  ;;  %v10186_v16 = vld [vmem:[%s15291_s3 + $0x10] sm:$0xff] }
 0x201   : > { %v2775_v20 = vpop.f32.mrf.mxu3 }
 0x202   : > { %v11928_v61 = vadd.f32 %v2775_v20, %v11620_v23  ;;  %v3306_v23 = vsel %vm3273_vm3, %v3303_v60, %v15298_v30  ;;  %v3928_v60 = vshrl.u32 %v11950_v13, 16 }
 0x203   : > { %v3803_v54 = vpop.f32.mrf.mxu2  ;;  %v3161_v21 = vpop.f32.mrf.mxu0 }
 0x204   : > { %v11930_v50 = vadd.f32 %v3803_v54, %v3489_v4  ;;  %v3230_v44 = vadd.f32 %v3161_v21, %v11881_v2  ;;  %v10187_v2 = vld [vmem:[%s15291_s3 + $0x18] sm:$0xff]  ;;  %v3036_v21 = vrot.slane %v3034_v10, 1 }
 0x205   : > { %v3421_v47 = vpop.f32.mrf.mxu1  ;;  %5601 = vmatpush.bf16.msra.mxu2 %v10187_v2  ;;  %v2859_v2 = vld [vmem:[%s11148_s14 + $0x98] sm:$0x3] }
 0x206   : > { %v3490_v5 = vadd.f32 %v3421_v47, %v3230_v44  ;;  %2817 = vmatmul.bf16.gmra.mxu3 %v2657_v52  ;;  %3200 = vmatmul.bf16.gmra.mxu0 %v3032_v26  ;;  %v3039_v52 = vrot.slane %v3037_v0, 2  ;;  %v3922_v26 = vrot.slane %v3920_v15, 2  ;;  %v3925_v47 = vrot.slane %v3923_v28, 3  ;;  %v10185_v0 = vld [vmem:[%s15291_s3 + $0x8] sm:$0xff] }
 0x207   : > { %v2878_v10 = vunpack.c.l.b16 %v2859_v2  ;;  %v3307_v28 = vrot.slane %v11886_v48, 2  ;;  %v3548_v2 = vld [vmem:[%s11148_s14 + $0xa0] sm:$0x3] }
 0x208   : > { %3845 = vmatmul.bf16.gmra.mxu2 %v3691_v53  ;;  %3460 = vmatmul.bf16.gmra.mxu1 %v3306_v23  ;;  %v3930_v53 = vrot.slane %v3928_v60, 2  ;;  %v3933_v23 = vrot.slane %v3931_v31, 3  ;;  %v3040_v15 = vor.u32 %v3039_v52, %v3036_v21  ;;  %v10184_v21 = vld [vmem:[%s15291_s3] sm:$0xff] }
 0x209   : > { %v2778_v4 = vpop.f32.mrf.mxu3  ;;  %5602 = vmatpush.bf16.msra.mxu2 %v10186_v16 }
 0x20a   : > { %v11955_v20 = vadd.f32 %v2778_v4, %v11631_v37  ;;  %v11965_v37 = vld [vmem:[%s11148_s14 + $0x98] sm:$0xff]  ;;  %v3926_v4 = vor.u32 %v3925_v47, %v3922_v26  ;;  %v3041_v48 = vsel %vm2880_vm2, %v11923_v35, %v3040_v15 }
 0x20b   : > { %v3806_v54 = vpop.f32.mrf.mxu2  ;;  %v3163_v44 = vpop.f32.mrf.mxu0 }
 0x20c   : > { %v11960_v32 = vadd.f32 %v3806_v54, %v3490_v5  ;;  %v3231_v27 = vadd.f32 %v3163_v44, %v11896_v57  ;;  %v3934_v5 = vor.u32 %v3933_v23, %v3930_v53  ;;  %v3692_v54 = vrot.slane %v11965_v37, 2 }
 0x20d   : > { %v3423_v30 = vpop.f32.mrf.mxu1  ;;  %5603 = vmatpush.bf16.msra.mxu2 %v10185_v0  ;;  %v2879_v44 = vpack.c.b16 %v2878_v10, %v2878_v10  ;;  %v15383_v53 = vrot.slane %v11859_v39, 2  ;;  %v11992_v0 = vld [vmem:[%s11148_s14 + $0x20] sm:$0xff] }
 0x20e   : > { %15381 = vst [vmem:[#allocation9_spill] sm:$0xff] %v11960_v32  ;;  %v3491_v57 = vadd.f32 %v3423_v30, %v3231_v27  ;;  %v3935_v47 = vsel %vm3918_vm4, %v3926_v4, %v3934_v5  ;;  %v3940_v58 = vshll.u32 %v11992_v0, 16 }
 0x20f   : > { %v3308_v23 = vsel %vm3273_vm3, %v15383_v53, %v3307_v28  ;;  %v3043_v10 = vshrl.u32 %v2879_v44, 16  ;;  %v3046_v35 = vshll.u32 %v2879_v44, 16 }
 0x211   : > { %v2780_v60 = vpop.f32.mrf.mxu3  ;;  %5604 = vmatpush.bf16.msra.mxu2 %v10184_v21 }
 0x212   : > { %v11973_v31 = vadd.f32 %v2780_v60, %v11642_v18  ;;  %v3693_v18 = vsel %vm3273_vm3, %v3690_v12, %v3692_v54  ;;  %v3639_v12 = vunpack.c.l.b16 %v3548_v2  ;;  %v3045_v60 = vrot.slane %v3043_v10, 1 }
 0x213   : > { %v3808_v16 = vpop.f32.mrf.mxu2  ;;  %v3166_v26 = vpop.f32.mrf.mxu0 }
 0x214   : > { %v11978_v52 = vadd.f32 %v3808_v16, %v3491_v57  ;;  %v3232_v27 = vadd.f32 %v3166_v26, %v11912_v1  ;;  %v3937_v1 = vshrl.u32 %v11992_v0, 16  ;;  %v3048_v26 = vrot.slane %v3046_v35, 2 }
 0x215   : > { %v3426_v30 = vpop.f32.mrf.mxu1 }
 0x216   : > { %15382 = vst [vmem:[#allocation10_spill] sm:$0xff] %v11978_v52  ;;  %v3492_v37 = vadd.f32 %v3426_v30, %v3232_v27  ;;  %3205 = vmatmul.bf16.gmra.mxu0 %v3041_v48  ;;  %4163 = vmatmul.bf16.vlgmr.msra.gmra.mxu3 %v3935_v47  ;;  %v3939_v48 = vrot.slane %v3937_v1, 2  ;;  %v3942_v47 = vrot.slane %v3940_v58, 3  ;;  %v3049_v53 = vor.u32 %v3048_v26, %v3045_v60 }
 0x217   : > { %v3309_v52 = vrot.slane %v2879_v44, 2 }
 0x218   : > { %3850 = vmatmul.bf16.gmra.mxu2 %v3693_v18  ;;  %3465 = vmatmul.bf16.gmra.mxu1 %v3308_v23  ;;  %v3658_v18 = vpack.c.b16 %v3639_v12, %v3639_v12  ;;  %v3943_v23 = vor.u32 %v3942_v47, %v3939_v48  ;;  %v3050_v58 = vsel %vm2880_vm2, %v3040_v15, %v3049_v53  ;;  %v4290_v48 = vld [vmem:[%s11148_s14 + $0x10] sm:$0x8]  ;;  %v10212_v15 = vld [vmem:[#allocation3 + $0x18] sm:$0xff] }
 0x219   : > { %v2783_v4 = vpop.f32.mrf.mxu3  ;;  %v3310_v26 = vsel %vm3273_vm3, %v3307_v28, %v3309_v52  ;;  %5173 = vmatpush.bf16.msra.mxu1 %v10212_v15 }
 0x21a   : > { %v11997_v39 = vadd.f32 %v2783_v4, %v11653_v38  ;;  %v3694_v2 = vrot.slane %v3658_v18, 2  ;;  %v9542_v38 = vld [vmem:[%s11148_s14 + $0x8] sm:$0xe]  ;;  %v10166_v4 = vld [vmem:[%s11148_s14 + $0x8] sm:$0xf0]  ;;  %v3944_v12 = vsel %vm3918_vm4, %v3934_v5, %v3943_v23 }
 0x21b   : > { %v3811_v57 = vpop.f32.mrf.mxu2  ;;  %v3168_v21 = vpop.f32.mrf.mxu0 }
 0x21c   : > { %v11999_v16 = vadd.f32 %v3811_v57, %v3492_v37  ;;  %v3233_v27 = vadd.f32 %v3168_v21, %v11928_v61  ;;  %v9543_v57 = vor.u32 %v10166_v4, %v9542_v38  ;;  %v3695_v21 = vsel %vm3273_vm3, %v3692_v54, %v3694_v2 }
 0x21d   : > { %v3428_v30 = vpop.f32.mrf.mxu1 }
 0x21e   : > { %15384 = vst [vmem:[#allocation11_spill] sm:$0xff] %v11999_v16  ;;  %v3493_v32 = vadd.f32 %v3428_v30, %v3233_v27  ;;  %v5362_v30 = vshrl.u32 %v9543_v57, 16  ;;  %v5365_v18 = vshll.u32 %v9543_v57, 16 }
 0x221   : > { %v2785_v10 = vpop.f32.mrf.mxu3 }
 0x222   : > { %v12005_v37 = vadd.f32 %v2785_v10, %v11667_v29  ;;  %v10167_v29 = vld [vmem:[%s11148_s14 + $0x10] sm:$0xff] }
 0x223   : > { %v3813_v35 = vpop.f32.mrf.mxu2  ;;  %v3171_v61 = vpop.f32.mrf.mxu0  ;;  %v5370_v54 = vshrl.u32 %v10167_v29, 16  ;;  %v5373_v53 = vshll.u32 %v10167_v29, 16 }
 0x224   : > { %v12007_v1 = vadd.f32 %v3813_v35, %v3493_v32  ;;  %v3234_v44 = vadd.f32 %v3171_v61, %v11955_v20  ;;  %v12017_v32 = vld [vmem:[%s11148_s14 + $0x28] sm:$0xff]  ;;  %v4309_v20 = vunpack.c.l.b16 %v4290_v48  ;;  %v15387_v61 = vunpack.c.l.b16 %v11512_v25 }
 0x225   : > { %v3431_v60 = vpop.f32.mrf.mxu1  ;;  %v3946_v27 = vshrl.u32 %v12017_v32, 16  ;;  %v3949_v5 = vshll.u32 %v12017_v32, 16 }
 0x226   : > { %15385 = vst [vmem:[#allocation12_spill] sm:$0xff] %v12007_v1  ;;  %v3494_v47 = vadd.f32 %v3431_v60, %v3234_v44  ;;  %3210 = vmatmul.bf16.gmra.mxu0 %v3050_v58  ;;  %4168 = vmatmul.bf16.gmra.mxu3 %v3944_v12  ;;  %v4310_v58 = vpack.c.b16 %v15387_v61, %v4309_v20  ;;  %v5364_v12 = vrot.slane %v5362_v30, 1  ;;  %v5367_v60 = vrot.slane %v5365_v18, 2 }
 0x227   : > { %v3948_v38 = vrot.slane %v3946_v27, 2  ;;  %v3951_v35 = vrot.slane %v3949_v5, 3 }
 0x228   : > { %3855 = vmatmul.bf16.gmra.mxu2 %v3695_v21  ;;  %3470 = vmatmul.bf16.gmra.mxu1 %v3310_v26  ;;  %v5372_v21 = vrot.slane %v5370_v54, 1  ;;  %v5375_v26 = vrot.slane %v5373_v53, 2  ;;  %v4312_v29 = vrot.slane %v4310_v58, 3 }
 0x229   : > { %v2788_v28 = vpop.f32.mrf.mxu3  ;;  %v3952_v48 = vor.u32 %v3951_v35, %v3948_v38 }
 0x22a   : > { %v12022_v52 = vadd.f32 %v2788_v28, %v11681_v45  ;;  %v4313_v45 = vrot.slane %v11950_v13, 3  ;;  %v5376_v27 = vor.u32 %v5375_v26, %v5372_v21 }
 0x22b   : > { %v3816_v2 = vpop.f32.mrf.mxu2  ;;  %v3173_v10 = vpop.f32.mrf.mxu0  ;;  %v3953_v18 = vsel %vm3918_vm4, %v3943_v23, %v3952_v48 }
 0x22c   : > { %v12024_v4 = vadd.f32 %v3816_v2, %v3494_v47  ;;  %v3235_v44 = vadd.f32 %v3173_v10, %v11973_v31  ;;  %v5368_v47 = vor.u32 %v5367_v60, %v5364_v12  ;;  %v4314_v54 = vsel %vm4311_vm5, %v4312_v29, %v4313_v45  ;;  %v10168_v2 = vld [vmem:[%s11148_s14 + $0x18] sm:$0xff]  ;;  %v12039_v10 = vld [vmem:[%s11148_s14 + $0x30] sm:$0xff] }
 0x22d   : > { %v3433_v57 = vpop.f32.mrf.mxu1  ;;  %v3958_v35 = vshll.u32 %v12039_v10, 16  ;;  %v5379_v61 = vshrl.u32 %v10168_v2, 16  ;;  %v5382_v23 = vshll.u32 %v10168_v2, 16 }
 0x22e   : > { %15386 = vst [vmem:[#allocation13_spill] sm:$0xff] %v12024_v4  ;;  %v3495_v15 = vadd.f32 %v3433_v57, %v3235_v44  ;;  %v5377_v13 = vsel %vm2880_vm2, %v5368_v47, %v5376_v27 }
 0x22f   : > { %v3960_v21 = vrot.slane %v3958_v35, 3  ;;  %v5381_v47 = vrot.slane %v5379_v61, 1  ;;  %v10169_v35 = vld [vmem:[%s11148_s14 + $0x20] sm:$0xff] }
 0x231   : > { %v2790_v5 = vpop.f32.mrf.mxu3 }
 0x232   : > { %v2846_v25 = vadd.f32 %v2790_v5, %v11692_v42  ;;  %v3955_v42 = vshrl.u32 %v12039_v10, 16 }
 0x233   : > { %v3818_v20 = vpop.f32.mrf.mxu2  ;;  %v3176_v31 = vpop.f32.mrf.mxu0 }
 0x234   : > { %v12031_v30 = vadd.f32 %v3818_v20, %v3495_v15  ;;  %v3236_v53 = vadd.f32 %v3176_v31, %v11997_v39  ;;  %v3957_v60 = vrot.slane %v3955_v42, 2  ;;  %v5384_v15 = vrot.slane %v5382_v23, 2 }
 0x235   : > { %v3436_v28 = vpop.f32.mrf.mxu1  ;;  %v4315_v20 = vrot.slane %v11992_v0, 3 }
 0x236   : > { %15388 = vst [vmem:[#allocation14_spill] sm:$0xff] %v12031_v30  ;;  %v3496_v38 = vadd.f32 %v3436_v28, %v3236_v53  ;;  %4173 = vmatmul.bf16.gmra.mxu3 %v3953_v18  ;;  %4423 = vmatmul.bf16.vlgmr.msra.gmra.mxu0 %v4314_v54  ;;  %v3961_v5 = vor.u32 %v3960_v21, %v3957_v60 }
 0x237   : > { %v5385_v31 = vor.u32 %v5384_v15, %v5381_v47  ;;  %v4316_v2 = vsel %vm4311_vm5, %v4313_v45, %v4315_v20 }
 0x238   : > { %5605 = vmatmul.bf16.vlgmr.msra.gmra.mxu2 %v5377_v13 }
 0x239   : > { %v2793_v58 = vpop.f32.mrf.mxu3  ;;  %v5386_v0 = vsel %vm2880_vm2, %v5376_v27, %v5385_v31 }
 0x23a   : > { %v2847_v12 = vadd.f32 %v2793_v58, %v11701_v46 }
 0x23b   : > { %v3821_v39 = vpop.f32.mrf.mxu2  ;;  %v3178_v57 = vpop.f32.mrf.mxu0 }
 0x23c   : > { %v12044_v44 = vadd.f32 %v3821_v39, %v3496_v38  ;;  %v3237_v26 = vadd.f32 %v3178_v57, %v12005_v37  ;;  %v3962_v37 = vsel %vm3918_vm4, %v3952_v48, %v3961_v5  ;;  %v5388_v39 = vshrl.u32 %v10169_v35, 16 }
 0x23d   : > { %v3438_v29 = vpop.f32.mrf.mxu1  ;;  %v5391_v48 = vshll.u32 %v10169_v35, 16 }
 0x23e   : > { %15389 = vst [vmem:[#allocation15_spill] sm:$0xff] %v12044_v44  ;;  %v3497_v18 = vadd.f32 %v3438_v29, %v3237_v26  ;;  %v10211_v29 = vld [vmem:[#allocation3 + $0x10] sm:$0xff] }
 0x23f   : > { %5174 = vmatpush.bf16.msra.mxu1 %v10211_v29 }
 0x241   : > { %v2795_v54 = vpop.f32.mrf.mxu3 }
 0x242   : > { %v12049_v46 = vadd.f32 %v2795_v54, %v11713_v63  ;;  %v12059_v63 = vld [vmem:[%s11148_s14 + $0x38] sm:$0xff]  ;;  %v5393_v54 = vrot.slane %v5391_v48, 2  ;;  %v10170_v48 = vld [vmem:[%s11148_s14 + $0x28] sm:$0xff] }
 0x243   : > { %v3823_v53 = vpop.f32.mrf.mxu2  ;;  %v3181_v13 = vpop.f32.mrf.mxu0  ;;  %v3964_v23 = vshrl.u32 %v12059_v63, 16  ;;  %v3967_v58 = vshll.u32 %v12059_v63, 16 }
 0x244   : > { %v12051_v28 = vadd.f32 %v3823_v53, %v3497_v18  ;;  %v3238_v38 = vadd.f32 %v3181_v13, %v12022_v52  ;;  %v5390_v18 = vrot.slane %v5388_v39, 1  ;;  %v4317_v13 = vrot.slane %v12017_v32, 3 }
 0x245   : > { %v3441_v42 = vpop.f32.mrf.mxu1  ;;  %v3966_v21 = vrot.slane %v3964_v23, 2  ;;  %v3969_v26 = vrot.slane %v3967_v58, 3 }
 0x246   : > { %15390 = vst [vmem:[#allocation16_spill] sm:$0xff] %v12051_v28  ;;  %v3498_v61 = vadd.f32 %v3441_v42, %v3238_v38  ;;  %4178 = vmatmul.bf16.gmra.mxu3 %v3962_v37  ;;  %4428 = vmatmul.bf16.gmra.mxu0 %v4316_v2  ;;  %v5394_v37 = vor.u32 %v5393_v54, %v5390_v18 }
 0x247   : > { %v3970_v53 = vor.u32 %v3969_v26, %v3966_v21  ;;  %v5400_v21 = vshll.u32 %v10170_v48, 16 }
 0x248   : > { %5610 = vmatmul.bf16.gmra.mxu2 %v5386_v0  ;;  %v5395_v39 = vsel %vm2880_vm2, %v5385_v31, %v5394_v37 }
 0x249   : > { %v2798_v57 = vpop.f32.mrf.mxu3 }
 0x24a   : > { %v2849_v45 = vadd.f32 %v2798_v57, %v11725_v36  ;;  %v12075_v57 = vld [vmem:[%s11148_s14 + $0x40] sm:$0xff] }
 0x24b   : > { %v3826_v52 = vpop.f32.mrf.mxu2  ;;  %v3183_v27 = vpop.f32.mrf.mxu0 }
 0x24c   : > { %v12064_v60 = vadd.f32 %v3826_v52, %v3498_v61  ;;  %v3239_v47 = vadd.f32 %v3183_v27, %v2846_v25  ;;  %v3971_v25 = vsel %vm3918_vm4, %v3961_v5, %v3970_v53  ;;  %v4318_v61 = vsel %vm4311_vm5, %v4315_v20, %v4317_v13 }
 0x24d   : > { %v3443_v15 = vpop.f32.mrf.mxu1  ;;  %v3976_v52 = vshll.u32 %v12075_v57, 16  ;;  %v5397_v27 = vshrl.u32 %v10170_v48, 16 }
 0x24e   : > { %15391 = vst [vmem:[#allocation17_spill] sm:$0xff] %v12064_v60  ;;  %v3499_v2 = vadd.f32 %v3443_v15, %v3239_v47  ;;  %v10209_v60 = vld [vmem:[#allocation3] sm:$0xff] }
 0x24f   : > { %v3978_v47 = vrot.slane %v3976_v52, 3  ;;  %v5399_v54 = vrot.slane %v5397_v27, 1 }
 0x251   : > { %v2800_v36 = vpop.f32.mrf.mxu3 }
 0x252   : > { %v2850_v38 = vadd.f32 %v2800_v36, %v11736_v56  ;;  %v3973_v56 = vshrl.u32 %v12075_v57, 16 }
 0x253   : > { %v3828_v42 = vpop.f32.mrf.mxu2  ;;  %v3186_v35 = vpop.f32.mrf.mxu0 }
 0x254   : > { %v12068_v0 = vadd.f32 %v3828_v42, %v3499_v2  ;;  %v3240_v23 = vadd.f32 %v3186_v35, %v2847_v12  ;;  %v3975_v29 = vrot.slane %v3973_v56, 2  ;;  %v5402_v2 = vrot.slane %v5400_v21, 2  ;;  %v12094_v21 = vld [vmem:[%s11148_s14 + $0x48] sm:$0xff] }
 0x255   : > { %v3446_v58 = vpop.f32.mrf.mxu1  ;;  %v4319_v42 = vrot.slane %v12039_v10, 3  ;;  %v10171_v10 = vld [vmem:[%s11148_s14 + $0x30] sm:$0xff] }
 0x256   : > { %15392 = vst [vmem:[#allocation18_spill] sm:$0xff] %v12068_v0  ;;  %v3500_v32 = vadd.f32 %v3446_v58, %v3240_v23  ;;  %4183 = vmatmul.bf16.gmra.mxu3 %v3971_v25  ;;  %4433 = vmatmul.bf16.gmra.mxu0 %v4318_v61  ;;  %v3979_v36 = vor.u32 %v3978_v47, %v3975_v29 }
 0x257   : > { %v5403_v35 = vor.u32 %v5402_v2, %v5399_v54  ;;  %v4320_v48 = vsel %vm4311_vm5, %v4317_v13, %v4319_v42 }
 0x258   : > { %5615 = vmatmul.bf16.gmra.mxu2 %v5395_v39 }
 0x259   : > { %v2803_v5 = vpop.f32.mrf.mxu3  ;;  %v5404_v52 = vsel %vm2880_vm2, %v5394_v37, %v5403_v35 }
 0x25a   : > { %v2851_v20 = vadd.f32 %v2803_v5, %v11604_v3  ;;  %v3985_v5 = vshll.u32 %v12094_v21, 16 }
 0x25b   : > { %v3831_v12 = vpop.f32.mrf.mxu2  ;;  %v3188_v31 = vpop.f32.mrf.mxu0 }
 0x25c   : > { %v12080_v26 = vadd.f32 %v3831_v12, %v3500_v32  ;;  %v3241_v15 = vadd.f32 %v3188_v31, %v12049_v46  ;;  %v3980_v46 = vsel %vm3918_vm4, %v3970_v53, %v3979_v36  ;;  %v5406_v12 = vshrl.u32 %v10171_v10, 16 }
 0x25d   : > { %v3448_v18 = vpop.f32.mrf.mxu1  ;;  %v5409_v31 = vshll.u32 %v10171_v10, 16 }
 0x25e   : > { %15393 = vst [vmem:[#allocation19_spill] sm:$0xff] %v12080_v26  ;;  %v3501_v25 = vadd.f32 %v3448_v18, %v3241_v15  ;;  %v3987_v15 = vrot.slane %v3985_v5, 3  ;;  %v5408_v2 = vrot.slane %v5406_v12, 1  ;;  %v10172_v12 = vld [vmem:[%s11148_s14 + $0x38] sm:$0xff] }
 0x261   : > { %v2805_v61 = vpop.f32.mrf.mxu3 }
 0x262   : > { %v12085_v3 = vadd.f32 %v2805_v61, %v11618_v59  ;;  %v3982_v59 = vshrl.u32 %v12094_v21, 16  ;;  %v10210_v61 = vld [vmem:[#allocation3 + $0x8] sm:$0xff] }
 0x263   : > { %v3833_v23 = vpop.f32.mrf.mxu2  ;;  %v3191_v39 = vpop.f32.mrf.mxu0  ;;  %5175 = vmatpush.bf16.msra.mxu1 %v10210_v61 }
 0x264   : > { %v12087_v58 = vadd.f32 %v3833_v23, %v3501_v25  ;;  %v3242_v32 = vadd.f32 %v3191_v39, %v2849_v45  ;;  %v3984_v47 = vrot.slane %v3982_v59, 2  ;;  %v5411_v25 = vrot.slane %v5409_v31, 2 }
 0x265   : > { %v3451_v56 = vpop.f32.mrf.mxu1  ;;  %v4321_v39 = vrot.slane %v12059_v63, 3 }
 0x266   : > { %15394 = vst [vmem:[#allocation20_spill] sm:$0xff] %v12087_v58  ;;  %v3502_v27 = vadd.f32 %v3451_v56, %v3242_v32  ;;  %4188 = vmatmul.bf16.gmra.mxu3 %v3980_v46  ;;  %4438 = vmatmul.bf16.gmra.mxu0 %v4320_v48  ;;  %v3988_v23 = vor.u32 %v3987_v15, %v3984_v47 }
 0x267   : > { %v5412_v46 = vor.u32 %v5411_v25, %v5408_v2  ;;  %5176 = vmatpush.bf16.msra.mxu1 %v10209_v60 }
 0x268   : > { %5620 = vmatmul.bf16.gmra.mxu2 %v5404_v52  ;;  %v3989_v10 = vsel %vm3918_vm4, %v3979_v36, %v3988_v23  ;;  %v5418_v36 = vshll.u32 %v10172_v12, 16 }
 0x269   : > { %v2808_v53 = vpop.f32.mrf.mxu3  ;;  %v5413_v63 = vsel %vm2880_vm2, %v5403_v35, %v5412_v46 }
 0x26a   : > { %v12099_v13 = vadd.f32 %v2808_v53, %v11629_v22  ;;  %v12114_v53 = vld [vmem:[%s11148_s14 + $0x50] sm:$0xff] }
 0x26b   : > { %v3836_v45 = vpop.f32.mrf.mxu2  ;;  %v3193_v37 = vpop.f32.mrf.mxu0 }
 0x26c   : > { %v12101_v29 = vadd.f32 %v3836_v45, %v3502_v27  ;;  %v3243_v18 = vadd.f32 %v3193_v37, %v2850_v38  ;;  %v4322_v27 = vsel %vm4311_vm5, %v4319_v42, %v4321_v39  ;;  %v3994_v45 = vshll.u32 %v12114_v53, 16 }
 0x26d   : > { %v3453_v54 = vpop.f32.mrf.mxu1  ;;  %v5415_v37 = vshrl.u32 %v10172_v12, 16 }
 0x26e   : > { %15395 = vst [vmem:[#allocation21_spill] sm:$0xff] %v12101_v29  ;;  %v3503_v22 = vadd.f32 %v3453_v54, %v3243_v18  ;;  %v3996_v15 = vrot.slane %v3994_v45, 3 }
 0x26f   : > { %v5417_v61 = vrot.slane %v5415_v37, 1 }
 0x271   : > { %v2810_v48 = vpop.f32.mrf.mxu3 }
 0x272   : > { %v12105_v32 = vadd.f32 %v2810_v48, %v11640_v33  ;;  %v3991_v33 = vshrl.u32 %v12114_v53, 16  ;;  %v10173_v48 = vld [vmem:[%s11148_s14 + $0x40] sm:$0xff] }
 0x273   : > { %v3838_v56 = vpop.f32.mrf.mxu2  ;;  %v3196_v38 = vpop.f32.mrf.mxu0 }
 0x274   : > { %v12107_v52 = vadd.f32 %v3838_v56, %v3503_v22  ;;  %v3244_v59 = vadd.f32 %v3196_v38, %v2851_v20  ;;  %v3993_v47 = vrot.slane %v3991_v33, 2  ;;  %v5420_v22 = vrot.slane %v5418_v36, 2 }
 0x275   : > { %v3456_v5 = vpop.f32.mrf.mxu1  ;;  %v275_v56 = vlaneseq  ;;  %v5427_v33 = vshll.u32 %v10173_v48, 16 }
 0x276   : > { %15396 = vst [vmem:[#allocation22_spill] sm:$0xff] %v12107_v52  ;;  %v3504_v31 = vadd.f32 %v3456_v5, %v3244_v59  ;;  %4193 = vmatmul.bf16.gmra.mxu3 %v3989_v10  ;;  %4443 = vmatmul.bf16.gmra.mxu0 %v4322_v27  ;;  %v12125_v38 = vor.u32 %v3996_v15, %v3993_v47  ;;  %v15299_v10 = vrot.slane %v12075_v57, 3  ;;  %v12129_v27 = vld [vmem:[%s11148_s14 + $0x58] sm:$0xff] }
 0x277   : > { %v4003_v59 = vshll.u32 %v12129_v27, 16  ;;  %v12133_v5 = vshrl.u32 %v275_v56, 7  ;;  %v5429_v56 = vrot.slane %v5427_v33, 2 }
 0x278   : > { %5625 = vmatmul.bf16.gmra.mxu2 %v5413_v63  ;;  %v12135_v63 = vor.u32 %v5420_v22, %v5417_v61 }
 0x279   : > { %v2813_v42 = vpop.f32.mrf.mxu3  ;;  %v315_v45 = vand.u32 65535, %v12133_v5  ;;  %v12158_v33 = vadd.s32 8, %v12133_v5 }
 0x27a   : > { %v12119_v20 = vadd.f32 %v2813_v42, %v11651_v55  ;;  %v4000_v55 = vshrl.u32 %v12129_v27, 16  ;;  %v3998_v42 = vsel %vm3918_vm4, %v3988_v23, %v12125_v38 }
 0x27b   : > { %v3841_v35 = vpop.f32.mrf.mxu2  ;;  %v3198_v54 = vpop.f32.mrf.mxu0  ;;  %v319_v61 = vmul.u32 58254, %v315_v45 }
 0x27c   : > { %v12121_v18 = vadd.f32 %v3841_v35, %v3504_v31  ;;  %v3245_v2 = vadd.f32 %v3198_v54, %v12085_v3  ;;  %v5424_v3 = vshrl.u32 %v10173_v48, 16  ;;  %v4324_v35 = vsel %vm4311_vm5, %v4321_v39, %v15299_v10 }
 0x27d   : > { %v3458_v25 = vpop.f32.mrf.mxu1  ;;  %v4002_v47 = vrot.slane %v4000_v55, 2  ;;  %v5422_v48 = vsel %vm2880_vm2, %v5412_v46, %v12135_v63  ;;  %v322_v39 = vshll.u32 %v319_v61, 16 }
 0x27e   : > { %15397 = vst [vmem:[#allocation23_spill] sm:$0xff] %v12121_v18  ;;  %v3505_v12 = vadd.f32 %v3458_v25, %v3245_v2  ;;  %v4005_v2 = vrot.slane %v4003_v59, 3  ;;  %v316_v25 = vshrl.u32 %v12133_v5, 16  ;;  %v5426_v23 = vrot.slane %v5424_v3, 1 }
 0x280   : > { %v320_v18 = vmul.u32 14564, %v316_v25  ;;  %v12153_v59 = vor.u32 %v4005_v2, %v4002_v47 }
 0x281   : > { %v2815_v31 = vpop.f32.mrf.mxu3 }
 0x282   : > { %v12139_v37 = vadd.f32 %v2815_v31, %v11665_v17  ;;  %v318_v31 = vmul.u32 14564, %v315_v45  ;;  %v324_v10 = vshll.u32 %v320_v18, 16 }
 0x283   : > { %v3843_v36 = vpop.f32.mrf.mxu2  ;;  %v3201_v54 = vpop.f32.mrf.mxu0 }
 0x284   : > { %v12146_v15 = vadd.f32 %v3843_v36, %v3505_v12  ;;  %v3246_v17 = vadd.f32 %v3201_v54, %v12099_v13  ;;  %v10174_v12 = vld [vmem:[%s11148_s14 + $0x48] sm:$0xff]  ;;  %v321_v36 = vmul.u32 58254, %v316_v25  ;;  %vm326_vm6 = vc.u32 %v318_v31, %v322_v39 }
 0x285   : > { %v3461_v22 = vpop.f32.mrf.mxu1  ;;  %v15399_v54 = vmov 0   ;;  %v328_v3 = vadd.s32 %v322_v39, %v318_v31  ;;  %v345_v13 = vshrl.u32 %v12158_v33, 16 }
 0x286   : > { %15398 = vst [vmem:[#allocation24_spill] sm:$0xff] %v12146_v15  ;;  %v3506_v55 = vadd.f32 %v3461_v22, %v3246_v17  ;;  %4198 = vmatmul.bf16.gmra.mxu3 %v3998_v42  ;;  %4448 = vmatmul.bf16.gmra.mxu0 %v4324_v35  ;;  %v327_v46 = vsel %vm326_vm6, 1, %v15399_v54  ;;  %v12160_v15 = vor.u32 %v5429_v56, %v5426_v23  ;;  %v12163_v42 = vld [vmem:[%s11148_s14 + $0x60] sm:$0xff]  ;;  %v5433_v22 = vshrl.u32 %v10174_v12, 16 }
 0x287   : > { %v4009_v35 = vshrl.u32 %v12163_v42, 16  ;;  %v4012_v47 = vshll.u32 %v12163_v42, 16  ;;  %v329_v2 = vadd.s32 %v327_v46, %v321_v36  ;;  %vm330_vm7 = vc.u32 %v328_v3, %v324_v10 }
 0x288   : > { %5630 = vmatmul.bf16.gmra.mxu2 %v5422_v48  ;;  %v344_v48 = vand.u32 65535, %v12158_v33  ;;  %v323_v23 = vshrl.u32 %v319_v61, 16  ;;  %v331_v56 = vsel %vm330_vm7, 1, %v15399_v54  ;;  %v5436_v46 = vshll.u32 %v10174_v12, 16 }
 0x289   : > { %v2818_v45 = vpop.f32.mrf.mxu3  ;;  %v325_v10 = vshrl.u32 %v320_v18, 16  ;;  %v12178_v29 = vmul.u32 14564, %v345_v13  ;;  %v15402_v12 = vrot.slane %v12075_v57, 3  ;;  %v5431_v18 = vsel %vm2880_vm2, %v12135_v63, %v12160_v15 }
 0x28a   : > { %v12168_v25 = vadd.f32 %v2818_v45, %v11679_v43  ;;  %v333_v43 = vadd.s32 %v331_v56, %v329_v2  ;;  %v12176_v45 = vmul.u32 58254, %v344_v48  ;;  %v347_v3 = vmul.u32 14564, %v344_v48  ;;  %v12194_v56 = vld [vmem:[%s11148_s14 + $0x68] sm:$0xff] }
 0x28b   : > { %v3846_v17 = vpop.f32.mrf.mxu2  ;;  %v3203_v39 = vpop.f32.mrf.mxu0  ;;  %v5435_v48 = vrot.slane %v5433_v22, 1  ;;  %v353_v57 = vshll.u32 %v12178_v29, 16 }
 0x28c   : > { %v12171_v31 = vadd.f32 %v3846_v17, %v3506_v55  ;;  %v3247_v52 = vadd.f32 %v3203_v39, %v12105_v32  ;;  %v4011_v55 = vrot.slane %v4009_v35, 2  ;;  %v4014_v17 = vrot.slane %v4012_v47, 3  ;;  %v10175_v35 = vld [vmem:[%s11148_s14 + $0x50] sm:$0xff] }
 0x28d   : > { %v3463_v36 = vpop.f32.mrf.mxu1  ;;  %v334_v61 = vadd.s32 %v333_v43, %v323_v23  ;;  %v4007_v32 = vsel %vm3918_vm4, %v12125_v38, %v12153_v59  ;;  %v15401_v39 = vrot.slane %v12094_v21, 3  ;;  %v5438_v47 = vrot.slane %v5436_v46, 2 }
 0x28e   : > { %15400 = vst [vmem:[#allocation25_spill] sm:$0xff] %v12171_v31  ;;  %v351_v31 = vshll.u32 %v12176_v45, 16  ;;  %v4018_v43 = vshrl.u32 %v12194_v56, 16  ;;  %v4021_v38 = vshll.u32 %v12194_v56, 16  ;;  %v3507_v58 = vadd.f32 %v3463_v36, %v3247_v52 }
 0x28f   : > { %v4326_v2 = vsel %vm4311_vm5, %v15402_v12, %v15401_v39  ;;  %v335_v23 = vadd.s32 %v334_v61, %v325_v10  ;;  %v12200_v39 = vadd.s32 16, %v12133_v5  ;;  %v4015_v46 = vor.u32 %v4014_v17, %v4011_v55 }
 0x290   : > { %v357_v0 = vadd.s32 %v351_v31, %v347_v3  ;;  %vm355_vm8 = vc.u32 %v347_v3, %v351_v31  ;;  %v5442_v28 = vshrl.u32 %v10175_v35, 16  ;;  %v5445_v52 = vshll.u32 %v10175_v35, 16 }
 0x291   : > { %v2820_v26 = vpop.f32.mrf.mxu3  ;;  %v336_v10 = vshrl.u32 %v335_v23, 4  ;;  %v350_v36 = vmul.u32 58254, %v345_v13  ;;  %v4020_v1 = vrot.slane %v4018_v43, 2  ;;  %v4023_v16 = vrot.slane %v4021_v38, 3 }
 0x292   : > { %v12203_v63 = vadd.f32 %v2820_v26, %v11690_v24  ;;  %v4327_v24 = vrot.slane %v12114_v53, 3  ;;  %v356_v26 = vsel %vm355_vm8, 1, %v15399_v54  ;;  %vm359_vm9 = vc.u32 %v357_v0, %v353_v57 }
 0x293   : > { %v3848_v22 = vpop.f32.mrf.mxu2  ;;  %v3206_v12 = vpop.f32.mrf.mxu0  ;;  %v337_v4 = vmul.u32 18, %v336_v10  ;;  %v12213_v13 = vsel %vm3918_vm4, %v12153_v59, %v4015_v46  ;;  %v360_v3 = vsel %vm359_vm9, 1, %v15399_v54  ;;  %v5444_v55 = vrot.slane %v5442_v28, 1 }
 0x294   : > { %v12205_v61 = vadd.f32 %v3848_v22, %v3507_v58  ;;  %v3248_v44 = vadd.f32 %v3206_v12, %v12119_v20  ;;  %v373_v58 = vand.u32 65535, %v12200_v39  ;;  %v12215_v20 = vor.u32 %v5438_v47, %v5435_v48 }
 0x295   : > { %v3466_v30 = vpop.f32.mrf.mxu1  ;;  %v352_v60 = vshrl.u32 %v12176_v45, 16  ;;  %v358_v17 = vadd.s32 %v356_v26, %v350_v36  ;;  %v374_v0 = vshrl.u32 %v12200_v39, 16  ;;  %v12221_v35 = vsub.s32 %v12133_v5, %v337_v4 }
 0x296   : > { %v3508_v31 = vadd.f32 %v3466_v30, %v3248_v44  ;;  %4203 = vmatmul.bf16.gmra.mxu3 %v4007_v32  ;;  %4453 = vmatmul.bf16.gmra.mxu0 %v4326_v2  ;;  %v12223_v30 = vor.u32 %v4023_v16, %v4020_v1  ;;  %v5447_v44 = vrot.slane %v5445_v52, 2  ;;  %v354_v59 = vshrl.u32 %v12178_v29, 16 }
 0x297   : > { %v362_v2 = vadd.s32 %v360_v3, %v358_v17  ;;  %v376_v48 = vmul.u32 14564, %v373_v58  ;;  %v377_v47 = vmul.u32 58254, %v373_v58  ;;  %v378_v23 = vmul.u32 14564, %v374_v0  ;;  %v12258_v17 = vld [vmem:[%s11148_s14 + $0x70] sm:$0xff] }
 0x298   : > { %5635 = vmatmul.bf16.gmra.mxu2 %v5431_v18  ;;  %v15403_v28 = vrot.slane %v12094_v21, 3  ;;  %v12234_v16 = vsel %vm2880_vm2, %v12160_v15, %v12215_v20  ;;  %v15300_v1 = vrot.slane %v12129_v27, 3  ;;  %v12238_v4 = vadd.s32 24, %v12133_v5 }
 0x299   : > { %v4164_v32 = vpop.f32.mrf.mxu3  ;;  %v363_v38 = vadd.s32 %v362_v2, %v352_v60  ;;  %v379_v57 = vmul.u32 58254, %v374_v0  ;;  %v380_v22 = vshll.u32 %v377_v47, 16  ;;  %v12245_v12 = vsel %vm3918_vm4, %v4015_v46, %v12223_v30 }
 0x29a   : > { %v4328_v45 = vsel %vm4311_vm5, %v15403_v28, %v4327_v24  ;;  %v12247_v15 = vor.u32 %v5447_v44, %v5444_v55  ;;  %v382_v52 = vshll.u32 %v378_v23, 16  ;;  %vm1356_vm10 = vcmp.ne.s32.totalorder %v12221_v35, 0 }
 0x29b   : > { %v3851_v18 = vpop.f32.mrf.mxu2  ;;  %v3208_v43 = vpop.f32.mrf.mxu0  ;;  %v364_v36 = vadd.s32 %v363_v38, %v354_v59  ;;  %vm384_vm11 = vc.u32 %v376_v48, %v380_v22  ;;  %v386_v26 = vadd.s32 %v380_v22, %v376_v48  ;;  %vm1392_vm12 = vcmp.lt.s32.totalorder %v12221_v35, 0  ;;  %v10176_v59 = vld [vmem:[%s11148_s14 + $0x58] sm:$0xff] }
 0x29c   : > { %v12240_v29 = vadd.f32 %v3851_v18, %v3508_v31  ;;  %v3249_v21 = vadd.f32 %v3208_v43, %v12139_v37  ;;  %v12252_v58 = vadd.s32 18, %v12221_v35  ;;  %v385_v37 = vsel %vm384_vm11, 1, %v15399_v54  ;;  %vm12268_vm14 = vmand %vm1392_vm12, %vm1356_vm10 }
 0x29d   : > { %v3468_v10 = vpop.f32.mrf.mxu1  ;;  %v402_v46 = vand.u32 65535, %v12238_v4  ;;  %v365_v31 = vshrl.u32 %v364_v36, 4  ;;  %v381_v3 = vshrl.u32 %v377_v47, 16  ;;  %v387_v55 = vadd.s32 %v385_v37, %v379_v57 }
 0x29e   : > { %vm388_vm13 = vc.u32 %v386_v26, %v382_v52  ;;  %v4027_v0 = vshrl.u32 %v12258_v17, 16  ;;  %v4030_v44 = vshll.u32 %v12258_v17, 16  ;;  %v403_v2 = vshrl.u32 %v12238_v4, 16 }
 0x29f   : > { %v389_v60 = vsel %vm388_vm13, 1, %v15399_v54  ;;  %v3509_v48 = vadd.f32 %v3468_v10, %v3249_v21  ;;  %v366_v28 = vmul.u32 18, %v365_v31  ;;  %v383_v43 = vshrl.u32 %v378_v23, 16 }
 0x2a0   : > { %v391_v38 = vadd.s32 %v389_v60, %v387_v55  ;;  %v12277_v57 = vsel %vm4311_vm5, %v4327_v24, %v15300_v1  ;;  %v4029_v21 = vrot.slane %v4027_v0, 2  ;;  %v4032_v10 = vrot.slane %v4030_v44, 3 }
 0x2a1   : > { %v4166_v18 = vpop.f32.mrf.mxu3  ;;  %v12279_v23 = vmul.u32 58254, %v402_v46  ;;  %v12286_v26 = vsel %vm2880_vm2, %v12215_v20, %v12247_v15  ;;  %v12289_v37 = vsub.s32 %v12158_v33, %v366_v28  ;;  %v5451_v55 = vshrl.u32 %v10176_v59, 16 }
 0x2a2   : > { %v392_v31 = vadd.s32 %v391_v38, %v381_v3  ;;  %v405_v60 = vmul.u32 14564, %v402_v46  ;;  %v407_v0 = vmul.u32 14564, %v403_v2  ;;  %v12293_v44 = vadd.f32 %v4164_v32, %v11748_v7 }
 0x2a3   : > { %v3853_v22 = vpop.f32.mrf.mxu2  ;;  %v3211_v36 = vpop.f32.mrf.mxu0  ;;  %v12300_v33 = vor.u32 %v4032_v10, %v4029_v21  ;;  %v409_v46 = vshll.u32 %v12279_v23, 16  ;;  %v12304_v3 = vadd.f32 %v4166_v18, %v11759_v11  ;;  %vm1357_vm15 = vcmp.ne.s32.totalorder %v12289_v37, 0 }
 0x2a4   : > { %v12281_v52 = vadd.f32 %v3853_v22, %v3509_v48  ;;  %v3250_v53 = vadd.f32 %v3211_v36, %v12168_v25  ;;  %v393_v20 = vadd.s32 %v392_v31, %v383_v43  ;;  %v5454_v22 = vshll.u32 %v10176_v59, 16 }
 0x2a5   : > { %v3471_v24 = vpop.f32.mrf.mxu1  ;;  %v408_v25 = vmul.u32 58254, %v403_v2  ;;  %vm1393_vm3 = vcmp.lt.s32.totalorder %v12289_v37, 0  ;;  %v15301_v32 = vrot.slane %v12163_v42, 3  ;;  %v5453_v59 = vrot.slane %v5451_v55, 1 }
 0x2a6   : > { %15406 = vst [vmem:[#allocation26_spill] sm:$0xff] %v12281_v52  ;;  %v3510_v1 = vadd.f32 %v3471_v24, %v3250_v53  ;;  %4208 = vmatmul.bf16.gmra.mxu3 %v12213_v13  ;;  %4458 = vmatmul.bf16.gmra.mxu0 %v4328_v45  ;;  %v394_v7 = vshrl.u32 %v393_v20, 4  ;;  %v411_v13 = vshll.u32 %v407_v0, 16  ;;  %vm413_vm6 = vc.u32 %v405_v60, %v409_v46  ;;  %vm12316_vm7 = vmand %vm1393_vm3, %vm1357_vm15 }
 0x2a7   : > { %v12313_v2 = vadd.s32 18, %v12289_v37  ;;  %v414_v11 = vsel %vm413_vm6, 1, %v15399_v54  ;;  %v415_v18 = vadd.s32 %v409_v46, %v405_v60  ;;  %v12323_v38 = vsel %vm3918_vm4, %v12223_v30, %v12300_v33  ;;  %v4787_v60 = vld [vmem:[#allocation2 + $0x4] sm:$0xc]  ;;  %v12338_v46 = vld [vmem:[#allocation2 + $0x8] sm:$0xf] }
 0x2a8   : > { %5640 = vmatmul.bf16.gmra.mxu2 %v12234_v16  ;;  %v395_v28 = vmul.u32 18, %v394_v7  ;;  %v5456_v21 = vrot.slane %v5454_v22, 2  ;;  %v416_v10 = vadd.s32 %v414_v11, %v408_v25  ;;  %v12326_v36 = vadd.s32 32, %v12133_v5 }
 0x2a9   : > { %v12310_v45 = vpop.f32.mrf.mxu3  ;;  %v410_v55 = vshrl.u32 %v12279_v23, 16  ;;  %vm417_vm8 = vc.u32 %v415_v18, %v411_v13 }
 0x2aa   : > { %v12331_v24 = vsub.s32 %v12200_v39, %v395_v28  ;;  %v418_v30 = vsel %vm417_vm8, 1, %v15399_v54  ;;  %v431_v22 = vand.u32 65535, %v12326_v36  ;;  %v432_v25 = vshrl.u32 %v12326_v36, 16 }
 0x2ab   : > { %v3856_v16 = vpop.f32.mrf.mxu2  ;;  %v3213_v53 = vpop.f32.mrf.mxu0  ;;  %v1501_v39 = vsel %vm12316_vm7, %v12313_v2, %v12289_v37  ;;  %v420_v7 = vadd.s32 %v418_v30, %v416_v10  ;;  %v12354_v43 = vor.u32 %v5456_v21, %v5453_v59  ;;  %v15302_v2 = vunpack.c.l.b16 %v12338_v46  ;;  %v12367_v21 = vld [vmem:[%s15292_s4] ss:$0 sm:$0xff] }
 0x2ac   : > { %v12328_v31 = vadd.f32 %v3856_v16, %v3510_v1  ;;  %v3251_v20 = vadd.f32 %v3213_v53, %v12203_v63  ;;  %v15410_v1 = vrot.slane %v12129_v27, 3  ;;  %v412_v63 = vshrl.u32 %v407_v0, 16 }
 0x2ad   : > { %v3473_v13 = vpop.f32.mrf.mxu1  ;;  %v434_v28 = vmul.u32 14564, %v431_v22  ;;  %v435_v11 = vmul.u32 58254, %v431_v22  ;;  %v12351_v18 = vmul.u32 14564, %v432_v25  ;;  %v4877_v16 = vunpack.c.l.b16 %v4787_v60  ;;  %v12360_v22 = vld [vmem:[%s11148_s14 + $0x78] sm:$0xff] }
 0x2ae   : > { %15409 = vst [vmem:[#allocation27_spill] sm:$0xff] %v12328_v31  ;;  %v12349_v23 = vsel %vm4311_vm5, %v15410_v1, %v15301_v32  ;;  %vm1358_vm9 = vcmp.ne.s32.totalorder %v12331_v24, 0  ;;  %v421_v37 = vadd.s32 %v420_v7, %v410_v55  ;;  %vm1394_vm10 = vcmp.lt.s32.totalorder %v12331_v24, 0 }
 0x2af   : > { %v437_v27 = vmul.u32 58254, %v432_v25  ;;  %v438_v53 = vshll.u32 %v435_v11, 16  ;;  %v440_v0 = vshll.u32 %v12351_v18, 16  ;;  %v3511_v10 = vadd.f32 %v3473_v13, %v3251_v20  ;;  %vm12395_vm15 = vmand %vm1394_vm10, %vm1358_vm9 }
 0x2b0   : > { %v422_v1 = vadd.s32 %v421_v37, %v412_v63  ;;  %v4036_v60 = vshrl.u32 %v12360_v22, 16  ;;  %v4039_v32 = vshll.u32 %v12360_v22, 16  ;;  %v12370_v55 = vadd.s32 18, %v12331_v24 }
 0x2b1   : > { %v4171_v30 = vpop.f32.mrf.mxu3  ;;  %vm442_vm11 = vc.u32 %v434_v28, %v438_v53  ;;  %v444_v20 = vadd.s32 %v438_v53, %v434_v28  ;;  %v12374_v25 = vpack.c.b16 %v15302_v2, %v4877_v16  ;;  %v439_v37 = vshrl.u32 %v435_v11, 16 }
 0x2b2   : > { %v423_v13 = vshrl.u32 %v422_v1, 4  ;;  %v443_v48 = vsel %vm442_vm11, 1, %v15399_v54  ;;  %v15411_v31 = vsel %vm12268_vm14, %v12252_v58, %v12221_v35  ;;  %v441_v16 = vshrl.u32 %v12351_v18, 16  ;;  %v10224_v58 = vld [vmem:[#allocation3 + $0x78] sm:$0xff] }
 0x2b3   : > { %v3858_v59 = vpop.f32.mrf.mxu2  ;;  %v4424_v7 = vpop.f32.mrf.mxu0  ;;  %vm12384_vm12 = vcmp.lt.s32.totalorder %v15411_v31, 16  ;;  %v445_v53 = vadd.s32 %v443_v48, %v437_v27  ;;  %vm446_vm13 = vc.u32 %v444_v20, %v440_v0  ;;  %v10248_v31 = vld [vmem:[#allocation3 + $0x138] sm:$0xff]  ;;  %v4038_v1 = vrot.slane %v4036_v60, 2  ;;  %5820 = vmatpush.bf16.msrb.mxu3 %v10224_v58 }
 0x2b4   : > { %v12376_v63 = vadd.f32 %v3858_v59, %v3511_v10  ;;  %v4514_v28 = vadd.f32 %v4424_v7, %v12293_v44  ;;  %v10177_v10 = vld [vmem:[%s11148_s14 + $0x60] sm:$0xff]  ;;  %v424_v35 = vmul.u32 18, %v423_v13  ;;  %v447_v11 = vsel %vm446_vm13, 1, %v15399_v54  ;;  %6882 = vmatpush.bf16.msrb.mxu2 %v10248_v31 }
 0x2b5   : > { %v4041_v44 = vrot.slane %v4039_v32, 3  ;;  %v449_v48 = vadd.s32 %v447_v11, %v445_v53  ;;  %v15303_v27 = vrot.slane %v12194_v56, 3  ;;  %v4934_v0 = vshrl.u32 %v12374_v25, 16  ;;  %v10232_v13 = vld [vmem:[#allocation3 + $0xb8] sm:$0xff] }
 0x2b6   : > { %v4554_v18 = vadd.f32 %v12367_v21, %v4514_v28  ;;  %4213 = vmatmul.bf16.gmra.mxu3 %v12245_v12  ;;  %4463 = vmatmul.bf16.gmra.mxu0 %v12277_v57  ;;  %v12407_v59 = vadd.f32 %v12310_v45, %v11773_v14  ;;  %vm12410_vm14 = vcmp.lt.s32.totalorder %v1501_v39, 16  ;;  %v12417_v12 = vsel %vm2880_vm2, %v12247_v15, %v12354_v43  ;;  %v10240_v28 = vld [vmem:[#allocation3 + $0xf8] sm:$0xff] }
 0x2b7   : > { %v12420_v57 = vsub.s32 %v12238_v4, %v424_v35  ;;  %v12423_v32 = vadd.s32 40, %v12133_v5  ;;  %v12426_v14 = vadd.f32 %v4171_v30, %v11788_v41  ;;  %v450_v45 = vadd.s32 %v449_v48, %v439_v37  ;;  %6128 = vmatpush.bf16.msrb.mxu0 %v10232_v13  ;;  %6646 = vmatpush.bf16.msrb.mxu1 %v10240_v28 }
 0x2b8   : > { %5645 = vmatmul.bf16.gmra.mxu2 %v12286_v26  ;;  %v1502_v26 = vsel %vm12395_vm15, %v12370_v55, %v12331_v24  ;;  %v5460_v39 = vshrl.u32 %v10177_v10, 16  ;;  %v12434_v4 = vor.u32 %v4041_v44, %v4038_v1  ;;  %v4937_v20 = vshll.u32 %v12374_v25, 16 }
 0x2b9   : > { %v4174_v15 = vpop.f32.mrf.mxu3  ;;  %vm1359_vm3 = vcmp.ne.s32.totalorder %v12420_v57, 0  ;;  %vm1395_vm6 = vcmp.lt.s32.totalorder %v12420_v57, 0  ;;  %v4590_v7 = vmax.f32 %v4554_v18, 0.0  ;;  %v451_v30 = vadd.s32 %v450_v45, %v441_v16 }
 0x2ba   : > { %v15418_v24 = vrot.slane %v12163_v42, 3  ;;  %v12446_v37 = vrot.slane %v4934_v0, 2  ;;  %v1467_v47 = vadd.s32 18, %v12420_v57  ;;  %v5463_v35 = vshll.u32 %v10177_v10, 16  ;;  %vm12456_vm7 = vmand %vm1395_vm6, %vm1359_vm3 }
 0x2bb   : > { %v12437_v41 = vpop.f32.mrf.mxu2  ;;  %v4426_v53 = vpop.f32.mrf.mxu0  ;;  %v460_v25 = vand.u32 65535, %v12423_v32  ;;  %v461_v58 = vshrl.u32 %v12423_v32, 16  ;;  %v452_v31 = vshrl.u32 %v451_v30, 4  ;;  %v5462_v11 = vrot.slane %v5460_v39, 1 }
 0x2bc   : > { %v12444_v55 = vsel %vm4311_vm5, %v15418_v24, %v15303_v27  ;;  %v4515_v16 = vadd.f32 %v4426_v53, %v12304_v3  ;;  %v12461_v10 = vadd.s32 48, %v12133_v5  ;;  %v5465_v1 = vrot.slane %v5463_v35, 2 }
 0x2bd   : > { %v463_v44 = vmul.u32 14564, %v460_v25  ;;  %v464_v18 = vmul.u32 58254, %v460_v25  ;;  %v12463_v48 = vmul.u32 14564, %v461_v58  ;;  %v453_v0 = vmul.u32 18, %v452_v31 }
 0x2be   : > { %v4555_v3 = vadd.f32 %v12367_v21, %v4515_v16  ;;  %v12469_v45 = vsel %vm3918_vm4, %v12300_v33, %v12434_v4  ;;  %v12471_v30 = vrot.slane %v4937_v20, 3  ;;  %v4626_v39 = vsel %vm12384_vm12, %v4590_v7, 0.0 }
 0x2bf   : > { %v1503_v13 = vsel %vm12456_vm7, %v1467_v47, %v12420_v57  ;;  %v467_v24 = vshll.u32 %v464_v18, 16  ;;  %v469_v28 = vshll.u32 %v12463_v48, 16  ;;  %v12480_v35 = vsub.s32 %v12326_v36, %v453_v0 }
 0x2c0   : > { %v4591_v53 = vmax.f32 %v4555_v3, 0.0  ;;  %v466_v25 = vmul.u32 58254, %v461_v58  ;;  %v489_v33 = vand.u32 65535, %v12461_v10  ;;  %v12483_v20 = vor.u32 %v5465_v1, %v5462_v11 }
 0x2c1   : > { %v4176_v16 = vpop.f32.mrf.mxu3  ;;  %vm471_vm8 = vc.u32 %v463_v44, %v467_v24  ;;  %v473_v52 = vadd.s32 %v467_v24, %v463_v44  ;;  %v490_v7 = vshrl.u32 %v12461_v10, 16  ;;  %vm1360_vm9 = vcmp.ne.s32.totalorder %v12480_v35, 0 }
 0x2c2   : > { %v4627_v57 = vsel %vm12410_vm14, %v4591_v53, 0.0  ;;  %v468_v42 = vshrl.u32 %v464_v18, 16  ;;  %v492_v36 = vmul.u32 14564, %v489_v33  ;;  %vm1396_vm10 = vcmp.lt.s32.totalorder %v12480_v35, 0 }
 0x2c3   : > { %v12488_v47 = vpop.f32.mrf.mxu2  ;;  %v10323_v31 = vpack.c.bf16 %v4627_v57, %v4626_v39  ;;  %v4429_v58 = vpop.f32.mrf.mxu0  ;;  %v472_v11 = vsel %vm471_vm8, 1, %v15399_v54  ;;  %vm475_vm11 = vc.u32 %v473_v52, %v469_v28  ;;  %vm12493_vm12 = vcmp.lt.s32.totalorder %v1502_v26, 16  ;;  %vm12513_vm13 = vmand %vm1396_vm10, %vm1360_vm9  ;;  %v10178_v57 = vld [vmem:[%s11148_s14 + $0x68] sm:$0xff] }
 0x2c4   : > { %15421 = vst [vmem:[#allocation28_spill] sm:$0xff] %v12488_v47  ;;  %v4516_v60 = vadd.f32 %v4429_v58, %v12407_v59  ;;  %v474_v44 = vadd.s32 %v472_v11, %v466_v25  ;;  %v476_v3 = vsel %vm475_vm11, 1, %v15399_v54  ;;  %v493_v0 = vmul.u32 58254, %v489_v33  ;;  %v12525_v33 = vld [vmem:[%s11148_s14 + $0x80] sm:$0xff] }
 0x2c5   : > { %v12500_v18 = vadd.f32 %v4174_v15, %v11802_v62  ;;  %10579 = vst [vmem:[#allocation2 + $0x10] sm:$0xff] %v10323_v31   ;;  %v12503_v39 = vadd.s32 18, %v12480_v35  ;;  %v494_v24 = vmul.u32 14564, %v490_v7  ;;  %v470_v59 = vshrl.u32 %v12463_v48, 16 }
 0x2c6   : > { %4218 = vmatmul.bf16.gmra.mxu3 %v12323_v38  ;;  %4468 = vmatmul.bf16.gmra.mxu0 %v12349_v23  ;;  %v478_v15 = vadd.s32 %v476_v3, %v474_v44  ;;  %v495_v28 = vmul.u32 58254, %v490_v7  ;;  %v496_v53 = vshll.u32 %v493_v0, 16  ;;  %v4556_v25 = vadd.f32 %v12367_v21, %v4516_v60 }
 0x2c7   : > { %vm12520_vm15 = vcmp.lt.s32.totalorder %v1503_v13, 16  ;;  %v498_v23 = vshll.u32 %v494_v24, 16  ;;  %v4045_v52 = vshrl.u32 %v12525_v33, 16  ;;  %v12532_v48 = vsel %vm2880_vm2, %v12354_v43, %v12483_v20 }
 0x2c8   : > { %5650 = vmatmul.bf16.gmra.mxu2 %v12417_v12  ;;  %v479_v7 = vadd.s32 %v478_v15, %v468_v42  ;;  %vm500_vm14 = vc.u32 %v492_v36, %v496_v53  ;;  %v502_v31 = vadd.s32 %v496_v53, %v492_v36  ;;  %v12535_v12 = vadd.f32 %v4176_v16, %v11814_v9 }
 0x2c9   : > { %v4179_v13 = vpop.f32.mrf.mxu3  ;;  %v1504_v58 = vsel %vm12513_vm13, %v12503_v39, %v12480_v35  ;;  %v501_v11 = vsel %vm500_vm14, 1, %v15399_v54  ;;  %v4048_v60 = vshll.u32 %v12525_v33, 16  ;;  %v497_v3 = vshrl.u32 %v493_v0, 16 }
 0x2ca   : > { %v480_v43 = vadd.s32 %v479_v7, %v470_v59  ;;  %v499_v42 = vshrl.u32 %v494_v24, 16  ;;  %v503_v15 = vadd.s32 %v501_v11, %v495_v28  ;;  %v4592_v36 = vmax.f32 %v4556_v25, 0.0 }
 0x2cb   : > { %v12543_v44 = vpop.f32.mrf.mxu2  ;;  %v4431_v53 = vpop.f32.mrf.mxu0  ;;  %vm504_vm3 = vc.u32 %v502_v31, %v498_v23  ;;  %v4047_v9 = vrot.slane %v4045_v52, 2  ;;  %v5469_v16 = vshrl.u32 %v10178_v57, 16  ;;  %v15308_v62 = vrot.slane %v12258_v17, 3 }
 0x2cc   : > { %v4517_v2 = vadd.f32 %v4431_v53, %v12426_v14  ;;  %v12546_v27 = vld [vmem:[#allocation2 + $0xc] sm:$0xff]  ;;  %v481_v35 = vshrl.u32 %v480_v43, 4  ;;  %v505_v39 = vsel %vm504_vm3, 1, %v15399_v54  ;;  %v4050_v47 = vrot.slane %v4048_v60, 3 }
 0x2cd   : > { %v507_v26 = vadd.s32 %v505_v39, %v503_v15  ;;  %v5472_v59 = vshll.u32 %v10178_v57, 16  ;;  %v12551_v0 = vadd.s32 56, %v12133_v5  ;;  %v15307_v28 = vshrl.u32 %v12546_v27, 16 }
 0x2ce   : > { %v4557_v24 = vadd.f32 %v12367_v21, %v4517_v2  ;;  %v15306_v25 = vshll.u32 %v12546_v27, 16  ;;  %v482_v14 = vmul.u32 18, %v481_v35  ;;  %v4628_v23 = vsel %vm12493_vm12, %v4592_v36, 0.0 }
 0x2cf   : > { %v508_v52 = vadd.s32 %v507_v26, %v497_v3  ;;  %v5471_v7 = vrot.slane %v5469_v16, 1  ;;  %v518_v31 = vand.u32 65535, %v12551_v0  ;;  %v4944_v57 = vrot.slane %v15307_v28, 2 }
 0x2d0   : > { %v4593_v11 = vmax.f32 %v4557_v24, 0.0  ;;  %v4947_v60 = vrot.slane %v15306_v25, 3  ;;  %v483_v2 = vsub.s32 %v12423_v32, %v482_v14  ;;  %v12566_v53 = vor.u32 %v4050_v47, %v4047_v9 }
 0x2d1   : > { %v12564_v43 = vpop.f32.mrf.mxu3  ;;  %v509_v15 = vadd.s32 %v508_v52, %v499_v42  ;;  %v5474_v1 = vrot.slane %v5472_v59, 2  ;;  %v519_v26 = vshrl.u32 %v12551_v0, 16  ;;  %vm12573_vm6 = vcmp.lt.s32.totalorder %v1504_v58, 16 }
 0x2d2   : > { %v4629_v3 = vsel %vm12520_vm15, %v4593_v11, 0.0  ;;  %v12577_v35 = vor.u32 %v4947_v60, %v4944_v57  ;;  %vm1361_vm7 = vcmp.ne.s32.totalorder %v483_v2, 0  ;;  %v12580_v32 = vadd.s32 64, %v12133_v5  ;;  %v10223_v60 = vld [vmem:[#allocation3 + $0x70] sm:$0xff] }
 0x2d3   : > { %v12571_v36 = vpop.f32.mrf.mxu2  ;;  %v10328_v47 = vpack.c.bf16 %v4629_v3, %v4628_v23  ;;  %v4434_v42 = vpop.f32.mrf.mxu0  ;;  %vm1397_vm8 = vcmp.lt.s32.totalorder %v483_v2, 0  ;;  %v1469_v9 = vadd.s32 18, %v483_v2  ;;  %v510_v39 = vshrl.u32 %v509_v15, 4  ;;  %5821 = vmatpush.bf16.msrb.mxu3 %v10223_v60 }
 0x2d4   : > { %15428 = vst [vmem:[#allocation29_spill] sm:$0xff] %v12571_v36  ;;  %v4518_v38 = vadd.f32 %v4434_v42, %v12500_v18  ;;  %v15431_v58 = vor.u32 %v12471_v30, %v12446_v37  ;;  %vm12588_vm9 = vmand %vm1397_vm8, %vm1361_vm7  ;;  %v521_v14 = vmul.u32 14564, %v518_v31  ;;  %v522_v52 = vmul.u32 58254, %v518_v31 }
 0x2d5   : > { %v12593_v23 = vadd.f32 %v4179_v13, %v11829_v8  ;;  %10580 = vst [vmem:[#allocation2 + $0x18] sm:$0xff] %v10328_v47   ;;  %v511_v11 = vmul.u32 18, %v510_v39  ;;  %v12595_v57 = vor.u32 %v5474_v1, %v5471_v7  ;;  %v523_v18 = vmul.u32 14564, %v519_v26 }
 0x2d6   : > { %v4949_v59 = vsel %vm3918_vm4, %v15431_v58, %v12577_v35  ;;  %v4558_v37 = vadd.f32 %v12367_v21, %v4518_v38  ;;  %4223 = vmatmul.bf16.gmra.mxu3 %v12469_v45  ;;  %4473 = vmatmul.bf16.gmra.mxu0 %v12444_v55  ;;  %v1505_v30 = vsel %vm12588_vm9, %v1469_v9, %v483_v2  ;;  %v524_v31 = vmul.u32 58254, %v519_v26  ;;  %v10247_v38 = vld [vmem:[#allocation3 + $0x130] sm:$0xff] }
 0x2d7   : > { %5177 = vmatmul.bf16.vlgmr.msra.gmra.mxu1 %v4949_v59  ;;  %v525_v15 = vshll.u32 %v522_v52, 16  ;;  %v12604_v8 = vsub.s32 %v12461_v10, %v511_v11  ;;  %v15434_v13 = vrot.slane %v12194_v56, 3  ;;  %v527_v45 = vshll.u32 %v523_v18, 16  ;;  %v10231_v58 = vld [vmem:[#allocation3 + $0xb0] sm:$0xff]  ;;  %6883 = vmatpush.bf16.msrb.mxu2 %v10247_v38 }
 0x2d8   : > { %5655 = vmatmul.bf16.gmra.mxu2 %v12532_v48  ;;  %v547_v55 = vand.u32 65535, %v12580_v32  ;;  %v12617_v2 = vsel %vm3918_vm4, %v12434_v4, %v12566_v53  ;;  %v548_v10 = vshrl.u32 %v12580_v32, 16  ;;  %v4594_v1 = vmax.f32 %v4558_v37, 0.0  ;;  %6129 = vmatpush.bf16.msrb.mxu0 %v10231_v58 }
 0x2d9   : > { %v12611_v7 = vsel %vm4311_vm5, %v15434_v13, %v15308_v62  ;;  %vm529_vm10 = vc.u32 %v521_v14, %v525_v15  ;;  %v531_v48 = vadd.s32 %v525_v15, %v521_v14  ;;  %v12620_v26 = vpop.f32.mrf.mxu3  ;;  %vm12622_vm11 = vcmp.lt.s32.totalorder %v1505_v30, 16  ;;  %v12648_v13 = vld [vmem:[%s11148_s14 + $0x88] sm:$0xff] }
 0x2da   : > { %v12629_v3 = vsel %vm2880_vm2, %v12483_v20, %v12595_v57  ;;  %v530_v47 = vsel %vm529_vm10, 1, %v15399_v54  ;;  %v526_v42 = vshrl.u32 %v522_v52, 16  ;;  %v528_v9 = vshrl.u32 %v523_v18, 16  ;;  %v10239_v20 = vld [vmem:[#allocation3 + $0xf0] sm:$0xff] }
 0x2db   : > { %v12632_v4 = vpop.f32.mrf.mxu2  ;;  %v532_v39 = vadd.s32 %v530_v47, %v524_v31  ;;  %vm533_vm12 = vc.u32 %v531_v48, %v527_v45  ;;  %v4436_v59 = vpop.f32.mrf.mxu0  ;;  %vm1362_vm13 = vcmp.ne.s32.totalorder %v12604_v8, 0  ;;  %v550_v14 = vmul.u32 14564, %v547_v55  ;;  %6647 = vmatpush.bf16.msrb.mxu1 %v10239_v20 }
 0x2dc   : > { %v534_v24 = vsel %vm533_vm12, 1, %v15399_v54  ;;  %v551_v11 = vmul.u32 58254, %v547_v55  ;;  %v4519_v60 = vadd.f32 %v4436_v59, %v12535_v12  ;;  %vm1398_vm15 = vcmp.lt.s32.totalorder %v12604_v8, 0  ;;  %v12638_v37 = vld [vmem:[#allocation2 + $0x14] sm:$0xff] }
 0x2dd   : > { %v536_v52 = vadd.s32 %v534_v24, %v532_v39  ;;  %v12640_v18 = vmul.u32 14564, %v548_v10  ;;  %v4630_v30 = vsel %vm12573_vm6, %v4594_v1, 0.0  ;;  %v12645_v31 = vadd.s32 18, %v12604_v8  ;;  %vm12663_vm3 = vmand %vm1398_vm15, %vm1362_vm13 }
 0x2de   : > { %v554_v15 = vshll.u32 %v551_v11, 16  ;;  %v4054_v12 = vshrl.u32 %v12648_v13, 16  ;;  %v4559_v45 = vadd.f32 %v12367_v21, %v4519_v60  ;;  %v15305_v55 = vshrl.u32 %v12638_v37, 16 }
 0x2df   : > { %v15304_v48 = vshll.u32 %v12638_v37, 16  ;;  %v537_v47 = vadd.s32 %v536_v52, %v526_v42  ;;  %v553_v39 = vmul.u32 58254, %v548_v10  ;;  %v556_v16 = vshll.u32 %v12640_v18, 16  ;;  %v10179_v52 = vld [vmem:[%s11148_s14 + $0x70] sm:$0xff] }
 0x2e0   : > { %vm558_vm14 = vc.u32 %v550_v14, %v554_v15  ;;  %v560_v1 = vadd.s32 %v554_v15, %v550_v14  ;;  %v4595_v38 = vmax.f32 %v4559_v45, 0.0  ;;  %v4953_v58 = vrot.slane %v15305_v55, 2 }
 0x2e1   : > { %v4956_v59 = vrot.slane %v15304_v48, 3  ;;  %v538_v24 = vadd.s32 %v537_v47, %v528_v9  ;;  %v4186_v20 = vpop.f32.mrf.mxu3  ;;  %v555_v10 = vshrl.u32 %v551_v11, 16  ;;  %v559_v14 = vsel %vm558_vm14, 1, %v15399_v54 }
 0x2e2   : > { %vm562_vm6 = vc.u32 %v560_v1, %v556_v16  ;;  %v4057_v60 = vshll.u32 %v12648_v13, 16  ;;  %v4631_v15 = vsel %vm12622_vm11, %v4595_v38, 0.0  ;;  %v4056_v48 = vrot.slane %v4054_v12, 2 }
 0x2e3   : > { %v12672_v9 = vpop.f32.mrf.mxu2  ;;  %v12674_v45 = vor.u32 %v4956_v59, %v4953_v58  ;;  %v539_v47 = vshrl.u32 %v538_v24, 4  ;;  %v10333_v55 = vpack.c.bf16 %v4631_v15, %v4630_v30  ;;  %v4439_v25 = vpop.f32.mrf.mxu0  ;;  %v561_v28 = vadd.s32 %v559_v14, %v553_v39 }
 0x2e4   : > { %15439 = vst [vmem:[#allocation30_spill] sm:$0xff] %v12672_v9  ;;  %v563_v11 = vsel %vm562_vm6, 1, %v15399_v54  ;;  %v4059_v62 = vrot.slane %v4057_v60, 3  ;;  %v1506_v16 = vsel %vm12663_vm3, %v12645_v31, %v12604_v8  ;;  %v4520_v56 = vadd.f32 %v4439_v25, %v12593_v23 }
 0x2e5   : > { %v4958_v1 = vsel %vm3918_vm4, %v12577_v35, %v12674_v45  ;;  %v540_v38 = vmul.u32 18, %v539_v47  ;;  %10581 = vst [vmem:[#allocation2 + $0x20] sm:$0xff] %v10333_v55   ;;  %v557_v30 = vshrl.u32 %v12640_v18, 16  ;;  %v565_v12 = vadd.s32 %v563_v11, %v561_v28 }
 0x2e6   : > { %v5478_v39 = vshrl.u32 %v10179_v52, 16  ;;  %v5481_v58 = vshll.u32 %v10179_v52, 16  ;;  %v4560_v59 = vadd.f32 %v12367_v21, %v4520_v56  ;;  %4228 = vmatmul.bf16.gmra.mxu3 %v12617_v2  ;;  %4478 = vmatmul.bf16.gmra.mxu0 %v12611_v7  ;;  %v4337_v23 = vrot.slane %v12360_v22, 3 }
 0x2e7   : > { %5182 = vmatmul.bf16.gmra.mxu1 %v4958_v1  ;;  %v541_v25 = vsub.s32 %v12551_v0, %v540_v38  ;;  %v12692_v35 = vadd.s32 72, %v12133_v5  ;;  %v566_v8 = vadd.s32 %v565_v12, %v555_v10  ;;  %v12695_v18 = vor.u32 %v4059_v62, %v4056_v48 }
 0x2e8   : > { %5660 = vmatmul.bf16.gmra.mxu2 %v12629_v3  ;;  %v5480_v28 = vrot.slane %v5478_v39, 1  ;;  %v5483_v31 = vrot.slane %v5481_v58, 2  ;;  %v4261_v55 = vadd.f32 %v12564_v43, %v11844_v49  ;;  %v4596_v2 = vmax.f32 %v4560_v59, 0.0 }
 0x2e9   : > { %vm1363_vm7 = vcmp.ne.s32.totalorder %v541_v25, 0  ;;  %vm1399_vm8 = vcmp.lt.s32.totalorder %v541_v25, 0  ;;  %v1471_v7 = vadd.s32 18, %v541_v25  ;;  %v12699_v0 = vpop.f32.mrf.mxu3  ;;  %v567_v42 = vadd.s32 %v566_v8, %v557_v30 }
 0x2ea   : > { %vm12701_vm9 = vmand %vm1399_vm8, %vm1363_vm7  ;;  %v576_v3 = vand.u32 65535, %v12692_v35  ;;  %v577_v62 = vshrl.u32 %v12692_v35, 16  ;;  %v4262_v48 = vadd.f32 %v12620_v26, %v11856_v34  ;;  %v12710_v49 = vadd.f32 %v4186_v20, %v11871_v19 }
 0x2eb   : > { %vm1542_vm10 = vcmp.lt.s32.totalorder %v1506_v16, 16  ;;  %v12712_v43 = vpop.f32.mrf.mxu2  ;;  %v1507_v10 = vsel %vm12701_vm9, %v1471_v7, %v541_v25  ;;  %v4441_v14 = vpop.f32.mrf.mxu0  ;;  %v568_v60 = vshrl.u32 %v567_v42, 4  ;;  %v4061_v52 = vsel %vm3918_vm4, %v12566_v53, %v12695_v18 }
 0x2ec   : > { %v15442_v15 = vrot.slane %v12258_v17, 3  ;;  %v12724_v19 = vor.u32 %v5483_v31, %v5480_v28  ;;  %v4521_v26 = vadd.f32 %v4441_v14, %v4261_v55  ;;  %v12726_v20 = vld [vmem:[#allocation2 + $0x1c] sm:$0xff]  ;;  %v579_v47 = vmul.u32 14564, %v576_v3 }
 0x2ed   : > { %v580_v11 = vmul.u32 58254, %v576_v3  ;;  %v12728_v16 = vmul.u32 14564, %v577_v62  ;;  %v4632_v56 = vsel %vm1542_vm10, %v4596_v2, 0.0  ;;  %vm12730_vm11 = vcmp.lt.s32.totalorder %v1507_v10, 16 }
 0x2ee   : > { %v4338_v34 = vsel %vm4311_vm5, %v15442_v15, %v4337_v23  ;;  %v569_v53 = vmul.u32 18, %v568_v60  ;;  %v12735_v38 = vadd.s32 80, %v12133_v5  ;;  %v4561_v17 = vadd.f32 %v12367_v21, %v4521_v26  ;;  %v12759_v26 = vld [vmem:[%s11148_s14 + $0x90] sm:$0xff] }
 0x2ef   : > { %v15314_v30 = vshrl.u32 %v12726_v20, 16  ;;  %v15309_v12 = vshll.u32 %v12726_v20, 16  ;;  %v583_v39 = vshll.u32 %v580_v11, 16  ;;  %v5485_v59 = vsel %vm2880_vm2, %v12595_v57, %v12724_v19 }
 0x2f0   : > { %v570_v58 = vsub.s32 %v12580_v32, %v569_v53  ;;  %v582_v25 = vmul.u32 58254, %v577_v62  ;;  %v585_v8 = vshll.u32 %v12728_v16, 16  ;;  %v4597_v28 = vmax.f32 %v4561_v17, 0.0 }
 0x2f1   : > { %v4962_v31 = vrot.slane %v15314_v30, 2  ;;  %v4965_v55 = vrot.slane %v15309_v12, 3  ;;  %vm587_vm12 = vc.u32 %v579_v47, %v583_v39  ;;  %v4191_v7 = vpop.f32.mrf.mxu3  ;;  %v605_v2 = vand.u32 65535, %v12735_v38 }
 0x2f2   : > { %vm1364_vm13 = vcmp.ne.s32.totalorder %v570_v58, 0  ;;  %v588_v32 = vsel %vm587_vm12, 1, %v15399_v54  ;;  %v606_v57 = vshrl.u32 %v12735_v38, 16  ;;  %v4633_v24 = vsel %vm12730_vm11, %v4597_v28, 0.0  ;;  %v10180_v28 = vld [vmem:[%s11148_s14 + $0x78] sm:$0xff] }
 0x2f3   : > { %v12754_v42 = vpop.f32.mrf.mxu2  ;;  %vm1400_vm15 = vcmp.lt.s32.totalorder %v570_v58, 0  ;;  %v12756_v3 = vor.u32 %v4965_v55, %v4962_v31  ;;  %v589_v62 = vadd.s32 %v583_v39, %v579_v47  ;;  %v10338_v10 = vpack.c.bf16 %v4633_v24, %v4632_v56  ;;  %v4444_v14 = vpop.f32.mrf.mxu0 }
 0x2f4   : > { %15445 = vst [vmem:[#allocation31_spill] sm:$0xff] %v12754_v42  ;;  %v584_v60 = vshrl.u32 %v580_v11, 16  ;;  %v590_v15 = vadd.s32 %v588_v32, %v582_v25  ;;  %v4063_v53 = vshrl.u32 %v12759_v26, 16  ;;  %v1472_v17 = vadd.s32 18, %v570_v58  ;;  %vm12766_vm3 = vmand %vm1400_vm15, %vm1364_vm13 }
 0x2f5   : > { %v4522_v12 = vadd.f32 %v4444_v14, %v4262_v48  ;;  %v4967_v1 = vsel %vm3918_vm4, %v12674_v45, %v12756_v3  ;;  %vm591_vm14 = vc.u32 %v589_v62, %v585_v8  ;;  %10582 = vst [vmem:[#allocation2 + $0x28] sm:$0xff] %v10338_v10   ;;  %v608_v56 = vmul.u32 14564, %v605_v2 }
 0x2f6   : > { %v592_v11 = vsel %vm591_vm14, 1, %v15399_v54  ;;  %v609_v39 = vmul.u32 58254, %v605_v2  ;;  %v610_v25 = vmul.u32 14564, %v606_v57  ;;  %v12774_v48 = vadd.f32 %v12699_v0, %v11883_v6  ;;  %4233 = vmatmul.bf16.gmra.mxu3 %v4061_v52  ;;  %4483 = vmatmul.bf16.gmra.mxu0 %v4338_v34 }
 0x2f7   : > { %5187 = vmatmul.bf16.gmra.mxu1 %v4967_v1  ;;  %v586_v45 = vshrl.u32 %v12728_v16, 16  ;;  %v594_v8 = vadd.s32 %v592_v11, %v590_v15  ;;  %v611_v31 = vmul.u32 58254, %v606_v57  ;;  %v12778_v55 = vadd.f32 %v12367_v21, %v4522_v12 }
 0x2f8   : > { %5665 = vmatmul.bf16.gmra.mxu2 %v5485_v59  ;;  %v612_v32 = vshll.u32 %v609_v39, 16  ;;  %v614_v24 = vshll.u32 %v610_v25, 16  ;;  %v4066_v2 = vshll.u32 %v12759_v26, 16  ;;  %v12782_v62 = vadd.f32 %v4191_v7, %v11898_v40 }
 0x2f9   : > { %v1508_v6 = vsel %vm12766_vm3, %v1472_v17, %v570_v58  ;;  %v595_v0 = vadd.s32 %v594_v8, %v584_v60  ;;  %v4065_v52 = vrot.slane %v4063_v53, 2  ;;  %v12786_v34 = vpop.f32.mrf.mxu3  ;;  %v5487_v57 = vshrl.u32 %v10180_v28, 16 }
 0x2fa   : > { %vm616_vm6 = vc.u32 %v608_v56, %v612_v32  ;;  %v618_v16 = vadd.s32 %v612_v32, %v608_v56  ;;  %v5490_v12 = vshll.u32 %v10180_v28, 16  ;;  %v613_v14 = vshrl.u32 %v609_v39, 16 }
 0x2fb   : > { %v12788_v10 = vpop.f32.mrf.mxu2  ;;  %v596_v59 = vadd.s32 %v595_v0, %v586_v45  ;;  %v615_v15 = vshrl.u32 %v610_v25, 16  ;;  %v617_v1 = vsel %vm616_vm6, 1, %v15399_v54  ;;  %vm12791_vm7 = vcmp.lt.s32.totalorder %v1508_v6, 16  ;;  %v4446_v7 = vpop.f32.mrf.mxu0 }
 0x2fc   : > { %v4598_v58 = vmax.f32 %v12778_v55, 0.0  ;;  %v619_v60 = vadd.s32 %v617_v1, %v611_v31  ;;  %vm620_vm8 = vc.u32 %v618_v16, %v614_v24  ;;  %v4068_v53 = vrot.slane %v4066_v2, 3  ;;  %v12798_v56 = vld [vmem:[#allocation2 + $0x24] sm:$0xff] }
 0x2fd   : > { %v597_v17 = vshrl.u32 %v596_v59, 4  ;;  %v4523_v47 = vadd.f32 %v4446_v7, %v12710_v49  ;;  %v621_v11 = vsel %vm620_vm8, 1, %v15399_v54  ;;  %v5489_v39 = vrot.slane %v5487_v57, 1 }
 0x2fe   : > { %v623_v25 = vadd.s32 %v621_v11, %v619_v60  ;;  %v4339_v28 = vrot.slane %v12525_v33, 3  ;;  %v5492_v45 = vrot.slane %v5490_v12, 2  ;;  %v12802_v8 = vadd.s32 88, %v12133_v5 }
 0x2ff   : > { %v598_v55 = vmul.u32 18, %v597_v17  ;;  %v4563_v31 = vadd.f32 %v12367_v21, %v4523_v47  ;;  %v15313_v32 = vshrl.u32 %v12798_v56, 16  ;;  %v15310_v24 = vshll.u32 %v12798_v56, 16 }
 0x300   : > { %v624_v49 = vadd.s32 %v623_v25, %v613_v14  ;;  %v12807_v2 = vor.u32 %v4068_v53, %v4065_v52  ;;  %v634_v6 = vand.u32 65535, %v12802_v8  ;;  %v635_v0 = vshrl.u32 %v12802_v8, 16 }
 0x301   : > { %v599_v16 = vsub.s32 %v12692_v35, %v598_v55  ;;  %v4971_v57 = vrot.slane %v15313_v32, 2  ;;  %v4974_v12 = vrot.slane %v15310_v24, 3  ;;  %v12816_v59 = vor.u32 %v5492_v45, %v5489_v39  ;;  %v12818_v7 = vpop.f32.mrf.mxu3 }
 0x302   : > { %v4599_v1 = vmax.f32 %v4563_v31, 0.0  ;;  %v625_v14 = vadd.s32 %v624_v49, %v615_v15  ;;  %v4340_v52 = vsel %vm4311_vm5, %v4337_v23, %v4339_v28  ;;  %v12825_v60 = vmul.u32 58254, %v634_v6  ;;  %v10222_v31 = vld [vmem:[#allocation3 + $0x68] sm:$0xff] }
 0x303   : > { %vm1365_vm9 = vcmp.ne.s32.totalorder %v599_v16, 0  ;;  %vm1401_vm10 = vcmp.lt.s32.totalorder %v599_v16, 0  ;;  %v1473_v35 = vadd.s32 18, %v599_v16  ;;  %v12827_v53 = vpop.f32.mrf.mxu2  ;;  %v637_v17 = vmul.u32 14564, %v634_v6  ;;  %v4449_v11 = vpop.f32.mrf.mxu0  ;;  %v10246_v49 = vld [vmem:[#allocation3 + $0x128] sm:$0xff]  ;;  %5822 = vmatpush.bf16.msrb.mxu3 %v10222_v31 }
 0x304   : > { %15450 = vst [vmem:[#allocation32_spill] sm:$0xff] %v12827_v53  ;;  %vm1437_vm11 = vmand %vm1401_vm10, %vm1365_vm9  ;;  %v626_v47 = vshrl.u32 %v625_v14, 4  ;;  %v4070_v15 = vsel %vm3918_vm4, %v12695_v18, %v12807_v2  ;;  %v12832_v39 = vor.u32 %v4974_v12, %v4971_v57  ;;  %v639_v22 = vmul.u32 14564, %v635_v0  ;;  %6884 = vmatpush.bf16.msrb.mxu2 %v10246_v49 }
 0x305   : > { %v1509_v25 = vsel %vm1437_vm11, %v1473_v35, %v599_v16  ;;  %v5494_v23 = vsel %vm2880_vm2, %v12724_v19, %v12816_v59  ;;  %v640_v45 = vmul.u32 58254, %v635_v0  ;;  %v641_v55 = vshll.u32 %v12825_v60, 16 }
 0x306   : > { %vm1545_vm12 = vcmp.lt.s32.totalorder %v1509_v25, 16  ;;  %v627_v6 = vmul.u32 18, %v626_v47  ;;  %v4976_v14 = vsel %vm3918_vm4, %v12756_v3, %v12832_v39  ;;  %v643_v18 = vshll.u32 %v639_v22, 16  ;;  %4238 = vmatmul.bf16.gmra.mxu3 %v4070_v15  ;;  %4488 = vmatmul.bf16.gmra.mxu0 %v4340_v52 }
 0x307   : > { %v4634_v57 = vsel %vm12791_vm7, %v4598_v58, 0.0  ;;  %v4635_v16 = vsel %vm1545_vm12, %v4599_v1, 0.0  ;;  %v4524_v12 = vadd.f32 %v4449_v11, %v12774_v48  ;;  %vm645_vm13 = vc.u32 %v637_v17, %v641_v55  ;;  %5192 = vmatmul.bf16.gmra.mxu1 %v4976_v14  ;;  %v12851_v58 = vld [vmem:[%s11148_s14 + $0x98] sm:$0xff] }
 0x308   : > { %v10343_v19 = vpack.c.bf16 %v4635_v16, %v4634_v57  ;;  %v628_v0 = vsub.s32 %v12735_v38, %v627_v6  ;;  %5670 = vmatmul.bf16.gmra.mxu2 %v5494_v23  ;;  %v646_v35 = vsel %vm645_vm13, 1, %v15399_v54  ;;  %v647_v47 = vadd.s32 %v641_v55, %v637_v17 }
 0x309   : > { %v642_v3 = vshrl.u32 %v12825_v60, 16  ;;  %v648_v25 = vadd.s32 %v646_v35, %v640_v45  ;;  %v12848_v40 = vadd.s32 96, %v12133_v5  ;;  %v4072_v48 = vshrl.u32 %v12851_v58, 16  ;;  %v12854_v1 = vpop.f32.mrf.mxu3 }
 0x30a   : > { %10583 = vst [vmem:[#allocation2 + $0x30] sm:$0xff] %v10343_v19   ;;  %vm1366_vm15 = vcmp.ne.s32.totalorder %v628_v0, 0  ;;  %vm1402_vm14 = vcmp.lt.s32.totalorder %v628_v0, 0  ;;  %v1474_v38 = vadd.s32 18, %v628_v0  ;;  %vm649_vm3 = vc.u32 %v647_v47, %v643_v18  ;;  %v10181_v47 = vld [vmem:[%s11148_s14 + $0x80] sm:$0xff] }
 0x30b   : > { %vm12856_vm6 = vmand %vm1402_vm14, %vm1366_vm15  ;;  %v12861_v60 = vadd.f32 %v12367_v21, %v4524_v12  ;;  %v12863_v17 = vpop.f32.mrf.mxu2  ;;  %v650_v11 = vsel %vm649_vm3, 1, %v15399_v54  ;;  %v663_v15 = vand.u32 65535, %v12848_v40  ;;  %v664_v23 = vshrl.u32 %v12848_v40, 16  ;;  %v4451_v49 = vpop.f32.mrf.mxu0 }
 0x30c   : > { %v1510_v45 = vsel %vm12856_vm6, %v1474_v38, %v628_v0  ;;  %v644_v55 = vshrl.u32 %v639_v22, 16  ;;  %v652_v31 = vadd.s32 %v650_v11, %v648_v25  ;;  %v4075_v6 = vshll.u32 %v12851_v58, 16 }
 0x30d   : > { %v4525_v14 = vadd.f32 %v4451_v49, %v12782_v62  ;;  %v666_v18 = vmul.u32 14564, %v663_v15  ;;  %v667_v57 = vmul.u32 58254, %v663_v15  ;;  %v4074_v16 = vrot.slane %v4072_v48, 2 }
 0x30e   : > { %v12874_v12 = vadd.f32 %v12786_v34, %v11914_v51  ;;  %v653_v19 = vadd.s32 %v652_v31, %v642_v3  ;;  %v668_v35 = vmul.u32 14564, %v664_v23  ;;  %v4600_v52 = vmax.f32 %v12861_v60, 0.0 }
 0x30f   : > { %v669_v0 = vmul.u32 58254, %v664_v23  ;;  %v670_v22 = vshll.u32 %v667_v57, 16  ;;  %v4077_v25 = vrot.slane %v4075_v6, 3  ;;  %vm12878_vm7 = vcmp.lt.s32.totalorder %v1510_v45, 16 }
 0x310   : > { %v654_v62 = vadd.s32 %v653_v19, %v644_v55  ;;  %v672_v11 = vshll.u32 %v668_v35, 16  ;;  %v15315_v48 = vrot.slane %v12648_v13, 3  ;;  %v12884_v15 = vadd.f32 %v12367_v21, %v4525_v14 }
 0x311   : > { %vm674_vm8 = vc.u32 %v666_v18, %v670_v22  ;;  %v676_v51 = vadd.s32 %v670_v22, %v666_v18  ;;  %v12886_v34 = vor.u32 %v4077_v25, %v4074_v16  ;;  %v12888_v3 = vld [vmem:[#allocation2 + $0x2c] sm:$0xff]  ;;  %v12890_v23 = vpop.f32.mrf.mxu3  ;;  %v671_v45 = vshrl.u32 %v667_v57, 16 }
 0x312   : > { %v655_v60 = vshrl.u32 %v654_v62, 4  ;;  %v675_v31 = vsel %vm674_vm8, 1, %v15399_v54  ;;  %v5496_v49 = vshrl.u32 %v10181_v47, 16  ;;  %v4342_v14 = vsel %vm4311_vm5, %v4339_v28, %v15315_v48  ;;  %v10221_v18 = vld [vmem:[#allocation3 + $0x60] sm:$0xff] }
 0x313   : > { %v12893_v55 = vpop.f32.mrf.mxu2  ;;  %v677_v6 = vadd.s32 %v675_v31, %v669_v0  ;;  %vm678_vm9 = vc.u32 %v676_v51, %v672_v11  ;;  %v4079_v21 = vsel %vm3918_vm4, %v12807_v2, %v12886_v34  ;;  %v4454_v19 = vpop.f32.mrf.mxu0  ;;  %v15312_v22 = vshrl.u32 %v12888_v3, 16  ;;  %5823 = vmatpush.bf16.msrb.mxu3 %v10221_v18 }
 0x314   : > { %15455 = vst [vmem:[#allocation33_spill] sm:$0xff] %v12893_v55  ;;  %v656_v16 = vmul.u32 18, %v655_v60  ;;  %v679_v57 = vsel %vm678_vm9, 1, %v15399_v54  ;;  %v15311_v0 = vshll.u32 %v12888_v3, 16  ;;  %v673_v25 = vshrl.u32 %v668_v35, 16 }
 0x315   : > { %v681_v62 = vadd.s32 %v679_v57, %v677_v6  ;;  %v5498_v11 = vrot.slane %v5496_v49, 1  ;;  %v5499_v51 = vshll.u32 %v10181_v47, 16  ;;  %v4980_v33 = vrot.slane %v15312_v22, 2  ;;  %v10230_v49 = vld [vmem:[#allocation3 + $0xa8] sm:$0xff] }
 0x316   : > { %v657_v2 = vsub.s32 %v12802_v8, %v656_v16  ;;  %v4983_v28 = vrot.slane %v15311_v0, 3  ;;  %v12912_v60 = vadd.s32 104, %v12133_v5  ;;  %v4601_v31 = vmax.f32 %v12884_v15, 0.0  ;;  %4243 = vmatmul.bf16.gmra.mxu3 %v4079_v21  ;;  %4493 = vmatmul.bf16.gmra.mxu0 %v4342_v14  ;;  %v10238_v47 = vld [vmem:[#allocation3 + $0xe8] sm:$0xff]  ;;  %v10220_v8 = vld [vmem:[#allocation3 + $0x58] sm:$0xff] }
 0x317   : > { %v682_v24 = vadd.s32 %v681_v62, %v671_v45  ;;  %v5501_v35 = vrot.slane %v5499_v51, 2  ;;  %v12916_v6 = vadd.s32 112, %v12133_v5  ;;  %v4636_v57 = vsel %vm12878_vm7, %v4600_v52, 0.0  ;;  %6130 = vmatpush.bf16.msrb.mxu0 %v10230_v49  ;;  %6648 = vmatpush.bf16.msrb.mxu1 %v10238_v47 }
 0x318   : > { %vm1367_vm10 = vcmp.ne.s32.totalorder %v657_v2, 0  ;;  %vm1403_vm11 = vcmp.lt.s32.totalorder %v657_v2, 0  ;;  %v1475_v18 = vadd.s32 18, %v657_v2  ;;  %v12918_v16 = vor.u32 %v4983_v28, %v4980_v33  ;;  %5824 = vmatpush.bf16.msrb.mxu3 %v10220_v8 }
 0x319   : > { %vm1439_vm12 = vmand %vm1403_vm11, %vm1367_vm10  ;;  %v683_v15 = vadd.s32 %v682_v24, %v673_v25  ;;  %v12922_v45 = vor.u32 %v5501_v35, %v5498_v11  ;;  %v692_v21 = vand.u32 65535, %v12912_v60  ;;  %v4526_v62 = vadd.f32 %v4454_v19, %v12874_v12  ;;  %v12929_v33 = vpop.f32.mrf.mxu3 }
 0x31a   : > { %v1511_v14 = vsel %vm1439_vm12, %v1475_v18, %v657_v2  ;;  %v4985_v51 = vsel %vm3918_vm4, %v12832_v39, %v12918_v16  ;;  %v693_v38 = vshrl.u32 %v12912_v60, 16  ;;  %v721_v12 = vand.u32 65535, %v12916_v6 }
 0x31b   : > { %vm1547_vm13 = vcmp.lt.s32.totalorder %v1511_v14, 16  ;;  %v684_v24 = vshrl.u32 %v683_v15, 4  ;;  %5197 = vmatmul.bf16.gmra.mxu1 %v4985_v51  ;;  %v5503_v52 = vsel %vm2880_vm2, %v12816_v59, %v12922_v45  ;;  %v12935_v25 = vpop.f32.mrf.mxu2  ;;  %v695_v11 = vmul.u32 14564, %v692_v21  ;;  %v4456_v28 = vpop.f32.mrf.mxu0  ;;  %v12943_v59 = vld [vmem:[%s15292_s4] ss:$0 sm:$0xff] }
 0x31c   : > { %v4637_v19 = vsel %vm1547_vm13, %v4601_v31, 0.0  ;;  %5675 = vmatmul.bf16.gmra.mxu2 %v5503_v52  ;;  %v696_v39 = vmul.u32 58254, %v692_v21  ;;  %v697_v2 = vmul.u32 14564, %v693_v38  ;;  %v4267_v35 = vadd.f32 %v12818_v7, %v11930_v50  ;;  %v3897_v7 = vld [vmem:[%s11148_s14 + $0xa0] sm:$0x7] }
 0x31d   : > { %v10348_v49 = vpack.c.bf16 %v4637_v19, %v4636_v57  ;;  %v685_v47 = vmul.u32 18, %v684_v24  ;;  %v12946_v8 = vadd.f32 %v12943_v59, %v4526_v62  ;;  %v698_v31 = vmul.u32 58254, %v693_v38 }
 0x31e   : > { %v699_v18 = vshll.u32 %v696_v39, 16  ;;  %v701_v15 = vshll.u32 %v697_v2, 16  ;;  %v700_v14 = vshrl.u32 %v696_v39, 16  ;;  %v4527_v51 = vadd.f32 %v4456_v28, %v4267_v35 }
 0x31f   : > { %10584 = vst [vmem:[#allocation2 + $0x38] sm:$0xff] %v10348_v49   ;;  %v686_v21 = vsub.s32 %v12848_v40, %v685_v47  ;;  %v722_v50 = vshrl.u32 %v12916_v6, 16  ;;  %v724_v24 = vmul.u32 14564, %v721_v12  ;;  %v725_v52 = vmul.u32 58254, %v721_v12  ;;  %v10219_v49 = vld [vmem:[#allocation3 + $0x50] sm:$0xff]  ;;  %v15459_v47 = vld [vmem:[#allocation10_spill] sm:$0xff] }
 0x320   : > { %vm703_vm15 = vc.u32 %v695_v11, %v699_v18  ;;  %v705_v57 = vadd.s32 %v699_v18, %v695_v11  ;;  %v3916_v35 = vunpack.c.l.b16 %v3897_v7  ;;  %v15458_v11 = vld [vmem:[#allocation9_spill] sm:$0xff]  ;;  %v12962_v18 = vadd.f32 %v12890_v23, %v15459_v47  ;;  %5825 = vmatpush.bf16.msrb.mxu3 %v10219_v49 }
 0x321   : > { %vm1368_vm14 = vcmp.ne.s32.totalorder %v686_v21, 0  ;;  %vm1404_vm3 = vcmp.lt.s32.totalorder %v686_v21, 0  ;;  %v1476_v62 = vadd.s32 18, %v686_v21  ;;  %v704_v38 = vsel %vm703_vm15, 1, %v15399_v54  ;;  %v12956_v39 = vpop.f32.mrf.mxu3 }
 0x322   : > { %vm12952_vm6 = vmand %vm1404_vm3, %vm1368_vm14  ;;  %v706_v40 = vadd.s32 %v704_v38, %v698_v31  ;;  %vm707_vm7 = vc.u32 %v705_v57, %v701_v15  ;;  %v726_v28 = vmul.u32 14564, %v722_v50  ;;  %v4268_v12 = vadd.f32 %v12854_v1, %v15458_v11  ;;  %v10182_v31 = vld [vmem:[%s11148_s14 + $0x88] sm:$0xff] }
 0x323   : > { %v1512_v0 = vsel %vm12952_vm6, %v1476_v62, %v686_v21  ;;  %v708_v22 = vsel %vm707_vm7, 1, %v15399_v54  ;;  %v12967_v32 = vpop.f32.mrf.mxu2  ;;  %v702_v15 = vshrl.u32 %v697_v2, 16  ;;  %v727_v38 = vmul.u32 58254, %v722_v50  ;;  %v4459_v30 = vpop.f32.mrf.mxu0  ;;  %v10218_v2 = vld [vmem:[#allocation3 + $0x48] sm:$0xff] }
 0x324   : > { %15460 = vst [vmem:[#allocation9_spill] sm:$0xff] %v12967_v32  ;;  %v710_v57 = vadd.s32 %v708_v22, %v706_v40  ;;  %v728_v7 = vshll.u32 %v725_v52, 16  ;;  %vm12970_vm8 = vcmp.lt.s32.totalorder %v1512_v0, 16  ;;  %v4602_v23 = vmax.f32 %v12946_v8, 0.0  ;;  %5826 = vmatpush.bf16.msrb.mxu3 %v10218_v2 }
 0x325   : > { %v12976_v19 = vadd.f32 %v12943_v59, %v4527_v51  ;;  %v730_v21 = vshll.u32 %v726_v28, 16  ;;  %v12978_v47 = vpack.c.b16 %v3916_v35, %v3916_v35  ;;  %v729_v50 = vshrl.u32 %v725_v52, 16 }
 0x326   : > { %v711_v62 = vadd.s32 %v710_v57, %v700_v14  ;;  %vm732_vm9 = vc.u32 %v724_v24, %v728_v7  ;;  %v734_v11 = vadd.s32 %v728_v7, %v724_v24  ;;  %v12980_v22 = vld [vmem:[#allocation2 + $0x34] sm:$0xff]  ;;  %v15318_v40 = vrot.slane %v12759_v26, 3 }
 0x327   : > { %v733_v0 = vsel %vm732_vm9, 1, %v15399_v54  ;;  %v5505_v49 = vshrl.u32 %v10182_v31, 16  ;;  %v4081_v51 = vshrl.u32 %v12978_v47, 16  ;;  %v731_v14 = vshrl.u32 %v726_v28, 16 }
 0x328   : > { %v712_v48 = vadd.s32 %v711_v62, %v702_v15  ;;  %v735_v8 = vadd.s32 %v733_v0, %v727_v38  ;;  %vm736_vm10 = vc.u32 %v734_v11, %v730_v21  ;;  %v4084_v35 = vshll.u32 %v12978_v47, 16  ;;  %v10217_v21 = vld [vmem:[#allocation3 + $0x40] sm:$0xff] }
 0x329   : > { %v737_v24 = vsel %vm736_vm10, 1, %v15399_v54  ;;  %v15463_v52 = vrot.slane %v12648_v13, 3  ;;  %v4083_v53 = vrot.slane %v4081_v51, 2  ;;  %v15317_v15 = vshrl.u32 %v12980_v22, 16  ;;  %v12993_v38 = vpop.f32.mrf.mxu3  ;;  %5827 = vmatpush.bf16.msrb.mxu3 %v10217_v21 }
 0x32a   : > { %v713_v7 = vshrl.u32 %v712_v48, 4  ;;  %v739_v55 = vadd.s32 %v737_v24, %v735_v8  ;;  %v4086_v28 = vrot.slane %v4084_v35, 3  ;;  %v15316_v62 = vshll.u32 %v12980_v22, 16 }
 0x32b   : > { %v4344_v57 = vsel %vm4311_vm5, %v15463_v52, %v15318_v40  ;;  %v5507_v11 = vrot.slane %v5505_v49, 1  ;;  %v5508_v2 = vshll.u32 %v10182_v31, 16  ;;  %v12996_v0 = vpop.f32.mrf.mxu2  ;;  %v4603_v13 = vmax.f32 %v12976_v19, 0.0 }
 0x32c   : > { %4498 = vmatmul.bf16.gmra.mxu0 %v4344_v57  ;;  %15464 = vst [vmem:[#allocation10_spill] sm:$0xff] %v12996_v0  ;;  %v714_v42 = vmul.u32 18, %v713_v7  ;;  %v740_v52 = vadd.s32 %v739_v55, %v729_v50  ;;  %v4989_v48 = vrot.slane %v15317_v15, 2  ;;  %v4087_v8 = vor.u32 %v4086_v28, %v4083_v53  ;;  %v4461_v55 = vpop.f32.mrf.mxu0 }
 0x32d   : > { %v4992_v51 = vrot.slane %v15316_v62, 3  ;;  %v5510_v24 = vrot.slane %v5508_v2, 2  ;;  %v13004_v35 = vadd.s32 120, %v12133_v5  ;;  %v4638_v31 = vsel %vm12970_vm8, %v4602_v23, 0.0 }
 0x32e   : > { %v715_v49 = vsub.s32 %v12912_v60, %v714_v42  ;;  %v741_v57 = vadd.s32 %v740_v52, %v731_v14  ;;  %v4528_v19 = vadd.f32 %v4459_v30, %v4268_v12  ;;  %v4088_v50 = vsel %vm3918_vm4, %v12886_v34, %v4087_v8 }
 0x32f   : > { %v13011_v7 = vor.u32 %v4992_v51, %v4989_v48  ;;  %v13013_v53 = vor.u32 %v5510_v24, %v5507_v11  ;;  %v750_v21 = vand.u32 65535, %v13004_v35  ;;  %4248 = vmatmul.bf16.gmra.mxu3 %v4088_v50  ;;  %v751_v34 = vshrl.u32 %v13004_v35, 16 }
 0x330   : > { %vm1369_vm11 = vcmp.ne.s32.totalorder %v715_v49, 0  ;;  %vm1405_vm12 = vcmp.lt.s32.totalorder %v715_v49, 0  ;;  %v1477_v28 = vadd.s32 18, %v715_v49  ;;  %v742_v2 = vshrl.u32 %v741_v57, 4 }
 0x331   : > { %vm1441_vm13 = vmand %vm1405_vm12, %vm1369_vm11  ;;  %v4994_v30 = vsel %vm3918_vm4, %v12918_v16, %v13011_v7  ;;  %v5512_v42 = vsel %vm2880_vm2, %v12922_v45, %v13013_v53  ;;  %v4529_v60 = vadd.f32 %v4461_v55, %v12962_v18  ;;  %v753_v23 = vmul.u32 14564, %v750_v21  ;;  %v13027_v16 = vpop.f32.mrf.mxu3 }
 0x332   : > { %v1513_v12 = vsel %vm1441_vm13, %v1477_v28, %v715_v49  ;;  %v743_v1 = vmul.u32 18, %v742_v2  ;;  %5202 = vmatmul.bf16.gmra.mxu1 %v4994_v30  ;;  %5680 = vmatmul.bf16.gmra.mxu2 %v5512_v42  ;;  %v754_v14 = vmul.u32 58254, %v750_v21  ;;  %v13025_v11 = vadd.f32 %v12943_v59, %v4528_v19  ;;  %v15466_v49 = vld [vmem:[#allocation11_spill] sm:$0xff]  ;;  %v15467_v28 = vld [vmem:[#allocation12_spill] sm:$0xff] }
 0x333   : > { %vm1549_vm15 = vcmp.lt.s32.totalorder %v1513_v12, 16  ;;  %v755_v52 = vmul.u32 14564, %v751_v34  ;;  %v13029_v48 = vpop.f32.mrf.mxu2  ;;  %v13032_v45 = vadd.s32 128, %v12133_v5  ;;  %v756_v51 = vmul.u32 58254, %v751_v34  ;;  %v5696_v42 = vld [vmem:[#allocation2 + $0x4] sm:$0x8] }
 0x334   : > { %15465 = vst [vmem:[#allocation34_spill] sm:$0xff] %v13029_v48  ;;  %v4639_v8 = vsel %vm1549_vm15, %v4603_v13, 0.0  ;;  %v13035_v18 = vsub.s32 %v12916_v6, %v743_v1  ;;  %v757_v24 = vshll.u32 %v754_v14, 16  ;;  %v4270_v57 = vadd.f32 %v12929_v33, %v15466_v49  ;;  %v10183_v1 = vld [vmem:[%s11148_s14 + $0x90] sm:$0xff] }
 0x335   : > { %v10353_v55 = vpack.c.bf16 %v4639_v8, %v4638_v31  ;;  %v759_v19 = vshll.u32 %v755_v52, 16  ;;  %v13040_v50 = vadd.f32 %v12943_v59, %v4529_v60  ;;  %v779_v33 = vand.u32 65535, %v13032_v45  ;;  %v4464_v60 = vpop.f32.mrf.mxu0 }
 0x336   : > { %vm1370_vm14 = vcmp.ne.s32.totalorder %v13035_v18, 0  ;;  %vm1406_vm3 = vcmp.lt.s32.totalorder %v13035_v18, 0  ;;  %v13045_v13 = vadd.s32 18, %v13035_v18  ;;  %vm761_vm6 = vc.u32 %v753_v23, %v757_v24 }
 0x337   : > { %10585 = vst [vmem:[#allocation2 + $0x40] sm:$0xff] %v10353_v55   ;;  %v762_v6 = vsel %vm761_vm6, 1, %v15399_v54  ;;  %v763_v21 = vadd.s32 %v757_v24, %v753_v23  ;;  %v780_v31 = vshrl.u32 %v13032_v45, 16  ;;  %v13052_v2 = vadd.f32 %v12956_v39, %v15467_v28  ;;  %vm13054_vm7 = vmand %vm1406_vm3, %vm1370_vm14 }
 0x338   : > { %v764_v34 = vadd.s32 %v762_v6, %v756_v51  ;;  %v15319_v12 = vrot.slane %v12851_v58, 3  ;;  %v758_v23 = vshrl.u32 %v754_v14, 16  ;;  %v782_v8 = vmul.u32 14564, %v779_v33 }
 0x339   : > { %vm765_vm8 = vc.u32 %v763_v21, %v759_v19  ;;  %v783_v24 = vmul.u32 58254, %v779_v33  ;;  %v760_v49 = vshrl.u32 %v755_v52, 16  ;;  %v784_v28 = vmul.u32 14564, %v780_v31 }
 0x33a   : > { %v766_v55 = vsel %vm765_vm8, 1, %v15399_v54  ;;  %v1514_v62 = vsel %vm13054_vm7, %v13045_v13, %v13035_v18  ;;  %v785_v6 = vmul.u32 58254, %v780_v31  ;;  %v13067_v14 = vadd.f32 %v4464_v60, %v4270_v57  ;;  %v13074_v18 = vpop.f32.mrf.mxu3 }
 0x33b   : > { %v768_v51 = vadd.s32 %v766_v55, %v764_v34  ;;  %v786_v15 = vshll.u32 %v783_v24, 16  ;;  %v788_v40 = vshll.u32 %v784_v28, 16  ;;  %v15470_v52 = vrot.slane %v12759_v26, 3  ;;  %v13076_v13 = vpop.f32.mrf.mxu2 }
 0x33c   : > { %v5514_v21 = vshrl.u32 %v10183_v1, 16  ;;  %v787_v39 = vshrl.u32 %v783_v24, 16  ;;  %15471 = vst [vmem:[#allocation11_spill] sm:$0xff] %v13076_v13  ;;  %v5517_v34 = vshll.u32 %v10183_v1, 16  ;;  %v5715_v60 = vunpack.c.l.b16 %v5696_v42  ;;  %v10245_v1 = vld [vmem:[#allocation3 + $0x120] sm:$0xff] }
 0x33d   : > { %v4346_v19 = vsel %vm4311_vm5, %v15470_v52, %v15319_v12  ;;  %v769_v33 = vadd.s32 %v768_v51, %v758_v23  ;;  %vm790_vm9 = vc.u32 %v782_v8, %v786_v15  ;;  %v792_v9 = vadd.s32 %v786_v15, %v782_v8  ;;  %6885 = vmatpush.bf16.msrb.mxu2 %v10245_v1 }
 0x33e   : > { %4503 = vmatmul.bf16.gmra.mxu0 %v4346_v19  ;;  %v791_v31 = vsel %vm790_vm9, 1, %v15399_v54  ;;  %v13079_v57 = vld [vmem:[#allocation2 + $0x3c] sm:$0xff]  ;;  %v5516_v30 = vrot.slane %v5514_v21, 1  ;;  %v789_v55 = vshrl.u32 %v784_v28, 16  ;;  %v5519_v24 = vrot.slane %v5517_v34, 2  ;;  %v13088_v21 = vld [vmem:[#allocation2 + $0xc] sm:$0xff] }
 0x33f   : > { %v770_v26 = vadd.s32 %v769_v33, %v760_v49  ;;  %v793_v52 = vadd.s32 %v791_v31, %v785_v6  ;;  %vm794_vm10 = vc.u32 %v792_v9, %v788_v40  ;;  %v15321_v15 = vshrl.u32 %v13079_v57, 16  ;;  %v10229_v49 = vld [vmem:[#allocation3 + $0xa0] sm:$0xff] }
 0x340   : > { %v795_v23 = vsel %vm794_vm10, 1, %v15399_v54  ;;  %v15320_v8 = vshll.u32 %v13079_v57, 16  ;;  %v15472_v12 = vunpack.c.l.b16 %v12338_v46  ;;  %v5718_v42 = vrot.slane %v13088_v21, 3  ;;  %v10237_v9 = vld [vmem:[#allocation3 + $0xe0] sm:$0xff]  ;;  %v4466_v46 = vpop.f32.mrf.mxu0  ;;  %6131 = vmatpush.bf16.msrb.mxu0 %v10229_v49 }
 0x341   : > { %v771_v51 = vshrl.u32 %v770_v26, 4  ;;  %v797_v19 = vadd.s32 %v795_v23, %v793_v52  ;;  %v4998_v40 = vrot.slane %v15321_v15, 2  ;;  %v13095_v6 = vor.u32 %v5519_v24, %v5516_v30  ;;  %6649 = vmatpush.bf16.msrb.mxu1 %v10237_v9 }
 0x342   : > { %v13086_v36 = vpack.c.b16 %v15472_v12, %v5715_v60  ;;  %v5001_v28 = vrot.slane %v15320_v8, 3  ;;  %v13098_v33 = vadd.s32 136, %v12133_v5  ;;  %vm13100_vm11 = vcmp.lt.s32.totalorder %v1514_v62, 16 }
 0x343   : > { %v772_v31 = vmul.u32 18, %v771_v51  ;;  %v798_v34 = vadd.s32 %v797_v19, %v787_v39  ;;  %v5521_v30 = vsel %vm2880_vm2, %v13013_v53, %v13095_v6  ;;  %v4531_v51 = vadd.f32 %v4466_v46, %v13052_v2 }
 0x344   : > { %v5717_v60 = vrot.slane %v13086_v36, 3  ;;  %v13105_v26 = vor.u32 %v5001_v28, %v4998_v40  ;;  %v808_v52 = vand.u32 65535, %v13098_v33  ;;  %v809_v23 = vshrl.u32 %v13098_v33, 16  ;;  %5685 = vmatmul.bf16.gmra.mxu2 %v5521_v30  ;;  %v13122_v40 = vpop.f32.mrf.mxu2  ;;  %v15476_v28 = vld [vmem:[#allocation13_spill] sm:$0xff] }
 0x345   : > { %v773_v62 = vsub.s32 %v13004_v35, %v772_v31  ;;  %v799_v24 = vadd.s32 %v798_v34, %v789_v55  ;;  %v13120_v55 = vpop.f32.mrf.mxu3  ;;  %15475 = vst [vmem:[#allocation12_spill] sm:$0xff] %v13122_v40  ;;  %v4272_v2 = vadd.f32 %v12993_v38, %v15476_v28  ;;  %v15477_v34 = vmax.f32 %v13025_v11, 0.0 }
 0x346   : > { %v5719_v39 = vsel %vm4311_vm5, %v5717_v60, %v5718_v42  ;;  %v5003_v19 = vsel %vm3918_vm4, %v13011_v7, %v13105_v26  ;;  %v811_v53 = vmul.u32 14564, %v808_v52  ;;  %v812_v1 = vmul.u32 58254, %v808_v52 }
 0x347   : > { %5828 = vmatmul.bf16.vlgmr.msrb.gmra.mxu3 %v5719_v39  ;;  %v813_v49 = vmul.u32 14564, %v809_v23  ;;  %vm1371_vm12 = vcmp.ne.s32.totalorder %v773_v62, 0  ;;  %vm1407_vm13 = vcmp.lt.s32.totalorder %v773_v62, 0  ;;  %v1479_v9 = vadd.s32 18, %v773_v62  ;;  %5207 = vmatmul.bf16.gmra.mxu1 %v5003_v19  ;;  %v10228_v39 = vld [vmem:[#allocation3 + $0x98] sm:$0xff] }
 0x348   : > { %v800_v35 = vshrl.u32 %v799_v24, 4  ;;  %vm1443_vm15 = vmand %vm1407_vm13, %vm1371_vm12  ;;  %v814_v46 = vmul.u32 58254, %v809_v23  ;;  %v815_v31 = vshll.u32 %v812_v1, 16  ;;  %v4640_v60 = vsel %vm13100_vm11, %v15477_v34, 0.0  ;;  %v10244_v19 = vld [vmem:[#allocation3 + $0x118] sm:$0xff]  ;;  %6132 = vmatpush.bf16.msrb.mxu0 %v10228_v39 }
 0x349   : > { %v817_v7 = vshll.u32 %v813_v49, 16  ;;  %v1515_v30 = vsel %vm1443_vm15, %v1479_v9, %v773_v62  ;;  %v13132_v24 = vadd.f32 %v12943_v59, %v13067_v14  ;;  %v13135_v23 = vadd.f32 %v12943_v59, %v4531_v51  ;;  %6886 = vmatpush.bf16.msrb.mxu2 %v10244_v19 }
 0x34a   : > { %v801_v52 = vmul.u32 18, %v800_v35  ;;  %vm1551_vm14 = vcmp.lt.s32.totalorder %v1515_v30, 16  ;;  %vm819_vm3 = vc.u32 %v811_v53, %v815_v31  ;;  %v821_v38 = vadd.s32 %v815_v31, %v811_v53  ;;  %v4469_v53 = vpop.f32.mrf.mxu0  ;;  %v4770_v31 = vld [vmem:[%s11148_s14 + $0x98] sm:$0x3]  ;;  %s10926_s14 = sshra.s32 %s8739_s13, 4  ;;  %s10927_s14 = int_to_ptr.hbm [resolvable:$true] %s10926_s14 }
 0x34b   : > { %v15478_v11 = vmax.f32 %v13040_v50, 0.0  ;;  %v820_v62 = vsel %vm819_vm3, 1, %v15399_v54  ;;  %v13142_v9 = vadd.s32 144, %v12133_v5  ;;  %v816_v35 = vshrl.u32 %v812_v1, 16  ;;  %s10928_s15 = scalar_lea.hbm %s10927_s14, 144  ;;  %p10933_p3 = scmp.lt.s32.totalorder %s10927_s14, %s15294_s6 }
 0x34c   : > { %v802_v12 = vsub.s32 %v13032_v45, %v801_v52  ;;  %v822_v34 = vadd.s32 %v820_v62, %v814_v46  ;;  %vm823_vm6 = vc.u32 %v821_v38, %v817_v7  ;;  %v818_v30 = vshrl.u32 %v813_v49, 16  ;;  %v15481_v46 = vld [vmem:[#allocation14_spill] sm:$0xff]  ;;  %p10929_p0 = scmp.ne.s32.totalorder %s10927_s14, %s10928_s15  ;;  %p10934_p4 = scmp.lt.s32.totalorder %s10932_s18, %s10928_s15 }
 0x34d   : > { %v4641_v28 = vsel %vm1551_vm14, %v15478_v11, 0.0  ;;  %v824_v50 = vsel %vm823_vm6, 1, %v15399_v54  ;;  %v837_v39 = vand.u32 65535, %v13142_v9  ;;  %v838_v1 = vshrl.u32 %v13142_v9, 16 }
 0x34e   : > { %v10358_v14 = vpack.c.bf16 %v4641_v28, %v4640_v60  ;;  %vm1372_vm7 = vcmp.ne.s32.totalorder %v802_v12, 0  ;;  %vm1408_vm8 = vcmp.lt.s32.totalorder %v802_v12, 0  ;;  %v1480_v51 = vadd.s32 18, %v802_v12  ;;  %p10930_p1 = pnand %p10929_p0, %p11059_p5  ;;  %p10935_p7 = por %p10934_p4, %p10933_p3 }
 0x34f   : > { %vm13146_vm9 = vmand %vm1408_vm8, %vm1372_vm7  ;;  %v826_v52 = vadd.s32 %v824_v50, %v822_v34  ;;  %v13154_v7 = vadd.f32 %v13027_v16, %v15481_v46  ;;  %v4347_v19 = vrot.slane %v12978_v47, 3  ;;  %v5341_v38 = vunpack.c.l.b16 %v4770_v31  ;;  %v13166_v46 = vpop.f32.mrf.mxu3 }
 0x350   : > { %10586 = vst [vmem:[#allocation2 + $0x48] sm:$0xff] %v10358_v14   ;;  %v1516_v60 = vsel %vm13146_vm9, %v1480_v51, %v802_v12  ;;  %v840_v28 = vmul.u32 14564, %v837_v39  ;;  %v841_v62 = vmul.u32 58254, %v837_v39  ;;  %v13159_v14 = vld [vmem:[#allocation2 + $0x14] sm:$0xff]  ;;  %v4606_v34 = vmax.f32 %v13132_v24, 0.0  ;;  %v13168_v12 = vpop.f32.mrf.mxu2  ;;  %p10931_p2 = pneg %p10930_p1 }
 0x351   : > { %v827_v11 = vadd.s32 %v826_v52, %v816_v35  ;;  %v15322_v49 = vrot.slane %v13159_v14, 3  ;;  %v842_v8 = vmul.u32 14564, %v838_v1  ;;  %v13164_v16 = vadd.f32 %v4469_v53, %v4272_v2  ;;  %15482 = vst [vmem:[#allocation13_spill] sm:$0xff] %v13168_v12 }
 0x352   : > { %v843_v31 = vmul.u32 58254, %v838_v1  ;;  %v844_v35 = vshll.u32 %v841_v62, 16  ;;  %v15483_v51 = vrot.slane %v12851_v58, 3  ;;  %vm13173_vm10 = vcmp.lt.s32.totalorder %v1516_v60, 16  ;;  %p10936_p8 = pnand %p10935_p7, %p10931_p2 }
 0x353   : > { %v828_v47 = vadd.s32 %v827_v11, %v818_v30  ;;  %v845_v24 = vshrl.u32 %v841_v62, 16  ;;  %v846_v39 = vshll.u32 %v842_v8, 16  ;;  %v5360_v2 = vpack.c.b16 %v5341_v38, %v5341_v38 }
 0x354   : > { %v4348_v45 = vsel %vm4311_vm5, %v15483_v51, %v4347_v19  ;;  %vm848_vm11 = vc.u32 %v840_v28, %v844_v35  ;;  %v850_v15 = vadd.s32 %v844_v35, %v840_v28  ;;  %v5721_v30 = vsel %vm4311_vm5, %v5718_v42, %v15322_v49  ;;  %v4471_v28 = vpop.f32.mrf.mxu0  ;;  %v10227_v35 = vld [vmem:[#allocation3 + $0x90] sm:$0xff] }
 0x355   : > { %4508 = vmatmul.bf16.gmra.mxu0 %v4348_v45  ;;  %v829_v53 = vshrl.u32 %v828_v47, 4  ;;  %v849_v58 = vsel %vm848_vm11, 1, %v15399_v54  ;;  %v5523_v60 = vshrl.u32 %v5360_v2, 16  ;;  %v5526_v19 = vshll.u32 %v5360_v2, 16  ;;  %v10243_v51 = vld [vmem:[#allocation3 + $0x110] sm:$0xff] }
 0x356   : > { %v13186_v11 = vadd.s32 152, %v12133_v5  ;;  %v847_v38 = vshrl.u32 %v842_v8, 16  ;;  %v851_v47 = vadd.s32 %v849_v58, %v843_v31  ;;  %vm852_vm12 = vc.u32 %v850_v15, %v846_v39  ;;  %6133 = vmatpush.bf16.msrb.mxu0 %v10227_v35  ;;  %6887 = vmatpush.bf16.msrb.mxu2 %v10243_v51  ;;  %v10226_v15 = vld [vmem:[#allocation3 + $0x88] sm:$0xff] }
 0x357   : > { %v13183_v1 = vld [vmem:[#allocation2 + $0x44] sm:$0xff]  ;;  %v830_v62 = vmul.u32 18, %v829_v53  ;;  %5833 = vmatmul.bf16.gmra.mxu3 %v5721_v30  ;;  %v853_v21 = vsel %vm852_vm12, 1, %v15399_v54  ;;  %v5525_v49 = vrot.slane %v5523_v60, 1  ;;  %v5528_v40 = vrot.slane %v5526_v19, 2  ;;  %v10242_v8 = vld [vmem:[#allocation3 + $0x108] sm:$0xff]  ;;  %v13202_v52 = vpop.f32.mrf.mxu3 }
 0x358   : > { %v15323_v42 = vshrl.u32 %v13183_v1, 16  ;;  %v15324_v45 = vshll.u32 %v13183_v1, 16  ;;  %v855_v50 = vadd.s32 %v853_v21, %v851_v47  ;;  %v866_v53 = vand.u32 65535, %v13186_v11 }
 0x359   : > { %v831_v2 = vsub.s32 %v13098_v33, %v830_v62  ;;  %v4642_v31 = vsel %vm13173_vm10, %v4606_v34, 0.0  ;;  %v867_v58 = vshrl.u32 %v13186_v11, 16  ;;  %v5529_v62 = vor.u32 %v5528_v40, %v5525_v49  ;;  %v13204_v34 = vpop.f32.mrf.mxu2 }
 0x35a   : > { %v5007_v39 = vrot.slane %v15323_v42, 2  ;;  %v5010_v30 = vrot.slane %v15324_v45, 3  ;;  %v856_v60 = vadd.s32 %v855_v50, %v845_v24  ;;  %v869_v47 = vmul.u32 14564, %v866_v53  ;;  %15486 = vst [vmem:[#allocation14_spill] sm:$0xff] %v13204_v34  ;;  %6134 = vmatpush.bf16.msrb.mxu0 %v10226_v15  ;;  %6888 = vmatpush.bf16.msrb.mxu2 %v10242_v8  ;;  %v10225_v24 = vld [vmem:[#allocation3 + $0x80] sm:$0xff] }
 0x35b   : > { %vm1373_vm13 = vcmp.ne.s32.totalorder %v831_v2, 0  ;;  %vm1409_vm15 = vcmp.lt.s32.totalorder %v831_v2, 0  ;;  %v1481_v33 = vadd.s32 18, %v831_v2  ;;  %v870_v35 = vmul.u32 58254, %v866_v53  ;;  %v10241_v53 = vld [vmem:[#allocation3 + $0x100] sm:$0xff] }
 0x35c   : > { %vm1445_vm14 = vmand %vm1409_vm15, %vm1373_vm13  ;;  %v13200_v19 = vor.u32 %v5010_v30, %v5007_v39  ;;  %v857_v21 = vadd.s32 %v856_v60, %v847_v38  ;;  %v871_v42 = vmul.u32 14564, %v867_v58  ;;  %v872_v45 = vmul.u32 58254, %v867_v58  ;;  %v13219_v60 = vpop.f32.mrf.mxu0 }
 0x35d   : > { %v1517_v51 = vsel %vm1445_vm14, %v1481_v33, %v831_v2  ;;  %v5530_v40 = vsel %vm2880_vm2, %v13095_v6, %v5529_v62  ;;  %v873_v49 = vshll.u32 %v870_v35, 16  ;;  %v15487_v39 = vmax.f32 %v13135_v23, 0.0 }
 0x35e   : > { %vm1553_vm3 = vcmp.lt.s32.totalorder %v1517_v51, 16  ;;  %v5012_v50 = vsel %vm3918_vm4, %v13105_v26, %v13200_v19  ;;  %v858_v2 = vshrl.u32 %v857_v21, 4  ;;  %5690 = vmatmul.bf16.gmra.mxu2 %v5530_v40  ;;  %v875_v38 = vshll.u32 %v871_v42, 16  ;;  %6135 = vmatpush.bf16.msrb.mxu0 %v10225_v24 }
 0x35f   : > { %v4643_v30 = vsel %vm1553_vm3, %v15487_v39, 0.0  ;;  %5212 = vmatmul.bf16.gmra.mxu1 %v5012_v50  ;;  %v4533_v15 = vadd.f32 %v4471_v28, %v13154_v7  ;;  %vm877_vm6 = vc.u32 %v869_v47, %v873_v49  ;;  %v879_v58 = vadd.s32 %v873_v49, %v869_v47  ;;  %6889 = vmatpush.bf16.msrb.mxu2 %v10241_v53  ;;  %v13229_v47 = vld [vmem:[#allocation2 + $0x1c] sm:$0xff]  ;;  %v13234_v49 = vpop.f32.mrf.mxu1 }
 0x360   : > { %v10363_v8 = vpack.c.bf16 %v4643_v30, %v4642_v31  ;;  %v859_v33 = vmul.u32 18, %v858_v2  ;;  %v13216_v26 = vadd.f32 %v12943_v59, %v13164_v16  ;;  %v878_v6 = vsel %vm877_vm6, 1, %v15399_v54 }
 0x361   : > { %v874_v23 = vshrl.u32 %v870_v35, 16  ;;  %v880_v62 = vadd.s32 %v878_v6, %v872_v45  ;;  %vm881_vm7 = vc.u32 %v879_v58, %v875_v38  ;;  %v13222_v7 = vadd.s32 160, %v12133_v5  ;;  %v13245_v38 = vpop.f32.mrf.mxu3 }
 0x362   : > { %10587 = vst [vmem:[#allocation2 + $0x50] sm:$0xff] %v10363_v8   ;;  %v860_v28 = vsub.s32 %v13142_v9, %v859_v33  ;;  %v882_v31 = vsel %vm881_vm7, 1, %v15399_v54  ;;  %v13227_v16 = vadd.f32 %v12943_v59, %v4533_v15  ;;  %v15325_v51 = vrot.slane %v13229_v47, 3  ;;  %v13247_v15 = vpop.f32.mrf.mxu2 }
 0x363   : > { %v876_v21 = vshrl.u32 %v871_v42, 16  ;;  %v884_v50 = vadd.s32 %v882_v31, %v880_v62  ;;  %v895_v35 = vand.u32 65535, %v13222_v7  ;;  %v896_v45 = vshrl.u32 %v13222_v7, 16  ;;  %15491 = vst [vmem:[#allocation35_spill] sm:$0xff] %v13247_v15 }
 0x364   : > { %vm1374_vm8 = vcmp.ne.s32.totalorder %v860_v28, 0  ;;  %vm1410_vm9 = vcmp.lt.s32.totalorder %v860_v28, 0  ;;  %v1482_v40 = vadd.s32 18, %v860_v28  ;;  %v15488_v9 = vrot.slane %v13159_v14, 3 }
 0x365   : > { %vm13241_vm10 = vmand %vm1410_vm9, %vm1374_vm8  ;;  %v885_v42 = vadd.s32 %v884_v50, %v874_v23  ;;  %v898_v39 = vmul.u32 14564, %v895_v35  ;;  %v899_v30 = vmul.u32 58254, %v895_v35  ;;  %v900_v2 = vmul.u32 14564, %v896_v45 }
 0x366   : > { %v5723_v24 = vsel %vm4311_vm5, %v15488_v9, %v15325_v51  ;;  %v4608_v8 = vmax.f32 %v13216_v26, 0.0  ;;  %v4609_v58 = vmax.f32 %v13227_v16, 0.0  ;;  %v1518_v14 = vsel %vm13241_vm10, %v1482_v40, %v860_v28 }
 0x367   : > { %5838 = vmatmul.bf16.gmra.mxu3 %v5723_v24  ;;  %v886_v33 = vadd.s32 %v885_v42, %v876_v21  ;;  %v901_v6 = vmul.u32 58254, %v896_v45  ;;  %v902_v62 = vshll.u32 %v899_v30, 16  ;;  %v903_v31 = vshrl.u32 %v899_v30, 16  ;;  %v4476_v45 = vpop.f32.mrf.mxu0 }
 0x368   : > { %v904_v23 = vshll.u32 %v900_v2, 16  ;;  %vm5976_vm11 = vsmask.f32 4352  ;;  %v5978_v35 = vshrl.u32 %v13086_v36, 16  ;;  %v5981_v26 = vshll.u32 %v13086_v36, 16 }
 0x369   : > { %v13253_v50 = vld [vmem:[#allocation2 + $0x4c] sm:$0xff]  ;;  %v887_v9 = vshrl.u32 %v886_v33, 4  ;;  %vm906_vm12 = vc.u32 %v898_v39, %v902_v62  ;;  %v908_v51 = vadd.s32 %v902_v62, %v898_v39  ;;  %v15492_v39 = vshrl.u32 %v12546_v27, 16 }
 0x36a   : > { %v907_v16 = vsel %vm906_vm12, 1, %v15399_v54  ;;  %v15327_v24 = vshrl.u32 %v13253_v50, 16  ;;  %v15326_v28 = vshll.u32 %v13253_v50, 16  ;;  %v5980_v21 = vrot.slane %v5978_v35, 3 }
 0x36b   : > { %v888_v40 = vmul.u32 18, %v887_v9  ;;  %v909_v53 = vadd.s32 %v907_v16, %v901_v6  ;;  %vm910_vm13 = vc.u32 %v908_v51, %v904_v23  ;;  %v5983_v42 = vrot.slane %v5981_v26, 4  ;;  %v10597_v51 = vld [vmem:[#allocation2 + $0x10] sm:$0xff]  }
 0x36c   : > { %v911_v30 = vsel %vm910_vm13, 1, %v15399_v54  ;;  %v5016_v33 = vrot.slane %v15327_v24, 2  ;;  %v5019_v36 = vrot.slane %v15326_v28, 3  ;;  %v5985_v62 = vrot.slane %v15492_v39, 3  ;;  %v13279_v39 = vpop.f32.mrf.mxu1  ;;  %v15498_v24 = vld [vmem:[#allocation15_spill] sm:$0xff] }
 0x36d   : > { %v889_v34 = vsub.s32 %v13186_v11, %v888_v40  ;;  %v905_v15 = vshrl.u32 %v900_v2, 16  ;;  %v913_v35 = vadd.s32 %v911_v30, %v909_v53  ;;  %v15493_v9 = vshll.u32 %v12546_v27, 16  ;;  %15496 = vst [vmem:[#allocation36_spill] sm:$0xff] %v13279_v39  ;;  %v13281_v27 = vpop.f32.mrf.mxu3  ;;  %v13283_v40 = vpop.f32.mrf.mxu2 }
 0x36e   : > { %vm13270_vm15 = vcmp.lt.s32.totalorder %v1518_v14, 16  ;;  %v13274_v26 = vor.u32 %v5019_v36, %v5016_v33  ;;  %v5984_v16 = vor.u32 %v5983_v42, %v5980_v21  ;;  %6890 = vmatmul.bf16.vlgmr.msrb.gmra.mxu2 %v10597_v51  ;;  %v13277_v28 = vadd.s32 168, %v12133_v5  ;;  %15497 = vst [vmem:[#allocation37_spill] sm:$0xff] %v13283_v40 }
 0x36f   : > { %v5986_v6 = vrot.slane %v15493_v9, 4  ;;  %vm1375_vm14 = vcmp.ne.s32.totalorder %v889_v34, 0  ;;  %vm1411_vm3 = vcmp.lt.s32.totalorder %v889_v34, 0  ;;  %v1483_v11 = vadd.s32 18, %v889_v34  ;;  %v10236_v9 = vld [vmem:[#allocation3 + $0xd8] sm:$0xff] }
 0x370   : > { %v914_v2 = vadd.s32 %v913_v35, %v903_v31  ;;  %vm1447_vm6 = vmand %vm1411_vm3, %vm1375_vm14  ;;  %v5021_v14 = vsel %vm3918_vm4, %v13200_v19, %v13274_v26  ;;  %v924_v53 = vand.u32 65535, %v13277_v28  ;;  %v925_v42 = vshrl.u32 %v13277_v28, 16  ;;  %6650 = vmatpush.bf16.msrb.mxu1 %v10236_v9 }
 0x371   : > { %v13288_v21 = vor.u32 %v5986_v6, %v5985_v62  ;;  %v1519_v30 = vsel %vm1447_vm6, %v1483_v11, %v889_v34  ;;  %5217 = vmatmul.bf16.gmra.mxu1 %v5021_v14  ;;  %v4644_v51 = vsel %vm13270_vm15, %v4608_v8, 0.0  ;;  %v4274_v39 = vadd.f32 %v13074_v18, %v15498_v24 }
 0x372   : > { %v915_v33 = vadd.s32 %v914_v2, %v905_v15  ;;  %vm1555_vm7 = vcmp.lt.s32.totalorder %v1519_v30, 16  ;;  %v927_v36 = vmul.u32 14564, %v924_v53  ;;  %v928_v35 = vmul.u32 58254, %v924_v53  ;;  %v13298_v2 = vpop.f32.mrf.mxu0 }
 0x373   : > { %v5988_v31 = vsel %vm5976_vm11, %v5984_v16, %v13288_v21  ;;  %v4645_v19 = vsel %vm1555_vm7, %v4609_v58, 0.0  ;;  %v929_v6 = vmul.u32 14564, %v925_v42  ;;  %v930_v15 = vmul.u32 58254, %v925_v42  ;;  %v15499_v16 = vld [vmem:[#allocation16_spill] sm:$0xff] }
 0x374   : > { %v916_v62 = vshrl.u32 %v915_v33, 4  ;;  %6136 = vmatmul.bf16.vlgmr.msrb.gmra.mxu0 %v5988_v31  ;;  %v10368_v34 = vpack.c.bf16 %v4645_v19, %v4644_v51  ;;  %v931_v11 = vshll.u32 %v928_v35, 16  ;;  %v4275_v14 = vadd.f32 %v13120_v55, %v15499_v16  ;;  %v13307_v33 = vld [vmem:[#allocation2 + $0x24] sm:$0xff]  ;;  %v15501_v16 = vld [vmem:[#allocation17_spill] sm:$0xff] }
 0x375   : > { %v933_v30 = vshll.u32 %v929_v6, 16  ;;  %v4534_v8 = vadd.f32 %v13219_v60, %v4274_v39  ;;  %v13304_v23 = vadd.s32 176, %v12133_v5  ;;  %v932_v18 = vshrl.u32 %v928_v35, 16  ;;  %v13312_v60 = vpop.f32.mrf.mxu1  ;;  %v13318_v19 = vpop.f32.mrf.mxu3 }
 0x376   : > { %v917_v53 = vmul.u32 18, %v916_v62  ;;  %10588 = vst [vmem:[#allocation2 + $0x58] sm:$0xff] %v10368_v34   ;;  %vm935_vm8 = vc.u32 %v927_v36, %v931_v11  ;;  %v937_v58 = vadd.s32 %v931_v11, %v927_v36  ;;  %v4535_v42 = vadd.f32 %v4476_v45, %v4275_v14  ;;  %v13320_v45 = vpop.f32.mrf.mxu2 }
 0x377   : > { %v936_v24 = vsel %vm935_vm8, 1, %v15399_v54  ;;  %v15328_v31 = vrot.slane %v13307_v33, 3  ;;  %v953_v55 = vand.u32 65535, %v13304_v23  ;;  %v954_v51 = vshrl.u32 %v13304_v23, 16  ;;  %15500 = vst [vmem:[#allocation15_spill] sm:$0xff] %v13320_v45 }
 0x378   : > { %v938_v9 = vadd.s32 %v936_v24, %v930_v15  ;;  %vm939_vm9 = vc.u32 %v937_v58, %v933_v30  ;;  %v13315_v39 = vsub.s32 %v13222_v7, %v917_v53  ;;  %v934_v36 = vshrl.u32 %v929_v6, 16 }
 0x379   : > { %v940_v35 = vsel %vm939_vm9, 1, %v15399_v54  ;;  %v956_v34 = vmul.u32 14564, %v953_v55  ;;  %v957_v15 = vmul.u32 58254, %v953_v55  ;;  %v958_v11 = vmul.u32 14564, %v954_v51 }
 0x37a   : > { %v942_v62 = vadd.s32 %v940_v35, %v938_v9  ;;  %v13324_v14 = vadd.f32 %v13166_v46, %v15501_v16  ;;  %v13327_v30 = vadd.f32 %v12943_v59, %v4534_v8  ;;  %v15502_v7 = vrot.slane %v13229_v47, 3  ;;  %v10598_v35 = vld [vmem:[#allocation2 + $0x18] sm:$0xff]  }
 0x37b   : > { %v13335_v58 = vadd.f32 %v12943_v59, %v4535_v42  ;;  %v959_v24 = vmul.u32 58254, %v954_v51  ;;  %v960_v9 = vshll.u32 %v957_v15, 16  ;;  %vm1376_vm10 = vcmp.ne.s32.totalorder %v13315_v39, 0  ;;  %v4481_v42 = vpop.f32.mrf.mxu0 }
 0x37c   : > { %v5725_v6 = vsel %vm4311_vm5, %v15502_v7, %v15328_v31  ;;  %v943_v53 = vadd.s32 %v942_v62, %v932_v18  ;;  %vm1412_vm12 = vcmp.lt.s32.totalorder %v13315_v39, 0  ;;  %v1484_v46 = vadd.s32 18, %v13315_v39 }
 0x37d   : > { %5843 = vmatmul.bf16.gmra.mxu3 %v5725_v6  ;;  %v962_v8 = vshll.u32 %v958_v11, 16  ;;  %v13340_v55 = vld [vmem:[#allocation2 + $0x54] sm:$0xff]  ;;  %vm964_vm13 = vc.u32 %v956_v34, %v960_v9  ;;  %v966_v16 = vadd.s32 %v960_v9, %v956_v34  ;;  %v15503_v18 = vshrl.u32 %v12638_v37, 16  ;;  %vm13353_vm15 = vmand %vm1412_vm12, %vm1376_vm10 }
 0x37e   : > { %v944_v47 = vadd.s32 %v943_v53, %v934_v36  ;;  %6895 = vmatmul.bf16.gmra.mxu2 %v10598_v35  ;;  %v965_v51 = vsel %vm964_vm13, 1, %v15399_v54  ;;  %v15330_v62 = vshrl.u32 %v13340_v55, 16  ;;  %v15329_v7 = vshll.u32 %v13340_v55, 16 }
 0x37f   : > { %v5989_v59 = vrot.slane %v15503_v18, 3  ;;  %v15504_v6 = vshll.u32 %v12638_v37, 16  ;;  %v961_v53 = vshrl.u32 %v957_v15, 16  ;;  %v967_v9 = vadd.s32 %v965_v51, %v959_v24  ;;  %v15508_v15 = vld [vmem:[#allocation18_spill] sm:$0xff] }
 0x380   : > { %v945_v34 = vshrl.u32 %v944_v47, 4  ;;  %vm968_vm14 = vc.u32 %v966_v16, %v962_v8  ;;  %v5025_v18 = vrot.slane %v15330_v62, 2  ;;  %v5028_v37 = vrot.slane %v15329_v7, 3  ;;  %v13367_v47 = vpop.f32.mrf.mxu1 }
 0x381   : > { %v5990_v31 = vrot.slane %v15504_v6, 4  ;;  %v969_v35 = vsel %vm968_vm14, 1, %v15399_v54  ;;  %v963_v45 = vshrl.u32 %v958_v11, 16  ;;  %v13365_v12 = vadd.s32 184, %v12133_v5  ;;  %15507 = vst [vmem:[#allocation16_spill] sm:$0xff] %v13367_v47  ;;  %v13379_v11 = vpop.f32.mrf.mxu3 }
 0x382   : > { %v946_v40 = vmul.u32 18, %v945_v34  ;;  %v971_v48 = vadd.s32 %v969_v35, %v967_v9  ;;  %v4277_v24 = vadd.f32 %v13202_v52, %v15508_v15  ;;  %v1520_v8 = vsel %vm13353_vm15, %v1484_v46, %v13315_v39 }
 0x383   : > { %v13362_v6 = vor.u32 %v5990_v31, %v5989_v59  ;;  %v13374_v16 = vor.u32 %v5028_v37, %v5025_v18  ;;  %v13381_v59 = vpop.f32.mrf.mxu2  ;;  %v982_v52 = vand.u32 65535, %v13365_v12  ;;  %v983_v9 = vshrl.u32 %v13365_v12, 16  ;;  %v13397_v37 = vpop.f32.mrf.mxu0 }
 0x384   : > { %15509 = vst [vmem:[#allocation17_spill] sm:$0xff] %v13381_v59  ;;  %v947_v51 = vsub.s32 %v13277_v28, %v946_v40  ;;  %v972_v34 = vadd.s32 %v971_v48, %v961_v53  ;;  %v4610_v39 = vmax.f32 %v13327_v30, 0.0  ;;  %v4611_v46 = vmax.f32 %v13335_v58, 0.0 }
 0x385   : > { %v5992_v31 = vsel %vm5976_vm11, %v13288_v21, %v13362_v6  ;;  %v5030_v21 = vsel %vm3918_vm4, %v13274_v26, %v13374_v16  ;;  %v13392_v36 = vadd.s32 192, %v12133_v5  ;;  %vm1556_vm7 = vcmp.lt.s32.totalorder %v1520_v8, 16 }
 0x386   : > { %6141 = vmatmul.bf16.gmra.mxu0 %v5992_v31  ;;  %vm1377_vm3 = vcmp.ne.s32.totalorder %v947_v51, 0  ;;  %vm1413_vm6 = vcmp.lt.s32.totalorder %v947_v51, 0  ;;  %v1485_v28 = vadd.s32 18, %v947_v51  ;;  %v973_v48 = vadd.s32 %v972_v34, %v963_v45  ;;  %5222 = vmatmul.bf16.gmra.mxu1 %v5030_v21 }
 0x387   : > { %vm1449_vm8 = vmand %vm1413_vm6, %vm1377_vm3  ;;  %v985_v40 = vmul.u32 14564, %v982_v52  ;;  %v986_v53 = vmul.u32 58254, %v982_v52  ;;  %v987_v35 = vmul.u32 14564, %v983_v9  ;;  %v4536_v58 = vadd.f32 %v13298_v2, %v13324_v14 }
 0x388   : > { %v1521_v30 = vsel %vm1449_vm8, %v1485_v28, %v947_v51  ;;  %v974_v18 = vshrl.u32 %v973_v48, 4  ;;  %v1011_v26 = vand.u32 65535, %v13392_v36  ;;  %v988_v15 = vmul.u32 58254, %v983_v9  ;;  %v13406_v9 = vpop.f32.mrf.mxu1 }
 0x389   : > { %vm1557_vm9 = vcmp.lt.s32.totalorder %v1521_v30, 16  ;;  %v989_v31 = vshll.u32 %v986_v53, 16  ;;  %v991_v7 = vshll.u32 %v987_v35, 16  ;;  %v4646_v45 = vsel %vm1556_vm7, %v4610_v39, 0.0 }
 0x38a   : > { %v4647_v34 = vsel %vm1557_vm9, %v4611_v46, 0.0  ;;  %v975_v8 = vmul.u32 18, %v974_v18  ;;  %v1012_v21 = vshrl.u32 %v13392_v36, 16  ;;  %v4537_v28 = vadd.f32 %v4481_v42, %v4277_v24  ;;  %v15511_v42 = vld [vmem:[#allocation19_spill] sm:$0xff] }
 0x38b   : > { %v10373_v52 = vpack.c.bf16 %v4647_v34, %v4646_v45  ;;  %vm993_vm10 = vc.u32 %v985_v40, %v989_v31  ;;  %v995_v51 = vadd.s32 %v989_v31, %v985_v40  ;;  %v1015_v14 = vmul.u32 58254, %v1011_v26  ;;  %v13408_v30 = vpop.f32.mrf.mxu2  ;;  %v10599_v45 = vld [vmem:[#allocation2 + $0x20] sm:$0xff]   ;;  %v13410_v40 = vpop.f32.mrf.mxu3  ;;  %v13415_v34 = vld [vmem:[#allocation2 + $0x2c] sm:$0xff] }
 0x38c   : > { %v13401_v48 = vsub.s32 %v13304_v23, %v975_v8  ;;  %v994_v2 = vsel %vm993_vm10, 1, %v15399_v54  ;;  %v13404_v62 = vmul.u32 14564, %v1012_v21  ;;  %15510 = vst [vmem:[#allocation18_spill] sm:$0xff] %v13408_v30  ;;  %v990_v39 = vshrl.u32 %v986_v53, 16 }
 0x38d   : > { %10589 = vst [vmem:[#allocation2 + $0x60] sm:$0xff] %v10373_v52   ;;  %v996_v46 = vadd.s32 %v994_v2, %v988_v15  ;;  %vm997_vm12 = vc.u32 %v995_v51, %v991_v7  ;;  %v1014_v18 = vmul.u32 14564, %v1011_v26  ;;  %v4278_v23 = vadd.f32 %v13245_v38, %v15511_v42  ;;  %v15512_v26 = vld [vmem:[#allocation20_spill] sm:$0xff]  ;;  %v13427_v38 = vld [vmem:[%s15292_s4] ss:$0 sm:$0xff] }
 0x38e   : > { %v992_v24 = vshrl.u32 %v987_v35, 16  ;;  %v998_v31 = vsel %vm997_vm12, 1, %v15399_v54  ;;  %v15331_v8 = vrot.slane %v13415_v34, 3  ;;  %6900 = vmatmul.bf16.gmra.mxu2 %v10599_v45  ;;  %v1017_v52 = vmul.u32 58254, %v1012_v21 }
 0x38f   : > { %v1000_v47 = vadd.s32 %v998_v31, %v996_v46  ;;  %v1018_v53 = vshll.u32 %v1015_v14, 16  ;;  %v1020_v7 = vshll.u32 %v13404_v62, 16  ;;  %v13421_v15 = vadd.f32 %v13281_v27, %v15512_v26  ;;  %v4486_v31 = vpop.f32.mrf.mxu0 }
 0x390   : > { %vm1378_vm13 = vcmp.ne.s32.totalorder %v13401_v48, 0  ;;  %v13430_v35 = vadd.f32 %v13427_v38, %v4536_v58  ;;  %v13433_v51 = vadd.f32 %v13427_v38, %v4537_v28  ;;  %vm1414_vm15 = vcmp.lt.s32.totalorder %v13401_v48, 0  ;;  %v13467_v59 = vpop.f32.mrf.mxu1 }
 0x391   : > { %v1001_v21 = vadd.s32 %v1000_v47, %v990_v39  ;;  %vm1022_vm14 = vc.u32 %v1014_v18, %v1018_v53  ;;  %v1024_v2 = vadd.s32 %v1018_v53, %v1014_v18  ;;  %v1486_v27 = vadd.s32 18, %v13401_v48  ;;  %vm13447_vm6 = vmand %vm1414_vm15, %vm1378_vm13  ;;  %15518 = vst [vmem:[#allocation19_spill] sm:$0xff] %v13467_v59 }
 0x392   : > { %v1019_v46 = vshrl.u32 %v1015_v14, 16  ;;  %v1023_v45 = vsel %vm1022_vm14, 1, %v15399_v54  ;;  %v15513_v42 = vrot.slane %v13307_v33, 3  ;;  %v15514_v47 = vshrl.u32 %v12726_v20, 16 }
 0x393   : > { %v1002_v26 = vadd.s32 %v1001_v21, %v992_v24  ;;  %v1025_v28 = vadd.s32 %v1023_v45, %v1017_v52  ;;  %vm1026_vm3 = vc.u32 %v1024_v2, %v1020_v7  ;;  %v4612_v18 = vmax.f32 %v13430_v35, 0.0 }
 0x394   : > { %v5727_v58 = vsel %vm4311_vm5, %v15513_v42, %v15331_v8  ;;  %v5993_v39 = vrot.slane %v15514_v47, 3  ;;  %v1027_v33 = vsel %vm1026_vm3, 1, %v15399_v54  ;;  %v13453_v53 = vld [vmem:[#allocation2 + $0x5c] sm:$0xff]  ;;  %v15517_v24 = vshll.u32 %v12726_v20, 16  ;;  %v13469_v20 = vpop.f32.mrf.mxu2 }
 0x395   : > { %5848 = vmatmul.bf16.gmra.mxu3 %v5727_v58  ;;  %v13458_v7 = vadd.s32 200, %v12133_v5  ;;  %v1003_v21 = vshrl.u32 %v1002_v26, 4  ;;  %v4613_v2 = vmax.f32 %v13433_v51, 0.0  ;;  %v1021_v45 = vshrl.u32 %v13404_v62, 16  ;;  %15519 = vst [vmem:[#allocation20_spill] sm:$0xff] %v13469_v20 }
 0x396   : > { %v5994_v52 = vrot.slane %v15517_v24, 4  ;;  %v1029_v42 = vadd.s32 %v1027_v33, %v1025_v28  ;;  %v15333_v58 = vshrl.u32 %v13453_v53, 16  ;;  %v15332_v35 = vshll.u32 %v13453_v53, 16  ;;  %v13475_v28 = vpop.f32.mrf.mxu3 }
 0x397   : > { %v1040_v8 = vand.u32 65535, %v13458_v7  ;;  %v1522_v26 = vsel %vm13447_vm6, %v1486_v27, %v13401_v48  ;;  %v1004_v51 = vmul.u32 18, %v1003_v21  ;;  %v1041_v62 = vshrl.u32 %v13458_v7, 16 }
 0x398   : > { %v13464_v47 = vor.u32 %v5994_v52, %v5993_v39  ;;  %v1030_v24 = vadd.s32 %v1029_v42, %v1019_v46  ;;  %v4538_v33 = vadd.f32 %v13397_v37, %v4278_v23  ;;  %v5034_v39 = vrot.slane %v15333_v58, 2 }
 0x399   : > { %v5037_v52 = vrot.slane %v15332_v35, 3  ;;  %v1005_v48 = vsub.s32 %v13365_v12, %v1004_v51  ;;  %v1044_v46 = vmul.u32 58254, %v1040_v8  ;;  %v1045_v14 = vmul.u32 14564, %v1041_v62  ;;  %v10235_v35 = vld [vmem:[#allocation3 + $0xd0] sm:$0xff]  ;;  %v13498_v51 = vpop.f32.mrf.mxu0 }
 0x39a   : > { %v5996_v59 = vsel %vm5976_vm11, %v13362_v6, %v13464_v47  ;;  %v1031_v27 = vadd.s32 %v1030_v24, %v1021_v45  ;;  %vm13486_vm7 = vcmp.lt.s32.totalorder %v1522_v26, 16  ;;  %v1043_v23 = vmul.u32 14564, %v1040_v8  ;;  %6651 = vmatpush.bf16.msrb.mxu1 %v10235_v35 }
 0x39b   : > { %6146 = vmatmul.bf16.gmra.mxu0 %v5996_v59  ;;  %v13490_v37 = vor.u32 %v5037_v52, %v5034_v39  ;;  %v13493_v42 = vadd.s32 208, %v12133_v5  ;;  %vm1379_vm8 = vcmp.ne.s32.totalorder %v1005_v48, 0  ;;  %vm1415_vm9 = vcmp.lt.s32.totalorder %v1005_v48, 0 }
 0x39c   : > { %v1487_v6 = vadd.s32 18, %v1005_v48  ;;  %v1032_v58 = vshrl.u32 %v1031_v27, 4  ;;  %vm1451_vm10 = vmand %vm1415_vm9, %vm1379_vm8  ;;  %v1046_v59 = vmul.u32 58254, %v1041_v62  ;;  %v1047_v45 = vshll.u32 %v1044_v46, 16  ;;  %v10600_v27 = vld [vmem:[#allocation2 + $0x28] sm:$0xff]  }
 0x39d   : > { %v5039_v12 = vsel %vm3918_vm4, %v13374_v16, %v13490_v37  ;;  %v1049_v26 = vshll.u32 %v1045_v14, 16  ;;  %v4648_v8 = vsel %vm13486_vm7, %v4612_v18, 0.0  ;;  %v4539_v52 = vadd.f32 %v4486_v31, %v13421_v15  ;;  %v13509_v15 = vpop.f32.mrf.mxu2 }
 0x39e   : > { %v1523_v24 = vsel %vm1451_vm10, %v1487_v6, %v1005_v48  ;;  %v1033_v39 = vmul.u32 18, %v1032_v58  ;;  %5227 = vmatmul.bf16.gmra.mxu1 %v5039_v12  ;;  %vm1051_vm13 = vc.u32 %v1043_v23, %v1047_v45  ;;  %v1053_v20 = vadd.s32 %v1047_v45, %v1043_v23  ;;  %6905 = vmatmul.bf16.gmra.mxu2 %v10600_v27  ;;  %v13507_v6 = vpop.f32.mrf.mxu1  ;;  %v13515_v12 = vpop.f32.mrf.mxu3 }
 0x39f   : > { %vm1559_vm12 = vcmp.lt.s32.totalorder %v1523_v24, 16  ;;  %v1069_v16 = vand.u32 65535, %v13493_v42  ;;  %v1052_v35 = vsel %vm1051_vm13, 1, %v15399_v54  ;;  %v1070_v21 = vshrl.u32 %v13493_v42, 16  ;;  %15522 = vst [vmem:[#allocation38_spill] sm:$0xff] %v13509_v15 }
 0x3a0   : > { %v4649_v62 = vsel %vm1559_vm12, %v4613_v2, 0.0  ;;  %v1034_v30 = vsub.s32 %v13392_v36, %v1033_v39  ;;  %v1048_v48 = vshrl.u32 %v1044_v46, 16  ;;  %v1054_v58 = vadd.s32 %v1052_v35, %v1046_v59  ;;  %v13520_v46 = vld [vmem:[#allocation2 + $0x34] sm:$0xff]  ;;  %v15523_v59 = vld [vmem:[#allocation21_spill] sm:$0xff] }
 0x3a1   : > { %v10378_v18 = vpack.c.bf16 %v4649_v62, %v4648_v8  ;;  %vm1055_vm15 = vc.u32 %v1053_v20, %v1049_v26  ;;  %v13512_v31 = vadd.f32 %v13427_v38, %v4538_v33  ;;  %v1050_v23 = vshrl.u32 %v1045_v14, 16  ;;  %v15524_v62 = vld [vmem:[#allocation22_spill] sm:$0xff] }
 0x3a2   : > { %v1056_v2 = vsel %vm1055_vm15, 1, %v15399_v54  ;;  %v1072_v45 = vmul.u32 14564, %v1069_v16  ;;  %v1073_v24 = vmul.u32 58254, %v1069_v16  ;;  %v1074_v8 = vmul.u32 14564, %v1070_v21 }
 0x3a3   : > { %10590 = vst [vmem:[#allocation2 + $0x68] sm:$0xff] %v10378_v18   ;;  %v1058_v36 = vadd.s32 %v1056_v2, %v1054_v58  ;;  %vm1380_vm14 = vcmp.ne.s32.totalorder %v1034_v30, 0  ;;  %vm1416_vm3 = vcmp.lt.s32.totalorder %v1034_v30, 0  ;;  %v13518_v20 = vadd.f32 %v13427_v38, %v4539_v52 }
 0x3a4   : > { %v4280_v14 = vadd.f32 %v13318_v19, %v15523_v59  ;;  %v1075_v39 = vmul.u32 58254, %v1070_v21  ;;  %v1076_v27 = vshll.u32 %v1073_v24, 16  ;;  %v4281_v35 = vadd.f32 %v13379_v11, %v15524_v62  ;;  %vm13528_vm6 = vmand %vm1416_vm3, %vm1380_vm14 }
 0x3a5   : > { %v1059_v26 = vadd.s32 %v1058_v36, %v1048_v48  ;;  %v1488_v16 = vadd.s32 18, %v1034_v30  ;;  %v4614_v18 = vmax.f32 %v13512_v31, 0.0  ;;  %v1078_v58 = vshll.u32 %v1074_v8, 16  ;;  %v4491_v48 = vpop.f32.mrf.mxu0 }
 0x3a6   : > { %vm1080_vm7 = vc.u32 %v1072_v45, %v1076_v27  ;;  %v1082_v33 = vadd.s32 %v1076_v27, %v1072_v45  ;;  %v15527_v15 = vrot.slane %v13520_v46, 3  ;;  %v15528_v19 = vrot.slane %v13415_v34, 3  ;;  %v13564_v52 = vpop.f32.mrf.mxu3 }
 0x3a7   : > { %v1060_v2 = vadd.s32 %v1059_v26, %v1050_v23  ;;  %v4615_v11 = vmax.f32 %v13518_v20, 0.0  ;;  %v1081_v36 = vsel %vm1080_vm7, 1, %v15399_v54  ;;  %v15529_v31 = vshrl.u32 %v12798_v56, 16 }
 0x3a8   : > { %v5729_v21 = vsel %vm4311_vm5, %v15528_v19, %v15527_v15  ;;  %v15530_v62 = vshll.u32 %v12798_v56, 16  ;;  %v1077_v45 = vshrl.u32 %v1073_v24, 16  ;;  %v1083_v27 = vadd.s32 %v1081_v36, %v1075_v39  ;;  %v13554_v24 = vpop.f32.mrf.mxu1 }
 0x3a9   : > { %5853 = vmatmul.bf16.gmra.mxu3 %v5729_v21  ;;  %v5997_v59 = vrot.slane %v15529_v31, 3  ;;  %v1061_v26 = vshrl.u32 %v1060_v2, 4  ;;  %vm1084_vm8 = vc.u32 %v1082_v33, %v1078_v58  ;;  %v1524_v34 = vsel %vm13528_vm6, %v1488_v16, %v1034_v30  ;;  %15531 = vst [vmem:[#allocation21_spill] sm:$0xff] %v13554_v24  ;;  %v13556_v33 = vpop.f32.mrf.mxu2 }
 0x3aa   : > { %v5998_v23 = vrot.slane %v15530_v62, 4  ;;  %v1085_v15 = vsel %vm1084_vm8, 1, %v15399_v54  ;;  %v13546_v19 = vld [vmem:[#allocation2 + $0x64] sm:$0xff]  ;;  %v13551_v21 = vadd.s32 216, %v12133_v5  ;;  %v1079_v32 = vshrl.u32 %v1074_v8, 16  ;;  %15532 = vst [vmem:[#allocation22_spill] sm:$0xff] %v13556_v33 }
 0x3ab   : > { %v1062_v31 = vmul.u32 18, %v1061_v26  ;;  %v1087_v56 = vadd.s32 %v1085_v15, %v1083_v27  ;;  %v4540_v2 = vadd.f32 %v13498_v51, %v4280_v14  ;;  %v15334_v30 = vshrl.u32 %v13546_v19, 16  ;;  %v10601_v26 = vld [vmem:[#allocation2 + $0x30] sm:$0xff]  }
 0x3ac   : > { %v13548_v20 = vor.u32 %v5998_v23, %v5997_v59  ;;  %v15335_v39 = vshll.u32 %v13546_v19, 16  ;;  %v1098_v58 = vand.u32 65535, %v13551_v21  ;;  %vm13566_vm9 = vcmp.lt.s32.totalorder %v1524_v34, 16 }
 0x3ad   : > { %v1063_v51 = vsub.s32 %v13458_v7, %v1062_v31  ;;  %v1088_v14 = vadd.s32 %v1087_v56, %v1077_v45  ;;  %v1099_v36 = vshrl.u32 %v13551_v21, 16  ;;  %v5043_v59 = vrot.slane %v15334_v30, 2  ;;  %v13580_v24 = vpop.f32.mrf.mxu0 }
 0x3ae   : > { %v6000_v16 = vsel %vm5976_vm11, %v13464_v47, %v13548_v20  ;;  %v5046_v47 = vrot.slane %v15335_v39, 3  ;;  %v1101_v62 = vmul.u32 14564, %v1098_v58  ;;  %v1102_v23 = vmul.u32 58254, %v1098_v58  ;;  %6910 = vmatmul.bf16.gmra.mxu2 %v10601_v26 }
 0x3af   : > { %6151 = vmatmul.bf16.gmra.mxu0 %v6000_v16  ;;  %vm1381_vm10 = vcmp.ne.s32.totalorder %v1063_v51, 0  ;;  %vm1417_vm12 = vcmp.lt.s32.totalorder %v1063_v51, 0  ;;  %v1489_v27 = vadd.s32 18, %v1063_v51  ;;  %v1089_v34 = vadd.s32 %v1088_v14, %v1079_v32 }
 0x3b0   : > { %vm1453_vm13 = vmand %vm1417_vm12, %vm1381_vm10  ;;  %v13576_v7 = vor.u32 %v5046_v47, %v5043_v59  ;;  %v1103_v45 = vmul.u32 14564, %v1099_v36  ;;  %v1105_v15 = vshll.u32 %v1102_v23, 16  ;;  %v4541_v31 = vadd.f32 %v4491_v48, %v4281_v35 }
 0x3b1   : > { %v4650_v56 = vsel %vm13566_vm9, %v4614_v18, 0.0  ;;  %v1525_v16 = vsel %vm1453_vm13, %v1489_v27, %v1063_v51  ;;  %v1090_v30 = vshrl.u32 %v1089_v34, 4  ;;  %v1104_v39 = vmul.u32 58254, %v1099_v36 }
 0x3b2   : > { %vm1561_vm15 = vcmp.lt.s32.totalorder %v1525_v16, 16  ;;  %v13583_v58 = vadd.f32 %v13427_v38, %v4540_v2  ;;  %v5048_v32 = vsel %vm3918_vm4, %v13490_v37, %v13576_v7  ;;  %v1107_v14 = vshll.u32 %v1103_v45, 16  ;;  %v13596_v37 = vpop.f32.mrf.mxu1 }
 0x3b3   : > { %v4651_v59 = vsel %vm1561_vm15, %v4615_v11, 0.0  ;;  %v1091_v47 = vmul.u32 18, %v1090_v30  ;;  %5232 = vmatmul.bf16.gmra.mxu1 %v5048_v32  ;;  %vm1109_vm14 = vc.u32 %v1101_v62, %v1105_v15  ;;  %v1111_v35 = vadd.s32 %v1105_v15, %v1101_v62  ;;  %v13598_v11 = vpop.f32.mrf.mxu2  ;;  %v13603_v15 = vpop.f32.mrf.mxu3 }
 0x3b4   : > { %v10383_v18 = vpack.c.bf16 %v4651_v59, %v4650_v56  ;;  %v1110_v48 = vsel %vm1109_vm14, 1, %v15399_v54  ;;  %v13590_v8 = vadd.f32 %v13427_v38, %v4541_v31  ;;  %v13593_v51 = vadd.s32 224, %v12133_v5  ;;  %15535 = vst [vmem:[#allocation39_spill] sm:$0xff] %v13598_v11 }
 0x3b5   : > { %v1092_v2 = vsub.s32 %v13493_v42, %v1091_v47  ;;  %v1106_v36 = vshrl.u32 %v1102_v23, 16  ;;  %v1112_v26 = vadd.s32 %v1110_v48, %v1104_v39  ;;  %vm1113_vm3 = vc.u32 %v1111_v35, %v1107_v14  ;;  %v15539_v14 = vld [vmem:[#allocation24_spill] sm:$0xff]  ;;  %v13615_v35 = vld [vmem:[#allocation2 + $0x3c] sm:$0xff] }
 0x3b6   : > { %10591 = vst [vmem:[#allocation2 + $0x70] sm:$0xff] %v10383_v18   ;;  %v1108_v30 = vshrl.u32 %v1103_v45, 16  ;;  %v1114_v62 = vsel %vm1113_vm3, 1, %v15399_v54  ;;  %v1127_v27 = vand.u32 65535, %v13593_v51  ;;  %v1128_v34 = vshrl.u32 %v13593_v51, 16  ;;  %v15538_v45 = vld [vmem:[#allocation23_spill] sm:$0xff] }
 0x3b7   : > { %vm1382_vm6 = vcmp.ne.s32.totalorder %v1092_v2, 0  ;;  %vm1418_vm7 = vcmp.lt.s32.totalorder %v1092_v2, 0  ;;  %v1490_v42 = vadd.s32 18, %v1092_v2  ;;  %v1116_v23 = vadd.s32 %v1114_v62, %v1112_v26 }
 0x3b8   : > { %vm13605_vm8 = vmand %vm1418_vm7, %vm1382_vm6  ;;  %v1130_v31 = vmul.u32 14564, %v1127_v27  ;;  %v1131_v56 = vmul.u32 58254, %v1127_v27  ;;  %v1132_v16 = vmul.u32 14564, %v1128_v34  ;;  %v4282_v32 = vadd.f32 %v13410_v40, %v15538_v45 }
 0x3b9   : > { %v13613_v59 = vadd.f32 %v13475_v28, %v15539_v14  ;;  %v1117_v47 = vadd.s32 %v1116_v23, %v1106_v36  ;;  %v15336_v18 = vrot.slane %v13615_v35, 3  ;;  %v4616_v48 = vmax.f32 %v13583_v58, 0.0  ;;  %v4496_v23 = vpop.f32.mrf.mxu0 }
 0x3ba   : > { %v1133_v26 = vmul.u32 58254, %v1128_v34  ;;  %v1134_v62 = vshll.u32 %v1131_v56, 16  ;;  %v1136_v33 = vshll.u32 %v1132_v16, 16  ;;  %v1526_v27 = vsel %vm13605_vm8, %v1490_v42, %v1092_v2 }
 0x3bb   : > { %v1118_v11 = vadd.s32 %v1117_v47, %v1108_v30  ;;  %v4617_v40 = vmax.f32 %v13590_v8, 0.0  ;;  %v15540_v28 = vrot.slane %v13520_v46, 3  ;;  %v15541_v58 = vshrl.u32 %v12888_v3, 16 }
 0x3bc   : > { %vm1138_vm9 = vc.u32 %v1130_v31, %v1134_v62  ;;  %v1140_v45 = vadd.s32 %v1134_v62, %v1130_v31  ;;  %v15542_v14 = vshll.u32 %v12888_v3, 16  ;;  %v1135_v30 = vshrl.u32 %v1131_v56, 16  ;;  %v10602_v62 = vld [vmem:[#allocation2 + $0x38] sm:$0xff]   ;;  %v13642_v56 = vpop.f32.mrf.mxu1 }
 0x3bd   : > { %v5731_v36 = vsel %vm4311_vm5, %v15540_v28, %v15336_v18  ;;  %v6001_v34 = vrot.slane %v15541_v58, 3  ;;  %v1119_v2 = vshrl.u32 %v1118_v11, 4  ;;  %v1139_v8 = vsel %vm1138_vm9, 1, %v15399_v54  ;;  %v13632_v42 = vld [vmem:[#allocation2 + $0x6c] sm:$0xff]  ;;  %15543 = vst [vmem:[#allocation23_spill] sm:$0xff] %v13642_v56 }
 0x3be   : > { %5858 = vmatmul.bf16.gmra.mxu3 %v5731_v36  ;;  %v6002_v39 = vrot.slane %v15542_v14, 4  ;;  %v13635_v46 = vadd.s32 232, %v12133_v5  ;;  %v1137_v47 = vshrl.u32 %v1132_v16, 16  ;;  %v1141_v28 = vadd.s32 %v1139_v8, %v1133_v26  ;;  %v13644_v14 = vpop.f32.mrf.mxu2  ;;  %6915 = vmatmul.bf16.gmra.mxu2 %v10602_v62 }
 0x3bf   : > { %vm1142_vm10 = vc.u32 %v1140_v45, %v1136_v33  ;;  %v1120_v36 = vmul.u32 18, %v1119_v2  ;;  %v15337_v3 = vshrl.u32 %v13632_v42, 16  ;;  %v15338_v11 = vshll.u32 %v13632_v42, 16  ;;  %15544 = vst [vmem:[#allocation24_spill] sm:$0xff] %v13644_v14  ;;  %v13651_v45 = vpop.f32.mrf.mxu3 }
 0x3c0   : > { %v13637_v31 = vor.u32 %v6002_v39, %v6001_v34  ;;  %v1143_v58 = vsel %vm1142_vm10, 1, %v15399_v54  ;;  %v1156_v16 = vand.u32 65535, %v13635_v46  ;;  %v1157_v26 = vshrl.u32 %v13635_v46, 16 }
 0x3c1   : > { %v1145_v18 = vadd.s32 %v1143_v58, %v1141_v28  ;;  %vm13653_vm12 = vcmp.lt.s32.totalorder %v1526_v27, 16  ;;  %v1121_v39 = vsub.s32 %v13551_v21, %v1120_v36  ;;  %v5052_v2 = vrot.slane %v15337_v3, 2 }
 0x3c2   : > { %v6004_v33 = vsel %vm5976_vm11, %v13548_v20, %v13637_v31  ;;  %v5055_v8 = vrot.slane %v15338_v11, 3  ;;  %v1159_v28 = vmul.u32 14564, %v1156_v16  ;;  %v1160_v62 = vmul.u32 58254, %v1156_v16 }
 0x3c3   : > { %6156 = vmatmul.bf16.gmra.mxu0 %v6004_v33  ;;  %v1146_v20 = vadd.s32 %v1145_v18, %v1135_v30  ;;  %v1161_v58 = vmul.u32 14564, %v1157_v26  ;;  %vm1383_vm13 = vcmp.ne.s32.totalorder %v1121_v39, 0  ;;  %vm1419_vm15 = vcmp.lt.s32.totalorder %v1121_v39, 0  ;;  %v13670_v33 = vpop.f32.mrf.mxu0 }
 0x3c4   : > { %v1491_v56 = vadd.s32 18, %v1121_v39  ;;  %v13662_v27 = vor.u32 %v5055_v8, %v5052_v2  ;;  %vm1455_vm14 = vmand %vm1419_vm15, %vm1383_vm13  ;;  %v4542_v21 = vadd.f32 %v13580_v24, %v4282_v32  ;;  %v1162_v36 = vmul.u32 58254, %v1157_v26 }
 0x3c5   : > { %v1147_v14 = vadd.s32 %v1146_v20, %v1137_v47  ;;  %v1163_v13 = vshll.u32 %v1160_v62, 16  ;;  %v4652_v3 = vsel %vm13653_vm12, %v4616_v48, 0.0  ;;  %v1165_v30 = vshll.u32 %v1161_v58, 16  ;;  %v13683_v20 = vld [vmem:[#allocation2 + $0x44] sm:$0xff] }
 0x3c6   : > { %v1527_v11 = vsel %vm1455_vm14, %v1491_v56, %v1121_v39  ;;  %v5057_v18 = vsel %vm3918_vm4, %v13576_v7, %v13662_v27  ;;  %v1164_v24 = vshrl.u32 %v1160_v62, 16  ;;  %v4543_v26 = vadd.f32 %v4496_v23, %v13613_v59 }
 0x3c7   : > { %vm1563_vm3 = vcmp.lt.s32.totalorder %v1527_v11, 16  ;;  %v1148_v16 = vshrl.u32 %v1147_v14, 4  ;;  %5237 = vmatmul.bf16.gmra.mxu1 %v5057_v18  ;;  %vm1167_vm6 = vc.u32 %v1159_v28, %v1163_v13  ;;  %v1169_v47 = vadd.s32 %v1163_v13, %v1159_v28  ;;  %v13678_v11 = vpop.f32.mrf.mxu1  ;;  %v13680_v14 = vpop.f32.mrf.mxu2  ;;  %v15548_v18 = vld [vmem:[#allocation25_spill] sm:$0xff] }
 0x3c8   : > { %v4653_v2 = vsel %vm1563_vm3, %v4617_v40, 0.0  ;;  %v1168_v32 = vsel %vm1167_vm6, 1, %v15399_v54  ;;  %v13676_v39 = vadd.s32 240, %v12133_v5  ;;  %15547 = vst [vmem:[#allocation40_spill] sm:$0xff] %v13680_v14  ;;  %v1166_v40 = vshrl.u32 %v1161_v58, 16  ;;  %v13686_v23 = vpop.f32.mrf.mxu3 }
 0x3c9   : > { %v10388_v48 = vpack.c.bf16 %v4653_v2, %v4652_v3  ;;  %v1149_v56 = vmul.u32 18, %v1148_v16  ;;  %v1170_v34 = vadd.s32 %v1168_v32, %v1162_v36  ;;  %vm1171_vm7 = vc.u32 %v1169_v47, %v1165_v30 }
 0x3ca   : > { %v1172_v7 = vsel %vm1171_vm7, 1, %v15399_v54  ;;  %v15339_v59 = vrot.slane %v13683_v20, 3  ;;  %v13689_v3 = vadd.f32 %v13427_v38, %v4542_v21  ;;  %v13692_v28 = vadd.f32 %v13427_v38, %v4543_v26 }
 0x3cb   : > { %10592 = vst [vmem:[#allocation2 + $0x78] sm:$0xff] %v10388_v48   ;;  %v1150_v13 = vsub.s32 %v13593_v51, %v1149_v56  ;;  %v1174_v8 = vadd.s32 %v1172_v7, %v1170_v34  ;;  %v1185_v62 = vand.u32 65535, %v13676_v39  ;;  %v1186_v36 = vshrl.u32 %v13676_v39, 16  ;;  %v10603_v34 = vld [vmem:[#allocation2 + $0x40] sm:$0xff]   ;;  %v13712_v14 = vpop.f32.mrf.mxu0 }
 0x3cc   : > { %v4284_v30 = vadd.f32 %v13515_v12, %v15548_v18  ;;  %v15551_v48 = vrot.slane %v13615_v35, 3  ;;  %v15552_v56 = vshrl.u32 %v12980_v22, 16  ;;  %v4618_v7 = vmax.f32 %v13689_v3, 0.0 }
 0x3cd   : > { %vm1384_vm8 = vcmp.ne.s32.totalorder %v1150_v13, 0  ;;  %vm1420_vm9 = vcmp.lt.s32.totalorder %v1150_v13, 0  ;;  %v1492_v51 = vadd.s32 18, %v1150_v13  ;;  %v1175_v58 = vadd.s32 %v1174_v8, %v1164_v24 }
 0x3ce   : > { %vm13698_vm10 = vmand %vm1420_vm9, %vm1384_vm8  ;;  %v1188_v21 = vmul.u32 14564, %v1185_v62  ;;  %v1189_v47 = vmul.u32 58254, %v1185_v62  ;;  %v1190_v2 = vmul.u32 14564, %v1186_v36  ;;  %v5733_v24 = vsel %vm4311_vm5, %v15551_v48, %v15339_v59  ;;  %6920 = vmatmul.bf16.gmra.mxu2 %v10603_v34 }
 0x3cf   : > { %v1528_v32 = vsel %vm13698_vm10, %v1492_v51, %v1150_v13  ;;  %v1176_v26 = vadd.s32 %v1175_v58, %v1166_v40  ;;  %v6005_v12 = vrot.slane %v15552_v56, 3  ;;  %v1191_v8 = vmul.u32 58254, %v1186_v36  ;;  %5863 = vmatmul.bf16.gmra.mxu3 %v5733_v24 }
 0x3d0   : > { %v1192_v18 = vshll.u32 %v1189_v47, 16  ;;  %v1194_v62 = vshll.u32 %v1190_v2, 16  ;;  %vm13714_vm12 = vcmp.lt.s32.totalorder %v1528_v32, 16  ;;  %v4619_v40 = vmax.f32 %v13692_v28, 0.0 }
 0x3d1   : > { %v1177_v35 = vshrl.u32 %v1176_v26, 4  ;;  %v15555_v51 = vshll.u32 %v12980_v22, 16  ;;  %v1193_v16 = vshrl.u32 %v1189_v47, 16  ;;  %v13724_v48 = vadd.s32 248, %v12133_v5  ;;  %v10234_v26 = vld [vmem:[#allocation3 + $0xc8] sm:$0xff]  ;;  %v13731_v47 = vpop.f32.mrf.mxu1 }
 0x3d2   : > { %vm1196_vm13 = vc.u32 %v1188_v21, %v1192_v18  ;;  %v1198_v3 = vadd.s32 %v1192_v18, %v1188_v21  ;;  %v13721_v36 = vld [vmem:[#allocation2 + $0x74] sm:$0xff]  ;;  %v1195_v56 = vshrl.u32 %v1190_v2, 16  ;;  %15556 = vst [vmem:[#allocation25_spill] sm:$0xff] %v13731_v47  ;;  %v13733_v21 = vpop.f32.mrf.mxu2  ;;  %6652 = vmatpush.bf16.msrb.mxu1 %v10234_v26 }
 0x3d3   : > { %v6006_v58 = vrot.slane %v15555_v51, 4  ;;  %v1178_v24 = vmul.u32 18, %v1177_v35  ;;  %v1197_v32 = vsel %vm1196_vm13, 1, %v15399_v54  ;;  %v15341_v22 = vshrl.u32 %v13721_v36, 16  ;;  %15557 = vst [vmem:[#allocation41_spill] sm:$0xff] %v13733_v21 }
 0x3d4   : > { %v1199_v59 = vadd.s32 %v1197_v32, %v1191_v8  ;;  %vm1200_vm15 = vc.u32 %v1198_v3, %v1194_v62  ;;  %v15340_v28 = vshll.u32 %v13721_v36, 16  ;;  %v13741_v8 = vpop.f32.mrf.mxu3 }
 0x3d5   : > { %v13727_v34 = vor.u32 %v6006_v58, %v6005_v12  ;;  %v1179_v18 = vsub.s32 %v13635_v46, %v1178_v24  ;;  %v1201_v35 = vsel %vm1200_vm15, 1, %v15399_v54  ;;  %v1214_v12 = vand.u32 65535, %v13724_v48 }
 0x3d6   : > { %v1203_v62 = vadd.s32 %v1201_v35, %v1199_v59  ;;  %v5061_v51 = vrot.slane %v15341_v22, 2  ;;  %v5064_v58 = vrot.slane %v15340_v28, 3  ;;  %v1215_v46 = vshrl.u32 %v13724_v48, 16 }
 0x3d7   : > { %v6008_v2 = vsel %vm5976_vm11, %v13637_v31, %v13727_v34  ;;  %vm1385_vm14 = vcmp.ne.s32.totalorder %v1179_v18, 0  ;;  %vm1421_vm3 = vcmp.lt.s32.totalorder %v1179_v18, 0  ;;  %v1493_v3 = vadd.s32 18, %v1179_v18 }
 0x3d8   : > { %6161 = vmatmul.bf16.gmra.mxu0 %v6008_v2  ;;  %v1217_v24 = vmul.u32 14564, %v1214_v12  ;;  %vm1457_vm6 = vmand %vm1421_vm3, %vm1385_vm14  ;;  %v1204_v31 = vadd.s32 %v1203_v62, %v1193_v16  ;;  %v13748_v32 = vor.u32 %v5064_v58, %v5061_v51  ;;  %v1218_v26 = vmul.u32 58254, %v1214_v12  ;;  %v13758_v16 = vpop.f32.mrf.mxu0  ;;  %v10604_v58 = vld [vmem:[#allocation2 + $0x48] sm:$0xff]  }
 0x3d9   : > { %v1219_v47 = vmul.u32 14564, %v1215_v46  ;;  %v13752_v59 = vadd.f32 %v12437_v41, %v13234_v49  ;;  %v1529_v35 = vsel %vm1457_vm6, %v1493_v3, %v1179_v18  ;;  %v4544_v28 = vadd.f32 %v13670_v33, %v4284_v30 }
 0x3da   : > { %v1220_v2 = vmul.u32 58254, %v1215_v46  ;;  %vm1565_vm7 = vcmp.lt.s32.totalorder %v1529_v35, 16  ;;  %v1205_v22 = vadd.s32 %v1204_v31, %v1195_v56  ;;  %v5066_v21 = vsel %vm3918_vm4, %v13662_v27, %v13748_v32  ;;  %v13784_v31 = vld [vmem:[#allocation2 + $0x4c] sm:$0xff]  ;;  %v15559_v35 = vld [vmem:[#allocation26_spill] sm:$0xff] }
 0x3db   : > { %v1221_v0 = vshll.u32 %v1218_v26, 16  ;;  %v4285_v12 = vadd.f32 %v13564_v52, %v12205_v61  ;;  %v4654_v41 = vsel %vm13714_vm12, %v4618_v7, 0.0  ;;  %v4655_v49 = vsel %vm1565_vm7, %v4619_v40, 0.0  ;;  %5242 = vmatmul.bf16.gmra.mxu1 %v5066_v21  ;;  %v13775_v40 = vpop.f32.mrf.mxu1 }
 0x3dc   : > { %v1223_v18 = vshll.u32 %v1219_v47, 16  ;;  %v10393_v33 = vpack.c.bf16 %v4655_v49, %v4654_v41  ;;  %v1206_v30 = vshrl.u32 %v1205_v22, 4  ;;  %v13766_v62 = vadd.f32 %v13603_v15, %v12240_v29  ;;  %v5829_v21 = vpop.f32.mrf.mxu3 }
 0x3dd   : > { %vm1225_vm8 = vc.u32 %v1217_v24, %v1221_v0  ;;  %v1227_v56 = vadd.s32 %v1221_v0, %v1217_v24  ;;  %v13769_v27 = vadd.f32 %v13427_v38, %v4544_v28  ;;  %v13773_v61 = vadd.s32 256, %v12133_v5  ;;  %v13777_v0 = vpop.f32.mrf.mxu2 }
 0x3de   : > { %v1226_v51 = vsel %vm1225_vm8, 1, %v15399_v54  ;;  %10593 = vst [vmem:[#allocation2 + $0x80] sm:$0xff] %v10393_v33   ;;  %v1207_v52 = vmul.u32 18, %v1206_v30  ;;  %v1222_v7 = vshrl.u32 %v1218_v26, 16  ;;  %v4545_v15 = vadd.f32 %v13712_v14, %v4285_v12  ;;  %6925 = vmatmul.bf16.gmra.mxu2 %v10604_v58 }
 0x3df   : > { %v1228_v13 = vadd.s32 %v1226_v51, %v1220_v2  ;;  %vm1229_vm9 = vc.u32 %v1227_v56, %v1223_v18  ;;  %15558 = vst [vmem:[#allocation42_spill] sm:$0xff] %v13777_v0  ;;  %v1243_v22 = vand.u32 65535, %v13773_v61  ;;  %v1244_v28 = vshrl.u32 %v13773_v61, 16 }
 0x3e0   : > { %v1230_v29 = vsel %vm1229_vm9, 1, %v15399_v54  ;;  %v1208_v46 = vsub.s32 %v13676_v39, %v1207_v52  ;;  %v1224_v3 = vshrl.u32 %v1219_v47, 16  ;;  %v5734_v26 = vrot.slane %v13784_v31, 3 }
 0x3e1   : > { %v1232_v24 = vadd.s32 %v1230_v29, %v1228_v13  ;;  %v13789_v2 = vadd.f32 %v13651_v45, %v15559_v35  ;;  %v1246_v14 = vmul.u32 14564, %v1243_v22  ;;  %v1247_v12 = vmul.u32 58254, %v1243_v22 }
 0x3e2   : > { %v1248_v41 = vmul.u32 14564, %v1244_v28  ;;  %vm1386_vm10 = vcmp.ne.s32.totalorder %v1208_v46, 0  ;;  %vm1422_vm12 = vcmp.lt.s32.totalorder %v1208_v46, 0  ;;  %v1494_v49 = vadd.s32 18, %v1208_v46 }
 0x3e3   : > { %v1233_v18 = vadd.s32 %v1232_v24, %v1222_v7  ;;  %vm13791_vm13 = vmand %vm1422_vm12, %vm1386_vm10  ;;  %v4620_v47 = vmax.f32 %v13769_v27, 0.0  ;;  %v1249_v33 = vmul.u32 58254, %v1244_v28  ;;  %v1250_v30 = vshll.u32 %v1247_v12, 16  ;;  %v4506_v7 = vpop.f32.mrf.mxu0 }
 0x3e4   : > { %v1252_v56 = vshll.u32 %v1248_v41, 16  ;;  %v4585_v45 = vadd.f32 %v13427_v38, %v4545_v15  ;;  %v1251_v52 = vshrl.u32 %v1247_v12, 16  ;;  %v15562_v13 = vrot.slane %v13683_v20, 3 }
 0x3e5   : > { %v1234_v51 = vadd.s32 %v1233_v18, %v1224_v3  ;;  %v1253_v22 = vshrl.u32 %v1248_v41, 16  ;;  %vm1254_vm15 = vc.u32 %v1246_v14, %v1250_v30  ;;  %v1256_v58 = vadd.s32 %v1250_v30, %v1246_v14  ;;  %v13802_v24 = vld [vmem:[#allocation2 + $0x7c] sm:$0xff] }
 0x3e6   : > { %v5735_v29 = vsel %vm4311_vm5, %v15562_v13, %v5734_v26  ;;  %v15563_v27 = vshrl.u32 %v13079_v57, 16  ;;  %v1530_v15 = vsel %vm13791_vm13, %v1494_v49, %v1208_v46  ;;  %v1255_v35 = vsel %vm1254_vm15, 1, %v15399_v54  ;;  %v13819_v46 = vpop.f32.mrf.mxu1  ;;  %v13821_v49 = vpop.f32.mrf.mxu2 }
 0x3e7   : > { %5868 = vmatmul.bf16.gmra.mxu3 %v5735_v29  ;;  %v1235_v3 = vshrl.u32 %v1234_v51, 4  ;;  %v15564_v20 = vshll.u32 %v13079_v57, 16  ;;  %v1257_v18 = vadd.s32 %v1255_v35, %v1249_v33  ;;  %vm1258_vm14 = vc.u32 %v1256_v58, %v1252_v56  ;;  %15565 = vst [vmem:[#allocation26_spill] sm:$0xff] %v13821_v49  ;;  %v13830_v58 = vpop.f32.mrf.mxu3 }
 0x3e8   : > { %v6009_v28 = vrot.slane %v15563_v27, 3  ;;  %v15343_v41 = vshrl.u32 %v13802_v24, 16  ;;  %v15342_v14 = vshll.u32 %v13802_v24, 16  ;;  %v1259_v13 = vsel %vm1258_vm14, 1, %v15399_v54 }
 0x3e9   : > { %v6010_v12 = vrot.slane %v15564_v20, 4  ;;  %v1236_v30 = vmul.u32 18, %v1235_v3  ;;  %v13817_v39 = vadd.f32 %v5829_v21, %v13752_v59  ;;  %v1261_v57 = vadd.s32 %v1259_v13, %v1257_v18 }
 0x3ea   : > { %v5070_v33 = vrot.slane %v15343_v41, 2  ;;  %v5073_v56 = vrot.slane %v15342_v14, 3  ;;  %v13828_v51 = vadd.s32 264, %v12133_v5  ;;  %v4621_v59 = vmax.f32 %v4585_v45, 0.0 }
 0x3eb   : > { %v13814_v29 = vor.u32 %v6010_v12, %v6009_v28  ;;  %v1237_v27 = vsub.s32 %v13724_v48, %v1236_v30  ;;  %v4546_v21 = vadd.f32 %v13758_v16, %v13766_v62  ;;  %v1262_v3 = vadd.s32 %v1261_v57, %v1251_v52  ;;  %v13849_v52 = vpop.f32.mrf.mxu0 }
 0x3ec   : > { %v13838_v35 = vor.u32 %v5073_v56, %v5070_v33  ;;  %v1272_v20 = vand.u32 65535, %v13828_v51  ;;  %v1273_v12 = vshrl.u32 %v13828_v51, 16  ;;  %vm13842_vm3 = vcmp.lt.s32.totalorder %v1530_v15, 16 }
 0x3ed   : > { %v6012_v28 = vsel %vm5976_vm11, %v13727_v34, %v13814_v29  ;;  %vm1387_vm6 = vcmp.ne.s32.totalorder %v1237_v27, 0  ;;  %vm1423_vm7 = vcmp.lt.s32.totalorder %v1237_v27, 0  ;;  %v1495_v48 = vadd.s32 18, %v1237_v27 }
 0x3ee   : > { %6166 = vmatmul.bf16.gmra.mxu0 %v6012_v28  ;;  %vm1459_vm8 = vmand %vm1423_vm7, %vm1387_vm6  ;;  %v1263_v16 = vadd.s32 %v1262_v3, %v1253_v22  ;;  %v5075_v34 = vsel %vm3918_vm4, %v13748_v32, %v13838_v35  ;;  %v1275_v62 = vmul.u32 14564, %v1272_v20  ;;  %v1276_v45 = vmul.u32 58254, %v1272_v20  ;;  %v10605_v28 = vld [vmem:[#allocation2 + $0x50] sm:$0xff]   ;;  %v13857_v14 = vpop.f32.mrf.mxu1 }
 0x3ef   : > { %v1531_v30 = vsel %vm1459_vm8, %v1495_v48, %v1237_v27  ;;  %5247 = vmatmul.bf16.gmra.mxu1 %v5075_v34  ;;  %v1277_v13 = vmul.u32 14564, %v1273_v12  ;;  %v4547_v15 = vadd.f32 %v4506_v7, %v13789_v2  ;;  %v1278_v33 = vmul.u32 58254, %v1273_v12  ;;  %v13859_v27 = vpop.f32.mrf.mxu2  ;;  %6930 = vmatmul.bf16.gmra.mxu2 %v10605_v28  ;;  %v5834_v12 = vpop.f32.mrf.mxu3 }
 0x3f0   : > { %vm1567_vm9 = vcmp.lt.s32.totalorder %v1531_v30, 16  ;;  %v1264_v57 = vshrl.u32 %v1263_v16, 4  ;;  %v1279_v56 = vshll.u32 %v1276_v45, 16  ;;  %v4656_v22 = vsel %vm13842_vm3, %v4620_v47, 0.0  ;;  %15568 = vst [vmem:[#allocation43_spill] sm:$0xff] %v13859_v27  ;;  %v13869_v30 = vld [vmem:[#allocation2 + $0x54] sm:$0xff] }
 0x3f1   : > { %v4657_v3 = vsel %vm1567_vm9, %v4621_v59, 0.0  ;;  %v13855_v32 = vadd.f32 %v13427_v38, %v4546_v21  ;;  %v1281_v20 = vshll.u32 %v1277_v13, 16  ;;  %v1280_v16 = vshrl.u32 %v1276_v45, 16 }
 0x3f2   : > { %v10398_v48 = vpack.c.bf16 %v4657_v3, %v4656_v22  ;;  %v1265_v2 = vmul.u32 18, %v1264_v57  ;;  %vm1283_vm10 = vc.u32 %v1275_v62, %v1279_v56  ;;  %v1285_v7 = vadd.s32 %v1279_v56, %v1275_v62 }
 0x3f3   : > { %v1284_v34 = vsel %vm1283_vm10, 1, %v15399_v54  ;;  %v13863_v47 = vadd.f32 %v13427_v38, %v4547_v15  ;;  %v13866_v59 = vadd.s32 272, %v12133_v5  ;;  %v15344_v57 = vrot.slane %v13869_v30, 3 }
 0x3f4   : > { %10594 = vst [vmem:[#allocation2 + $0x88] sm:$0xff] %v10398_v48   ;;  %v1266_v21 = vsub.s32 %v13773_v61, %v1265_v2  ;;  %v1286_v18 = vadd.s32 %v1284_v34, %v1278_v33  ;;  %vm1287_vm12 = vc.u32 %v1285_v7, %v1281_v20  ;;  %v1282_v62 = vshrl.u32 %v1277_v13, 16  ;;  %v13877_v20 = vpop.f32.mrf.mxu0 }
 0x3f5   : > { %v1288_v45 = vsel %vm1287_vm12, 1, %v15399_v54  ;;  %v1301_v56 = vand.u32 65535, %v13866_v59  ;;  %v1302_v38 = vshrl.u32 %v13866_v59, 16  ;;  %v5612_v61 = vadd.f32 %v12543_v44, %v13312_v60 }
 0x3f6   : > { %vm1388_vm13 = vcmp.ne.s32.totalorder %v1266_v21, 0  ;;  %vm1424_vm15 = vcmp.lt.s32.totalorder %v1266_v21, 0  ;;  %v1496_v15 = vadd.s32 18, %v1266_v21  ;;  %v1290_v28 = vadd.s32 %v1288_v45, %v1286_v18  ;;  %v10249_v45 = vld [vmem:[#allocation2 + $0x10] sm:$0xff] }
 0x3f7   : > { %vm1460_vm14 = vmand %vm1424_vm15, %vm1388_vm13  ;;  %v1304_v33 = vmul.u32 14564, %v1301_v56  ;;  %v1305_v22 = vmul.u32 58254, %v1301_v56  ;;  %v1306_v3 = vmul.u32 14564, %v1302_v38  ;;  %v5737_v7 = vsel %vm4311_vm5, %v5734_v26, %v15344_v57  ;;  %v13898_v57 = vpop.f32.mrf.mxu1 }
 0x3f8   : > { %v1532_v13 = vsel %vm1460_vm14, %v1496_v15, %v1266_v21  ;;  %v1291_v2 = vadd.s32 %v1290_v28, %v1280_v16  ;;  %v1307_v18 = vmul.u32 58254, %v1302_v38  ;;  %5873 = vmatmul.bf16.gmra.mxu3 %v5737_v7  ;;  %v15571_v16 = vshrl.u32 %v13183_v1, 16  ;;  %v10233_v7 = vld [vmem:[#allocation3 + $0xc0] sm:$0xff] }
 0x3f9   : > { %v1308_v44 = vshll.u32 %v1305_v22, 16  ;;  %v1310_v60 = vshll.u32 %v1306_v3, 16  ;;  %vm13886_vm3 = vcmp.lt.s32.totalorder %v1532_v13, 16  ;;  %v1309_v56 = vshrl.u32 %v1305_v22, 16  ;;  %v13900_v13 = vpop.f32.mrf.mxu2  ;;  %6653 = vmatpush.bf16.msrb.mxu1 %v10233_v7  ;;  %v10606_v7 = vld [vmem:[#allocation2 + $0x58] sm:$0xff]  }
 0x3fa   : > { %v1292_v21 = vadd.s32 %v1291_v2, %v1282_v62  ;;  %v6013_v15 = vrot.slane %v15571_v16, 3  ;;  %v15572_v26 = vshll.u32 %v13183_v1, 16  ;;  %v13896_v38 = vadd.f32 %v5834_v12, %v5612_v61  ;;  %15573 = vst [vmem:[#allocation44_spill] sm:$0xff] %v13900_v13 }
 0x3fb   : > { %vm1312_vm6 = vc.u32 %v1304_v33, %v1308_v44  ;;  %v1314_v28 = vadd.s32 %v1308_v44, %v1304_v33  ;;  %v13892_v31 = vld [vmem:[#allocation2 + $0x84] sm:$0xff]  ;;  %v1311_v62 = vshrl.u32 %v1306_v3, 16  ;;  %v13904_v2 = vadd.s32 280, %v12133_v5  ;;  %v13906_v33 = vpop.f32.mrf.mxu3 }
 0x3fc   : > { %v6014_v41 = vrot.slane %v15572_v26, 4  ;;  %v1293_v34 = vshrl.u32 %v1292_v21, 4  ;;  %v1313_v22 = vsel %vm1312_vm6, 1, %v15399_v54  ;;  %v15345_v1 = vshrl.u32 %v13892_v31, 16 }
 0x3fd   : > { %v1315_v44 = vadd.s32 %v1313_v22, %v1307_v18  ;;  %vm1316_vm7 = vc.u32 %v1314_v28, %v1310_v60  ;;  %v15346_v12 = vshll.u32 %v13892_v31, 16  ;;  %v1330_v3 = vand.u32 65535, %v13904_v2  ;;  %v6137_v28 = vpop.f32.mrf.mxu0 }
 0x3fe   : > { %v1294_v61 = vmul.u32 18, %v1293_v34  ;;  %v1317_v16 = vsel %vm1316_vm7, 1, %v15399_v54  ;;  %v13911_v26 = vor.u32 %v6014_v41, %v6013_v15  ;;  %v5079_v5 = vrot.slane %v15345_v1, 2 }
 0x3ff   : > { %v1319_v21 = vadd.s32 %v1317_v16, %v1315_v44  ;;  %v5082_v18 = vrot.slane %v15346_v12, 3  ;;  %v1331_v60 = vshrl.u32 %v13904_v2, 16  ;;  %v1333_v41 = vmul.u32 14564, %v1330_v3  ;;  %6935 = vmatmul.bf16.gmra.mxu2 %v10606_v7 }
 0x400   : > { %v1295_v22 = vsub.s32 %v13828_v51, %v1294_v61  ;;  %v6016_v34 = vsel %vm5976_vm11, %v13814_v29, %v13911_v26  ;;  %v1334_v15 = vmul.u32 58254, %v1330_v3  ;;  %v13928_v3 = vpop.f32.mrf.mxu1  ;;  %v13955_v0 = vadd.f32 %v6137_v28, %v13817_v39  ;;  %v10299_v39 = vld [vmem:[#allocation3 + $0x1b8] sm:$0xff] }
 0x401   : > { %v1320_v48 = vadd.s32 %v1319_v21, %v1309_v56  ;;  %v13923_v44 = vor.u32 %v5082_v18, %v5079_v5  ;;  %6171 = vmatmul.bf16.gmra.mxu0 %v6016_v34  ;;  %v1335_v16 = vmul.u32 14564, %v1331_v60  ;;  %v1336_v1 = vmul.u32 58254, %v1331_v60  ;;  %v13930_v56 = vpop.f32.mrf.mxu2 }
 0x402   : > { %vm1389_vm8 = vcmp.ne.s32.totalorder %v1295_v22, 0  ;;  %vm1425_vm9 = vcmp.lt.s32.totalorder %v1295_v22, 0  ;;  %v1497_v12 = vadd.s32 18, %v1295_v22  ;;  %v1337_v13 = vshll.u32 %v1334_v15, 16  ;;  %15574 = vst [vmem:[#allocation45_spill] sm:$0xff] %v13930_v56  ;;  %7874 = vmatpush.bf16.msra.mxu0 %v10299_v39 }
 0x403   : > { %vm1461_vm10 = vmand %vm1425_vm9, %vm1389_vm8  ;;  %v1321_v51 = vadd.s32 %v1320_v48, %v1311_v62  ;;  %v5084_v29 = vsel %vm3918_vm4, %v13838_v35, %v13923_v44  ;;  %v1339_v61 = vshll.u32 %v1335_v16, 16  ;;  %v5617_v21 = vadd.f32 %v12632_v4, %v13406_v9  ;;  %v5839_v60 = vpop.f32.mrf.mxu3  ;;  %v14277_v35 = vld [vmem:[#allocation2 + $0x18] sm:$0xff] }
 0x404   : > { %v1533_v5 = vsel %vm1461_vm10, %v1497_v12, %v1295_v22  ;;  %5252 = vmatmul.bf16.gmra.mxu1 %v5084_v29  ;;  %vm1341_vm12 = vc.u32 %v1333_v41, %v1337_v13  ;;  %v1343_v18 = vadd.s32 %v1337_v13, %v1333_v41  ;;  %v15575_v34 = vmax.f32 %v13855_v32, 0.0  ;;  %v15579_v12 = vld [vmem:[#allocation27_spill] sm:$0xff] }
 0x405   : > { %vm13938_vm13 = vcmp.lt.s32.totalorder %v1533_v5, 16  ;;  %v1322_v62 = vshrl.u32 %v1321_v51, 4  ;;  %v1342_v7 = vsel %vm1341_vm12, 1, %v15399_v54  ;;  %v15578_v56 = vmax.f32 %v13863_v47, 0.0 }
 0x406   : > { %v4658_v48 = vsel %vm13886_vm3, %v15575_v34, 0.0  ;;  %v1338_v9 = vshrl.u32 %v1334_v15, 16  ;;  %v1344_v13 = vadd.s32 %v1342_v7, %v1336_v1  ;;  %vm1345_vm15 = vc.u32 %v1343_v18, %v1339_v61  ;;  %v13950_v34 = vpop.f32.mrf.mxu0  ;;  %v13958_v15 = vld [vmem:[#allocation2 + $0x5c] sm:$0xff] }
 0x407   : > { %v4659_v4 = vsel %vm13938_vm13, %v15578_v56, 0.0  ;;  %v4288_v22 = vadd.f32 %v13686_v23, %v15579_v12  ;;  %v1323_v29 = vmul.u32 18, %v1322_v62  ;;  %v1346_v5 = vsel %vm1345_vm15, 1, %v15399_v54 }
 0x408   : > { %v10403_v41 = vpack.c.bf16 %v4659_v4, %v4658_v48  ;;  %v4289_v51 = vadd.f32 %v13741_v8, %v12376_v63  ;;  %v1340_v27 = vshrl.u32 %v1335_v16, 16  ;;  %v1348_v49 = vadd.s32 %v1346_v5, %v1344_v13  ;;  %v10274_v8 = vld [vmem:[#allocation3 + $0x178] sm:$0xff]  ;;  %v13974_v4 = vpop.f32.mrf.mxu1 }
 0x409   : > { %v1324_v1 = vsub.s32 %v13866_v59, %v1323_v29  ;;  %v5738_v23 = vrot.slane %v13958_v15, 3  ;;  %v15580_v61 = vshrl.u32 %v13253_v50, 16  ;;  %v15581_v56 = vshll.u32 %v13253_v50, 16  ;;  %v10315_v16 = vld [vmem:[#allocation3 + $0x238] sm:$0xff]  ;;  %v13976_v50 = vpop.f32.mrf.mxu2  ;;  %7378 = vmatpush.bf16.msra.mxu3 %v10274_v8 }
 0x40a   : > { %10595 = vst [vmem:[#allocation2 + $0x90] sm:$0xff] %v10403_v41   ;;  %v1349_v48 = vadd.s32 %v1348_v49, %v1338_v9  ;;  %v13965_v63 = vadd.f32 %v5839_v60, %v5617_v21  ;;  %v4548_v28 = vadd.f32 %v13849_v52, %v4288_v22  ;;  %v4549_v59 = vadd.f32 %v13877_v20, %v4289_v51  ;;  %v10874_v9 = vld [vmem:[%s15292_s4] ss:$0 sm:$0xff] }
 0x40b   : > { %v6017_v54 = vrot.slane %v15580_v61, 3  ;;  %v6018_v18 = vrot.slane %v15581_v56, 4  ;;  %v15582_v62 = vrot.slane %v13869_v30, 3  ;;  %15583 = vst [vmem:[#allocation27_spill] sm:$0xff] %v13976_v50  ;;  %vm1390_vm14 = vcmp.ne.s32.totalorder %v1324_v1, 0  ;;  %v13980_v60 = vpop.f32.mrf.mxu3  ;;  %8440 = vmatpush.bf16.msra.mxu2 %v10315_v16 }
 0x40c   : > { %vm1426_vm6 = vcmp.lt.s32.totalorder %v1324_v1, 0  ;;  %v1350_v49 = vadd.s32 %v1349_v48, %v1340_v27  ;;  %v1498_v52 = vadd.s32 18, %v1324_v1  ;;  %v13989_v13 = vadd.f32 %v10874_v9, %v4548_v28  ;;  %v15651_v28 = vld [vmem:[#allocation35_spill] sm:$0xff] }
 0x40d   : > { %v5739_v7 = vsel %vm4311_vm5, %v15582_v62, %v5738_v23  ;;  %v13978_v21 = vor.u32 %v6018_v18, %v6017_v54  ;;  %vm13982_vm7 = vmand %vm1426_vm6, %vm1390_vm14  ;;  %v13991_v27 = vadd.f32 %v10874_v9, %v4549_v59  ;;  %v5622_v48 = vadd.f32 %v12712_v43, %v13507_v6 }
 0x40e   : > { %5878 = vmatmul.bf16.gmra.mxu3 %v5739_v7  ;;  %v1351_v20 = vshrl.u32 %v1350_v49, 4  ;;  %v6142_v12 = vpop.f32.mrf.mxu0  ;;  %v1534_v51 = vsel %vm13982_vm7, %v1498_v52, %v1324_v1  ;;  %v15348_v8 = vmax.f32 %v13989_v13, 0.0  ;;  %v5740_v52 = vrot.slane %v13546_v19, 3 }
 0x40f   : > { %v6020_v29 = vsel %vm5976_vm11, %v13911_v26, %v13978_v21  ;;  %v13999_v5 = vadd.f32 %v6142_v12, %v13896_v38  ;;  %v15347_v26 = vmax.f32 %v13991_v27, 0.0  ;;  %vm14016_vm10 = vcmp.lt.s32.totalorder %v1534_v51, 16 }
 0x410   : > { %v1352_v22 = vmul.u32 18, %v1351_v20  ;;  %v14010_v38 = vpop.f32.mrf.mxu1  ;;  %v4660_v30 = vsel %vm14016_vm10, %v15348_v8, 0.0  ;;  %v15591_v12 = vshrl.u32 %v13340_v55, 16  ;;  %v15598_v8 = vshll.u32 %v13453_v53, 16 }
 0x411   : > { %v13993_v41 = vld [vmem:[#allocation2 + $0x8c] sm:$0xff]  ;;  %6176 = vmatmul.bf16.gmra.mxu0 %v6020_v29  ;;  %v4823_v18 = vld [vmem:[#allocation2 + $0x94] sm:$0x7]  ;;  %v14012_v16 = vpop.f32.mrf.mxu2  ;;  %v15592_v29 = vshll.u32 %v13340_v55, 16 }
 0x412   : > { %v1353_v61 = vsub.s32 %v13904_v2, %v1352_v22  ;;  %v15350_v54 = vshrl.u32 %v13993_v41, 16  ;;  %v15349_v56 = vshll.u32 %v13993_v41, 16  ;;  %15586 = vst [vmem:[#allocation46_spill] sm:$0xff] %v14012_v16  ;;  %v4913_v6 = vunpack.c.l.b16 %v4823_v18 }
 0x413   : > { %v5844_v39 = vpop.f32.mrf.mxu3  ;;  %v6021_v22 = vrot.slane %v15591_v12, 3  ;;  %v6022_v51 = vrot.slane %v15592_v29, 4  ;;  %v10616_v12 = vld [vmem:[#allocation2 + $0x18] sm:$0xf0]  ;;  %v10617_v29 = vld [vmem:[#allocation2 + $0x18] sm:$0xe] }
 0x414   : > { %vm1391_vm8 = vcmp.ne.s32.totalorder %v1353_v61, 0  ;;  %vm1427_vm9 = vcmp.lt.s32.totalorder %v1353_v61, 0  ;;  %v1499_v1 = vadd.s32 18, %v1353_v61  ;;  %v5088_v2 = vrot.slane %v15350_v54, 2  ;;  %v10273_v54 = vld [vmem:[#allocation3 + $0x170] sm:$0xff] }
 0x415   : > { %vm1463_vm12 = vmand %vm1427_vm9, %vm1391_vm8  ;;  %v5091_v43 = vrot.slane %v15349_v56, 3  ;;  %v14022_v62 = vadd.f32 %v5844_v39, %v5622_v48  ;;  %v14045_v48 = vpack.c.b16 %v4913_v6, %v4913_v6  ;;  %v5741_v39 = vsel %vm4311_vm5, %v5738_v23, %v5740_v52  ;;  %7379 = vmatpush.bf16.msra.mxu3 %v10273_v54 }
 0x416   : > { %v1535_v59 = vsel %vm1463_vm12, %v1499_v1, %v1353_v61  ;;  %v14029_v20 = vpop.f32.mrf.mxu0  ;;  %v10607_v1 = vld [vmem:[#allocation2 + $0x60] sm:$0xff]   ;;  %v6023_v55 = vor.u32 %v6022_v51, %v6021_v22  ;;  %v5627_v22 = vadd.f32 %v12788_v10, %v13596_v37  ;;  %v15597_v37 = vshrl.u32 %v13453_v53, 16 }
 0x417   : > { %vm14024_vm15 = vcmp.lt.s32.totalorder %v1535_v59, 16  ;;  %v5092_v49 = vor.u32 %v5091_v43, %v5088_v2  ;;  %v10307_v2 = vld [vmem:[#allocation3 + $0x1f8] sm:$0xff]  ;;  %6940 = vmatmul.bf16.gmra.mxu2 %v10607_v1  ;;  %v5098_v6 = vshll.u32 %v14045_v48, 16  ;;  %v6026_v56 = vrot.slane %v15598_v8, 4 }
 0x418   : > { %v4661_v9 = vsel %vm14024_vm15, %v15347_v26, 0.0  ;;  %v14050_v43 = vpop.f32.mrf.mxu1  ;;  %8133 = vmatpush.bf16.msra.mxu1 %v10307_v2  ;;  %v6024_v15 = vsel %vm5976_vm11, %v13978_v21, %v6023_v55  ;;  %v14069_v2 = vld [vmem:[#allocation2 + $0x20] sm:$0xff] }
 0x419   : > { %v10408_v61 = vpack.c.bf16 %v4661_v9, %v4660_v30  ;;  %v5093_v18 = vsel %vm3918_vm4, %v13923_v44, %v5092_v49  ;;  %v14052_v59 = vpop.f32.mrf.mxu2  ;;  %v5095_v44 = vshrl.u32 %v14045_v48, 16  ;;  %v8031_v10 = vrot.slane %v14069_v2, 1 }
 0x41a   : > { %5257 = vmatmul.bf16.gmra.mxu1 %v5093_v18  ;;  %15593 = vst [vmem:[#allocation47_spill] sm:$0xff] %v14052_v59  ;;  %v5100_v18 = vrot.slane %v5098_v6, 3 }
 0x41b   : > { %10596 = vst [vmem:[#allocation2 + $0x98] sm:$0xff] %v10408_v61   ;;  %v14054_v30 = vpop.f32.mrf.mxu3  ;;  %v5097_v61 = vrot.slane %v5095_v44, 2 }
 0x41c   : > { %15594 = vst [vmem:[#allocation48_spill] sm:$0xff] %v14054_v30 }
 0x41d   : > { %v5101_v26 = vor.u32 %v5100_v18, %v5097_v61  ;;  %v10752_v18 = vld [vmem:[#allocation2 + $0x14] sm:$0xff]  }
 0x41e   : > { %5883 = vmatmul.bf16.gmra.mxu3 %v5741_v39  ;;  %v6147_v9 = vpop.f32.mrf.mxu0  ;;  %v14071_v39 = vor.u32 %v10617_v29, %v10616_v12  ;;  %v10638_v12 = vld [vmem:[#allocation2 + $0xc] sm:$0x8]  ;;  %v10750_v29 = vld [vmem:[#allocation2 + $0xc] sm:$0xf0]  }
 0x41f   : > { %v14061_v23 = vadd.f32 %v6147_v9, %v13965_v63  ;;  %v5742_v9 = vrot.slane %v13632_v42, 3  ;;  %v5102_v61 = vsel %vm3918_vm4, %v5092_v49, %v5101_v26  ;;  %v10639_v16 = vor.u32 %v10750_v29, %v10638_v12  ;;  %vm10876_vm4 = vmpackc.low %vm13938_vm13, %vm13886_vm3 }
 0x420   : > { %v14065_v51 = vpop.f32.mrf.mxu1  ;;  %v8030_v6 = vrot.slane %v14071_v39, 1  ;;  %v6419_v49 = vshrl.u32 %v10752_v18, 16 }
 0x421   : > { %6181 = vmatmul.bf16.gmra.mxu0 %v6024_v15  ;;  %v14067_v1 = vpop.f32.mrf.mxu2  ;;  %v6025_v15 = vrot.slane %v15597_v37, 3  ;;  %v5743_v59 = vsel %vm4311_vm5, %v5740_v52, %v5742_v9  ;;  %v6414_v50 = vshll.u32 %v10639_v16, 16  ;;  %v5657_v7 = vadd.f32 %v15651_v28, %v14065_v51 }
 0x422   : > { %15595 = vst [vmem:[#allocation49_spill] sm:$0xff] %v14067_v1  ;;  %v14088_v1 = vld [vmem:[#allocation2 + $0x28] sm:$0xff] }
 0x423   : > { %v5849_v21 = vpop.f32.mrf.mxu3  ;;  %v6027_v8 = vor.u32 %v6026_v56, %v6025_v15  ;;  %v6421_v56 = vrot.slane %v6419_v49, 3  ;;  %v5632_v15 = vadd.f32 %v12863_v17, %v13678_v11  ;;  %v15606_v49 = vshrl.u32 %v13546_v19, 16 }
 0x424   : > { %v14073_v63 = vadd.f32 %v5849_v21, %v5627_v22  ;;  %v14086_v22 = vsel %vm2235_vm1, %v8030_v6, %v8031_v10  ;;  %v10608_v21 = vld [vmem:[#allocation2 + $0x68] sm:$0xff]   ;;  %v6422_v6 = vshll.u32 %v10752_v18, 16  ;;  %v6416_v18 = vrot.slane %v6414_v50, 4 }
 0x425   : > { %15599 = vst [vmem:[#allocation51_spill] sm:$0xff] %v14086_v22  ;;  %v6411_v22 = vshrl.u32 %v10639_v16, 16  ;;  %v6028_v52 = vsel %vm5976_vm11, %v6023_v55, %v6027_v8  ;;  %v15607_v17 = vshll.u32 %v13546_v19, 16 }
 0x426   : > { %v14076_v44 = vpop.f32.mrf.mxu0 }
 0x427   : > { %15596 = vst [vmem:[#allocation50_spill] sm:$0xff] %v14076_v44  ;;  %6945 = vmatmul.bf16.gmra.mxu2 %v10608_v21  ;;  %v6413_v54 = vrot.slane %v6411_v22, 3  ;;  %v6030_v11 = vrot.slane %v15607_v17, 4  ;;  %v10754_v22 = vld [vmem:[#allocation2 + $0x1c] sm:$0xff]   ;;  %v10758_v44 = vld [vmem:[#allocation2 + $0x2c] sm:$0xff]  }
 0x428   : > { %v14091_v37 = vpop.f32.mrf.mxu1  ;;  %v6428_v19 = vshrl.u32 %v10754_v22, 16 }
 0x429   : > { %v14093_v53 = vpop.f32.mrf.mxu2 }
 0x42a   : > { %5262 = vmatmul.bf16.gmra.mxu1 %v5102_v61  ;;  %15600 = vst [vmem:[#allocation52_spill] sm:$0xff] %v14093_v53  ;;  %v8033_v61 = vrot.slane %v14088_v1, 1 }
 0x42b   : > { %v14095_v26 = vpop.f32.mrf.mxu3 }
 0x42c   : > { %15601 = vst [vmem:[#allocation53_spill] sm:$0xff] %v14095_v26  ;;  %v14103_v29 = vsel %vm2235_vm1, %v8031_v10, %v8033_v61 }
 0x42d   : > { %15603 = vst [vmem:[#allocation55_spill] sm:$0xff] %v14103_v29 }
 0x42e   : > { %5888 = vmatmul.bf16.gmra.mxu3 %v5743_v59  ;;  %v6152_v30 = vpop.f32.mrf.mxu0  ;;  %v6424_v59 = vrot.slane %v6422_v6, 4  ;;  %v6029_v6 = vrot.slane %v15606_v49, 3 }
 0x42f   : > { %v14100_v12 = vadd.f32 %v6152_v30, %v14022_v62  ;;  %v6417_v62 = vor.u32 %v6416_v18, %v6413_v54  ;;  %v5744_v30 = vrot.slane %v13721_v36, 3  ;;  %v10306_v18 = vld [vmem:[#allocation3 + $0x1f0] sm:$0xff] }
 0x430   : > { %v14107_v21 = vpop.f32.mrf.mxu1  ;;  %v6425_v55 = vor.u32 %v6424_v59, %v6421_v56  ;;  %v10609_v56 = vld [vmem:[#allocation2 + $0x70] sm:$0xff]   ;;  %v10298_v59 = vld [vmem:[#allocation3 + $0x1b0] sm:$0xff]  ;;  %v6031_v49 = vor.u32 %v6030_v11, %v6029_v6  ;;  %8134 = vmatpush.bf16.msra.mxu1 %v10306_v18 }
 0x431   : > { %15602 = vst [vmem:[#allocation54_spill] sm:$0xff] %v14100_v12  ;;  %6186 = vmatmul.bf16.gmra.mxu0 %v6028_v52  ;;  %v14109_v16 = vpop.f32.mrf.mxu2  ;;  %v14121_v52 = vld [vmem:[#allocation2 + $0x30] sm:$0xff] }
 0x432   : > { %15604 = vst [vmem:[#allocation56_spill] sm:$0xff] %v14109_v16  ;;  %v6426_v50 = vsel %vm5976_vm11, %v6417_v62, %v6425_v55  ;;  %v6431_v62 = vshll.u32 %v10754_v22, 16  ;;  %7875 = vmatpush.bf16.msra.mxu0 %v10298_v59  ;;  %v6032_v16 = vsel %vm5976_vm11, %v6027_v8, %v6031_v49  ;;  %v5637_v22 = vadd.f32 %v12935_v25, %v13775_v40  ;;  %v14152_v25 = vld [vmem:[#allocation2 + $0x38] sm:$0xff] }
 0x433   : > { %v5854_v53 = vpop.f32.mrf.mxu3 }
 0x434   : > { %v14111_v26 = vadd.f32 %v5854_v53, %v5632_v15  ;;  %v10314_v53 = vld [vmem:[#allocation3 + $0x230] sm:$0xff]  ;;  %v5745_v15 = vsel %vm4311_vm5, %v5742_v9, %v5744_v30  ;;  %v6433_v6 = vrot.slane %v6431_v62, 4  ;;  %v15614_v62 = vshll.u32 %v13632_v42, 16 }
 0x435   : > { %8441 = vmatpush.bf16.msra.mxu2 %v10314_v53 }
 0x436   : > { %v14114_v10 = vpop.f32.mrf.mxu0 }
 0x437   : > { %15605 = vst [vmem:[#allocation57_spill] sm:$0xff] %v14114_v10  ;;  %6950 = vmatmul.bf16.gmra.mxu2 %v10609_v56  ;;  %v6430_v56 = vrot.slane %v6428_v19, 3 }
 0x438   : > { %v14128_v17 = vpop.f32.mrf.mxu1 }
 0x439   : > { %v14124_v54 = vpop.f32.mrf.mxu2 }
 0x43a   : > { %6654 = vmatmul.bf16.vlgmr.msrb.gmra.mxu1 %v6426_v50  ;;  %15608 = vst [vmem:[#allocation58_spill] sm:$0xff] %v14124_v54  ;;  %v8035_v50 = vrot.slane %v14121_v52, 1 }
 0x43b   : > { %v14126_v29 = vpop.f32.mrf.mxu3 }
 0x43c   : > { %15609 = vst [vmem:[#allocation59_spill] sm:$0xff] %v14126_v29  ;;  %v14133_v54 = vsel %vm2235_vm1, %v8033_v61, %v8035_v50  ;;  %v5746_v61 = vrot.slane %v13802_v24, 3  ;;  %v10272_v29 = vld [vmem:[#allocation3 + $0x168] sm:$0xff] }
 0x43d   : > { %15610 = vst [vmem:[#allocation60_spill] sm:$0xff] %v14133_v54  ;;  %v10756_v54 = vld [vmem:[#allocation2 + $0x24] sm:$0xff]   ;;  %7380 = vmatpush.bf16.msra.mxu3 %v10272_v29 }
 0x43e   : > { %5893 = vmatmul.bf16.gmra.mxu3 %v5745_v15  ;;  %v6434_v15 = vor.u32 %v6433_v6, %v6430_v56  ;;  %v10610_v56 = vld [vmem:[#allocation2 + $0x78] sm:$0xff]   ;;  %v5747_v6 = vsel %vm4311_vm5, %v5744_v30, %v5746_v61 }
 0x440   : > { %v6157_v9 = vpop.f32.mrf.mxu0 }
 0x441   : > { %6191 = vmatmul.bf16.gmra.mxu0 %v6032_v16  ;;  %v14136_v11 = vadd.f32 %v6157_v9, %v14073_v63  ;;  %v14140_v53 = vpop.f32.mrf.mxu2  ;;  %v15613_v16 = vshrl.u32 %v13632_v42, 16  ;;  %v6034_v63 = vrot.slane %v15614_v62, 4  ;;  %v6435_v9 = vsel %vm5976_vm11, %v6425_v55, %v6434_v15 }
 0x442   : > { %15612 = vst [vmem:[#allocation62_spill] sm:$0xff] %v14140_v53  ;;  %v8037_v42 = vrot.slane %v14152_v25, 1  ;;  %v6437_v62 = vshrl.u32 %v10756_v54, 16  ;;  %v6440_v55 = vshll.u32 %v10756_v54, 16  ;;  %v5748_v53 = vrot.slane %v13892_v31, 3  ;;  %v15618_v54 = vld [vmem:[#allocation10_spill] sm:$0xff] }
 0x443   : > { %15611 = vst [vmem:[#allocation61_spill] sm:$0xff] %v14136_v11  ;;  %v5859_v59 = vpop.f32.mrf.mxu3  ;;  %v6033_v19 = vrot.slane %v15613_v16, 3 }
 0x444   : > { %v14142_v18 = vadd.f32 %v5859_v59, %v5637_v22  ;;  %v14144_v8 = vpop.f32.mrf.mxu1 }
 0x445   : > { %v6035_v59 = vor.u32 %v6034_v63, %v6033_v19  ;;  %v6439_v63 = vrot.slane %v6437_v62, 3  ;;  %v15622_v62 = vshll.u32 %v13721_v36, 16 }
 0x447   : > { %6955 = vmatmul.bf16.gmra.mxu2 %v10610_v56  ;;  %v14168_v56 = vsel %vm2235_vm1, %v8035_v50, %v8037_v42  ;;  %v6036_v19 = vsel %vm5976_vm11, %v6031_v49, %v6035_v59  ;;  %v15621_v49 = vshrl.u32 %v13721_v36, 16 }
 0x448   : > { %v14154_v40 = vpop.f32.mrf.mxu0  ;;  %15617 = vst [vmem:[#allocation65_spill] sm:$0xff] %v14168_v56 }
 0x449   : > { %15615 = vst [vmem:[#allocation63_spill] sm:$0xff] %v14154_v40  ;;  %v14157_v22 = vpop.f32.mrf.mxu2  ;;  %v5642_v40 = vadd.f32 %v15618_v54, %v13857_v14  ;;  %v14187_v14 = vld [vmem:[#allocation2 + $0x40] sm:$0xff] }
 0x44a   : > { %6659 = vmatmul.bf16.gmra.mxu1 %v6435_v9  ;;  %15616 = vst [vmem:[#allocation64_spill] sm:$0xff] %v14157_v22  ;;  %v15351_v9 = vrot.slane %v13993_v41, 3  ;;  %v10611_v54 = vld [vmem:[#allocation2 + $0x80] sm:$0xff]  }
 0x44b   : > { %v14159_v16 = vpop.f32.mrf.mxu3 }
 0x44c   : > { %v5751_v30 = vsel %vm4311_vm5, %v5748_v53, %v15351_v9  ;;  %v14171_v22 = vpop.f32.mrf.mxu1 }
 0x44e   : > { %5898 = vmatmul.bf16.gmra.mxu3 %v5747_v6  ;;  %v6442_v6 = vrot.slane %v6440_v55, 4  ;;  %v6038_v55 = vrot.slane %v15622_v62, 4 }
 0x450   : > { %v6443_v12 = vor.u32 %v6442_v6, %v6439_v63  ;;  %v10297_v63 = vld [vmem:[#allocation3 + $0x1a8] sm:$0xff] }
 0x451   : > { %6196 = vmatmul.bf16.gmra.mxu0 %v6036_v19  ;;  %v14175_v11 = vpop.f32.mrf.mxu2  ;;  %v6037_v19 = vrot.slane %v15621_v49, 3  ;;  %v6449_v49 = vshll.u32 %v10758_v44, 16 }
 0x452   : > { %15619 = vst [vmem:[#allocation10_spill] sm:$0xff] %v14175_v11  ;;  %v6444_v56 = vsel %vm5976_vm11, %v6434_v15, %v6443_v12  ;;  %v10313_v11 = vld [vmem:[#allocation3 + $0x228] sm:$0xff]  ;;  %v8039_v15 = vrot.slane %v14187_v14, 1  ;;  %7876 = vmatpush.bf16.msra.mxu0 %v10297_v63  ;;  %v15628_v63 = vld [vmem:[#allocation11_spill] sm:$0xff] }
 0x453   : > { %v5864_v10 = vpop.f32.mrf.mxu3  ;;  %v6039_v36 = vor.u32 %v6038_v55, %v6037_v19  ;;  %8442 = vmatpush.bf16.msra.mxu2 %v10313_v11  ;;  %v10271_v19 = vld [vmem:[#allocation3 + $0x160] sm:$0xff] }
 0x454   : > { %v14180_v50 = vadd.f32 %v5864_v10, %v5642_v40  ;;  %v10305_v40 = vld [vmem:[#allocation3 + $0x1e8] sm:$0xff]  ;;  %7381 = vmatpush.bf16.msra.mxu3 %v10271_v19  ;;  %v10270_v19 = vld [vmem:[#allocation3 + $0x158] sm:$0xff] }
 0x455   : > { %v6162_v29 = vpop.f32.mrf.mxu0  ;;  %8135 = vmatpush.bf16.msra.mxu1 %v10305_v40 }
 0x456   : > { %v14178_v9 = vadd.f32 %v6162_v29, %v14111_v26  ;;  %v5749_v26 = vsel %vm4311_vm5, %v5746_v61, %v5748_v53  ;;  %v6446_v29 = vshrl.u32 %v10758_v44, 16  ;;  %v6040_v53 = vsel %vm5976_vm11, %v6035_v59, %v6039_v36 }
 0x457   : > { %6960 = vmatmul.bf16.gmra.mxu2 %v10611_v54  ;;  %v6451_v54 = vrot.slane %v6449_v49, 4  ;;  %v10760_v49 = vld [vmem:[#allocation2 + $0x34] sm:$0xff]  }
 0x458   : > { %15620 = vst [vmem:[#allocation66_spill] sm:$0xff] %v14178_v9  ;;  %v14189_v6 = vpop.f32.mrf.mxu1  ;;  %v6448_v61 = vrot.slane %v6446_v29, 3  ;;  %7382 = vmatpush.bf16.msra.mxu3 %v10270_v19 }
 0x459   : > { %v14192_v10 = vpop.f32.mrf.mxu2 }
 0x45a   : > { %6664 = vmatmul.bf16.gmra.mxu1 %v6444_v56  ;;  %15623 = vst [vmem:[#allocation67_spill] sm:$0xff] %v14192_v10  ;;  %v14196_v56 = vsel %vm2235_vm1, %v8037_v42, %v8039_v15  ;;  %v6452_v55 = vor.u32 %v6451_v54, %v6448_v61  ;;  %v5647_v42 = vadd.f32 %v15628_v63, %v13928_v3  ;;  %v10612_v3 = vld [vmem:[#allocation2 + $0x88] sm:$0xff]  }
 0x45b   : > { %15624 = vst [vmem:[#allocation68_spill] sm:$0xff] %v14196_v56  ;;  %v14200_v9 = vpop.f32.mrf.mxu3  ;;  %v15630_v56 = vshll.u32 %v13802_v24, 16 }
 0x45c   : > { %v6453_v59 = vsel %vm5976_vm11, %v6443_v12, %v6452_v55 }
 0x45d   : > { %v14198_v62 = vpop.f32.mrf.mxu0  ;;  %v6042_v10 = vrot.slane %v15630_v56, 4  ;;  %v6455_v56 = vshrl.u32 %v10760_v49, 16 }
 0x45e   : > { %5903 = vmatmul.bf16.gmra.mxu3 %v5749_v26  ;;  %15625 = vst [vmem:[#allocation69_spill] sm:$0xff] %v14198_v62  ;;  %v15629_v26 = vshrl.u32 %v13802_v24, 16  ;;  %v14214_v62 = vld [vmem:[#allocation2 + $0x48] sm:$0xff] }
 0x45f   : > { %v8041_v12 = vrot.slane %v14214_v62, 1 }
 0x460   : > { %v14205_v44 = vpop.f32.mrf.mxu1  ;;  %v6041_v40 = vrot.slane %v15629_v26, 3  ;;  %v6458_v26 = vshll.u32 %v10760_v49, 16  ;;  %v10268_v49 = vld [vmem:[#allocation3 + $0x148] sm:$0xff] }
 0x461   : > { %6201 = vmatmul.bf16.gmra.mxu0 %v6040_v53  ;;  %v14203_v11 = vpop.f32.mrf.mxu2  ;;  %15627 = vst [vmem:[#allocation71_spill] sm:$0xff] %v14205_v44 }
 0x462   : > { %15626 = vst [vmem:[#allocation70_spill] sm:$0xff] %v14203_v11  ;;  %v6043_v24 = vor.u32 %v6042_v10, %v6041_v40  ;;  %v10269_v11 = vld [vmem:[#allocation3 + $0x150] sm:$0xff]  ;;  %v6460_v10 = vrot.slane %v6458_v26, 4  ;;  %v10267_v26 = vld [vmem:[#allocation3 + $0x140] sm:$0xff] }
 0x463   : > { %7383 = vmatpush.bf16.msra.mxu3 %v10269_v11 }
 0x467   : > { %6965 = vmatmul.bf16.gmra.mxu2 %v10612_v3  ;;  %7384 = vmatpush.bf16.msra.mxu3 %v10268_v49 }
 0x469   : > { %v14221_v63 = vpop.f32.mrf.mxu2 }
 0x46a   : > { %v5869_v53 = vpop.f32.mrf.mxu3  ;;  %6669 = vmatmul.bf16.gmra.mxu1 %v6453_v59  ;;  %15631 = vst [vmem:[#allocation11_spill] sm:$0xff] %v14221_v63  ;;  %v15632_v59 = vld [vmem:[#allocation9_spill] sm:$0xff]  ;;  %v15647_v63 = vshll.u32 %v13993_v41, 16 }
 0x46b   : > { %v6167_v29 = vpop.f32.mrf.mxu0  ;;  %v14219_v54 = vadd.f32 %v5869_v53, %v5647_v42  ;;  %v5639_v44 = vadd.f32 %v15632_v59, %v13819_v46  ;;  %v6044_v53 = vsel %vm5976_vm11, %v6039_v36, %v6043_v24  ;;  %v5752_v59 = vrot.slane %v14045_v48, 3  ;;  %7385 = vmatpush.bf16.msra.mxu3 %v10267_v26 }
 0x46c   : > { %v14217_v61 = vadd.f32 %v6167_v29, %v14142_v18  ;;  %v14227_v18 = vsel %vm2235_vm1, %v8039_v15, %v8041_v12  ;;  %v14229_v42 = vpop.f32.mrf.mxu1  ;;  %v15636_v36 = vshll.u32 %v13892_v31, 16  ;;  %v15638_v48 = vrot.slane %v13993_v41, 3 }
 0x46d   : > { %15633 = vst [vmem:[#allocation9_spill] sm:$0xff] %v14227_v18  ;;  %v5932_v29 = vadd.f32 %v14159_v16, %v5639_v44  ;;  %v15635_v16 = vshrl.u32 %v13892_v31, 16  ;;  %v15640_v31 = vmax.f32 %v13855_v32, 0.0 }
 0x46e   : > { %5908 = vmatmul.bf16.gmra.mxu3 %v5751_v30  ;;  %v6457_v30 = vrot.slane %v6455_v56, 3  ;;  %v6046_v56 = vrot.slane %v15636_v36, 4  ;;  %v5753_v49 = vsel %vm4311_vm5, %v15638_v48, %v5752_v59  ;;  %vm10879_vm5 = vmpackc.low %vm14024_vm15, %vm14016_vm10 }
 0x46f   : > { %v6045_v44 = vrot.slane %v15635_v16, 3 }
 0x470   : > { %v6461_v15 = vor.u32 %v6460_v10, %v6457_v30  ;;  %v15637_v30 = vld [vmem:[#allocation13_spill] sm:$0xff] }
 0x471   : > { %6206 = vmatmul.bf16.gmra.mxu0 %v6044_v53  ;;  %v14237_v46 = vpop.f32.mrf.mxu2  ;;  %v5652_v10 = vadd.f32 %v15637_v30, %v14010_v38  ;;  %v14264_v26 = vor.u32 %v6046_v56, %v6045_v44  ;;  %v10312_v56 = vld [vmem:[#allocation3 + $0x220] sm:$0xff] }
 0x472   : > { %v14235_v19 = vpop.f32.mrf.mxu3  ;;  %15634 = vst [vmem:[#allocation72_spill] sm:$0xff] %v14237_v46  ;;  %v6462_v11 = vsel %vm5976_vm11, %v6452_v55, %v6461_v15  ;;  %v15641_v55 = vmax.f32 %v13863_v47, 0.0  ;;  %8443 = vmatpush.bf16.msra.mxu2 %v10312_v56 }
 0x473   : > { %v6169_v40 = vpop.f32.mrf.mxu0  ;;  %v6048_v44 = vsel %vm5976_vm11, %v6043_v24, %v14264_v26 }
 0x474   : > { %v14233_v3 = vadd.f32 %v6169_v40, %v5932_v29  ;;  %v14245_v53 = vpop.f32.mrf.mxu1  ;;  %v10762_v29 = vld [vmem:[#allocation2 + $0x3c] sm:$0xff]   ;;  %v14247_v40 = vld [vmem:[#allocation2 + $0x50] sm:$0xff]  ;;  %v10877_v36 = vpack.c.bf16 %v15641_v55, %v15640_v31  ;;  %v7167_v55 = vshll.u32 %v10249_v45, 16 }
 0x475   : > { %v6464_v59 = vshrl.u32 %v10762_v29, 16  ;;  %v6467_v30 = vshll.u32 %v10762_v29, 16  ;;  %v10304_v29 = vld [vmem:[#allocation3 + $0x1e0] sm:$0xff] }
 0x476   : > { %8136 = vmatpush.bf16.msra.mxu1 %v10304_v29  ;;  %v10764_v29 = vld [vmem:[#allocation2 + $0x44] sm:$0xff]  }
 0x477   : > { %10878 = vmatmul.msk.bf16.gmra.mxu2 %vm10876_vm4, %v10877_v36  ;;  %v6469_v31 = vrot.slane %v6467_v30, 4 }
 0x479   : > { %v14254_v16 = vpop.f32.mrf.mxu2 }
 0x47a   : > { %6674 = vmatmul.bf16.gmra.mxu1 %v6462_v11  ;;  %15639 = vst [vmem:[#allocation13_spill] sm:$0xff] %v14254_v16  ;;  %v15352_v11 = vrot.slane %v14247_v40, 1 }
 0x47b   : > { %v5874_v38 = vpop.f32.mrf.mxu3 }
 0x47c   : > { %v14267_v48 = vadd.f32 %v5874_v38, %v5652_v10  ;;  %v14272_v32 = vsel %vm2235_vm1, %v8041_v12, %v15352_v11  ;;  %v6466_v10 = vrot.slane %v6464_v59, 3  ;;  %v15643_v12 = vld [vmem:[#allocation34_spill] sm:$0xff]  ;;  %v7169_v59 = vrot.slane %v7167_v55, 1  ;;  %v10295_v55 = vld [vmem:[#allocation3 + $0x198] sm:$0xff] }
 0x47d   : > { %15642 = vst [vmem:[#allocation73_spill] sm:$0xff] %v14272_v32  ;;  %v5644_v36 = vadd.f32 %v15643_v12, %v13898_v57  ;;  %v15646_v57 = vshrl.u32 %v13993_v41, 16  ;;  %v15649_v41 = vmax.f32 %v13989_v13, 0.0 }
 0x47e   : > { %5913 = vmatmul.bf16.gmra.mxu3 %v5753_v49  ;;  %v6172_v16 = vpop.f32.mrf.mxu0  ;;  %v10296_v49 = vld [vmem:[#allocation3 + $0x1a0] sm:$0xff]  ;;  %v14289_v11 = vor.u32 %v6469_v31, %v6466_v10  ;;  %v5955_v31 = vld [vmem:[#allocation2 + $0x94] sm:$0xf] }
 0x47f   : > { %v14275_v47 = vadd.f32 %v6172_v16, %v14180_v50  ;;  %7877 = vmatpush.bf16.msra.mxu0 %v10296_v49  ;;  %v7172_v50 = vshll.u32 %v14277_v35, 16  ;;  %v5934_v24 = vadd.f32 %v14200_v9, %v5644_v36  ;;  %v7165_v49 = vshrl.u32 %v10249_v45, 16  ;;  %v10311_v36 = vld [vmem:[#allocation3 + $0x218] sm:$0xff] }
 0x480   : > { %v6049_v12 = vrot.slane %v15646_v57, 3  ;;  %v6471_v9 = vsel %vm5976_vm11, %v6461_v15, %v14289_v11  ;;  %v6476_v57 = vshll.u32 %v10764_v29, 16  ;;  %8444 = vmatpush.bf16.msra.mxu2 %v10311_v36  ;;  %v10310_v36 = vld [vmem:[#allocation3 + $0x210] sm:$0xff] }
 0x481   : > { %6211 = vmatmul.bf16.gmra.mxu0 %v6048_v44  ;;  %v14283_v38 = vpop.f32.mrf.mxu1  ;;  %v14286_v16 = vpop.f32.mrf.mxu2  ;;  %v14295_v46 = vrot.slane %v7172_v50, 1  ;;  %v7170_v10 = vor.u32 %v7169_v59, %v7165_v49  ;;  %v5974_v59 = vunpack.c.l.b16 %v5955_v31  ;;  %v6473_v49 = vshrl.u32 %v10764_v29, 16 }
 0x482   : > { %15644 = vst [vmem:[#allocation34_spill] sm:$0xff] %v14286_v16  ;;  %v6050_v16 = vrot.slane %v15647_v63, 4  ;;  %v15650_v63 = vmax.f32 %v13991_v27, 0.0 }
 0x483   : > { %v14291_v44 = vpop.f32.mrf.mxu3  ;;  %v7175_v45 = vsel %vm1735_vm0, %v7170_v10, %v14295_v46  ;;  %7878 = vmatpush.bf16.msra.mxu0 %v10295_v55  ;;  %v14321_v10 = vld [vmem:[#allocation2 + $0x58] sm:$0xff]  ;;  %v5975_v29 = vpack.c.b16 %v5974_v59, %v5974_v59  ;;  %v6475_v51 = vrot.slane %v6473_v49, 3  ;;  %v8290_v49 = vshrl.u32 %v14071_v39, 16 }
 0x484   : > { %v10880_v15 = vpack.c.bf16 %v15650_v63, %v15649_v41  ;;  %v10294_v55 = vld [vmem:[#allocation3 + $0x190] sm:$0xff]  ;;  %8445 = vmatpush.bf16.msra.mxu2 %v10310_v36  ;;  %v10293_v63 = vld [vmem:[#allocation3 + $0x188] sm:$0xff]  ;;  %v8045_v28 = vrot.slane %v14321_v10, 1 }
 0x486   : > { %v6174_v30 = vpop.f32.mrf.mxu0 }
 0x487   : > { %v14293_v56 = vadd.f32 %v6174_v30, %v5934_v24  ;;  %10881 = vmatmul.msk.bf16.gmra.mxu2 %vm10879_vm5, %v10880_v15  ;;  %v14315_v24 = vor.u32 %v6050_v16, %v6049_v12  ;;  %v14326_v16 = vld [vmem:[#allocation2 + $0x20] sm:$0xff]  ;;  %7879 = vmatpush.bf16.msra.mxu0 %v10294_v55  ;;  %v10309_v15 = vld [vmem:[#allocation3 + $0x208] sm:$0xff]  ;;  %v15655_v55 = vrot.slane %v14247_v40, 1 }
 0x488   : > { %v7180_v59 = vshll.u32 %v14326_v16, 16  ;;  %8446 = vmatpush.bf16.msra.mxu2 %v10309_v15 }
 0x489   : > { %15645 = vst [vmem:[#allocation74_spill] sm:$0xff] %v14293_v56  ;;  %v14305_v50 = vpop.f32.mrf.mxu2  ;;  %v14317_v30 = vpop.f32.mrf.mxu1  ;;  %v6052_v12 = vsel %vm5976_vm11, %v14264_v26, %v14315_v24  ;;  %v15653_v26 = vld [vmem:[#allocation12_spill] sm:$0xff]  ;;  %v14346_v36 = vsel %vm2235_vm1, %v15655_v55, %v8045_v28 }
 0x48a   : > { %6679 = vmatmul.bf16.gmra.mxu1 %v6471_v9  ;;  %15648 = vst [vmem:[#allocation75_spill] sm:$0xff] %v14305_v50  ;;  %v14366_v56 = vld [vmem:[#allocation2 + $0x60] sm:$0xff] }
 0x48b   : > { %15656 = vst [vmem:[#allocation76_spill] sm:$0xff] %v14346_v36  ;;  %7880 = vmatpush.bf16.msra.mxu0 %v10293_v63 }
 0x48e   : > { %7386 = vmatmul.bf16.vlgmr.msra.gmra.mxu3 %v7175_v45  ;;  %v6177_v9 = vpop.f32.mrf.mxu0  ;;  %v6478_v45 = vrot.slane %v6476_v57, 4  ;;  %v8293_v57 = vshll.u32 %v14071_v39, 16  ;;  %v7176_v39 = vshrl.u32 %v14277_v35, 16  ;;  %v10766_v35 = vld [vmem:[#allocation2 + $0x4c] sm:$0xff]  }
 0x48f   : > { %v14324_v13 = vadd.f32 %v6177_v9, %v14219_v54 }
 0x490   : > { %v14349_v54 = vor.u32 %v6478_v45, %v6475_v51  ;;  %v8292_v51 = vrot.slane %v8290_v49, 1  ;;  %v8295_v45 = vrot.slane %v8293_v57, 2  ;;  %v7178_v63 = vor.u32 %v7176_v39, %v14295_v46  ;;  %v15660_v46 = vld [vmem:[#allocation15_spill] sm:$0xff] }
 0x491   : > { %15652 = vst [vmem:[#allocation35_spill] sm:$0xff] %v14324_v13  ;;  %v5879_v27 = vpop.f32.mrf.mxu3  ;;  %6216 = vmatmul.bf16.gmra.mxu0 %v6052_v12  ;;  %v14339_v9 = vpop.f32.mrf.mxu2  ;;  %v6057_v12 = vshll.u32 %v5975_v29, 16  ;;  %v10308_v13 = vld [vmem:[#allocation3 + $0x200] sm:$0xff]  ;;  %v8047_v57 = vrot.slane %v14366_v56, 1 }
 0x492   : > { %v14331_v31 = vadd.f32 %v5879_v27, %v5657_v7  ;;  %v5649_v7 = vadd.f32 %v15653_v26, %v13974_v4  ;;  %15654 = vst [vmem:[#allocation12_spill] sm:$0xff] %v14339_v9  ;;  %v6054_v27 = vshrl.u32 %v5975_v29, 16  ;;  %v15657_v4 = vshrl.u32 %v14069_v2, 16  ;;  %8447 = vmatpush.bf16.msra.mxu2 %v10308_v13 }
 0x493   : > { %v15658_v9 = vshll.u32 %v14069_v2, 16  ;;  %v6059_v36 = vrot.slane %v6057_v12, 4  ;;  %v14376_v39 = vsel %vm2235_vm1, %v8045_v28, %v8047_v57  ;;  %v15353_v28 = vshrl.u32 %v14088_v1, 16 }
 0x494   : > { %v5936_v41 = vadd.f32 %v14235_v19, %v5649_v7  ;;  %v8297_v26 = vrot.slane %v15657_v4, 1  ;;  %v7182_v19 = vrot.slane %v7180_v59, 1  ;;  %v6056_v7 = vrot.slane %v6054_v27, 3  ;;  %v10292_v4 = vld [vmem:[#allocation3 + $0x180] sm:$0xff]  ;;  %15661 = vst [vmem:[#allocation15_spill] sm:$0xff] %v14376_v39 }
 0x495   : > { %v8298_v50 = vrot.slane %v15658_v9, 2  ;;  %v6480_v9 = vsel %vm5976_vm11, %v14289_v11, %v14349_v54  ;;  %7881 = vmatpush.bf16.msra.mxu0 %v10292_v4  ;;  %v8296_v59 = vor.u32 %v8295_v45, %v8292_v51  ;;  %v6482_v27 = vshrl.u32 %v10766_v35, 16  ;;  %v14383_v51 = vld [vmem:[#allocation2 + $0x28] sm:$0xff] }
 0x496   : > { %v6179_v32 = vpop.f32.mrf.mxu0  ;;  %v6060_v49 = vor.u32 %v6059_v36, %v6056_v7  ;;  %v6485_v11 = vshll.u32 %v10766_v35, 16  ;;  %v15354_v35 = vshll.u32 %v14088_v1, 16 }
 0x497   : > { %v14356_v29 = vpop.f32.mrf.mxu1  ;;  %v14358_v18 = vadd.f32 %v6179_v32, %v5936_v41  ;;  %v8299_v15 = vor.u32 %v8298_v50, %v8297_v26  ;;  %v7183_v32 = vsel %vm1735_vm0, %v7178_v63, %v7182_v19  ;;  %v5662_v50 = vadd.f32 %v15660_v46, %v14107_v21  ;;  %v15662_v63 = vld [vmem:[#allocation14_spill] sm:$0xff] }
 0x498   : > { %v6061_v45 = vsel %vm5976_vm11, %v14315_v24, %v6060_v49  ;;  %v6484_v21 = vrot.slane %v6482_v27, 3  ;;  %v8301_v49 = vrot.slane %v15353_v28, 1  ;;  %v8302_v27 = vrot.slane %v15354_v35, 2  ;;  %v14410_v28 = vld [vmem:[#allocation2 + $0x68] sm:$0xff] }
 0x499   : > { %v14360_v55 = vpop.f32.mrf.mxu3  ;;  %v14369_v41 = vpop.f32.mrf.mxu2  ;;  %v8300_v12 = vsel %vm2880_vm2, %v8296_v59, %v8299_v15  ;;  %v10615_v59 = vld [vmem:[#allocation2 + $0x18] sm:$0xff]  }
 0x49a   : > { %6684 = vmatmul.bf16.gmra.mxu1 %v6480_v9  ;;  %15659 = vst [vmem:[#allocation77_spill] sm:$0xff] %v14369_v41  ;;  %8448 = vmatmul.bf16.vlgmr.msra.gmra.mxu2 %v8300_v12  ;;  %v6487_v9 = vrot.slane %v6485_v11, 4 }
 0x49c   : > { %v6488_v24 = vor.u32 %v6487_v9, %v6484_v21  ;;  %v10768_v21 = vld [vmem:[#allocation2 + $0x54] sm:$0xff]  }
 0x49e   : > { %7391 = vmatmul.bf16.gmra.mxu3 %v7183_v32  ;;  %v6182_v26 = vpop.f32.mrf.mxu0  ;;  %v5654_v32 = vadd.f32 %v15662_v63, %v14050_v43 }
 0x49f   : > { %v14378_v4 = vpop.f32.mrf.mxu1  ;;  %v14381_v13 = vadd.f32 %v6182_v26, %v14267_v48  ;;  %v7188_v48 = vshll.u32 %v14383_v51, 16 }
 0x4a0   : > { %v5938_v46 = vadd.f32 %v14291_v44, %v5654_v32  ;;  %v6489_v44 = vsel %vm5976_vm11, %v14349_v54, %v6488_v24  ;;  %v8303_v32 = vor.u32 %v8302_v27, %v8301_v49  ;;  %v6494_v54 = vshll.u32 %v10768_v21, 16  ;;  %v15665_v49 = vld [vmem:[#allocation18_spill] sm:$0xff] }
 0x4a1   : > { %v5884_v36 = vpop.f32.mrf.mxu3  ;;  %6221 = vmatmul.bf16.gmra.mxu0 %v6061_v45  ;;  %v14394_v12 = vpop.f32.mrf.mxu2  ;;  %v7184_v45 = vshrl.u32 %v14326_v16, 16  ;;  %v7190_v63 = vrot.slane %v7188_v48, 1  ;;  %v8049_v16 = vrot.slane %v14410_v28, 1  ;;  %v6491_v48 = vshrl.u32 %v10768_v21, 16  ;;  %v14429_v21 = vld [vmem:[#allocation2 + $0x30] sm:$0xff] }
 0x4a2   : > { %v14387_v7 = vadd.f32 %v5884_v36, %v5662_v50  ;;  %15663 = vst [vmem:[#allocation14_spill] sm:$0xff] %v14394_v12  ;;  %v7663_v50 = vshll.u32 %v10615_v59, 16  ;;  %v10303_v12 = vld [vmem:[#allocation3 + $0x1d8] sm:$0xff]  ;;  %v5667_v27 = vadd.f32 %v15665_v49, %v14144_v8 }
 0x4a3   : > { %v7186_v9 = vor.u32 %v7184_v45, %v7182_v19  ;;  %8137 = vmatpush.bf16.msra.mxu1 %v10303_v12  ;;  %v8304_v19 = vsel %vm2880_vm2, %v8299_v15, %v8303_v32  ;;  %v6493_v8 = vrot.slane %v6491_v48, 3 }
 0x4a4   : > { %v7665_v35 = vrot.slane %v7663_v50, 1 }
 0x4a5   : > { %v7191_v41 = vsel %vm1735_vm0, %v7186_v9, %v7190_v63 }
 0x4a6   : > { %v6184_v11 = vpop.f32.mrf.mxu0 }
 0x4a7   : > { %v14401_v26 = vpop.f32.mrf.mxu1  ;;  %v14403_v36 = vadd.f32 %v6184_v11, %v5938_v46  ;;  %v7661_v46 = vshrl.u32 %v10615_v59, 16  ;;  %v15664_v11 = vshll.u32 %v14069_v2, 16 }
 0x4a9   : > { %v14405_v43 = vpop.f32.mrf.mxu3  ;;  %v7670_v39 = vrot.slane %v15664_v11, 1  ;;  %v7666_v50 = vor.u32 %v7665_v35, %v7661_v46  ;;  %v6496_v35 = vrot.slane %v6494_v54, 4  ;;  %v15356_v46 = vshll.u32 %v14121_v52, 16 }
 0x4aa   : > { %6689 = vmatmul.bf16.gmra.mxu1 %v6489_v44  ;;  %v14419_v44 = vpop.f32.mrf.mxu2  ;;  %8453 = vmatmul.bf16.gmra.mxu2 %v8304_v19  ;;  %v15669_v19 = vld [vmem:[#allocation37_spill] sm:$0xff] }
 0x4ab   : > { %15666 = vst [vmem:[#allocation18_spill] sm:$0xff] %v14419_v44  ;;  %v7671_v15 = vsel %vm1735_vm0, %v7666_v50, %v7670_v39  ;;  %v5659_v49 = vadd.f32 %v15669_v19, %v14091_v37  ;;  %v6497_v44 = vor.u32 %v6496_v35, %v6493_v8  ;;  %v8306_v48 = vrot.slane %v15356_v46, 2  ;;  %v10770_v35 = vld [vmem:[#allocation2 + $0x5c] sm:$0xff]   ;;  %v14455_v46 = vld [vmem:[#allocation2 + $0x70] sm:$0xff] }
 0x4ad   : > { %v6498_v8 = vsel %vm5976_vm11, %v6488_v24, %v6497_v44  ;;  %v6500_v24 = vshrl.u32 %v10770_v35, 16 }
 0x4ae   : > { %7396 = vmatmul.bf16.gmra.mxu3 %v7191_v41  ;;  %v6187_v45 = vpop.f32.mrf.mxu0  ;;  %v14422_v41 = vsel %vm2235_vm1, %v8047_v57, %v8049_v16  ;;  %v15355_v57 = vshrl.u32 %v14121_v52, 16 }
 0x4af   : > { %15667 = vst [vmem:[#allocation78_spill] sm:$0xff] %v14422_v41  ;;  %v14424_v59 = vpop.f32.mrf.mxu1  ;;  %v14427_v12 = vadd.f32 %v6187_v45, %v14331_v31  ;;  %v7196_v31 = vshll.u32 %v14429_v21, 16  ;;  %v5940_v45 = vadd.f32 %v14360_v55, %v5659_v49  ;;  %v7192_v41 = vshrl.u32 %v14383_v51, 16 }
 0x4b0   : > { %v8305_v50 = vrot.slane %v15355_v57, 1 }
 0x4b1   : > { %15668 = vst [vmem:[#allocation79_spill] sm:$0xff] %v14427_v12  ;;  %v5889_v9 = vpop.f32.mrf.mxu3  ;;  %7882 = vmatmul.bf16.vlgmr.msra.gmra.mxu0 %v7671_v15  ;;  %v7198_v37 = vrot.slane %v7196_v31, 1  ;;  %v7194_v49 = vor.u32 %v7192_v41, %v7190_v63  ;;  %v15672_v12 = vld [vmem:[#allocation36_spill] sm:$0xff] }
 0x4b2   : > { %v14432_v11 = vadd.f32 %v5889_v9, %v5667_v27  ;;  %v14452_v55 = vpop.f32.mrf.mxu2  ;;  %v8307_v57 = vor.u32 %v8306_v48, %v8305_v50  ;;  %v15675_v50 = vld [vmem:[#allocation38_spill] sm:$0xff] }
 0x4b3   : > { %15671 = vst [vmem:[#allocation80_spill] sm:$0xff] %v14452_v55  ;;  %v6503_v55 = vshll.u32 %v10770_v35, 16 }
 0x4b4   : > { %v8308_v63 = vsel %vm2880_vm2, %v8303_v32, %v8307_v57 }
 0x4b6   : > { %v6189_v54 = vpop.f32.mrf.mxu0 }
 0x4b7   : > { %v6655_v27 = vpop.f32.mrf.mxu1  ;;  %v14444_v9 = vadd.f32 %v6189_v54, %v5940_v45  ;;  %v15673_v45 = vld [vmem:[#allocation28_spill] sm:$0xff] }
 0x4b8   : > { %v14450_v19 = vadd.f32 %v6655_v27, %v13955_v0  ;;  %v5609_v54 = vadd.f32 %v15673_v45, %v15672_v12  ;;  %v15674_v0 = vshll.u32 %v14088_v1, 16  ;;  %v8051_v27 = vrot.slane %v14455_v46, 1 }
 0x4b9   : > { %15670 = vst [vmem:[#allocation37_spill] sm:$0xff] %v14444_v9  ;;  %v14446_v15 = vpop.f32.mrf.mxu3  ;;  %v7199_v9 = vsel %vm1735_vm0, %v7194_v49, %v7198_v37  ;;  %v5672_v12 = vadd.f32 %v15675_v50, %v14189_v6 }
 0x4ba   : > { %6694 = vmatmul.bf16.gmra.mxu1 %v6498_v8  ;;  %v5920_v51 = vadd.f32 %v13830_v58, %v5609_v54  ;;  %v7678_v31 = vrot.slane %v15674_v0, 1  ;;  %v15676_v8 = vshrl.u32 %v14069_v2, 16  ;;  %8458 = vmatmul.bf16.gmra.mxu2 %v8308_v63  ;;  %v14471_v58 = vsel %vm2235_vm1, %v8049_v16, %v8051_v27  ;;  %v14476_v54 = vld [vmem:[#allocation2 + $0x38] sm:$0xff]  ;;  %v14485_v0 = vpop.f32.mrf.mxu2 }
 0x4bb   : > { %15677 = vst [vmem:[#allocation36_spill] sm:$0xff] %v14471_v58  ;;  %v6505_v2 = vrot.slane %v6503_v55, 4  ;;  %v15357_v16 = vshrl.u32 %v14152_v25, 16  ;;  %v7204_v50 = vshll.u32 %v14476_v54, 16  ;;  %v14635_v58 = vld [vmem:[#allocation2 + $0x50] sm:$0xff] }
 0x4bc   : > { %v6228_v41 = vadd.f32 %v13950_v34, %v5920_v51  ;;  %v7674_v49 = vor.u32 %v15676_v8, %v7670_v39  ;;  %v6502_v51 = vrot.slane %v6500_v24, 3  ;;  %v15358_v39 = vshll.u32 %v14152_v25, 16  ;;  %15678 = vst [vmem:[#allocation28_spill] sm:$0xff] %v14485_v0 }
 0x4be   : > { %7401 = vmatmul.bf16.gmra.mxu3 %v7199_v9  ;;  %v6192_v48 = vpop.f32.mrf.mxu0  ;;  %v7679_v34 = vsel %vm1735_vm0, %v7674_v49, %v7678_v31  ;;  %v8310_v55 = vrot.slane %v15358_v39, 2  ;;  %v15681_v39 = vld [vmem:[#allocation29_spill] sm:$0xff] }
 0x4bf   : > { %v6657_v9 = vpop.f32.mrf.mxu1  ;;  %v14474_v45 = vadd.f32 %v6192_v48, %v14387_v7  ;;  %v15679_v7 = vld [vmem:[#allocation17_spill] sm:$0xff]  ;;  %v6506_v48 = vor.u32 %v6505_v2, %v6502_v51  ;;  %v10772_v51 = vld [vmem:[#allocation2 + $0x64] sm:$0xff]  }
 0x4c0   : > { %v14478_v32 = vadd.f32 %v6657_v9, %v6228_v41  ;;  %v5664_v63 = vadd.f32 %v15679_v7, %v14128_v17  ;;  %v7206_v17 = vrot.slane %v7204_v50, 1 }
 0x4c1   : > { %v5894_v35 = vpop.f32.mrf.mxu3  ;;  %7887 = vmatmul.bf16.gmra.mxu0 %v7679_v34 }
 0x4c2   : > { %v14481_v6 = vadd.f32 %v5894_v35, %v5672_v12  ;;  %v5942_v41 = vadd.f32 %v14405_v43, %v5664_v63  ;;  %v8309_v12 = vrot.slane %v15357_v16, 1  ;;  %v7200_v35 = vshrl.u32 %v14429_v21, 16  ;;  %v14504_v63 = vld [vmem:[#allocation2 + $0x78] sm:$0xff]  ;;  %v15680_v16 = vld [vmem:[#allocation16_spill] sm:$0xff] }
 0x4c3   : > { %v6507_v43 = vsel %vm5976_vm11, %v6497_v44, %v6506_v48  ;;  %v5614_v0 = vadd.f32 %v15681_v39, %v15680_v16  ;;  %v8053_v44 = vrot.slane %v14504_v63, 1  ;;  %v15684_v16 = vld [vmem:[#allocation39_spill] sm:$0xff] }
 0x4c4   : > { %v7202_v2 = vor.u32 %v7200_v35, %v7198_v37  ;;  %v8311_v7 = vor.u32 %v8310_v55, %v8309_v12  ;;  %v6509_v37 = vshrl.u32 %v10772_v51, 16  ;;  %v6512_v12 = vshll.u32 %v10772_v51, 16 }
 0x4c5   : > { %v5922_v21 = vadd.f32 %v13906_v33, %v5614_v0  ;;  %v5677_v35 = vadd.f32 %v15684_v16, %v14229_v42  ;;  %v15685_v33 = vshrl.u32 %v14088_v1, 16 }
 0x4c6   : > { %v6194_v24 = vpop.f32.mrf.mxu0  ;;  %v8312_v55 = vsel %vm2880_vm2, %v8307_v57, %v8311_v7  ;;  %v6514_v1 = vrot.slane %v6512_v12, 4 }
 0x4c7   : > { %v6660_v8 = vpop.f32.mrf.mxu1  ;;  %v14495_v49 = vadd.f32 %v6194_v24, %v5942_v41  ;;  %v10302_v41 = vld [vmem:[#allocation3 + $0x1d0] sm:$0xff]  ;;  %v7207_v24 = vsel %vm1735_vm0, %v7202_v2, %v7206_v17  ;;  %v6230_v39 = vadd.f32 %v14029_v20, %v5922_v21  ;;  %v7682_v0 = vor.u32 %v15685_v33, %v7678_v31 }
 0x4c8   : > { %v14501_v34 = vadd.f32 %v6660_v8, %v13999_v5  ;;  %v15682_v5 = vshll.u32 %v14121_v52, 16  ;;  %v14512_v8 = vpop.f32.mrf.mxu2  ;;  %8138 = vmatpush.bf16.msra.mxu1 %v10302_v41  ;;  %v14522_v2 = vsel %vm2235_vm1, %v8051_v27, %v8053_v44  ;;  %v6511_v21 = vrot.slane %v6509_v37, 3 }
 0x4c9   : > { %v14497_v9 = vpop.f32.mrf.mxu3  ;;  %15683 = vst [vmem:[#allocation38_spill] sm:$0xff] %v14512_v8  ;;  %v15360_v31 = vshll.u32 %v14187_v14, 16  ;;  %v15359_v27 = vshrl.u32 %v14187_v14, 16 }
 0x4ca   : > { %6699 = vmatmul.bf16.gmra.mxu1 %v6507_v43  ;;  %v7686_v50 = vrot.slane %v15682_v5, 1  ;;  %8463 = vmatmul.bf16.gmra.mxu2 %v8312_v55  ;;  %15686 = vst [vmem:[#allocation17_spill] sm:$0xff] %v14522_v2  ;;  %v14527_v5 = vld [vmem:[#allocation2 + $0x40] sm:$0xff] }
 0x4cb   : > { %v15687_v55 = vld [vmem:[#allocation20_spill] sm:$0xff]  ;;  %v7212_v16 = vshll.u32 %v14527_v5, 16  ;;  %v8313_v33 = vrot.slane %v15359_v27, 1  ;;  %v8314_v37 = vrot.slane %v15360_v31, 2  ;;  %v15689_v31 = vld [vmem:[#allocation19_spill] sm:$0xff] }
 0x4cc   : > { %v7687_v20 = vsel %vm1735_vm0, %v7682_v0, %v7686_v50  ;;  %v14555_v27 = vld [vmem:[#allocation2 + $0x80] sm:$0xff] }
 0x4ce   : > { %7406 = vmatmul.bf16.gmra.mxu3 %v7207_v24  ;;  %v6197_v43 = vpop.f32.mrf.mxu0 }
 0x4cf   : > { %v6662_v41 = vpop.f32.mrf.mxu1  ;;  %v14525_v24 = vadd.f32 %v6197_v43, %v14432_v11  ;;  %v5669_v11 = vadd.f32 %v15687_v55, %v14171_v22  ;;  %v7208_v22 = vshrl.u32 %v14476_v54, 16  ;;  %v15691_v54 = vshll.u32 %v14152_v25, 16 }
 0x4d0   : > { %v14529_v57 = vadd.f32 %v6662_v41, %v6230_v39  ;;  %v6515_v39 = vor.u32 %v6514_v1, %v6511_v21  ;;  %v10774_v1 = vld [vmem:[#allocation2 + $0x6c] sm:$0xff]  }
 0x4d1   : > { %v5899_v51 = vpop.f32.mrf.mxu3  ;;  %7892 = vmatmul.bf16.gmra.mxu0 %v7687_v20  ;;  %v5944_v43 = vadd.f32 %v14446_v15, %v5669_v11  ;;  %v7214_v20 = vrot.slane %v7212_v16, 1  ;;  %v7210_v55 = vor.u32 %v7208_v22, %v7206_v17  ;;  %v8315_v11 = vor.u32 %v8314_v37, %v8313_v33  ;;  %v15692_v33 = vld [vmem:[#allocation50_spill] sm:$0xff]  ;;  %v15693_v22 = vld [vmem:[#allocation40_spill] sm:$0xff] }
 0x4d2   : > { %v14532_v42 = vadd.f32 %v5899_v51, %v5677_v35  ;;  %v14544_v35 = vpop.f32.mrf.mxu2  ;;  %v6516_v21 = vsel %vm5976_vm11, %v6506_v48, %v6515_v39  ;;  %v8055_v16 = vrot.slane %v14555_v27, 1  ;;  %v6518_v48 = vshrl.u32 %v10774_v1, 16 }
 0x4d3   : > { %15688 = vst [vmem:[#allocation16_spill] sm:$0xff] %v14544_v35  ;;  %v15690_v35 = vld [vmem:[#allocation30_spill] sm:$0xff]  ;;  %v8316_v17 = vsel %vm2880_vm2, %v8311_v7, %v8315_v11 }
 0x4d4   : > { %v5619_v8 = vadd.f32 %v15690_v35, %v15689_v31  ;;  %v5682_v31 = vadd.f32 %v15693_v22, %v14283_v38  ;;  %v15698_v22 = vld [vmem:[#allocation22_spill] sm:$0xff] }
 0x4d6   : > { %v6199_v12 = vpop.f32.mrf.mxu0 }
 0x4d7   : > { %v6665_v0 = vpop.f32.mrf.mxu1  ;;  %v14546_v41 = vadd.f32 %v6199_v12, %v5944_v43  ;;  %v7215_v43 = vsel %vm1735_vm0, %v7210_v55, %v7214_v20  ;;  %v5924_v12 = vadd.f32 %v13980_v60, %v5619_v8  ;;  %v14571_v60 = vsel %vm2235_vm1, %v8053_v44, %v8055_v16 }
 0x4d8   : > { %v14552_v15 = vadd.f32 %v6665_v0, %v14061_v23  ;;  %v7694_v23 = vrot.slane %v15691_v54, 1  ;;  %v6521_v0 = vshll.u32 %v10774_v1, 16  ;;  %15695 = vst [vmem:[#allocation29_spill] sm:$0xff] %v14571_v60  ;;  %v14576_v54 = vld [vmem:[#allocation2 + $0x48] sm:$0xff]  ;;  %v15362_v44 = vshll.u32 %v14214_v62, 16 }
 0x4d9   : > { %v14548_v51 = vpop.f32.mrf.mxu3  ;;  %v6232_v37 = vadd.f32 %v15692_v33, %v5924_v12 }
 0x4da   : > { %6704 = vmatmul.bf16.gmra.mxu1 %v6516_v21  ;;  %v15694_v21 = vshrl.u32 %v14121_v52, 16  ;;  %8468 = vmatmul.bf16.gmra.mxu2 %v8316_v17  ;;  %v14583_v33 = vpop.f32.mrf.mxu2  ;;  %v6520_v52 = vrot.slane %v6518_v48, 3  ;;  %v15361_v17 = vshrl.u32 %v14214_v62, 16  ;;  %v8318_v48 = vrot.slane %v15362_v44, 2 }
 0x4db   : > { %15696 = vst [vmem:[#allocation39_spill] sm:$0xff] %v14583_v33 }
 0x4dc   : > { %v7690_v55 = vor.u32 %v15694_v21, %v7686_v50  ;;  %v6523_v50 = vrot.slane %v6521_v0, 4  ;;  %v7220_v21 = vshll.u32 %v14576_v54, 16  ;;  %v15699_v0 = vld [vmem:[#allocation41_spill] sm:$0xff] }
 0x4de   : > { %7411 = vmatmul.bf16.gmra.mxu3 %v7215_v43  ;;  %v6202_v35 = vpop.f32.mrf.mxu0  ;;  %v7695_v12 = vsel %vm1735_vm0, %v7690_v55, %v7694_v23  ;;  %v5684_v55 = vadd.f32 %v15699_v0, %v14317_v30  ;;  %v7222_v60 = vrot.slane %v7220_v21, 1  ;;  %v14611_v30 = vld [vmem:[#allocation2 + $0x88] sm:$0xff]  ;;  %v15702_v0 = vld [vmem:[#allocation31_spill] sm:$0xff] }
 0x4df   : > { %v6667_v8 = vpop.f32.mrf.mxu1  ;;  %v14574_v43 = vadd.f32 %v6202_v35, %v14481_v6  ;;  %v15697_v6 = vld [vmem:[#allocation71_spill] sm:$0xff] }
 0x4e0   : > { %v14578_v7 = vadd.f32 %v6667_v8, %v6232_v37  ;;  %v5674_v35 = vadd.f32 %v15698_v22, %v15697_v6  ;;  %v14591_v8 = vor.u32 %v6523_v50, %v6520_v52  ;;  %v7216_v22 = vshrl.u32 %v14527_v5, 16 }
 0x4e1   : > { %v5904_v1 = vpop.f32.mrf.mxu3  ;;  %7897 = vmatmul.bf16.gmra.mxu0 %v7695_v12 }
 0x4e2   : > { %v14581_v38 = vadd.f32 %v5904_v1, %v5682_v31  ;;  %v5946_v37 = vadd.f32 %v14497_v9, %v5674_v35  ;;  %v8317_v31 = vrot.slane %v15361_v17, 1  ;;  %v15700_v9 = vld [vmem:[#allocation54_spill] sm:$0xff]  ;;  %v6525_v35 = vsel %vm5976_vm11, %v6515_v39, %v14591_v8  ;;  %v14615_v5 = vpop.f32.mrf.mxu2 }
 0x4e3   : > { %v10776_v17 = vld [vmem:[#allocation2 + $0x74] sm:$0xff]   ;;  %v7218_v44 = vor.u32 %v7216_v22, %v7214_v20  ;;  %15703 = vst [vmem:[#allocation20_spill] sm:$0xff] %v14615_v5  ;;  %v8057_v20 = vrot.slane %v14611_v30, 1 }
 0x4e4   : > { %v14609_v2 = vor.u32 %v8318_v48, %v8317_v31  ;;  %v6527_v31 = vshrl.u32 %v10776_v17, 16  ;;  %v6530_v48 = vshll.u32 %v10776_v17, 16 }
 0x4e5   : > { %v7223_v21 = vsel %vm1735_vm0, %v7218_v44, %v7222_v60  ;;  %v15708_v44 = vshrl.u32 %v14152_v25, 16 }
 0x4e6   : > { %v6204_v1 = vpop.f32.mrf.mxu0  ;;  %v8320_v22 = vsel %vm2880_vm2, %v8315_v11, %v14609_v2  ;;  %v6529_v25 = vrot.slane %v6527_v31, 3 }
 0x4e7   : > { %v6670_v12 = vpop.f32.mrf.mxu1  ;;  %v14599_v33 = vadd.f32 %v6204_v1, %v5946_v37  ;;  %v15701_v37 = vld [vmem:[#allocation21_spill] sm:$0xff] }
 0x4e8   : > { %v14603_v52 = vadd.f32 %v6670_v12, %v15700_v9  ;;  %v5624_v1 = vadd.f32 %v15702_v0, %v15701_v37  ;;  %v15704_v12 = vld [vmem:[#allocation48_spill] sm:$0xff]  ;;  %v15706_v9 = vld [vmem:[#allocation57_spill] sm:$0xff] }
 0x4e9   : > { %v5906_v6 = vpop.f32.mrf.mxu3 }
 0x4ea   : > { %v14605_v50 = vadd.f32 %v5906_v6, %v5684_v55  ;;  %6709 = vmatmul.bf16.gmra.mxu1 %v6525_v35  ;;  %v5926_v55 = vadd.f32 %v15704_v12, %v5624_v1  ;;  %v15705_v6 = vshll.u32 %v14187_v14, 16  ;;  %v15707_v35 = vld [vmem:[#allocation42_spill] sm:$0xff]  ;;  %v7698_v1 = vor.u32 %v15708_v44, %v7694_v23  ;;  %8473 = vmatmul.bf16.gmra.mxu2 %v8320_v22 }
 0x4eb   : > { %v5687_v0 = vadd.f32 %v15707_v35, %v14356_v29  ;;  %v6532_v23 = vrot.slane %v6530_v48, 4  ;;  %v15363_v22 = vshrl.u32 %v14247_v40, 16  ;;  %v7228_v35 = vshll.u32 %v14635_v58, 16 }
 0x4ec   : > { %v7702_v39 = vrot.slane %v15705_v6, 1  ;;  %v6234_v37 = vadd.f32 %v15706_v9, %v5926_v55  ;;  %v10301_v9 = vld [vmem:[#allocation3 + $0x1c8] sm:$0xff] }
 0x4ed   : > { %8139 = vmatpush.bf16.msra.mxu1 %v10301_v9  ;;  %v8321_v31 = vrot.slane %v15363_v22, 1 }
 0x4ee   : > { %7416 = vmatmul.bf16.gmra.mxu3 %v7223_v21  ;;  %v6207_v5 = vpop.f32.mrf.mxu0  ;;  %v14630_v21 = vsel %vm2235_vm1, %v8055_v16, %v8057_v20  ;;  %v7703_v55 = vsel %vm1735_vm0, %v7698_v1, %v7702_v39  ;;  %v15364_v16 = vshll.u32 %v14247_v40, 16  ;;  %v15712_v1 = vld [vmem:[#allocation26_spill] sm:$0xff] }
 0x4ef   : > { %15709 = vst [vmem:[#allocation19_spill] sm:$0xff] %v14630_v21  ;;  %v6672_v12 = vpop.f32.mrf.mxu1  ;;  %v14633_v6 = vadd.f32 %v6207_v5, %v14532_v42  ;;  %v15710_v42 = vld [vmem:[#allocation24_spill] sm:$0xff]  ;;  %v15714_v21 = vld [vmem:[#allocation61_spill] sm:$0xff] }
 0x4f0   : > { %v14637_v11 = vadd.f32 %v6672_v12, %v6234_v37  ;;  %v5679_v5 = vadd.f32 %v15710_v42, %v14245_v53  ;;  %v14647_v37 = vpop.f32.mrf.mxu2  ;;  %v8322_v48 = vrot.slane %v15364_v16, 2  ;;  %v5689_v12 = vadd.f32 %v15712_v1, %v14378_v4  ;;  %v14666_v4 = vld [vmem:[#allocation2 + $0x90] sm:$0xff]  ;;  %v15715_v1 = vld [vmem:[#allocation23_spill] sm:$0xff] }
 0x4f1   : > { %v5909_v17 = vpop.f32.mrf.mxu3  ;;  %7902 = vmatmul.bf16.gmra.mxu0 %v7703_v55  ;;  %15711 = vst [vmem:[#allocation30_spill] sm:$0xff] %v14647_v37  ;;  %v7224_v42 = vshrl.u32 %v14576_v54, 16  ;;  %v7230_v37 = vrot.slane %v7228_v35, 1  ;;  %v15717_v35 = vld [vmem:[#allocation53_spill] sm:$0xff] }
 0x4f2   : > { %v14640_v29 = vadd.f32 %v5909_v17, %v5687_v0  ;;  %v5948_v44 = vadd.f32 %v14548_v51, %v5679_v5  ;;  %v6533_v0 = vor.u32 %v6532_v23, %v6529_v25  ;;  %v10778_v5 = vld [vmem:[#allocation2 + $0x7c] sm:$0xff]   ;;  %v8323_v16 = vor.u32 %v8322_v48, %v8321_v31 }
 0x4f3   : > { %v7226_v22 = vor.u32 %v7224_v42, %v7222_v60  ;;  %v15719_v31 = vld [vmem:[#allocation63_spill] sm:$0xff] }
 0x4f4   : > { %v6534_v23 = vsel %vm5976_vm11, %v14591_v8, %v6533_v0  ;;  %v6536_v8 = vshrl.u32 %v10778_v5, 16  ;;  %v8324_v60 = vsel %vm2880_vm2, %v14609_v2, %v8323_v16  ;;  %v15720_v42 = vld [vmem:[#allocation43_spill] sm:$0xff] }
 0x4f5   : > { %v7231_v54 = vsel %vm1735_vm0, %v7226_v22, %v7230_v37 }
 0x4f6   : > { %v6209_v17 = vpop.f32.mrf.mxu0 }
 0x4f7   : > { %v6675_v55 = vpop.f32.mrf.mxu1  ;;  %v14656_v9 = vadd.f32 %v6209_v17, %v5948_v44  ;;  %v15716_v44 = vld [vmem:[#allocation32_spill] sm:$0xff] }
 0x4f8   : > { %v14660_v51 = vadd.f32 %v6675_v55, %v15714_v21  ;;  %v5629_v17 = vadd.f32 %v15716_v44, %v15715_v1  ;;  %v15718_v21 = vshll.u32 %v14214_v62, 16  ;;  %v15365_v55 = vrot.slane %v14666_v4, 1  ;;  %v14680_v1 = vpop.f32.mrf.mxu2 }
 0x4f9   : > { %15713 = vst [vmem:[#allocation50_spill] sm:$0xff] %v14656_v9  ;;  %v5911_v53 = vpop.f32.mrf.mxu3  ;;  %v15722_v44 = vshrl.u32 %v14187_v14, 16  ;;  %v6538_v14 = vrot.slane %v6536_v8, 3 }
 0x4fa   : > { %v14662_v25 = vadd.f32 %v5911_v53, %v5689_v12  ;;  %6714 = vmatmul.bf16.gmra.mxu1 %v6534_v23  ;;  %v5928_v9 = vadd.f32 %v15717_v35, %v5629_v17  ;;  %v7710_v12 = vrot.slane %v15718_v21, 1  ;;  %v6539_v53 = vshll.u32 %v10778_v5, 16  ;;  %15721 = vst [vmem:[#allocation40_spill] sm:$0xff] %v14680_v1  ;;  %8478 = vmatmul.bf16.gmra.mxu2 %v8324_v60  ;;  %v14692_v35 = vld [vmem:[#allocation2 + $0x58] sm:$0xff] }
 0x4fb   : > { %v5692_v23 = vadd.f32 %v15720_v42, %v14401_v26  ;;  %v7706_v17 = vor.u32 %v15722_v44, %v7702_v39  ;;  %v15367_v60 = vshll.u32 %v14321_v10, 16  ;;  %v7236_v42 = vshll.u32 %v14692_v35, 16 }
 0x4fc   : > { %v6236_v48 = vadd.f32 %v15719_v31, %v5928_v9  ;;  %v6541_v39 = vrot.slane %v6539_v53, 4 }
 0x4fd   : > { %v7711_v21 = vsel %vm1735_vm0, %v7706_v17, %v7710_v12 }
 0x4fe   : > { %7421 = vmatmul.bf16.gmra.mxu3 %v7231_v54  ;;  %v6212_v22 = vpop.f32.mrf.mxu0  ;;  %v14687_v54 = vsel %vm2235_vm1, %v8057_v20, %v15365_v55  ;;  %v15366_v20 = vshrl.u32 %v14321_v10, 16 }
 0x4ff   : > { %15723 = vst [vmem:[#allocation71_spill] sm:$0xff] %v14687_v54  ;;  %v6677_v5 = vpop.f32.mrf.mxu1  ;;  %v14690_v2 = vadd.f32 %v6212_v22, %v14581_v38  ;;  %v14702_v38 = vor.u32 %v6541_v39, %v6538_v14  ;;  %v15727_v14 = vld [vmem:[#allocation66_spill] sm:$0xff]  ;;  %v15729_v54 = vld [vmem:[#allocation25_spill] sm:$0xff] }
 0x500   : > { %v14694_v26 = vadd.f32 %v6677_v5, %v6236_v48  ;;  %v8325_v22 = vrot.slane %v15366_v20, 1  ;;  %v8326_v48 = vrot.slane %v15367_v60, 2  ;;  %v14717_v55 = vpop.f32.mrf.mxu2 }
 0x501   : > { %15724 = vst [vmem:[#allocation22_spill] sm:$0xff] %v14690_v2  ;;  %v5914_v9 = vpop.f32.mrf.mxu3  ;;  %7907 = vmatmul.bf16.gmra.mxu0 %v7711_v21  ;;  %v7238_v21 = vrot.slane %v7236_v42, 1  ;;  %v6543_v60 = vsel %vm5976_vm11, %v6533_v0, %v14702_v38  ;;  %v15731_v42 = vld [vmem:[#allocation59_spill] sm:$0xff]  ;;  %v15733_v0 = vld [vmem:[#allocation69_spill] sm:$0xff] }
 0x502   : > { %v14697_v31 = vadd.f32 %v5914_v9, %v5692_v23  ;;  %v15725_v23 = vld [vmem:[#allocation44_spill] sm:$0xff]  ;;  %v7232_v9 = vshrl.u32 %v14635_v58, 16  ;;  %15728 = vst [vmem:[#allocation54_spill] sm:$0xff] %v14717_v55  ;;  %v8327_v1 = vor.u32 %v8326_v48, %v8325_v22  ;;  %v15734_v22 = vshrl.u32 %v14214_v62, 16 }
 0x503   : > { %v5694_v44 = vadd.f32 %v15725_v23, %v14424_v59  ;;  %v10780_v59 = vld [vmem:[#allocation2 + $0x84] sm:$0xff]  }
 0x504   : > { %v7234_v23 = vor.u32 %v7232_v9, %v7230_v37  ;;  %v8328_v55 = vsel %vm2880_vm2, %v8323_v16, %v8327_v1  ;;  %v7714_v48 = vor.u32 %v15734_v22, %v7710_v12  ;;  %v14742_v16 = vld [vmem:[#allocation2 + $0xa0] sm:$0xff] }
 0x506   : > { %v6214_v8 = vpop.f32.mrf.mxu0  ;;  %v7239_v58 = vsel %vm1735_vm0, %v7234_v23, %v7238_v21 }
 0x507   : > { %v6680_v53 = vpop.f32.mrf.mxu1  ;;  %v14711_v17 = vadd.f32 %v6214_v8, %v14605_v50  ;;  %v15730_v50 = vld [vmem:[#allocation33_spill] sm:$0xff] }
 0x508   : > { %v14715_v39 = vadd.f32 %v6680_v53, %v15727_v14  ;;  %v5634_v8 = vadd.f32 %v15730_v50, %v15729_v54  ;;  %v15732_v53 = vshll.u32 %v14247_v40, 16  ;;  %v15735_v54 = vld [vmem:[#allocation45_spill] sm:$0xff] }
 0x509   : > { %15726 = vst [vmem:[#allocation41_spill] sm:$0xff] %v14711_v17  ;;  %v5916_v5 = vpop.f32.mrf.mxu3 }
 0x50a   : > { %v14719_v20 = vadd.f32 %v5916_v5, %v5694_v44  ;;  %6719 = vmatmul.bf16.gmra.mxu1 %v6543_v60  ;;  %v5930_v17 = vadd.f32 %v15731_v42, %v5634_v8  ;;  %v7718_v14 = vrot.slane %v15732_v53, 1  ;;  %v6545_v44 = vshrl.u32 %v10780_v59, 16  ;;  %8483 = vmatmul.bf16.gmra.mxu2 %v8328_v55  ;;  %v14738_v8 = vld [vmem:[#allocation2 + $0x60] sm:$0xff]  ;;  %v14751_v53 = vpop.f32.mrf.mxu2 }
 0x50b   : > { %v6548_v5 = vshll.u32 %v10780_v59, 16  ;;  %v6981_v60 = vadd.f32 %v15735_v54, %v14450_v19  ;;  %v14740_v59 = vld [vmem:[#allocation2 + $0x98] sm:$0xff]  ;;  %v15368_v19 = vshrl.u32 %v14366_v56, 16  ;;  %15736 = vst [vmem:[#allocation21_spill] sm:$0xff] %v14751_v53 }
 0x50c   : > { %v6238_v2 = vadd.f32 %v15733_v0, %v5930_v17  ;;  %v7719_v62 = vsel %vm1735_vm0, %v7714_v48, %v7718_v14  ;;  %v6547_v55 = vrot.slane %v6545_v44, 3  ;;  %v7244_v0 = vshll.u32 %v14738_v8, 16 }
 0x50d   : > { %v6550_v42 = vrot.slane %v6548_v5, 4  ;;  %v8329_v22 = vrot.slane %v15368_v19, 1  ;;  %v15737_v5 = vrot.slane %v14666_v4, 1  ;;  %v7240_v19 = vshrl.u32 %v14692_v35, 16 }
 0x50e   : > { %7426 = vmatmul.bf16.gmra.mxu3 %v7239_v58  ;;  %v6217_v37 = vpop.f32.mrf.mxu0  ;;  %v10300_v58 = vld [vmem:[#allocation3 + $0x1c0] sm:$0xff]  ;;  %v15742_v35 = vshll.u32 %v14321_v10, 16 }
 0x50f   : > { %v6682_v9 = vpop.f32.mrf.mxu1  ;;  %v14736_v23 = vadd.f32 %v6217_v37, %v14640_v29  ;;  %v15369_v29 = vshll.u32 %v14366_v56, 16  ;;  %8140 = vmatpush.bf16.msra.mxu1 %v10300_v58  ;;  %v15370_v37 = vrot.slane %v14742_v16, 1  ;;  %v6551_v48 = vor.u32 %v6550_v42, %v6547_v55 }
 0x510   : > { %v14744_v17 = vadd.f32 %v6682_v9, %v6238_v2  ;;  %v8061_v2 = vrot.slane %v14740_v59, 1 }
 0x511   : > { %v7387_v50 = vpop.f32.mrf.mxu3  ;;  %7912 = vmatmul.bf16.gmra.mxu0 %v7719_v62  ;;  %v8330_v44 = vrot.slane %v15369_v29, 2  ;;  %v7246_v29 = vrot.slane %v7244_v0, 1  ;;  %v7726_v0 = vrot.slane %v15742_v35, 1 }
 0x512   : > { %v14747_v12 = vadd.f32 %v7387_v50, %v6981_v60  ;;  %v14763_v54 = vsel %vm2235_vm1, %v15737_v5, %v8061_v2  ;;  %v14768_v60 = vsel %vm2235_vm1, %v8061_v2, %v15370_v37  ;;  %v15740_v50 = vld [vmem:[#allocation27_spill] sm:$0xff]  ;;  %v6552_v2 = vsel %vm5976_vm11, %v14702_v38, %v6551_v48  ;;  %v10782_v37 = vld [vmem:[#allocation2 + $0x8c] sm:$0xff]  }
 0x513   : > { %15738 = vst [vmem:[#allocation31_spill] sm:$0xff] %v14763_v54  ;;  %v6982_v62 = vadd.f32 %v15740_v50, %v14478_v32  ;;  %v8331_v54 = vor.u32 %v8330_v44, %v8329_v22 }
 0x514   : > { %15739 = vst [vmem:[#allocation48_spill] sm:$0xff] %v14768_v60  ;;  %v7242_v60 = vor.u32 %v7240_v19, %v7238_v21  ;;  %v15744_v21 = vld [vmem:[#allocation46_spill] sm:$0xff] }
 0x515   : > { %v8332_v50 = vsel %vm2880_vm2, %v8327_v1, %v8331_v54  ;;  %v6983_v19 = vadd.f32 %v15744_v21, %v14501_v34  ;;  %v15372_v34 = vshll.u32 %v14410_v28, 16 }
 0x516   : > { %v6219_v9 = vpop.f32.mrf.mxu0  ;;  %v7247_v32 = vsel %vm1735_vm0, %v7242_v60, %v7246_v29 }
 0x517   : > { %v6685_v58 = vpop.f32.mrf.mxu1  ;;  %v14773_v55 = vadd.f32 %v6219_v9, %v14662_v25  ;;  %v14784_v25 = vpop.f32.mrf.mxu2  ;;  %v6554_v9 = vshrl.u32 %v10782_v37, 16 }
 0x518   : > { %v14777_v5 = vadd.f32 %v6685_v58, %v14217_v61  ;;  %15741 = vst [vmem:[#allocation57_spill] sm:$0xff] %v14784_v25  ;;  %v6557_v61 = vshll.u32 %v10782_v37, 16  ;;  %v15743_v58 = vshrl.u32 %v14247_v40, 16 }
 0x519   : > { %v7389_v42 = vpop.f32.mrf.mxu3  ;;  %v6556_v40 = vrot.slane %v6554_v9, 3  ;;  %v15746_v9 = vld [vmem:[#allocation47_spill] sm:$0xff] }
 0x51a   : > { %v14779_v53 = vadd.f32 %v7389_v42, %v6982_v62  ;;  %6724 = vmatmul.bf16.gmra.mxu1 %v6552_v2  ;;  %v7722_v38 = vor.u32 %v15743_v58, %v7718_v14  ;;  %8488 = vmatmul.bf16.gmra.mxu2 %v8332_v50  ;;  %v14796_v42 = vld [vmem:[#allocation2 + $0x68] sm:$0xff]  ;;  %v6559_v14 = vrot.slane %v6557_v61, 4  ;;  %v6984_v61 = vadd.f32 %v15746_v9, %v14529_v57 }
 0x51c   : > { %v7727_v1 = vsel %vm1735_vm0, %v7722_v38, %v7726_v0  ;;  %v6560_v35 = vor.u32 %v6559_v14, %v6556_v40 }
 0x51e   : > { %7431 = vmatmul.bf16.gmra.mxu3 %v7247_v32  ;;  %v6222_v62 = vpop.f32.mrf.mxu0  ;;  %v15371_v32 = vshrl.u32 %v14410_v28, 16  ;;  %v6561_v14 = vsel %vm5976_vm11, %v6551_v48, %v6560_v35  ;;  %v15749_v48 = vld [vmem:[#allocation49_spill] sm:$0xff] }
 0x51f   : > { %v6687_v22 = vpop.f32.mrf.mxu1  ;;  %v14794_v44 = vadd.f32 %v6222_v62, %v14697_v31  ;;  %v7252_v31 = vshll.u32 %v14796_v42, 16  ;;  %v14811_v62 = vpop.f32.mrf.mxu2 }
 0x520   : > { %v14799_v2 = vadd.f32 %v6687_v22, %v14233_v3  ;;  %v8333_v50 = vrot.slane %v15371_v32, 1  ;;  %v8334_v3 = vrot.slane %v15372_v34, 2  ;;  %15745 = vst [vmem:[#allocation42_spill] sm:$0xff] %v14811_v62  ;;  %v7248_v22 = vshrl.u32 %v14738_v8, 16  ;;  %v10783_v32 = vld [vmem:[#allocation2 + $0x94] sm:$0xff]  }
 0x521   : > { %v7392_v60 = vpop.f32.mrf.mxu3  ;;  %7917 = vmatmul.bf16.gmra.mxu0 %v7727_v1  ;;  %v6563_v9 = vshrl.u32 %v10783_v32, 16  ;;  %v6566_v8 = vshll.u32 %v10783_v32, 16  ;;  %v15751_v32 = vld [vmem:[#allocation74_spill] sm:$0xff] }
 0x522   : > { %v14802_v37 = vadd.f32 %v7392_v60, %v6983_v19  ;;  %v7254_v60 = vrot.slane %v7252_v31, 1  ;;  %v7250_v34 = vor.u32 %v7248_v22, %v7246_v29  ;;  %v8335_v62 = vor.u32 %v8334_v3, %v8333_v50  ;;  %v14836_v3 = vld [vmem:[#allocation2 + $0x70] sm:$0xff] }
 0x524   : > { %v7255_v57 = vsel %vm1735_vm0, %v7250_v34, %v7254_v60  ;;  %v8336_v31 = vsel %vm2880_vm2, %v8331_v54, %v8335_v62 }
 0x526   : > { %v6224_v58 = vpop.f32.mrf.mxu0 }
 0x527   : > { %v6690_v38 = vpop.f32.mrf.mxu1  ;;  %v14816_v21 = vadd.f32 %v6224_v58, %v14719_v20  ;;  %v15747_v20 = vshll.u32 %v14366_v56, 16  ;;  %v14838_v22 = vpop.f32.mrf.mxu2 }
 0x528   : > { %v14820_v1 = vadd.f32 %v6690_v38, %v14275_v47  ;;  %15750 = vst [vmem:[#allocation24_spill] sm:$0xff] %v14838_v22 }
 0x529   : > { %v7394_v19 = vpop.f32.mrf.mxu3  ;;  %v7734_v58 = vrot.slane %v15747_v20, 1  ;;  %v7260_v20 = vshll.u32 %v14836_v3, 16 }
 0x52a   : > { %v14822_v40 = vadd.f32 %v7394_v19, %v6984_v61  ;;  %6729 = vmatmul.bf16.gmra.mxu1 %v6561_v14  ;;  %v15748_v61 = vshrl.u32 %v14321_v10, 16  ;;  %v6985_v19 = vadd.f32 %v15749_v48, %v14552_v15  ;;  %8493 = vmatmul.bf16.gmra.mxu2 %v8336_v31  ;;  %v15374_v15 = vshll.u32 %v14455_v46, 16 }
 0x52c   : > { %v7730_v38 = vor.u32 %v15748_v61, %v7726_v0  ;;  %v6565_v0 = vrot.slane %v6563_v9, 3  ;;  %v8338_v61 = vrot.slane %v15374_v15, 2  ;;  %v10875_v9 = vld [vmem:[#allocation2 + $0x98] sm:$0xff] }
 0x52e   : > { %7436 = vmatmul.bf16.gmra.mxu3 %v7255_v57  ;;  %v7883_v47 = vpop.f32.mrf.mxu0  ;;  %v7735_v54 = vsel %vm1735_vm0, %v7730_v38, %v7734_v58  ;;  %v6568_v57 = vrot.slane %v6566_v8, 4  ;;  %v15753_v38 = vld [vmem:[#allocation52_spill] sm:$0xff]  ;;  %v10481_v8 = vunpack.c.h.b16 %v10875_v9 }
 0x52f   : > { %v6692_v29 = vpop.f32.mrf.mxu1  ;;  %v14834_v50 = vadd.f32 %v7883_v47, %v14747_v12  ;;  %v15373_v12 = vshrl.u32 %v14455_v46, 16 }
 0x530   : > { %v14841_v14 = vadd.f32 %v6692_v29, %v15751_v32  ;;  %v6569_v31 = vor.u32 %v6568_v57, %v6565_v0  ;;  %v7262_v0 = vrot.slane %v7260_v20, 1  ;;  %v15754_v57 = vld [vmem:[#allocation35_spill] sm:$0xff] }
 0x531   : > { %v7397_v34 = vpop.f32.mrf.mxu3  ;;  %7922 = vmatmul.bf16.gmra.mxu0 %v7735_v54  ;;  %v8337_v47 = vrot.slane %v15373_v12, 1  ;;  %v7256_v54 = vshrl.u32 %v14796_v42, 16 }
 0x532   : > { %15752 = vst [vmem:[#allocation26_spill] sm:$0xff] %v14841_v14  ;;  %v14844_v10 = vadd.f32 %v7397_v34, %v6985_v19  ;;  %v6986_v19 = vadd.f32 %v15753_v38, %v14578_v7  ;;  %v6570_v15 = vsel %vm5976_vm11, %v6560_v35, %v6569_v31  ;;  %v14865_v7 = vpop.f32.mrf.mxu2  ;;  %v6409_v38 = vpack.c.b16 %v10481_v8, %v10481_v8  ;;  %v15758_v35 = vld [vmem:[#allocation56_spill] sm:$0xff] }
 0x533   : > { %v7258_v25 = vor.u32 %v7256_v54, %v7254_v60  ;;  %v8339_v14 = vor.u32 %v8338_v61, %v8337_v47  ;;  %15755 = vst [vmem:[#allocation61_spill] sm:$0xff] %v14865_v7  ;;  %v6987_v60 = vadd.f32 %v15758_v35, %v14603_v52  ;;  %v15375_v52 = vshrl.u32 %v14504_v63, 16 }
 0x534   : > { %v6572_v47 = vshrl.u32 %v6409_v38, 16  ;;  %v6575_v61 = vshll.u32 %v6409_v38, 16 }
 0x535   : > { %v8340_v20 = vsel %vm2880_vm2, %v8335_v62, %v8339_v14 }
 0x536   : > { %v7885_v48 = vpop.f32.mrf.mxu0  ;;  %v6577_v38 = vrot.slane %v6575_v61, 4 }
 0x537   : > { %v6695_v29 = vpop.f32.mrf.mxu1  ;;  %v14856_v34 = vadd.f32 %v7885_v48, %v14779_v53  ;;  %v7263_v53 = vsel %vm1735_vm0, %v7258_v25, %v7262_v0  ;;  %v15756_v48 = vshll.u32 %v14410_v28, 16 }
 0x538   : > { %v14860_v22 = vadd.f32 %v6695_v29, %v15754_v57 }
 0x539   : > { %v7399_v32 = vpop.f32.mrf.mxu3  ;;  %v7742_v42 = vrot.slane %v15756_v48, 1 }
 0x53a   : > { %v14862_v12 = vadd.f32 %v7399_v32, %v6986_v19  ;;  %6734 = vmatmul.bf16.gmra.mxu1 %v6570_v15  ;;  %v15757_v19 = vshrl.u32 %v14366_v56, 16  ;;  %8498 = vmatmul.bf16.gmra.mxu2 %v8340_v20  ;;  %v10262_v32 = vld [vmem:[#allocation2 + $0x78] sm:$0xff]  ;;  %v7756_v56 = vshll.u32 %v14504_v63, 16  ;;  %v14886_v48 = vpop.f32.mrf.mxu2 }
 0x53c   : > { %v7738_v29 = vor.u32 %v15757_v19, %v7734_v58  ;;  %v6574_v58 = vrot.slane %v6572_v47, 3  ;;  %v8342_v20 = vrot.slane %v7756_v56, 2  ;;  %v7264_v47 = vshrl.u32 %v14836_v3, 16 }
 0x53e   : > { %7441 = vmatmul.bf16.gmra.mxu3 %v7263_v53  ;;  %v7888_v9 = vpop.f32.mrf.mxu0  ;;  %v7743_v62 = vsel %vm1735_vm0, %v7738_v29, %v7742_v42  ;;  %v7268_v53 = vshll.u32 %v10262_v32, 16  ;;  %v6578_v35 = vor.u32 %v6577_v38, %v6574_v58  ;;  %v7266_v7 = vor.u32 %v7264_v47, %v7262_v0 }
 0x53f   : > { %v6697_v15 = vpop.f32.mrf.mxu1  ;;  %v14876_v8 = vadd.f32 %v7888_v9, %v14802_v37  ;;  %v8341_v37 = vrot.slane %v15375_v52, 1  ;;  %v15760_v9 = vld [vmem:[#allocation58_spill] sm:$0xff] }
 0x540   : > { %v14879_v54 = vadd.f32 %v6697_v15, %v14358_v18  ;;  %v6988_v19 = vadd.f32 %v15760_v9, %v14637_v11  ;;  %v7270_v61 = vrot.slane %v7268_v53, 1  ;;  %v6579_v52 = vsel %vm5976_vm11, %v6569_v31, %v6578_v35  ;;  %v15763_v9 = vld [vmem:[#allocation62_spill] sm:$0xff] }
 0x541   : > { %v7402_v25 = vpop.f32.mrf.mxu3  ;;  %7927 = vmatmul.bf16.gmra.mxu0 %v7743_v62  ;;  %v6989_v31 = vadd.f32 %v15763_v9, %v14660_v51 }
 0x542   : > { %15759 = vst [vmem:[#allocation23_spill] sm:$0xff] %v14879_v54  ;;  %v14882_v57 = vadd.f32 %v7402_v25, %v6987_v60  ;;  %v8343_v54 = vor.u32 %v8342_v20, %v8341_v37  ;;  %v7271_v11 = vsel %vm1735_vm0, %v7266_v7, %v7270_v61  ;;  %v14906_v3 = vpop.f32.mrf.mxu2  ;;  %v10263_v37 = vld [vmem:[#allocation2 + $0x80] sm:$0xff] }
 0x543   : > { %v7276_v51 = vshll.u32 %v10263_v37, 16 }
 0x544   : > { %v8344_v38 = vsel %vm2880_vm2, %v8339_v14, %v8343_v54 }
 0x546   : > { %v7890_v18 = vpop.f32.mrf.mxu0 }
 0x547   : > { %v6700_v29 = vpop.f32.mrf.mxu1  ;;  %v14893_v60 = vadd.f32 %v7890_v18, %v14822_v40  ;;  %v15761_v40 = vshll.u32 %v14455_v46, 16 }
 0x548   : > { %v14897_v25 = vadd.f32 %v6700_v29, %v14381_v13  ;;  %v15762_v13 = vshrl.u32 %v14410_v28, 16  ;;  %v7764_v28 = vshll.u32 %v14555_v27, 16 }
 0x549   : > { %v7404_v15 = vpop.f32.mrf.mxu3  ;;  %v7750_v58 = vrot.slane %v15761_v40, 1 }
 0x54a   : > { %v14899_v62 = vadd.f32 %v7404_v15, %v6988_v19  ;;  %6739 = vmatmul.bf16.gmra.mxu1 %v6579_v52  ;;  %v7746_v18 = vor.u32 %v15762_v13, %v7742_v42  ;;  %8503 = vmatmul.bf16.gmra.mxu2 %v8344_v38  ;;  %v15376_v42 = vshrl.u32 %v14555_v27, 16  ;;  %v15765_v15 = vld [vmem:[#allocation64_spill] sm:$0xff]  ;;  %v7272_v38 = vshrl.u32 %v10262_v32, 16  ;;  %v14930_v13 = vpop.f32.mrf.mxu2 }
 0x54b   : > { %v6990_v47 = vadd.f32 %v15765_v15, %v14694_v26  ;;  %v7758_v26 = vrot.slane %v7756_v56, 1  ;;  %v15768_v32 = vshrl.u32 %v14455_v46, 16  ;;  %v15769_v15 = vld [vmem:[#allocation10_spill] sm:$0xff]  ;;  %v7772_v46 = vshll.u32 %v14611_v30, 16 }
 0x54c   : > { %v7751_v14 = vsel %vm1735_vm0, %v7746_v18, %v7750_v58  ;;  %v8345_v29 = vrot.slane %v15376_v42, 1  ;;  %v15766_v18 = vld [vmem:[#allocation79_spill] sm:$0xff] }
 0x54e   : > { %7446 = vmatmul.bf16.gmra.mxu3 %v7271_v11  ;;  %v7893_v53 = vpop.f32.mrf.mxu0 }
 0x54f   : > { %v6702_v0 = vpop.f32.mrf.mxu1  ;;  %v14913_v52 = vadd.f32 %v7893_v53, %v14844_v10  ;;  %v8346_v10 = vrot.slane %v7764_v28, 2  ;;  %v7278_v53 = vrot.slane %v7276_v51, 1  ;;  %v7754_v51 = vor.u32 %v15768_v32, %v7750_v58 }
 0x550   : > { %v14916_v20 = vadd.f32 %v6702_v0, %v14403_v36  ;;  %v7274_v0 = vor.u32 %v7272_v38, %v7270_v61  ;;  %v15377_v58 = vshrl.u32 %v14611_v30, 16  ;;  %v8350_v38 = vrot.slane %v7772_v46, 2 }
 0x551   : > { %v7407_v7 = vpop.f32.mrf.mxu3  ;;  %7932 = vmatmul.bf16.gmra.mxu0 %v7751_v14  ;;  %v15767_v14 = vld [vmem:[#allocation51_spill] sm:$0xff]  ;;  %v7759_v56 = vsel %vm1735_vm0, %v7754_v51, %v7758_v26  ;;  %v7280_v32 = vshrl.u32 %v10263_v37, 16  ;;  %v15774_v37 = vshrl.u32 %v14504_v63, 16 }
 0x552   : > { %15764 = vst [vmem:[#allocation32_spill] sm:$0xff] %v14916_v20  ;;  %v14919_v19 = vadd.f32 %v7407_v7, %v6989_v31  ;;  %v8347_v7 = vor.u32 %v8346_v10, %v8345_v29  ;;  %v7279_v42 = vsel %vm1735_vm0, %v7274_v0, %v7278_v53  ;;  %v6991_v20 = vadd.f32 %v15769_v15, %v14715_v39  ;;  %v10264_v10 = vld [vmem:[#allocation2 + $0x88] sm:$0xff]  ;;  %v15772_v0 = vld [vmem:[#allocation67_spill] sm:$0xff] }
 0x553   : > { %v7284_v39 = vshll.u32 %v10264_v10, 16 }
 0x555   : > { %v7286_v51 = vrot.slane %v7284_v39, 1  ;;  %v7762_v39 = vor.u32 %v15774_v37, %v7758_v26 }
 0x556   : > { %v7895_v35 = vpop.f32.mrf.mxu0 }
 0x557   : > { %v6705_v36 = vpop.f32.mrf.mxu1  ;;  %v14928_v11 = vadd.f32 %v7895_v35, %v14862_v12  ;;  %v8348_v12 = vsel %vm2880_vm2, %v8343_v54, %v8347_v7 }
 0x558   : > { %v14933_v9 = vadd.f32 %v6705_v36, %v15766_v18 }
 0x559   : > { %v7409_v40 = vpop.f32.mrf.mxu3 }
 0x55a   : > { %v7486_v31 = vadd.f32 %v7409_v40, %v6990_v47  ;;  %8141 = vmatmul.bf16.vlgmr.msra.gmra.mxu1 %v15767_v14  ;;  %8508 = vmatmul.bf16.gmra.mxu2 %v8348_v12  ;;  %v15770_v47 = vld [vmem:[#allocation37_spill] sm:$0xff]  ;;  %v6992_v14 = vadd.f32 %v15772_v0, %v14744_v17  ;;  %v7766_v17 = vrot.slane %v7764_v28, 1  ;;  %v7780_v28 = vshll.u32 %v14666_v4, 16 }
 0x55c   : > { %v8354_v26 = vrot.slane %v7780_v28, 2 }
 0x55e   : > { %7451 = vmatmul.bf16.gmra.mxu3 %v7279_v42  ;;  %v7898_v35 = vpop.f32.mrf.mxu0  ;;  %v14951_v42 = vpop.f32.mrf.mxu2 }
 0x55f   : > { %v6707_v36 = vpop.f32.mrf.mxu1  ;;  %v14943_v61 = vadd.f32 %v7898_v35, %v14882_v57  ;;  %v8349_v57 = vrot.slane %v15377_v58, 1 }
 0x560   : > { %v14946_v40 = vadd.f32 %v6707_v36, %v15770_v47 }
 0x561   : > { %v7412_v29 = vpop.f32.mrf.mxu3  ;;  %7937 = vmatmul.bf16.gmra.mxu0 %v7759_v56  ;;  %v8351_v47 = vor.u32 %v8350_v38, %v8349_v57  ;;  %v15773_v56 = vld [vmem:[#allocation55_spill] sm:$0xff]  ;;  %v7767_v38 = vsel %vm1735_vm0, %v7762_v39, %v7766_v17  ;;  %v7774_v39 = vrot.slane %v7772_v46, 1  ;;  %v7788_v46 = vshll.u32 %v14740_v59, 16 }
 0x562   : > { %15771 = vst [vmem:[#allocation53_spill] sm:$0xff] %v14946_v40  ;;  %v7487_v54 = vadd.f32 %v7412_v29, %v6991_v20  ;;  %v7282_v29 = vor.u32 %v7280_v32, %v7278_v53  ;;  %v10265_v53 = vld [vmem:[#allocation2 + $0x90] sm:$0xff] }
 0x564   : > { %v7287_v58 = vsel %vm1735_vm0, %v7282_v29, %v7286_v51 }
 0x566   : > { %v7900_v18 = vpop.f32.mrf.mxu0  ;;  %v14965_v40 = vpop.f32.mrf.mxu2 }
 0x567   : > { %v6710_v12 = vpop.f32.mrf.mxu1  ;;  %v14958_v35 = vadd.f32 %v7900_v18, %v14899_v62  ;;  %v8352_v62 = vsel %vm2880_vm2, %v8347_v7, %v8351_v47  ;;  %v15378_v7 = vshrl.u32 %v14666_v4, 16 }
 0x568   : > { %v14961_v15 = vadd.f32 %v6710_v12, %v14474_v45 }
 0x569   : > { %v7414_v20 = vpop.f32.mrf.mxu3  ;;  %v8353_v63 = vrot.slane %v15378_v7, 1  ;;  %v15776_v7 = vshrl.u32 %v14555_v27, 16 }
 0x56a   : > { %v7488_v36 = vadd.f32 %v7414_v20, %v6992_v14  ;;  %8146 = vmatmul.bf16.gmra.mxu1 %v15773_v56  ;;  %8513 = vmatmul.bf16.gmra.mxu2 %v8352_v62 }
 0x56b   : > { %v8355_v62 = vor.u32 %v8354_v26, %v8353_v63 }
 0x56e   : > { %7456 = vmatmul.bf16.gmra.mxu3 %v7287_v58  ;;  %v7903_v18 = vpop.f32.mrf.mxu0  ;;  %v7292_v58 = vshll.u32 %v10265_v53, 16  ;;  %v14981_v14 = vpop.f32.mrf.mxu2 }
 0x56f   : > { %v6712_v45 = vpop.f32.mrf.mxu1  ;;  %v14971_v0 = vadd.f32 %v7903_v18, %v14919_v19  ;;  %v15775_v18 = vld [vmem:[#allocation60_spill] sm:$0xff] }
 0x570   : > { %v14974_v57 = vadd.f32 %v6712_v45, %v14495_v49  ;;  %v7288_v49 = vshrl.u32 %v10264_v10, 16  ;;  %v7294_v32 = vrot.slane %v7292_v58, 1  ;;  %v8356_v45 = vsel %vm2880_vm2, %v8351_v47, %v8355_v62 }
 0x571   : > { %7942 = vmatmul.bf16.gmra.mxu0 %v7767_v38  ;;  %v7792_v47 = vshrl.u32 %v14740_v59, 16 }
 0x572   : > { %v7290_v56 = vor.u32 %v7288_v49, %v7286_v51  ;;  %v7296_v49 = vshrl.u32 %v10265_v53, 16  ;;  %v15778_v53 = vshrl.u32 %v14611_v30, 16 }
 0x573   : > { %v8357_v27 = vrot.slane %v7792_v47, 1 }
 0x574   : > { %v7295_v37 = vsel %vm1735_vm0, %v7290_v56, %v7294_v32 }
 0x576   : > { %v7905_v19 = vpop.f32.mrf.mxu0 }
 0x577   : > { %v6715_v12 = vpop.f32.mrf.mxu1  ;;  %v14983_v20 = vadd.f32 %v7905_v19, %v7486_v31  ;;  %v7770_v31 = vor.u32 %v15776_v7, %v7766_v17  ;;  %v14995_v19 = vpop.f32.mrf.mxu2  ;;  %v8358_v17 = vrot.slane %v7788_v46, 2 }
 0x578   : > { %v14986_v29 = vadd.f32 %v6715_v12, %v14525_v24  ;;  %v10266_v24 = vld [vmem:[#allocation2 + $0x98] sm:$0xff] }
 0x579   : > { %v7775_v63 = vsel %vm1735_vm0, %v7770_v31, %v7774_v39  ;;  %v7300_v26 = vshll.u32 %v10266_v24, 16  ;;  %v15777_v31 = vld [vmem:[#allocation65_spill] sm:$0xff] }
 0x57a   : > { %8151 = vmatmul.bf16.gmra.mxu1 %v15775_v18  ;;  %8518 = vmatmul.bf16.gmra.mxu2 %v8356_v45  ;;  %v8359_v45 = vor.u32 %v8358_v17, %v8357_v27  ;;  %v7796_v17 = vshll.u32 %v14742_v16, 16 }
 0x57b   : > { %v7302_v56 = vrot.slane %v7300_v26, 1  ;;  %v7778_v26 = vor.u32 %v15778_v53, %v7774_v39  ;;  %v7790_v53 = vrot.slane %v7788_v46, 1  ;;  %v15783_v46 = vld [vmem:[#allocation9_spill] sm:$0xff] }
 0x57c   : > { %v8362_v30 = vrot.slane %v7796_v17, 2 }
 0x57e   : > { %7461 = vmatmul.bf16.gmra.mxu3 %v7295_v37  ;;  %v7908_v38 = vpop.f32.mrf.mxu0  ;;  %v7298_v37 = vor.u32 %v7296_v49, %v7294_v32 }
 0x57f   : > { %v6717_v10 = vpop.f32.mrf.mxu1  ;;  %v14993_v58 = vadd.f32 %v7908_v38, %v7487_v54  ;;  %v15008_v38 = vpop.f32.mrf.mxu2 }
 0x580   : > { %v14998_v51 = vadd.f32 %v6717_v10, %v14546_v41  ;;  %v7053_v41 = vld [vmem:[#allocation2 + $0xa0] sm:$0x1]  ;;  %v7303_v59 = vsel %vm1735_vm0, %v7298_v37, %v7302_v56 }
 0x581   : > { %7947 = vmatmul.bf16.gmra.mxu0 %v7775_v63  ;;  %v7144_v10 = vunpack.c.l.b16 %v7053_v41  ;;  %v7782_v63 = vrot.slane %v7780_v28, 1 }
 0x583   : > { %v7783_v27 = vsel %vm1735_vm0, %v7778_v26, %v7782_v63 }
 0x586   : > { %v7910_v7 = vpop.f32.mrf.mxu0 }
 0x587   : > { %v6720_v12 = vpop.f32.mrf.mxu1  ;;  %v15003_v54 = vadd.f32 %v7910_v7, %v7488_v36  ;;  %v8360_v36 = vsel %vm2880_vm2, %v8355_v62, %v8359_v45  ;;  %v7163_v7 = vpack.c.b16 %v7144_v10, %v7144_v10  ;;  %v15021_v28 = vpop.f32.mrf.mxu2  ;;  %v7304_v62 = vshrl.u32 %v10266_v24, 16  ;;  %v15779_v10 = vld [vmem:[#allocation68_spill] sm:$0xff] }
 0x588   : > { %v15006_v18 = vadd.f32 %v6720_v12, %v14574_v43  ;;  %v7800_v12 = vshrl.u32 %v14742_v16, 16 }
 0x589   : > { %v7308_v49 = vshll.u32 %v7163_v7, 16  ;;  %v7306_v37 = vor.u32 %v7304_v62, %v7302_v56 }
 0x58a   : > { %8156 = vmatmul.bf16.gmra.mxu1 %v15777_v31  ;;  %8523 = vmatmul.bf16.gmra.mxu2 %v8360_v36  ;;  %v8361_v41 = vrot.slane %v7800_v12, 1 }
 0x58b   : > { %v7310_v31 = vrot.slane %v7308_v49, 1 }
 0x58d   : > { %v7311_v36 = vsel %vm1735_vm0, %v7306_v37, %v7310_v31  ;;  %v7798_v37 = vrot.slane %v7796_v17, 1 }
 0x58e   : > { %7466 = vmatmul.bf16.gmra.mxu3 %v7303_v59 }
 0x58f   : > { %v6722_v43 = vpop.f32.mrf.mxu1  ;;  %v15032_v24 = vpop.f32.mrf.mxu2 }
 0x590   : > { %v15016_v32 = vadd.f32 %v6722_v43, %v14599_v33  ;;  %v15026_v33 = vor.u32 %v8362_v30, %v8361_v41  ;;  %v15780_v43 = vshrl.u32 %v14666_v4, 16  ;;  %v15782_v41 = vld [vmem:[#allocation22_spill] sm:$0xff] }
 0x591   : > { %7952 = vmatmul.bf16.gmra.mxu0 %v7783_v27 }
 0x592   : > { %v8364_v26 = vsel %vm2880_vm2, %v8359_v45, %v15026_v33  ;;  %v7786_v56 = vor.u32 %v15780_v43, %v7782_v63  ;;  %v7549_v45 = vld [vmem:[#allocation2 + $0xa8] sm:$0x1]  ;;  %v15784_v63 = vld [vmem:[#allocation41_spill] sm:$0xff] }
 0x593   : > { %v7640_v31 = vunpack.c.l.b16 %v7549_v45  ;;  %v15786_v45 = vld [vmem:[#allocation76_spill] sm:$0xff] }
 0x594   : > { %v7791_v49 = vsel %vm1735_vm0, %v7786_v56, %v7790_v53 }
 0x597   : > { %v6725_v39 = vpop.f32.mrf.mxu1 }
 0x598   : > { %v15024_v59 = vadd.f32 %v6725_v39, %v14633_v6  ;;  %v15781_v6 = vld [vmem:[#allocation50_spill] sm:$0xff]  ;;  %v7794_v39 = vor.u32 %v7792_v47, %v7790_v53  ;;  %v7802_v47 = vor.u32 %v7800_v12, %v7798_v37 }
 0x59a   : > { %8161 = vmatmul.bf16.gmra.mxu1 %v15779_v10  ;;  %8528 = vmatmul.bf16.gmra.mxu2 %v8364_v26  ;;  %v15048_v26 = vpack.c.b16 %v7640_v31, %v7640_v31  ;;  %v15787_v31 = vld [vmem:[#allocation15_spill] sm:$0xff] }
 0x59c   : > { %v7804_v43 = vshll.u32 %v15048_v26, 16 }
 0x59e   : > { %7471 = vmatmul.bf16.gmra.mxu3 %v7311_v36  ;;  %v7799_v36 = vsel %vm1735_vm0, %v7794_v39, %v7798_v37  ;;  %v7806_v17 = vrot.slane %v7804_v43, 1 }
 0x59f   : > { %v6727_v7 = vpop.f32.mrf.mxu1 }
 0x5a0   : > { %v15037_v27 = vadd.f32 %v6727_v7, %v15781_v6  ;;  %v15785_v6 = vld [vmem:[#allocation73_spill] sm:$0xff]  ;;  %v7807_v53 = vsel %vm1735_vm0, %v7802_v47, %v7806_v17 }
 0x5a1   : > { %7957 = vmatmul.bf16.gmra.mxu0 %v7791_v49 }
 0x5a7   : > { %v6730_v62 = vpop.f32.mrf.mxu1 }
 0x5a8   : > { %v15041_v30 = vadd.f32 %v6730_v62, %v15782_v41 }
 0x5aa   : > { %8166 = vmatmul.bf16.gmra.mxu1 %v15783_v46 }
 0x5af   : > { %v6732_v4 = vpop.f32.mrf.mxu1 }
 0x5b0   : > { %v15045_v10 = vadd.f32 %v6732_v4, %v15784_v63  ;;  %v15072_v4 = vld [vmem:[%s15293_s5] ss:$0 sm:$0xff] }
 0x5b1   : > { %7962 = vmatmul.bf16.gmra.mxu0 %v7799_v36 }
 0x5b7   : > { %v6735_v56 = vpop.f32.mrf.mxu1 }
 0x5b8   : > { %v15052_v7 = vadd.f32 %v6735_v56, %v14736_v23 }
 0x5ba   : > { %8171 = vmatmul.bf16.gmra.mxu1 %v15785_v6 }
 0x5bf   : > { %v6737_v49 = vpop.f32.mrf.mxu1 }
 0x5c0   : > { %v15057_v62 = vadd.f32 %v6737_v49, %v14773_v55 }
 0x5c1   : > { %7967 = vmatmul.bf16.gmra.mxu0 %v7807_v53 }
 0x5c7   : > { %v6740_v41 = vpop.f32.mrf.mxu1 }
 0x5c8   : > { %v15060_v46 = vadd.f32 %v6740_v41, %v14794_v44 }
 0x5ca   : > { %8176 = vmatmul.bf16.gmra.mxu1 %v15786_v45 }
 0x5cf   : > { %v6742_v23 = vpop.f32.mrf.mxu1 }
 0x5d0   : > { %v15064_v39 = vadd.f32 %v6742_v23, %v14816_v21 }
 0x5d7   : > { %v8142_v12 = vpop.f32.mrf.mxu1 }
 0x5d8   : > { %v8232_v37 = vadd.f32 %v8142_v12, %v14834_v50 }
 0x5da   : > { %8181 = vmatmul.bf16.gmra.mxu1 %v15787_v31  ;;  %v8539_v55 = vadd.f32 %v14886_v48, %v8232_v37 }
 0x5dc   : > { %v8579_v36 = vadd.f32 %v15072_v4, %v8539_v55  ;;  %v8474_v55 = vpop.f32.mrf.mxu2 }
 0x5de   : > { %v8615_v43 = vmax.f32 %v8579_v36, 0.0  ;;  %v7417_v36 = vpop.f32.mrf.mxu3 }
 0x5df   : > { %v8144_v44 = vpop.f32.mrf.mxu1 }
 0x5e0   : > { %v8233_v63 = vadd.f32 %v8144_v44, %v14856_v34  ;;  %v15788_v34 = vld [vmem:[#allocation78_spill] sm:$0xff]  ;;  %v15789_v44 = vld [vmem:[#allocation36_spill] sm:$0xff] }
 0x5e2   : > { %v8540_v21 = vadd.f32 %v14906_v3, %v8233_v63 }
 0x5e4   : > { %v8580_v50 = vadd.f32 %v15072_v4, %v8540_v21 }
 0x5e6   : > { %v8616_v56 = vmax.f32 %v8580_v50, 0.0  ;;  %v8476_v50 = vpop.f32.mrf.mxu2 }
 0x5e7   : > { %v8147_v48 = vpop.f32.mrf.mxu1 }
 0x5e8   : > { %v10489_v6 = vpack.c.bf16 %v8616_v56, %v8615_v43  ;;  %v8234_v47 = vadd.f32 %v8147_v48, %v14876_v8  ;;  %v7913_v56 = vpop.f32.mrf.mxu0 }
 0x5ea   : > { %10490 = vst [vmem:[%s15081_s28] sm:$0xff] %v10489_v6   ;;  %8186 = vmatmul.bf16.gmra.mxu1 %v15788_v34  ;;  %v8541_v17 = vadd.f32 %v14930_v13, %v8234_v47 }
 0x5ec   : > { %v8581_v49 = vadd.f32 %v15072_v4, %v8541_v17  ;;  %v7419_v17 = vpop.f32.mrf.mxu3 }
 0x5ee   : > { %v8617_v23 = vmax.f32 %v8581_v49, 0.0 }
 0x5ef   : > { %v8149_v3 = vpop.f32.mrf.mxu1 }
 0x5f0   : > { %v8235_v53 = vadd.f32 %v8149_v3, %v14893_v60 }
 0x5f2   : > { %v8542_v41 = vadd.f32 %v14951_v42, %v8235_v53  ;;  %v7915_v53 = vpop.f32.mrf.mxu0 }
 0x5f4   : > { %v8582_v45 = vadd.f32 %v15072_v4, %v8542_v41 }
 0x5f6   : > { %v8618_v12 = vmax.f32 %v8582_v45, 0.0 }
 0x5f7   : > { %v8152_v37 = vpop.f32.mrf.mxu1 }
 0x5f8   : > { %v10494_v31 = vpack.c.bf16 %v8618_v12, %v8617_v23  ;;  %v8236_v8 = vadd.f32 %v8152_v37, %v14913_v52  ;;  %v15107_v12 = vpop.f32.mrf.mxu3 }
 0x5fa   : > { %10619 = vst [vmem:[%s15081_s28 + $0x8] sm:$0xff] %v10494_v31   ;;  %8191 = vmatmul.bf16.gmra.mxu1 %v15789_v44  ;;  %v8543_v13 = vadd.f32 %v14965_v40, %v8236_v8  ;;  %v15790_v40 = vld [vmem:[#allocation17_spill] sm:$0xff] }
 0x5fc   : > { %v8583_v42 = vadd.f32 %v15072_v4, %v8543_v13  ;;  %v15109_v13 = vpop.f32.mrf.mxu0 }
 0x5fe   : > { %v8619_v48 = vmax.f32 %v8583_v42, 0.0 }
 0x5ff   : > { %v8154_v60 = vpop.f32.mrf.mxu1 }
 0x600   : > { %v8237_v63 = vadd.f32 %v8154_v60, %v14928_v11  ;;  %v8479_v11 = vpop.f32.mrf.mxu2  ;;  %v15791_v60 = vld [vmem:[#allocation29_spill] sm:$0xff] }
 0x602   : > { %v8544_v21 = vadd.f32 %v14981_v14, %v8237_v63  ;;  %v15115_v63 = vpop.f32.mrf.mxu3 }
 0x604   : > { %v8584_v43 = vadd.f32 %v15072_v4, %v8544_v21 }
 0x606   : > { %v8620_v6 = vmax.f32 %v8584_v43, 0.0 }
 0x607   : > { %v8157_v47 = vpop.f32.mrf.mxu1 }
 0x608   : > { %v10499_v52 = vpack.c.bf16 %v8620_v6, %v8619_v48  ;;  %v8238_v34 = vadd.f32 %v8157_v47, %v14943_v61  ;;  %v8481_v31 = vpop.f32.mrf.mxu2  ;;  %v15122_v6 = vpop.f32.mrf.mxu0 }
 0x60a   : > { %10620 = vst [vmem:[%s15081_s28 + $0x10] sm:$0xff] %v10499_v52   ;;  %8196 = vmatmul.bf16.gmra.mxu1 %v15790_v40  ;;  %v8545_v3 = vadd.f32 %v14995_v19, %v8238_v34 }
 0x60c   : > { %v8585_v41 = vadd.f32 %v15072_v4, %v8545_v3 }
 0x60e   : > { %v8621_v61 = vmax.f32 %v8585_v41, 0.0 }
 0x60f   : > { %v8159_v14 = vpop.f32.mrf.mxu1 }
 0x610   : > { %v8239_v49 = vadd.f32 %v8159_v14, %v14958_v35  ;;  %v15118_v21 = vpop.f32.mrf.mxu2 }
 0x612   : > { %v8546_v45 = vadd.f32 %v15008_v38, %v8239_v49  ;;  %v15132_v49 = vpop.f32.mrf.mxu0 }
 0x614   : > { %v8586_v23 = vadd.f32 %v15072_v4, %v8546_v45 }
 0x616   : > { %v8622_v37 = vmax.f32 %v8586_v23, 0.0 }
 0x617   : > { %v8162_v8 = vpop.f32.mrf.mxu1 }
 0x618   : > { %v10504_v44 = vpack.c.bf16 %v8622_v37, %v8621_v61  ;;  %v8240_v19 = vadd.f32 %v8162_v8, %v14971_v0  ;;  %v15130_v14 = vpop.f32.mrf.mxu2  ;;  %v15793_v37 = vld [vmem:[#allocation70_spill] sm:$0xff] }
 0x619   : > { %v6993_v8 = vadd.f32 %v15793_v37, %v14777_v5  ;;  %v15795_v5 = vld [vmem:[#allocation71_spill] sm:$0xff] }
 0x61a   : > { %10621 = vst [vmem:[%s15081_s28 + $0x18] sm:$0xff] %v10504_v44   ;;  %8201 = vmatmul.bf16.gmra.mxu1 %v15791_v60  ;;  %v8547_v35 = vadd.f32 %v15021_v28, %v8240_v19  ;;  %v15125_v28 = vpop.f32.mrf.mxu3 }
 0x61b   : > { %v7489_v60 = vadd.f32 %v7417_v36, %v6993_v8  ;;  %v8268_v36 = vld [vmem:[#allocation2 + $0xa8] sm:$0x3] }
 0x61c   : > { %v8587_v43 = vadd.f32 %v15072_v4, %v8547_v35  ;;  %v15796_v8 = vld [vmem:[#allocation72_spill] sm:$0xff] }
 0x61e   : > { %v8623_v47 = vmax.f32 %v8587_v43, 0.0  ;;  %v7985_v43 = vadd.f32 %v7913_v56, %v7489_v60 }
 0x61f   : > { %v8164_v38 = vpop.f32.mrf.mxu1 }
 0x620   : > { %v8241_v42 = vadd.f32 %v8164_v38, %v14983_v20  ;;  %v15792_v20 = vld [vmem:[#allocation19_spill] sm:$0xff]  ;;  %v15141_v19 = vpop.f32.mrf.mxu2 }
 0x622   : > { %v8548_v48 = vadd.f32 %v15032_v24, %v8241_v42  ;;  %v15138_v44 = vpop.f32.mrf.mxu3 }
 0x624   : > { %v8588_v0 = vadd.f32 %v15072_v4, %v8548_v48  ;;  %v15794_v48 = vld [vmem:[#allocation11_spill] sm:$0xff] }
 0x626   : > { %v8624_v52 = vmax.f32 %v8588_v0, 0.0 }
 0x627   : > { %v8167_v34 = vpop.f32.mrf.mxu1 }
 0x628   : > { %v10509_v40 = vpack.c.bf16 %v8624_v52, %v8623_v47  ;;  %v8242_v3 = vadd.f32 %v8167_v34, %v14993_v58 }
 0x62a   : > { %10622 = vst [vmem:[%s15081_s28 + $0x20] sm:$0xff] %v10509_v40   ;;  %8206 = vmatmul.bf16.gmra.mxu1 %v15792_v20  ;;  %v8549_v24 = vadd.f32 %v8474_v55, %v8242_v3  ;;  %v15143_v55 = vpop.f32.mrf.mxu0  ;;  %v15149_v34 = vpop.f32.mrf.mxu3 }
 0x62b   : > { %v8491_v3 = vpop.f32.mrf.mxu2 }
 0x62c   : > { %v8589_v23 = vadd.f32 %v15072_v4, %v8549_v24  ;;  %v8287_v24 = vunpack.c.l.b16 %v8268_v36 }
 0x62e   : > { %v8625_v35 = vmax.f32 %v8589_v23, 0.0  ;;  %v8288_v56 = vpack.c.b16 %v8287_v24, %v8287_v24 }
 0x62f   : > { %v8169_v41 = vpop.f32.mrf.mxu1 }
 0x630   : > { %v8243_v45 = vadd.f32 %v8169_v41, %v15003_v54  ;;  %v8369_v37 = vshll.u32 %v8288_v56, 16 }
 0x632   : > { %v8550_v61 = vadd.f32 %v8476_v50, %v8243_v45  ;;  %v6994_v50 = vadd.f32 %v15794_v48, %v14799_v2  ;;  %v15151_v45 = vpop.f32.mrf.mxu0  ;;  %v7434_v48 = vpop.f32.mrf.mxu3 }
 0x634   : > { %v8590_v58 = vadd.f32 %v15072_v4, %v8550_v61  ;;  %v7490_v47 = vadd.f32 %v7419_v17, %v6994_v50  ;;  %v8366_v61 = vshrl.u32 %v8288_v56, 16  ;;  %v6995_v17 = vadd.f32 %v15796_v8, %v14820_v1  ;;  %v8494_v50 = vpop.f32.mrf.mxu2  ;;  %v15798_v1 = vld [vmem:[#allocation13_spill] sm:$0xff] }
 0x636   : > { %v8626_v38 = vmax.f32 %v8590_v58, 0.0  ;;  %v7986_v52 = vadd.f32 %v7915_v53, %v7490_v47  ;;  %v8371_v58 = vrot.slane %v8369_v37, 2  ;;  %v7491_v60 = vadd.f32 %v15107_v12, %v6995_v17 }
 0x637   : > { %v8172_v42 = vpop.f32.mrf.mxu1 }
 0x638   : > { %v10514_v54 = vpack.c.bf16 %v8626_v38, %v8625_v35  ;;  %v8244_v0 = vadd.f32 %v8172_v42, %v7985_v43 }
 0x63a   : > { %10623 = vst [vmem:[%s15081_s28 + $0x28] sm:$0xff] %v10514_v54   ;;  %8211 = vmatmul.bf16.gmra.mxu1 %v15795_v5  ;;  %v8551_v40 = vadd.f32 %v8479_v11, %v8244_v0  ;;  %v8368_v11 = vrot.slane %v8366_v61, 1  ;;  %v7987_v54 = vadd.f32 %v15109_v13, %v7491_v60  ;;  %v15797_v5 = vld [vmem:[#allocation26_spill] sm:$0xff]  ;;  %v7930_v12 = vpop.f32.mrf.mxu0  ;;  %v7437_v56 = vpop.f32.mrf.mxu3  ;;  %v15801_v60 = vld [vmem:[#allocation23_spill] sm:$0xff] }
 0x63b   : > { %v6996_v47 = vadd.f32 %v15798_v1, %v15797_v5  ;;  %v15800_v61 = vld [vmem:[#allocation34_spill] sm:$0xff] }
 0x63c   : > { %v8591_v23 = vadd.f32 %v15072_v4, %v8551_v40  ;;  %v8372_v43 = vor.u32 %v8371_v58, %v8368_v11  ;;  %v15799_v40 = vld [vmem:[#allocation31_spill] sm:$0xff]  ;;  %v6997_v37 = vadd.f32 %v15800_v61, %v14860_v22 }
 0x63d   : > { %v7492_v36 = vadd.f32 %v15115_v63, %v6996_v47 }
 0x63e   : > { %v8627_v35 = vmax.f32 %v8591_v23, 0.0  ;;  %v8373_v0 = vsel %vm2880_vm2, %v15026_v33, %v8372_v43  ;;  %v7493_v63 = vadd.f32 %v15125_v28, %v6997_v37  ;;  %v15806_v37 = vld [vmem:[#allocation32_spill] sm:$0xff] }
 0x63f   : > { %v8174_v20 = vpop.f32.mrf.mxu1  ;;  %8533 = vmatmul.bf16.gmra.mxu2 %v8373_v0 }
 0x640   : > { %v8245_v41 = vadd.f32 %v8174_v20, %v7986_v52  ;;  %v7988_v20 = vadd.f32 %v15122_v6, %v7492_v36  ;;  %v7989_v11 = vadd.f32 %v15132_v49, %v7493_v63 }
 0x642   : > { %v8552_v2 = vadd.f32 %v8481_v31, %v8245_v41  ;;  %v7933_v17 = vpop.f32.mrf.mxu0  ;;  %v7439_v43 = vpop.f32.mrf.mxu3 }
 0x644   : > { %v8592_v53 = vadd.f32 %v15072_v4, %v8552_v2  ;;  %v8496_v2 = vpop.f32.mrf.mxu2 }
 0x646   : > { %v8628_v38 = vmax.f32 %v8592_v53, 0.0 }
 0x647   : > { %v8177_v42 = vpop.f32.mrf.mxu1 }
 0x648   : > { %v10519_v31 = vpack.c.bf16 %v8628_v38, %v8627_v35  ;;  %v8246_v52 = vadd.f32 %v8177_v42, %v7987_v54  ;;  %v15802_v35 = vld [vmem:[#allocation75_spill] sm:$0xff]  ;;  %v15803_v42 = vld [vmem:[#allocation48_spill] sm:$0xff] }
 0x649   : > { %v6998_v38 = vadd.f32 %v15802_v35, %v15801_v60 }
 0x64a   : > { %10624 = vst [vmem:[%s15081_s28 + $0x30] sm:$0xff] %v10519_v31   ;;  %8216 = vmatmul.bf16.gmra.mxu1 %v15799_v40  ;;  %v8553_v13 = vadd.f32 %v15118_v21, %v8246_v52  ;;  %v7935_v0 = vpop.f32.mrf.mxu0  ;;  %v8065_v52 = vrot.slane %v15048_v26, 1  ;;  %v15804_v40 = vld [vmem:[#allocation12_spill] sm:$0xff] }
 0x64b   : > { %v7494_v22 = vadd.f32 %v15138_v44, %v6998_v38  ;;  %v6999_v36 = vadd.f32 %v15804_v40, %v14897_v25  ;;  %v15808_v38 = vld [vmem:[#allocation14_spill] sm:$0xff] }
 0x64c   : > { %v8593_v33 = vadd.f32 %v15072_v4, %v8553_v13  ;;  %v8499_v54 = vpop.f32.mrf.mxu2  ;;  %v7442_v13 = vpop.f32.mrf.mxu3 }
 0x64d   : > { %v7990_v31 = vadd.f32 %v15143_v55, %v7494_v22 }
 0x64e   : > { %v8629_v6 = vmax.f32 %v8593_v33, 0.0  ;;  %v15805_v33 = vrot.slane %v14742_v16, 1 }
 0x64f   : > { %v8179_v24 = vpop.f32.mrf.mxu1 }
 0x650   : > { %v8247_v41 = vadd.f32 %v8179_v24, %v7988_v20  ;;  %v7495_v20 = vadd.f32 %v15149_v34, %v6999_v36 }
 0x652   : > { %v8554_v23 = vadd.f32 %v15130_v14, %v8247_v41  ;;  %v7938_v26 = vpop.f32.mrf.mxu0 }
 0x654   : > { %v8594_v8 = vadd.f32 %v15072_v4, %v8554_v23  ;;  %v8066_v23 = vsel %vm2235_vm1, %v15805_v33, %v8065_v52 }
 0x656   : > { %v8630_v53 = vmax.f32 %v8594_v8, 0.0  ;;  %v15807_v8 = vld [vmem:[#allocation77_spill] sm:$0xff] }
 0x657   : > { %v8182_v21 = vpop.f32.mrf.mxu1  ;;  %v7000_v25 = vadd.f32 %v15807_v8, %v15806_v37 }
 0x658   : > { %v10524_v58 = vpack.c.bf16 %v8630_v53, %v8629_v6  ;;  %v8248_v14 = vadd.f32 %v8182_v21, %v7989_v11  ;;  %v7444_v11 = vpop.f32.mrf.mxu3 }
 0x659   : > { %v7496_v34 = vadd.f32 %v7434_v48, %v7000_v25 }
 0x65a   : > { %10625 = vst [vmem:[%s15081_s28 + $0x38] sm:$0xff] %v10524_v58   ;;  %8221 = vmatmul.bf16.gmra.mxu1 %v15803_v42  ;;  %v8555_v28 = vadd.f32 %v15141_v19, %v8248_v14  ;;  %v8501_v19 = vpop.f32.mrf.mxu2  ;;  %v7001_v14 = vadd.f32 %v15808_v38, %v14933_v9 }
 0x65b   : > { %v7992_v6 = vadd.f32 %v7930_v12, %v7496_v34 }
 0x65c   : > { %v8595_v49 = vadd.f32 %v15072_v4, %v8555_v28  ;;  %v7497_v22 = vadd.f32 %v7437_v56, %v7001_v14 }
 0x65e   : > { %v8631_v55 = vmax.f32 %v8595_v49, 0.0  ;;  %v7993_v12 = vadd.f32 %v7933_v17, %v7497_v22  ;;  %v15811_v17 = vld [vmem:[#allocation80_spill] sm:$0xff] }
 0x65f   : > { %v8184_v5 = vpop.f32.mrf.mxu1 }
 0x660   : > { %v8249_v1 = vadd.f32 %v8184_v5, %v7990_v31  ;;  %v15809_v5 = vld [vmem:[#allocation53_spill] sm:$0xff] }
 0x662   : > { %v8556_v47 = vadd.f32 %v8491_v3, %v8249_v1  ;;  %v7991_v3 = vadd.f32 %v15151_v45, %v7495_v20  ;;  %v8504_v16 = vpop.f32.mrf.mxu2  ;;  %v7940_v45 = vpop.f32.mrf.mxu0  ;;  %v15810_v1 = vld [vmem:[#allocation18_spill] sm:$0xff] }
 0x663   : > { %v7002_v49 = vadd.f32 %v15810_v1, %v15809_v5 }
 0x664   : > { %v8596_v44 = vadd.f32 %v15072_v4, %v8556_v47  ;;  %v7447_v47 = vpop.f32.mrf.mxu3 }
 0x666   : > { %v8632_v24 = vmax.f32 %v8596_v44, 0.0 }
 0x667   : > { %v8187_v41 = vpop.f32.mrf.mxu1 }
 0x668   : > { %v10529_v61 = vpack.c.bf16 %v8632_v24, %v8631_v55  ;;  %v8250_v63 = vadd.f32 %v8187_v41, %v7991_v3  ;;  %v7003_v41 = vadd.f32 %v15811_v17, %v14961_v15 }
 0x66a   : > { %10626 = vst [vmem:[%s15081_s28 + $0x40] sm:$0xff] %v10529_v61   ;;  %8226 = vmatmul.bf16.gmra.mxu1 %v8066_v23  ;;  %v8557_v53 = vadd.f32 %v8494_v50, %v8250_v63  ;;  %v8506_v40 = vpop.f32.mrf.mxu2  ;;  %v7943_v36 = vpop.f32.mrf.mxu0  ;;  %v7499_v61 = vadd.f32 %v7442_v13, %v7003_v41  ;;  %v15812_v63 = vld [vmem:[#allocation28_spill] sm:$0xff] }
 0x66b   : > { %v7004_v34 = vadd.f32 %v15812_v63, %v14974_v57 }
 0x66c   : > { %v8597_v60 = vadd.f32 %v15072_v4, %v8557_v53  ;;  %v7449_v33 = vpop.f32.mrf.mxu3 }
 0x66e   : > { %v8633_v31 = vmax.f32 %v8597_v60, 0.0 }
 0x66f   : > { %v8189_v21 = vpop.f32.mrf.mxu1 }
 0x670   : > { %v8251_v58 = vadd.f32 %v8189_v21, %v7992_v6 }
 0x672   : > { %v8558_v35 = vadd.f32 %v8496_v2, %v8251_v58  ;;  %v7498_v2 = vadd.f32 %v7439_v43, %v7002_v49  ;;  %v8509_v3 = vpop.f32.mrf.mxu2  ;;  %v7945_v43 = vpop.f32.mrf.mxu0 }
 0x674   : > { %v8598_v42 = vadd.f32 %v15072_v4, %v8558_v35  ;;  %v7994_v44 = vadd.f32 %v7935_v0, %v7498_v2  ;;  %v7995_v0 = vadd.f32 %v7938_v26, %v7499_v61  ;;  %v7452_v53 = vpop.f32.mrf.mxu3  ;;  %v15813_v26 = vld [vmem:[#allocation38_spill] sm:$0xff] }
 0x676   : > { %v8634_v28 = vmax.f32 %v8598_v42, 0.0  ;;  %v7005_v42 = vadd.f32 %v15813_v26, %v14986_v29 }
 0x677   : > { %v8192_v48 = vpop.f32.mrf.mxu1 }
 0x678   : > { %v10534_v50 = vpack.c.bf16 %v8634_v28, %v8633_v31  ;;  %v8252_v52 = vadd.f32 %v8192_v48, %v7993_v12  ;;  %v7501_v57 = vadd.f32 %v7447_v47, %v7005_v42 }
 0x67a   : > { %10627 = vst [vmem:[%s15081_s28 + $0x48] sm:$0xff] %v10534_v50   ;;  %v8559_v20 = vadd.f32 %v8499_v54, %v8252_v52  ;;  %v8511_v58 = vpop.f32.mrf.mxu2  ;;  %v7948_v13 = vpop.f32.mrf.mxu0  ;;  %v15814_v50 = vld [vmem:[#allocation16_spill] sm:$0xff] }
 0x67b   : > { %v7006_v5 = vadd.f32 %v15814_v50, %v14998_v51 }
 0x67c   : > { %v8599_v56 = vadd.f32 %v15072_v4, %v8559_v20  ;;  %v7454_v48 = vpop.f32.mrf.mxu3 }
 0x67d   : > { %v7502_v52 = vadd.f32 %v7449_v33, %v7006_v5 }
 0x67e   : > { %v8635_v37 = vmax.f32 %v8599_v56, 0.0 }
 0x67f   : > { %v8194_v9 = vpop.f32.mrf.mxu1 }
 0x680   : > { %v8253_v55 = vadd.f32 %v8194_v9, %v7994_v44 }
 0x682   : > { %v8560_v24 = vadd.f32 %v8501_v19, %v8253_v55  ;;  %v7500_v19 = vadd.f32 %v7444_v11, %v7004_v34  ;;  %v8514_v12 = vpop.f32.mrf.mxu2  ;;  %v7950_v49 = vpop.f32.mrf.mxu0 }
 0x684   : > { %v8600_v23 = vadd.f32 %v15072_v4, %v8560_v24  ;;  %v7996_v21 = vadd.f32 %v7940_v45, %v7500_v19  ;;  %v7997_v45 = vadd.f32 %v7943_v36, %v7501_v57  ;;  %v7457_v47 = vpop.f32.mrf.mxu3  ;;  %v15815_v36 = vld [vmem:[#allocation39_spill] sm:$0xff] }
 0x685   : > { %v7007_v56 = vadd.f32 %v15815_v36, %v15006_v18  ;;  %v15820_v36 = vld [vmem:[#allocation21_spill] sm:$0xff] }
 0x686   : > { %v8636_v8 = vmax.f32 %v8600_v23, 0.0 }
 0x687   : > { %v8197_v25 = vpop.f32.mrf.mxu1  ;;  %v7503_v17 = vadd.f32 %v7452_v53, %v7007_v56  ;;  %v7012_v56 = vadd.f32 %v15820_v36, %v15045_v10 }
 0x688   : > { %v10539_v54 = vpack.c.bf16 %v8636_v8, %v8635_v37  ;;  %v8254_v6 = vadd.f32 %v8197_v25, %v7995_v0  ;;  %v15816_v37 = vld [vmem:[#allocation20_spill] sm:$0xff] }
 0x689   : > { %v7999_v61 = vadd.f32 %v7948_v13, %v7503_v17  ;;  %v7008_v8 = vadd.f32 %v15816_v37, %v15016_v32 }
 0x68a   : > { %10628 = vst [vmem:[%s15081_s28 + $0x50] sm:$0xff] %v10539_v54   ;;  %v8561_v15 = vadd.f32 %v8504_v16, %v8254_v6  ;;  %v8516_v55 = vpop.f32.mrf.mxu2  ;;  %v7953_v51 = vpop.f32.mrf.mxu0 }
 0x68b   : > { %v7504_v25 = vadd.f32 %v7454_v48, %v7008_v8 }
 0x68c   : > { %v8601_v38 = vadd.f32 %v15072_v4, %v8561_v15  ;;  %v7459_v0 = vpop.f32.mrf.mxu3  ;;  %v15817_v15 = vld [vmem:[#allocation30_spill] sm:$0xff] }
 0x68d   : > { %v8000_v63 = vadd.f32 %v7950_v49, %v7504_v25 }
 0x68e   : > { %v8637_v31 = vmax.f32 %v8601_v38, 0.0 }
 0x68f   : > { %v8199_v60 = vpop.f32.mrf.mxu1 }
 0x690   : > { %v8255_v35 = vadd.f32 %v8199_v60, %v7996_v21 }
 0x692   : > { %v8562_v14 = vadd.f32 %v8506_v40, %v8255_v35  ;;  %v7998_v40 = vadd.f32 %v7945_v43, %v7502_v52  ;;  %v8519_v54 = vpop.f32.mrf.mxu2  ;;  %v7955_v18 = vpop.f32.mrf.mxu0 }
 0x694   : > { %v8602_v22 = vadd.f32 %v15072_v4, %v8562_v14  ;;  %v7462_v35 = vpop.f32.mrf.mxu3 }
 0x696   : > { %v8638_v28 = vmax.f32 %v8602_v22, 0.0 }
 0x697   : > { %v8202_v11 = vpop.f32.mrf.mxu1 }
 0x698   : > { %v10544_v16 = vpack.c.bf16 %v8638_v28, %v8637_v31  ;;  %v8256_v1 = vadd.f32 %v8202_v11, %v7997_v45  ;;  %v15818_v31 = vld [vmem:[#allocation40_spill] sm:$0xff] }
 0x699   : > { %v7010_v28 = vadd.f32 %v15818_v31, %v15037_v27  ;;  %v15823_v31 = vld [vmem:[#allocation24_spill] sm:$0xff] }
 0x69a   : > { %10629 = vst [vmem:[%s15081_s28 + $0x58] sm:$0xff] %v10544_v16   ;;  %v8563_v2 = vadd.f32 %v8509_v3, %v8256_v1  ;;  %v8521_v14 = vpop.f32.mrf.mxu2  ;;  %v7958_v57 = vpop.f32.mrf.mxu0 }
 0x69b   : > { %v7506_v48 = vadd.f32 %v7459_v0, %v7010_v28  ;;  %v7015_v28 = vadd.f32 %v15823_v31, %v15060_v46 }
 0x69c   : > { %v8603_v20 = vadd.f32 %v15072_v4, %v8563_v2 }
 0x69d   : > { %v8002_v45 = vadd.f32 %v7955_v18, %v7506_v48 }
 0x69e   : > { %v8639_v41 = vmax.f32 %v8603_v20, 0.0 }
 0x69f   : > { %v8204_v29 = vpop.f32.mrf.mxu1 }
 0x6a0   : > { %v8257_v44 = vadd.f32 %v8204_v29, %v7998_v40  ;;  %v15819_v40 = vld [vmem:[#allocation54_spill] sm:$0xff] }
 0x6a1   : > { %v7011_v2 = vadd.f32 %v15819_v40, %v15041_v30 }
 0x6a2   : > { %v8564_v9 = vadd.f32 %v8511_v58, %v8257_v44  ;;  %v7009_v58 = vadd.f32 %v15817_v15, %v15024_v59  ;;  %v8524_v5 = vpop.f32.mrf.mxu2  ;;  %v7960_v52 = vpop.f32.mrf.mxu0  ;;  %v15822_v15 = vld [vmem:[#allocation42_spill] sm:$0xff] }
 0x6a3   : > { %v7507_v27 = vadd.f32 %v7462_v35, %v7011_v2 }
 0x6a4   : > { %v8604_v24 = vadd.f32 %v15072_v4, %v8564_v9  ;;  %v7505_v32 = vadd.f32 %v7457_v47, %v7009_v58  ;;  %v7014_v58 = vadd.f32 %v15822_v15, %v15057_v62 }
 0x6a5   : > { %v8003_v9 = vadd.f32 %v7958_v57, %v7507_v27 }
 0x6a6   : > { %v8640_v23 = vmax.f32 %v8604_v24, 0.0  ;;  %v8001_v42 = vadd.f32 %v7953_v51, %v7505_v32 }
 0x6a7   : > { %v8207_v33 = vpop.f32.mrf.mxu1 }
 0x6a8   : > { %v10549_v3 = vpack.c.bf16 %v8640_v23, %v8639_v41  ;;  %v8258_v43 = vadd.f32 %v8207_v33, %v7999_v61 }
 0x6aa   : > { %10630 = vst [vmem:[%s15081_s28 + $0x60] sm:$0xff] %v10549_v3   ;;  %v8565_v34 = vadd.f32 %v8514_v12, %v8258_v43  ;;  %v7464_v12 = vpop.f32.mrf.mxu3  ;;  %v8526_v17 = vpop.f32.mrf.mxu2  ;;  %v15821_v43 = vld [vmem:[#allocation57_spill] sm:$0xff] }
 0x6ab   : > { %v7508_v41 = vadd.f32 %v7464_v12, %v7012_v56  ;;  %v7963_v23 = vpop.f32.mrf.mxu0  ;;  %v7013_v25 = vadd.f32 %v15821_v43, %v15052_v7 }
 0x6ac   : > { %v8605_v53 = vadd.f32 %v15072_v4, %v8565_v34 }
 0x6ad   : > { %v8004_v33 = vadd.f32 %v7960_v52, %v7508_v41 }
 0x6ae   : > { %v8641_v13 = vmax.f32 %v8605_v53, 0.0 }
 0x6af   : > { %v8209_v6 = vpop.f32.mrf.mxu1 }
 0x6b0   : > { %v8259_v19 = vadd.f32 %v8209_v6, %v8000_v63 }
 0x6b2   : > { %v8566_v21 = vadd.f32 %v8516_v55, %v8259_v19  ;;  %v7467_v24 = vpop.f32.mrf.mxu3 }
 0x6b3   : > { %v7509_v63 = vadd.f32 %v7467_v24, %v7013_v25  ;;  %v7965_v6 = vpop.f32.mrf.mxu0 }
 0x6b4   : > { %v8606_v60 = vadd.f32 %v15072_v4, %v8566_v21 }
 0x6b5   : > { %v8005_v53 = vadd.f32 %v7963_v23, %v7509_v63 }
 0x6b6   : > { %v8642_v38 = vmax.f32 %v8606_v60, 0.0 }
 0x6b7   : > { %v8212_v26 = vpop.f32.mrf.mxu1 }
 0x6b8   : > { %v10554_v22 = vpack.c.bf16 %v8642_v38, %v8641_v13  ;;  %v8260_v11 = vadd.f32 %v8212_v26, %v8001_v42 }
 0x6ba   : > { %10631 = vst [vmem:[%s15081_s28 + $0x68] sm:$0xff] %v10554_v22   ;;  %v8567_v16 = vadd.f32 %v8519_v54, %v8260_v11  ;;  %v7469_v0 = vpop.f32.mrf.mxu3  ;;  %v8529_v54 = vpop.f32.mrf.mxu2 }
 0x6bb   : > { %v7510_v32 = vadd.f32 %v7469_v0, %v7014_v58  ;;  %v7968_v42 = vpop.f32.mrf.mxu0 }
 0x6bc   : > { %v8607_v1 = vadd.f32 %v15072_v4, %v8567_v16 }
 0x6bd   : > { %v8006_v13 = vadd.f32 %v7965_v6, %v7510_v32 }
 0x6be   : > { %v8643_v44 = vmax.f32 %v8607_v1, 0.0  ;;  %v15824_v1 = vld [vmem:[#allocation61_spill] sm:$0xff] }
 0x6bf   : > { %v8214_v59 = vpop.f32.mrf.mxu1 }
 0x6c0   : > { %v8261_v50 = vadd.f32 %v8214_v59, %v8002_v45 }
 0x6c2   : > { %v8568_v49 = vadd.f32 %v8521_v14, %v8261_v50  ;;  %v7472_v35 = vpop.f32.mrf.mxu3  ;;  %v8531_v38 = vpop.f32.mrf.mxu2 }
 0x6c3   : > { %v7511_v62 = vadd.f32 %v7472_v35, %v7015_v28  ;;  %v7970_v40 = vpop.f32.mrf.mxu0 }
 0x6c4   : > { %v8608_v29 = vadd.f32 %v15072_v4, %v8568_v49  ;;  %v7016_v49 = vadd.f32 %v15824_v1, %v15064_v39 }
 0x6c5   : > { %v8007_v12 = vadd.f32 %v7968_v42, %v7511_v62 }
 0x6c6   : > { %v8644_v47 = vmax.f32 %v8608_v29, 0.0 }
 0x6c7   : > { %v8217_v20 = vpop.f32.mrf.mxu1 }
 0x6c8   : > { %v10559_v55 = vpack.c.bf16 %v8644_v47, %v8643_v44  ;;  %v8262_v51 = vadd.f32 %v8217_v20, %v8003_v9 }
 0x6ca   : > { %10632 = vst [vmem:[%s15081_s28 + $0x70] sm:$0xff] %v10559_v55   ;;  %v8569_v61 = vadd.f32 %v8524_v5, %v8262_v51  ;;  %v8534_v16 = vpop.f32.mrf.mxu2  ;;  %v7474_v5 = vpop.f32.mrf.mxu3 }
 0x6cb   : > { %v7512_v2 = vadd.f32 %v7474_v5, %v7016_v49 }
 0x6cc   : > { %v8609_v37 = vadd.f32 %v15072_v4, %v8569_v61 }
 0x6cd   : > { %v8008_v46 = vadd.f32 %v7970_v40, %v7512_v2 }
 0x6ce   : > { %v8645_v34 = vmax.f32 %v8609_v37, 0.0 }
 0x6cf   : > { %v8219_v30 = vpop.f32.mrf.mxu1 }
 0x6d0   : > { %v8263_v3 = vadd.f32 %v8219_v30, %v8004_v33 }
 0x6d2   : > { %v8570_v8 = vadd.f32 %v8526_v17, %v8263_v3  ;;  %v8536_v47 = vpop.f32.mrf.mxu2 }
 0x6d4   : > { %v8610_v10 = vadd.f32 %v15072_v4, %v8570_v8 }
 0x6d6   : > { %v8646_v18 = vmax.f32 %v8610_v10, 0.0 }
 0x6d7   : > { %v8222_v19 = vpop.f32.mrf.mxu1 }
 0x6d8   : > { %v10564_v21 = vpack.c.bf16 %v8646_v18, %v8645_v34  ;;  %v8264_v60 = vadd.f32 %v8222_v19, %v8005_v53 }
 0x6da   : > { %10633 = vst [vmem:[%s15081_s28 + $0x78] sm:$0xff] %v10564_v21   ;;  %v8571_v7 = vadd.f32 %v8529_v54, %v8264_v60 }
 0x6dc   : > { %v8611_v22 = vadd.f32 %v15072_v4, %v8571_v7 }
 0x6de   : > { %v8647_v48 = vmax.f32 %v8611_v22, 0.0 }
 0x6df   : > { %v8224_v14 = vpop.f32.mrf.mxu1 }
 0x6e0   : > { %v8265_v26 = vadd.f32 %v8224_v14, %v8006_v13 }
 0x6e2   : > { %v8572_v57 = vadd.f32 %v8531_v38, %v8265_v26 }
 0x6e4   : > { %v8612_v11 = vadd.f32 %v15072_v4, %v8572_v57 }
 0x6e6   : > { %v8648_v45 = vmax.f32 %v8612_v11, 0.0 }
 0x6e7   : > { %v8227_v59 = vpop.f32.mrf.mxu1 }
 0x6e8   : > { %v10569_v50 = vpack.c.bf16 %v8648_v45, %v8647_v48  ;;  %v8266_v52 = vadd.f32 %v8227_v59, %v8007_v12 }
 0x6ea   : > { %10634 = vst [vmem:[%s15081_s28 + $0x80] sm:$0xff] %v10569_v50   ;;  %v8573_v29 = vadd.f32 %v8534_v16, %v8266_v52 }
 0x6ec   : > { %v8613_v20 = vadd.f32 %v15072_v4, %v8573_v29 }
 0x6ee   : > { %v8649_v55 = vmax.f32 %v8613_v20, 0.0 }
 0x6ef   : > { %v8229_v27 = vpop.f32.mrf.mxu1 }
 0x6f0   : > { %v8267_v44 = vadd.f32 %v8229_v27, %v8008_v46 }
 0x6f2   : > { %v8574_v9 = vadd.f32 %v8536_v47, %v8267_v44 }
 0x6f4   : > { %v8614_v39 = vadd.f32 %v15072_v4, %v8574_v9 }
 0x6f6   : > { %v8650_v36 = vmax.f32 %v8614_v39, 0.0 }
 0x6f8   : > { %v10574_v56 = vpack.c.bf16 %v8650_v36, %v8649_v55 }
 0x6fa   : > { %10635 = vst [vmem:[%s15081_s28 + $0x88] sm:$0xff] %v10574_v56  }
 0x6fb   : > { %10939 = shalt.err (!%p10936_p8)
}
 0x6fc   : > { %s10984_s20 = smov 64   ;;  %s10985_s28 = smov 4  }
 0x6fd   : > { %10791 = dma.vmem_to_hbm [thread:$0]  (%p11059_p5), %s8737_s12, 2304, %s8739_s13, %s8724_s25, %s10984_s20, %s10984_s20, %s10985_s28  }
 0x6fe PF: > { %p10803_p9 = scmp.ge.s32.totalorder %s10978_s24, 2  ;;  %s8753_s29 = sand.u32 1, %s10966_s21  }
 0x6ff   : > { %s8754_s9 = scalar_lea.sflag [#allocation5], %s8753_s29 }
 0x700   : > { %p10798_p10 = pnand %p10803_p9, %p11063_p6 }
 0x702   : > { %p10799_p11 = pneg %p10798_p10 }
 0x704   : > { %10961 = dma.done.wait (%p10799_p11), %s8754_s9, 2304  }
 0x705   : > { %10963 = vsyncadd (%p10799_p11), %s8754_s9, 4294964992  ;;  %p17_p12 = scmp.ge.s32.totalorder %s11046_s27, 4   ;;  %s15825_s21 = smov %s10970_s22 }
 0x706   : > { %s15826_s22 = smov %s10974_s23  ;;  %s15827_s23 = smov %s11057_s30 }
 0x707   : > { %s15828_s24 = smov %s11046_s27  ;;  %19 = sbr.rel (!%p17_p12) target bundleno = 4 (0x4), region = 100 }
 0x70c   :  { %8760 = vsyncpa [#allocation4], 1 }
 0x70d   :  { %8762 = vsyncpa [#allocation4 + $0x1], 1 }
 0x70e   :  { %8763 = vsyncpa [#allocation5], 1 }
 0x70f   :  { %8765 = vsyncpa [#allocation5 + $0x1], 1 }

</bundles_post_ra>
